<compile_context>
chip_gen: v7x
topology: tpu7x:2x2x1
jax: 0.10.0
libtpu: 0.0.40
codegen_flags: <defaults>
</compile_context>

<pallas_src>
import jax
import jax.numpy as jnp
import numpy as np
from jax.experimental import pallas as pl
from jax.experimental.pallas import tpu as pltpu

H_NODES = 40          # hidden width of every Linear/LayerNorm
EPS = 1e-5            # nn.LayerNorm default eps
OUT_PAD = 128         # lane-dense padded output width (real outputs = 5)
WEIGHT_DTYPE = jnp.float32   # set to jnp.bfloat16 on v6e/v7x for half the weight bytes


# ---------------------------------------------------------------------------
# Pallas kernel: one batch tile through encoder (5->2) + decoder (2->5).
# refs: x (TILE_B, 40) zero-padded, w_slab (9,40,40), v_slab (25,40),
#       w_out (40,128), b_out (1,128), out (TILE_B, 128)
# ---------------------------------------------------------------------------
def ae_kernel(x_ref, w_ref, v_ref, wo_ref, bo_ref, o_ref):
    def dot(h, w):
        # bf16 weights -> bf16 MXU pass; f32 weights -> f32 pass. f32 accumulate.
        return jnp.dot(h.astype(w.dtype), w, preferred_element_type=jnp.float32)

    def linear_silu_ln(h, wi, bi, gi, bei):
        # Just-in-time parameter loads: keep live vreg ranges short.
        w = w_ref[wi]                                   # (40, 40)
        h = dot(h, w) + v_ref[bi:bi + 1, :]             # Linear
        h = h * jax.lax.logistic(h)                     # SiLU (EUP sigmoid)
        # Fused single-pass LayerNorm statistics over the 40 real features.
        s = jnp.sum(h, axis=-1, keepdims=True)
        ss = jnp.sum(h * h, axis=-1, keepdims=True)
        mu = s * (1.0 / H_NODES)
        var = ss * (1.0 / H_NODES) - mu * mu
        inv = jax.lax.rsqrt(var + EPS)
        return (h - mu) * inv * v_ref[gi:gi + 1, :] + v_ref[bei:bei + 1, :]

    h = x_ref[...].astype(jnp.float32)                  # (TILE_B, 40), cols 5..39 are zero

    # ---- encoder: 4 x (Linear + SiLU + LayerNorm) then Linear(40 -> 2) ----
    for li in range(4):
        h = linear_silu_ln(h, li, li, 5 + li, 9 + li)
    h = dot(h, w_ref[4]) + v_ref[4:5, :]                # latent, cols 2..39 exactly zero

    # ---- decoder: 4 x (Linear + SiLU + LayerNorm) then Linear(40 -> 5) ----
    for li in range(4):
        h = linear_silu_ln(h, 5 + li, 13 + li, 17 + li, 21 + li)
    y = dot(h, wo_ref[...]) + bo_ref[...]               # (TILE_B, 128) lane-dense

    o_ref[...] = y.astype(o_ref.dtype)


# ---------------------------------------------------------------------------
# Host-side wrapper: pads batch/features, sets up the batch grid.
# ---------------------------------------------------------------------------
def autoencoder_forward(x, w_slab, v_slab, w_out, b_out, *, tile_b=256):
    assert tile_b % 8 == 0
    B, F = x.shape
    Bp = ((B + tile_b - 1) // tile_b) * tile_b
    # Pad batch to a tile multiple and features to 40 (matches the zero-padded
    # rows of the first encoder weight), so the hot path is clean 40x40 matmuls.
    xp = jnp.pad(x.astype(jnp.float32), ((0, Bp - B), (0, H_NODES - F)))

    out = pl.pallas_call(
        ae_kernel,
        out_shape=jax.ShapeDtypeStruct((Bp, OUT_PAD), jnp.float32),
        grid_spec=pltpu.PrefetchScalarGridSpec(
            num_scalar_prefetch=0,
            grid=(Bp // tile_b,),
            in_specs=[
                pl.BlockSpec((tile_b, H_NODES), lambda i: (i, 0)),       # x tile
                pl.BlockSpec(w_slab.shape, lambda i: (0, 0, 0)),         # weights (resident)
                pl.BlockSpec(v_slab.shape, lambda i: (0, 0)),            # bias/gamma/beta
                pl.BlockSpec(w_out.shape, lambda i: (0, 0)),             # output weight
                pl.BlockSpec(b_out.shape, lambda i: (0, 0)),             # output bias
            ],
            out_specs=pl.BlockSpec((tile_b, OUT_PAD), lambda i: (i, 0)),
        ),
        compiler_params=pltpu.CompilerParams(
            dimension_semantics=("parallel",),   # megacore sharding on v7x
        ),
    )(xp, w_slab, v_slab, w_out, b_out)

    return out[:B, :5]   # drop batch padding + lane padding


# ---------------------------------------------------------------------------
# Deterministic parameter init (mirrors nn.Linear / nn.LayerNorm shapes;
# weights stored pre-transposed as (in_features, out_features)).
# ---------------------------------------------------------------------------
def init_mlp_params(key, in_dim, out_dim, hidden=H_NODES):
    dims = [(in_dim, hidden), (hidden, hidden), (hidden, hidden),
            (hidden, hidden), (hidden, out_dim)]
    params = []
    for i, (din, dout) in enumerate(dims):
        key, kw, kb = jax.random.split(key, 3)
        bound = 1.0 / np.sqrt(din)
        w = jax.random.uniform(kw, (din, dout), jnp.float32, -bound, bound)
        b = jax.random.uniform(kb, (1, dout), jnp.float32, -bound, bound)
        params += [w, b]
        if i < 4:  # LayerNorm follows every Linear except the last
            params += [jnp.ones((1, hidden), jnp.float32),
                       jnp.zeros((1, hidden), jnp.float32)]
    return params


def pack_params(enc, dec, weight_dtype=WEIGHT_DTYPE):
    """Pack the 36 per-layer parameters into 4 DMA-friendly slabs."""
    (ew1, eb1, eg1, ebe1, ew2, eb2, eg2, ebe2, ew3, eb3, eg3, ebe3,
     ew4, eb4, eg4, ebe4, ew5, eb5) = enc
    (dw1, db1, dg1, dbe1, dw2, db2, dg2, dbe2, dw3, db3, dg3, dbe3,
     dw4, db4, dg4, dbe4, dw5, db5) = dec

    def pad_w(w):   # zero-pad to (40, 40)
        return jnp.pad(w, ((0, H_NODES - w.shape[0]), (0, H_NODES - w.shape[1])))

    def pad_v(v):   # zero-pad a (1, d) vector to (1, 40)
        return jnp.pad(v, ((0, 0), (0, H_NODES - v.shape[1])))

    w_slab = jnp.stack([
        pad_w(ew1), ew2, ew3, ew4, pad_w(ew5),     # encoder W1..W5
        pad_w(dw1), dw2, dw3, dw4,                 # decoder W1..W4
    ]).astype(weight_dtype)                         # (9, 40, 40)

    v_slab = jnp.concatenate(
        [pad_v(eb1), pad_v(eb2), pad_v(eb3), pad_v(eb4), pad_v(eb5),   # 0..4  enc biases
         eg1, eg2, eg3, eg4,                                           # 5..8  enc gammas
         ebe1, ebe2, ebe3, ebe4,                                       # 9..12 enc betas
         pad_v(db1), pad_v(db2), pad_v(db3), pad_v(db4),               # 13..16 dec biases
         dg1, dg2, dg3, dg4,                                           # 17..20 dec gammas
         dbe1, dbe2, dbe3, dbe4],                                      # 21..24 dec betas
        axis=0).astype(jnp.float32)                 # (25, 40)

    w_out = jnp.pad(dw5, ((0, 0), (0, OUT_PAD - dw5.shape[1]))).astype(weight_dtype)  # (40, 128)
    b_out = jnp.pad(db5, ((0, 0), (0, OUT_PAD - db5.shape[1]))).astype(jnp.float32)   # (1, 128)
    return w_slab, v_slab, w_out, b_out


# ---------------------------------------------------------------------------
# Pure-JAX reference (PyTorch f32 semantics) for correctness checking.
# ---------------------------------------------------------------------------
def reference_forward(x, enc_params, dec_params):
    def mlp(h, p):
        (w1, b1, g1, be1, w2, b2, g2, be2, w3, b3, g3, be3,
         w4, b4, g4, be4, w5, b5) = p

        def lsl(h, w, b, g, be):
            h = h @ w + b
            h = h * jax.nn.sigmoid(h)
            mu = jnp.mean(h, axis=-1, keepdims=True)
            var = jnp.mean((h - mu) ** 2, axis=-1, keepdims=True)
            return (h - mu) * jax.lax.rsqrt(var + EPS) * g + be

        h = lsl(h, w1, b1, g1, be1)
        h = lsl(h, w2, b2, g2, be2)
        h = lsl(h, w3, b3, g3, be3)
        h = lsl(h, w4, b4, g4, be4)
        return h @ w5 + b5

    z = mlp(x.astype(jnp.float32), enc_params)
    return mlp(z, dec_params)


if __name__ == "__main__":
    key = jax.random.PRNGKey(0)
    k_x, k_enc, k_dec = jax.random.split(key, 3)

    B = 1000  # deliberately not a multiple of TILE_B to exercise batch padding
    x = jax.random.normal(k_x, (B, 5), jnp.float32)   # AutoEncoder input: 5 features

    enc_params = init_mlp_params(k_enc, in_dim=5, out_dim=2)   # encoder: 5 -> 2
    dec_params = init_mlp_params(k_dec, in_dim=2, out_dim=5)   # decoder: 2 -> 5
    w_slab, v_slab, w_out, b_out = pack_params(enc_params, dec_params)

    y = autoencoder_forward(x, w_slab, v_slab, w_out, b_out, tile_b=256)
    y = jax.block_until_ready(y)

    y_ref = reference_forward(x, enc_params, dec_params)
    np.testing.assert_allclose(np.asarray(y), np.asarray(y_ref), rtol=1e-4, atol=1e-5)

    print("KERNEL_OK")
</pallas_src>

<mosaic_0001>
module attributes {stable_mosaic.version = 11 : i64} {
  func.func @ae_kernel(%arg0: i32, %arg1: memref<256x40xf32, #tpu.memory_space<vmem>>, %arg2: memref<9x40x40xf32, #tpu.memory_space<vmem>>, %arg3: memref<25x40xf32, #tpu.memory_space<vmem>>, %arg4: memref<40x128xf32, #tpu.memory_space<vmem>>, %arg5: memref<1x128xf32, #tpu.memory_space<vmem>>, %arg6: memref<256x128xf32, #tpu.memory_space<vmem>>) attributes {dimension_semantics = [#tpu.dimension_semantics<parallel>], iteration_bounds = array<i64: 4>, scalar_prefetch = 0 : i64, scratch_operands = 0 : i64, tpu.core_type = #tpu.core_type<tc>, window_params = [{transform_indices = @transform_0, window_bounds = array<i64: 256, 40>}, {pipeline_mode = #tpu.pipeline_mode<synchronous>, transform_indices = @transform_1, window_bounds = array<i64: 9, 40, 40>}, {pipeline_mode = #tpu.pipeline_mode<synchronous>, transform_indices = @transform_2, window_bounds = array<i64: 25, 40>}, {pipeline_mode = #tpu.pipeline_mode<synchronous>, transform_indices = @transform_3, window_bounds = array<i64: 40, 128>}, {pipeline_mode = #tpu.pipeline_mode<synchronous>, transform_indices = @transform_4, window_bounds = array<i64: 1, 128>}, {transform_indices = @transform_5, window_bounds = array<i64: 256, 128>}]} {
    %c0 = arith.constant 0 : index
    %c0_0 = arith.constant 0 : index
    %0 = vector.load %arg1[%c0, %c0_0] : memref<256x40xf32, #tpu.memory_space<vmem>>, vector<256x40xf32>
    %c0_1 = arith.constant 0 : index
    %c0_2 = arith.constant 0 : index
    %c0_3 = arith.constant 0 : index
    %1 = vector.load %arg2[%c0_1, %c0_2, %c0_3] : memref<9x40x40xf32, #tpu.memory_space<vmem>>, vector<1x40x40xf32>
    %2 = vector.shape_cast %1 : vector<1x40x40xf32> to vector<40x40xf32>
    %cst = arith.constant dense<0.000000e+00> : vector<256x40xf32>
    %3 = tpu.matmul %0, %2, %cst {dimension_numbers = #tpu.dot_dimension_numbers<[1], [0], [0], [1], [0, 0, 1, 1], [], []>} : vector<256x40xf32>, vector<40x40xf32>, vector<256x40xf32> -> vector<256x40xf32>
    %c0_4 = arith.constant 0 : index
    %c0_5 = arith.constant 0 : index
    %4 = vector.load %arg3[%c0_4, %c0_5] : memref<25x40xf32, #tpu.memory_space<vmem>>, vector<1x40xf32>
    %5 = vector.broadcast %4 : vector<1x40xf32> to vector<256x40xf32>
    %6 = arith.addf %3, %5 : vector<256x40xf32>
    %7 = arith.negf %6 : vector<256x40xf32>
    %8 = math.exp %7 : vector<256x40xf32>
    %cst_6 = arith.constant 1.000000e+00 : f32
    %9 = vector.broadcast %cst_6 : f32 to vector<256x40xf32>
    %10 = arith.addf %9, %8 : vector<256x40xf32>
    %11 = arith.divf %9, %10 : vector<256x40xf32>
    %12 = arith.mulf %6, %11 : vector<256x40xf32>
    %cst_7 = arith.constant dense<0.000000e+00> : vector<256xf32>
    %13 = vector.multi_reduction <add>, %12, %cst_7 [1] : vector<256x40xf32> to vector<256xf32>
    %14 = vector.shape_cast %13 : vector<256xf32> to vector<256x1xf32>
    %15 = arith.mulf %12, %12 : vector<256x40xf32>
    %cst_8 = arith.constant dense<0.000000e+00> : vector<256xf32>
    %16 = vector.multi_reduction <add>, %15, %cst_8 [1] : vector<256x40xf32> to vector<256xf32>
    %17 = vector.shape_cast %16 : vector<256xf32> to vector<256x1xf32>
    %cst_9 = arith.constant 2.500000e-02 : f32
    %18 = vector.broadcast %cst_9 : f32 to vector<256x1xf32>
    %19 = arith.mulf %14, %18 : vector<256x1xf32>
    %cst_10 = arith.constant 2.500000e-02 : f32
    %20 = vector.broadcast %cst_10 : f32 to vector<256x1xf32>
    %21 = arith.mulf %17, %20 : vector<256x1xf32>
    %22 = arith.mulf %19, %19 : vector<256x1xf32>
    %23 = arith.subf %21, %22 : vector<256x1xf32>
    %cst_11 = arith.constant 9.99999974E-6 : f32
    %24 = vector.broadcast %cst_11 : f32 to vector<256x1xf32>
    %25 = arith.addf %23, %24 : vector<256x1xf32>
    %26 = math.rsqrt %25 : vector<256x1xf32>
    %27 = vector.broadcast %19 : vector<256x1xf32> to vector<256x40xf32>
    %28 = arith.subf %12, %27 : vector<256x40xf32>
    %29 = vector.broadcast %26 : vector<256x1xf32> to vector<256x40xf32>
    %30 = arith.mulf %28, %29 : vector<256x40xf32>
    %c5 = arith.constant 5 : index
    %c0_12 = arith.constant 0 : index
    %31 = vector.load %arg3[%c5, %c0_12] : memref<25x40xf32, #tpu.memory_space<vmem>>, vector<1x40xf32>
    %32 = vector.broadcast %31 : vector<1x40xf32> to vector<256x40xf32>
    %33 = arith.mulf %30, %32 : vector<256x40xf32>
    %c9 = arith.constant 9 : index
    %c0_13 = arith.constant 0 : index
    %34 = vector.load %arg3[%c9, %c0_13] : memref<25x40xf32, #tpu.memory_space<vmem>>, vector<1x40xf32>
    %35 = vector.broadcast %34 : vector<1x40xf32> to vector<256x40xf32>
    %36 = arith.addf %33, %35 : vector<256x40xf32>
    %c1 = arith.constant 1 : index
    %c0_14 = arith.constant 0 : index
    %c0_15 = arith.constant 0 : index
    %37 = vector.load %arg2[%c1, %c0_14, %c0_15] : memref<9x40x40xf32, #tpu.memory_space<vmem>>, vector<1x40x40xf32>
    %38 = vector.shape_cast %37 : vector<1x40x40xf32> to vector<40x40xf32>
    %cst_16 = arith.constant dense<0.000000e+00> : vector<256x40xf32>
    %39 = tpu.matmul %36, %38, %cst_16 {dimension_numbers = #tpu.dot_dimension_numbers<[1], [0], [0], [1], [0, 0, 1, 1], [], []>} : vector<256x40xf32>, vector<40x40xf32>, vector<256x40xf32> -> vector<256x40xf32>
    %c1_17 = arith.constant 1 : index
    %c0_18 = arith.constant 0 : index
    %40 = vector.load %arg3[%c1_17, %c0_18] : memref<25x40xf32, #tpu.memory_space<vmem>>, vector<1x40xf32>
    %41 = vector.broadcast %40 : vector<1x40xf32> to vector<256x40xf32>
    %42 = arith.addf %39, %41 : vector<256x40xf32>
    %43 = arith.negf %42 : vector<256x40xf32>
    %44 = math.exp %43 : vector<256x40xf32>
    %cst_19 = arith.constant 1.000000e+00 : f32
    %45 = vector.broadcast %cst_19 : f32 to vector<256x40xf32>
    %46 = arith.addf %45, %44 : vector<256x40xf32>
    %47 = arith.divf %45, %46 : vector<256x40xf32>
    %48 = arith.mulf %42, %47 : vector<256x40xf32>
    %cst_20 = arith.constant dense<0.000000e+00> : vector<256xf32>
    %49 = vector.multi_reduction <add>, %48, %cst_20 [1] : vector<256x40xf32> to vector<256xf32>
    %50 = vector.shape_cast %49 : vector<256xf32> to vector<256x1xf32>
    %51 = arith.mulf %48, %48 : vector<256x40xf32>
    %cst_21 = arith.constant dense<0.000000e+00> : vector<256xf32>
    %52 = vector.multi_reduction <add>, %51, %cst_21 [1] : vector<256x40xf32> to vector<256xf32>
    %53 = vector.shape_cast %52 : vector<256xf32> to vector<256x1xf32>
    %cst_22 = arith.constant 2.500000e-02 : f32
    %54 = vector.broadcast %cst_22 : f32 to vector<256x1xf32>
    %55 = arith.mulf %50, %54 : vector<256x1xf32>
    %cst_23 = arith.constant 2.500000e-02 : f32
    %56 = vector.broadcast %cst_23 : f32 to vector<256x1xf32>
    %57 = arith.mulf %53, %56 : vector<256x1xf32>
    %58 = arith.mulf %55, %55 : vector<256x1xf32>
    %59 = arith.subf %57, %58 : vector<256x1xf32>
    %cst_24 = arith.constant 9.99999974E-6 : f32
    %60 = vector.broadcast %cst_24 : f32 to vector<256x1xf32>
    %61 = arith.addf %59, %60 : vector<256x1xf32>
    %62 = math.rsqrt %61 : vector<256x1xf32>
    %63 = vector.broadcast %55 : vector<256x1xf32> to vector<256x40xf32>
    %64 = arith.subf %48, %63 : vector<256x40xf32>
    %65 = vector.broadcast %62 : vector<256x1xf32> to vector<256x40xf32>
    %66 = arith.mulf %64, %65 : vector<256x40xf32>
    %c6 = arith.constant 6 : index
    %c0_25 = arith.constant 0 : index
    %67 = vector.load %arg3[%c6, %c0_25] : memref<25x40xf32, #tpu.memory_space<vmem>>, vector<1x40xf32>
    %68 = vector.broadcast %67 : vector<1x40xf32> to vector<256x40xf32>
    %69 = arith.mulf %66, %68 : vector<256x40xf32>
    %c10 = arith.constant 10 : index
    %c0_26 = arith.constant 0 : index
    %70 = vector.load %arg3[%c10, %c0_26] : memref<25x40xf32, #tpu.memory_space<vmem>>, vector<1x40xf32>
    %71 = vector.broadcast %70 : vector<1x40xf32> to vector<256x40xf32>
    %72 = arith.addf %69, %71 : vector<256x40xf32>
    %c2 = arith.constant 2 : index
    %c0_27 = arith.constant 0 : index
    %c0_28 = arith.constant 0 : index
    %73 = vector.load %arg2[%c2, %c0_27, %c0_28] : memref<9x40x40xf32, #tpu.memory_space<vmem>>, vector<1x40x40xf32>
    %74 = vector.shape_cast %73 : vector<1x40x40xf32> to vector<40x40xf32>
    %cst_29 = arith.constant dense<0.000000e+00> : vector<256x40xf32>
    %75 = tpu.matmul %72, %74, %cst_29 {dimension_numbers = #tpu.dot_dimension_numbers<[1], [0], [0], [1], [0, 0, 1, 1], [], []>} : vector<256x40xf32>, vector<40x40xf32>, vector<256x40xf32> -> vector<256x40xf32>
    %c2_30 = arith.constant 2 : index
    %c0_31 = arith.constant 0 : index
    %76 = vector.load %arg3[%c2_30, %c0_31] : memref<25x40xf32, #tpu.memory_space<vmem>>, vector<1x40xf32>
    %77 = vector.broadcast %76 : vector<1x40xf32> to vector<256x40xf32>
    %78 = arith.addf %75, %77 : vector<256x40xf32>
    %79 = arith.negf %78 : vector<256x40xf32>
    %80 = math.exp %79 : vector<256x40xf32>
    %cst_32 = arith.constant 1.000000e+00 : f32
    %81 = vector.broadcast %cst_32 : f32 to vector<256x40xf32>
    %82 = arith.addf %81, %80 : vector<256x40xf32>
    %83 = arith.divf %81, %82 : vector<256x40xf32>
    %84 = arith.mulf %78, %83 : vector<256x40xf32>
    %cst_33 = arith.constant dense<0.000000e+00> : vector<256xf32>
    %85 = vector.multi_reduction <add>, %84, %cst_33 [1] : vector<256x40xf32> to vector<256xf32>
    %86 = vector.shape_cast %85 : vector<256xf32> to vector<256x1xf32>
    %87 = arith.mulf %84, %84 : vector<256x40xf32>
    %cst_34 = arith.constant dense<0.000000e+00> : vector<256xf32>
    %88 = vector.multi_reduction <add>, %87, %cst_34 [1] : vector<256x40xf32> to vector<256xf32>
    %89 = vector.shape_cast %88 : vector<256xf32> to vector<256x1xf32>
    %cst_35 = arith.constant 2.500000e-02 : f32
    %90 = vector.broadcast %cst_35 : f32 to vector<256x1xf32>
    %91 = arith.mulf %86, %90 : vector<256x1xf32>
    %cst_36 = arith.constant 2.500000e-02 : f32
    %92 = vector.broadcast %cst_36 : f32 to vector<256x1xf32>
    %93 = arith.mulf %89, %92 : vector<256x1xf32>
    %94 = arith.mulf %91, %91 : vector<256x1xf32>
    %95 = arith.subf %93, %94 : vector<256x1xf32>
    %cst_37 = arith.constant 9.99999974E-6 : f32
    %96 = vector.broadcast %cst_37 : f32 to vector<256x1xf32>
    %97 = arith.addf %95, %96 : vector<256x1xf32>
    %98 = math.rsqrt %97 : vector<256x1xf32>
    %99 = vector.broadcast %91 : vector<256x1xf32> to vector<256x40xf32>
    %100 = arith.subf %84, %99 : vector<256x40xf32>
    %101 = vector.broadcast %98 : vector<256x1xf32> to vector<256x40xf32>
    %102 = arith.mulf %100, %101 : vector<256x40xf32>
    %c7 = arith.constant 7 : index
    %c0_38 = arith.constant 0 : index
    %103 = vector.load %arg3[%c7, %c0_38] : memref<25x40xf32, #tpu.memory_space<vmem>>, vector<1x40xf32>
    %104 = vector.broadcast %103 : vector<1x40xf32> to vector<256x40xf32>
    %105 = arith.mulf %102, %104 : vector<256x40xf32>
    %c11 = arith.constant 11 : index
    %c0_39 = arith.constant 0 : index
    %106 = vector.load %arg3[%c11, %c0_39] : memref<25x40xf32, #tpu.memory_space<vmem>>, vector<1x40xf32>
    %107 = vector.broadcast %106 : vector<1x40xf32> to vector<256x40xf32>
    %108 = arith.addf %105, %107 : vector<256x40xf32>
    %c3 = arith.constant 3 : index
    %c0_40 = arith.constant 0 : index
    %c0_41 = arith.constant 0 : index
    %109 = vector.load %arg2[%c3, %c0_40, %c0_41] : memref<9x40x40xf32, #tpu.memory_space<vmem>>, vector<1x40x40xf32>
    %110 = vector.shape_cast %109 : vector<1x40x40xf32> to vector<40x40xf32>
    %cst_42 = arith.constant dense<0.000000e+00> : vector<256x40xf32>
    %111 = tpu.matmul %108, %110, %cst_42 {dimension_numbers = #tpu.dot_dimension_numbers<[1], [0], [0], [1], [0, 0, 1, 1], [], []>} : vector<256x40xf32>, vector<40x40xf32>, vector<256x40xf32> -> vector<256x40xf32>
    %c3_43 = arith.constant 3 : index
    %c0_44 = arith.constant 0 : index
    %112 = vector.load %arg3[%c3_43, %c0_44] : memref<25x40xf32, #tpu.memory_space<vmem>>, vector<1x40xf32>
    %113 = vector.broadcast %112 : vector<1x40xf32> to vector<256x40xf32>
    %114 = arith.addf %111, %113 : vector<256x40xf32>
    %115 = arith.negf %114 : vector<256x40xf32>
    %116 = math.exp %115 : vector<256x40xf32>
    %cst_45 = arith.constant 1.000000e+00 : f32
    %117 = vector.broadcast %cst_45 : f32 to vector<256x40xf32>
    %118 = arith.addf %117, %116 : vector<256x40xf32>
    %119 = arith.divf %117, %118 : vector<256x40xf32>
    %120 = arith.mulf %114, %119 : vector<256x40xf32>
    %cst_46 = arith.constant dense<0.000000e+00> : vector<256xf32>
    %121 = vector.multi_reduction <add>, %120, %cst_46 [1] : vector<256x40xf32> to vector<256xf32>
    %122 = vector.shape_cast %121 : vector<256xf32> to vector<256x1xf32>
    %123 = arith.mulf %120, %120 : vector<256x40xf32>
    %cst_47 = arith.constant dense<0.000000e+00> : vector<256xf32>
    %124 = vector.multi_reduction <add>, %123, %cst_47 [1] : vector<256x40xf32> to vector<256xf32>
    %125 = vector.shape_cast %124 : vector<256xf32> to vector<256x1xf32>
    %cst_48 = arith.constant 2.500000e-02 : f32
    %126 = vector.broadcast %cst_48 : f32 to vector<256x1xf32>
    %127 = arith.mulf %122, %126 : vector<256x1xf32>
    %cst_49 = arith.constant 2.500000e-02 : f32
    %128 = vector.broadcast %cst_49 : f32 to vector<256x1xf32>
    %129 = arith.mulf %125, %128 : vector<256x1xf32>
    %130 = arith.mulf %127, %127 : vector<256x1xf32>
    %131 = arith.subf %129, %130 : vector<256x1xf32>
    %cst_50 = arith.constant 9.99999974E-6 : f32
    %132 = vector.broadcast %cst_50 : f32 to vector<256x1xf32>
    %133 = arith.addf %131, %132 : vector<256x1xf32>
    %134 = math.rsqrt %133 : vector<256x1xf32>
    %135 = vector.broadcast %127 : vector<256x1xf32> to vector<256x40xf32>
    %136 = arith.subf %120, %135 : vector<256x40xf32>
    %137 = vector.broadcast %134 : vector<256x1xf32> to vector<256x40xf32>
    %138 = arith.mulf %136, %137 : vector<256x40xf32>
    %c8 = arith.constant 8 : index
    %c0_51 = arith.constant 0 : index
    %139 = vector.load %arg3[%c8, %c0_51] : memref<25x40xf32, #tpu.memory_space<vmem>>, vector<1x40xf32>
    %140 = vector.broadcast %139 : vector<1x40xf32> to vector<256x40xf32>
    %141 = arith.mulf %138, %140 : vector<256x40xf32>
    %c12 = arith.constant 12 : index
    %c0_52 = arith.constant 0 : index
    %142 = vector.load %arg3[%c12, %c0_52] : memref<25x40xf32, #tpu.memory_space<vmem>>, vector<1x40xf32>
    %143 = vector.broadcast %142 : vector<1x40xf32> to vector<256x40xf32>
    %144 = arith.addf %141, %143 : vector<256x40xf32>
    %c4 = arith.constant 4 : index
    %c0_53 = arith.constant 0 : index
    %c0_54 = arith.constant 0 : index
    %145 = vector.load %arg2[%c4, %c0_53, %c0_54] : memref<9x40x40xf32, #tpu.memory_space<vmem>>, vector<1x40x40xf32>
    %146 = vector.shape_cast %145 : vector<1x40x40xf32> to vector<40x40xf32>
    %cst_55 = arith.constant dense<0.000000e+00> : vector<256x40xf32>
    %147 = tpu.matmul %144, %146, %cst_55 {dimension_numbers = #tpu.dot_dimension_numbers<[1], [0], [0], [1], [0, 0, 1, 1], [], []>} : vector<256x40xf32>, vector<40x40xf32>, vector<256x40xf32> -> vector<256x40xf32>
    %c4_56 = arith.constant 4 : index
    %c0_57 = arith.constant 0 : index
    %148 = vector.load %arg3[%c4_56, %c0_57] : memref<25x40xf32, #tpu.memory_space<vmem>>, vector<1x40xf32>
    %149 = vector.broadcast %148 : vector<1x40xf32> to vector<256x40xf32>
    %150 = arith.addf %147, %149 : vector<256x40xf32>
    %c5_58 = arith.constant 5 : index
    %c0_59 = arith.constant 0 : index
    %c0_60 = arith.constant 0 : index
    %151 = vector.load %arg2[%c5_58, %c0_59, %c0_60] : memref<9x40x40xf32, #tpu.memory_space<vmem>>, vector<1x40x40xf32>
    %152 = vector.shape_cast %151 : vector<1x40x40xf32> to vector<40x40xf32>
    %cst_61 = arith.constant dense<0.000000e+00> : vector<256x40xf32>
    %153 = tpu.matmul %150, %152, %cst_61 {dimension_numbers = #tpu.dot_dimension_numbers<[1], [0], [0], [1], [0, 0, 1, 1], [], []>} : vector<256x40xf32>, vector<40x40xf32>, vector<256x40xf32> -> vector<256x40xf32>
    %c13 = arith.constant 13 : index
    %c0_62 = arith.constant 0 : index
    %154 = vector.load %arg3[%c13, %c0_62] : memref<25x40xf32, #tpu.memory_space<vmem>>, vector<1x40xf32>
    %155 = vector.broadcast %154 : vector<1x40xf32> to vector<256x40xf32>
    %156 = arith.addf %153, %155 : vector<256x40xf32>
    %157 = arith.negf %156 : vector<256x40xf32>
    %158 = math.exp %157 : vector<256x40xf32>
    %cst_63 = arith.constant 1.000000e+00 : f32
    %159 = vector.broadcast %cst_63 : f32 to vector<256x40xf32>
    %160 = arith.addf %159, %158 : vector<256x40xf32>
    %161 = arith.divf %159, %160 : vector<256x40xf32>
    %162 = arith.mulf %156, %161 : vector<256x40xf32>
    %cst_64 = arith.constant dense<0.000000e+00> : vector<256xf32>
    %163 = vector.multi_reduction <add>, %162, %cst_64 [1] : vector<256x40xf32> to vector<256xf32>
    %164 = vector.shape_cast %163 : vector<256xf32> to vector<256x1xf32>
    %165 = arith.mulf %162, %162 : vector<256x40xf32>
    %cst_65 = arith.constant dense<0.000000e+00> : vector<256xf32>
    %166 = vector.multi_reduction <add>, %165, %cst_65 [1] : vector<256x40xf32> to vector<256xf32>
    %167 = vector.shape_cast %166 : vector<256xf32> to vector<256x1xf32>
    %cst_66 = arith.constant 2.500000e-02 : f32
    %168 = vector.broadcast %cst_66 : f32 to vector<256x1xf32>
    %169 = arith.mulf %164, %168 : vector<256x1xf32>
    %cst_67 = arith.constant 2.500000e-02 : f32
    %170 = vector.broadcast %cst_67 : f32 to vector<256x1xf32>
    %171 = arith.mulf %167, %170 : vector<256x1xf32>
    %172 = arith.mulf %169, %169 : vector<256x1xf32>
    %173 = arith.subf %171, %172 : vector<256x1xf32>
    %cst_68 = arith.constant 9.99999974E-6 : f32
    %174 = vector.broadcast %cst_68 : f32 to vector<256x1xf32>
    %175 = arith.addf %173, %174 : vector<256x1xf32>
    %176 = math.rsqrt %175 : vector<256x1xf32>
    %177 = vector.broadcast %169 : vector<256x1xf32> to vector<256x40xf32>
    %178 = arith.subf %162, %177 : vector<256x40xf32>
    %179 = vector.broadcast %176 : vector<256x1xf32> to vector<256x40xf32>
    %180 = arith.mulf %178, %179 : vector<256x40xf32>
    %c17 = arith.constant 17 : index
    %c0_69 = arith.constant 0 : index
    %181 = vector.load %arg3[%c17, %c0_69] : memref<25x40xf32, #tpu.memory_space<vmem>>, vector<1x40xf32>
    %182 = vector.broadcast %181 : vector<1x40xf32> to vector<256x40xf32>
    %183 = arith.mulf %180, %182 : vector<256x40xf32>
    %c21 = arith.constant 21 : index
    %c0_70 = arith.constant 0 : index
    %184 = vector.load %arg3[%c21, %c0_70] : memref<25x40xf32, #tpu.memory_space<vmem>>, vector<1x40xf32>
    %185 = vector.broadcast %184 : vector<1x40xf32> to vector<256x40xf32>
    %186 = arith.addf %183, %185 : vector<256x40xf32>
    %c6_71 = arith.constant 6 : index
    %c0_72 = arith.constant 0 : index
    %c0_73 = arith.constant 0 : index
    %187 = vector.load %arg2[%c6_71, %c0_72, %c0_73] : memref<9x40x40xf32, #tpu.memory_space<vmem>>, vector<1x40x40xf32>
    %188 = vector.shape_cast %187 : vector<1x40x40xf32> to vector<40x40xf32>
    %cst_74 = arith.constant dense<0.000000e+00> : vector<256x40xf32>
    %189 = tpu.matmul %186, %188, %cst_74 {dimension_numbers = #tpu.dot_dimension_numbers<[1], [0], [0], [1], [0, 0, 1, 1], [], []>} : vector<256x40xf32>, vector<40x40xf32>, vector<256x40xf32> -> vector<256x40xf32>
    %c14 = arith.constant 14 : index
    %c0_75 = arith.constant 0 : index
    %190 = vector.load %arg3[%c14, %c0_75] : memref<25x40xf32, #tpu.memory_space<vmem>>, vector<1x40xf32>
    %191 = vector.broadcast %190 : vector<1x40xf32> to vector<256x40xf32>
    %192 = arith.addf %189, %191 : vector<256x40xf32>
    %193 = arith.negf %192 : vector<256x40xf32>
    %194 = math.exp %193 : vector<256x40xf32>
    %cst_76 = arith.constant 1.000000e+00 : f32
    %195 = vector.broadcast %cst_76 : f32 to vector<256x40xf32>
    %196 = arith.addf %195, %194 : vector<256x40xf32>
    %197 = arith.divf %195, %196 : vector<256x40xf32>
    %198 = arith.mulf %192, %197 : vector<256x40xf32>
    %cst_77 = arith.constant dense<0.000000e+00> : vector<256xf32>
    %199 = vector.multi_reduction <add>, %198, %cst_77 [1] : vector<256x40xf32> to vector<256xf32>
    %200 = vector.shape_cast %199 : vector<256xf32> to vector<256x1xf32>
    %201 = arith.mulf %198, %198 : vector<256x40xf32>
    %cst_78 = arith.constant dense<0.000000e+00> : vector<256xf32>
    %202 = vector.multi_reduction <add>, %201, %cst_78 [1] : vector<256x40xf32> to vector<256xf32>
    %203 = vector.shape_cast %202 : vector<256xf32> to vector<256x1xf32>
    %cst_79 = arith.constant 2.500000e-02 : f32
    %204 = vector.broadcast %cst_79 : f32 to vector<256x1xf32>
    %205 = arith.mulf %200, %204 : vector<256x1xf32>
    %cst_80 = arith.constant 2.500000e-02 : f32
    %206 = vector.broadcast %cst_80 : f32 to vector<256x1xf32>
    %207 = arith.mulf %203, %206 : vector<256x1xf32>
    %208 = arith.mulf %205, %205 : vector<256x1xf32>
    %209 = arith.subf %207, %208 : vector<256x1xf32>
    %cst_81 = arith.constant 9.99999974E-6 : f32
    %210 = vector.broadcast %cst_81 : f32 to vector<256x1xf32>
    %211 = arith.addf %209, %210 : vector<256x1xf32>
    %212 = math.rsqrt %211 : vector<256x1xf32>
    %213 = vector.broadcast %205 : vector<256x1xf32> to vector<256x40xf32>
    %214 = arith.subf %198, %213 : vector<256x40xf32>
    %215 = vector.broadcast %212 : vector<256x1xf32> to vector<256x40xf32>
    %216 = arith.mulf %214, %215 : vector<256x40xf32>
    %c18 = arith.constant 18 : index
    %c0_82 = arith.constant 0 : index
    %217 = vector.load %arg3[%c18, %c0_82] : memref<25x40xf32, #tpu.memory_space<vmem>>, vector<1x40xf32>
    %218 = vector.broadcast %217 : vector<1x40xf32> to vector<256x40xf32>
    %219 = arith.mulf %216, %218 : vector<256x40xf32>
    %c22 = arith.constant 22 : index
    %c0_83 = arith.constant 0 : index
    %220 = vector.load %arg3[%c22, %c0_83] : memref<25x40xf32, #tpu.memory_space<vmem>>, vector<1x40xf32>
    %221 = vector.broadcast %220 : vector<1x40xf32> to vector<256x40xf32>
    %222 = arith.addf %219, %221 : vector<256x40xf32>
    %c7_84 = arith.constant 7 : index
    %c0_85 = arith.constant 0 : index
    %c0_86 = arith.constant 0 : index
    %223 = vector.load %arg2[%c7_84, %c0_85, %c0_86] : memref<9x40x40xf32, #tpu.memory_space<vmem>>, vector<1x40x40xf32>
    %224 = vector.shape_cast %223 : vector<1x40x40xf32> to vector<40x40xf32>
    %cst_87 = arith.constant dense<0.000000e+00> : vector<256x40xf32>
    %225 = tpu.matmul %222, %224, %cst_87 {dimension_numbers = #tpu.dot_dimension_numbers<[1], [0], [0], [1], [0, 0, 1, 1], [], []>} : vector<256x40xf32>, vector<40x40xf32>, vector<256x40xf32> -> vector<256x40xf32>
    %c15 = arith.constant 15 : index
    %c0_88 = arith.constant 0 : index
    %226 = vector.load %arg3[%c15, %c0_88] : memref<25x40xf32, #tpu.memory_space<vmem>>, vector<1x40xf32>
    %227 = vector.broadcast %226 : vector<1x40xf32> to vector<256x40xf32>
    %228 = arith.addf %225, %227 : vector<256x40xf32>
    %229 = arith.negf %228 : vector<256x40xf32>
    %230 = math.exp %229 : vector<256x40xf32>
    %cst_89 = arith.constant 1.000000e+00 : f32
    %231 = vector.broadcast %cst_89 : f32 to vector<256x40xf32>
    %232 = arith.addf %231, %230 : vector<256x40xf32>
    %233 = arith.divf %231, %232 : vector<256x40xf32>
    %234 = arith.mulf %228, %233 : vector<256x40xf32>
    %cst_90 = arith.constant dense<0.000000e+00> : vector<256xf32>
    %235 = vector.multi_reduction <add>, %234, %cst_90 [1] : vector<256x40xf32> to vector<256xf32>
    %236 = vector.shape_cast %235 : vector<256xf32> to vector<256x1xf32>
    %237 = arith.mulf %234, %234 : vector<256x40xf32>
    %cst_91 = arith.constant dense<0.000000e+00> : vector<256xf32>
    %238 = vector.multi_reduction <add>, %237, %cst_91 [1] : vector<256x40xf32> to vector<256xf32>
    %239 = vector.shape_cast %238 : vector<256xf32> to vector<256x1xf32>
    %cst_92 = arith.constant 2.500000e-02 : f32
    %240 = vector.broadcast %cst_92 : f32 to vector<256x1xf32>
    %241 = arith.mulf %236, %240 : vector<256x1xf32>
    %cst_93 = arith.constant 2.500000e-02 : f32
    %242 = vector.broadcast %cst_93 : f32 to vector<256x1xf32>
    %243 = arith.mulf %239, %242 : vector<256x1xf32>
    %244 = arith.mulf %241, %241 : vector<256x1xf32>
    %245 = arith.subf %243, %244 : vector<256x1xf32>
    %cst_94 = arith.constant 9.99999974E-6 : f32
    %246 = vector.broadcast %cst_94 : f32 to vector<256x1xf32>
    %247 = arith.addf %245, %246 : vector<256x1xf32>
    %248 = math.rsqrt %247 : vector<256x1xf32>
    %249 = vector.broadcast %241 : vector<256x1xf32> to vector<256x40xf32>
    %250 = arith.subf %234, %249 : vector<256x40xf32>
    %251 = vector.broadcast %248 : vector<256x1xf32> to vector<256x40xf32>
    %252 = arith.mulf %250, %251 : vector<256x40xf32>
    %c19 = arith.constant 19 : index
    %c0_95 = arith.constant 0 : index
    %253 = vector.load %arg3[%c19, %c0_95] : memref<25x40xf32, #tpu.memory_space<vmem>>, vector<1x40xf32>
    %254 = vector.broadcast %253 : vector<1x40xf32> to vector<256x40xf32>
    %255 = arith.mulf %252, %254 : vector<256x40xf32>
    %c23 = arith.constant 23 : index
    %c0_96 = arith.constant 0 : index
    %256 = vector.load %arg3[%c23, %c0_96] : memref<25x40xf32, #tpu.memory_space<vmem>>, vector<1x40xf32>
    %257 = vector.broadcast %256 : vector<1x40xf32> to vector<256x40xf32>
    %258 = arith.addf %255, %257 : vector<256x40xf32>
    %c8_97 = arith.constant 8 : index
    %c0_98 = arith.constant 0 : index
    %c0_99 = arith.constant 0 : index
    %259 = vector.load %arg2[%c8_97, %c0_98, %c0_99] : memref<9x40x40xf32, #tpu.memory_space<vmem>>, vector<1x40x40xf32>
    %260 = vector.shape_cast %259 : vector<1x40x40xf32> to vector<40x40xf32>
    %cst_100 = arith.constant dense<0.000000e+00> : vector<256x40xf32>
    %261 = tpu.matmul %258, %260, %cst_100 {dimension_numbers = #tpu.dot_dimension_numbers<[1], [0], [0], [1], [0, 0, 1, 1], [], []>} : vector<256x40xf32>, vector<40x40xf32>, vector<256x40xf32> -> vector<256x40xf32>
    %c16 = arith.constant 16 : index
    %c0_101 = arith.constant 0 : index
    %262 = vector.load %arg3[%c16, %c0_101] : memref<25x40xf32, #tpu.memory_space<vmem>>, vector<1x40xf32>
    %263 = vector.broadcast %262 : vector<1x40xf32> to vector<256x40xf32>
    %264 = arith.addf %261, %263 : vector<256x40xf32>
    %265 = arith.negf %264 : vector<256x40xf32>
    %266 = math.exp %265 : vector<256x40xf32>
    %cst_102 = arith.constant 1.000000e+00 : f32
    %267 = vector.broadcast %cst_102 : f32 to vector<256x40xf32>
    %268 = arith.addf %267, %266 : vector<256x40xf32>
    %269 = arith.divf %267, %268 : vector<256x40xf32>
    %270 = arith.mulf %264, %269 : vector<256x40xf32>
    %cst_103 = arith.constant dense<0.000000e+00> : vector<256xf32>
    %271 = vector.multi_reduction <add>, %270, %cst_103 [1] : vector<256x40xf32> to vector<256xf32>
    %272 = vector.shape_cast %271 : vector<256xf32> to vector<256x1xf32>
    %273 = arith.mulf %270, %270 : vector<256x40xf32>
    %cst_104 = arith.constant dense<0.000000e+00> : vector<256xf32>
    %274 = vector.multi_reduction <add>, %273, %cst_104 [1] : vector<256x40xf32> to vector<256xf32>
    %275 = vector.shape_cast %274 : vector<256xf32> to vector<256x1xf32>
    %cst_105 = arith.constant 2.500000e-02 : f32
    %276 = vector.broadcast %cst_105 : f32 to vector<256x1xf32>
    %277 = arith.mulf %272, %276 : vector<256x1xf32>
    %cst_106 = arith.constant 2.500000e-02 : f32
    %278 = vector.broadcast %cst_106 : f32 to vector<256x1xf32>
    %279 = arith.mulf %275, %278 : vector<256x1xf32>
    %280 = arith.mulf %277, %277 : vector<256x1xf32>
    %281 = arith.subf %279, %280 : vector<256x1xf32>
    %cst_107 = arith.constant 9.99999974E-6 : f32
    %282 = vector.broadcast %cst_107 : f32 to vector<256x1xf32>
    %283 = arith.addf %281, %282 : vector<256x1xf32>
    %284 = math.rsqrt %283 : vector<256x1xf32>
    %285 = vector.broadcast %277 : vector<256x1xf32> to vector<256x40xf32>
    %286 = arith.subf %270, %285 : vector<256x40xf32>
    %287 = vector.broadcast %284 : vector<256x1xf32> to vector<256x40xf32>
    %288 = arith.mulf %286, %287 : vector<256x40xf32>
    %c20 = arith.constant 20 : index
    %c0_108 = arith.constant 0 : index
    %289 = vector.load %arg3[%c20, %c0_108] : memref<25x40xf32, #tpu.memory_space<vmem>>, vector<1x40xf32>
    %290 = vector.broadcast %289 : vector<1x40xf32> to vector<256x40xf32>
    %291 = arith.mulf %288, %290 : vector<256x40xf32>
    %c24 = arith.constant 24 : index
    %c0_109 = arith.constant 0 : index
    %292 = vector.load %arg3[%c24, %c0_109] : memref<25x40xf32, #tpu.memory_space<vmem>>, vector<1x40xf32>
    %293 = vector.broadcast %292 : vector<1x40xf32> to vector<256x40xf32>
    %294 = arith.addf %291, %293 : vector<256x40xf32>
    %c0_110 = arith.constant 0 : index
    %c0_111 = arith.constant 0 : index
    %295 = vector.load %arg4[%c0_110, %c0_111] : memref<40x128xf32, #tpu.memory_space<vmem>>, vector<40x128xf32>
    %cst_112 = arith.constant dense<0.000000e+00> : vector<256x128xf32>
    %296 = tpu.matmul %294, %295, %cst_112 {dimension_numbers = #tpu.dot_dimension_numbers<[1], [0], [0], [1], [0, 0, 1, 1], [], []>} : vector<256x40xf32>, vector<40x128xf32>, vector<256x128xf32> -> vector<256x128xf32>
    %c0_113 = arith.constant 0 : index
    %c0_114 = arith.constant 0 : index
    %297 = vector.load %arg5[%c0_113, %c0_114] : memref<1x128xf32, #tpu.memory_space<vmem>>, vector<1x128xf32>
    %298 = vector.broadcast %297 : vector<1x128xf32> to vector<256x128xf32>
    %299 = arith.addf %296, %298 : vector<256x128xf32>
    %c0_115 = arith.constant 0 : index
    %c0_116 = arith.constant 0 : index
    %300 = vector.load %arg6[%c0_115, %c0_116] : memref<256x128xf32, #tpu.memory_space<vmem>>, vector<256x128xf32>
    tpu.vector_store %arg6[%c0_115, %c0_116], %299 {strides = array<i32>} : memref<256x128xf32, #tpu.memory_space<vmem>>, vector<256x128xf32>,
    return
  }
  func.func @transform_0(%arg0: i32) -> (i32, i32) {
    %c0_i32 = arith.constant 0 : i32
    %c0_i32_0 = arith.constant 0 : i32
    return %arg0, %c0_i32 : i32, i32
  }
  func.func @transform_1(%arg0: i32) -> (i32, i32, i32) {
    %c0_i32 = arith.constant 0 : i32
    %c0_i32_0 = arith.constant 0 : i32
    %c0_i32_1 = arith.constant 0 : i32
    %c0_i32_2 = arith.constant 0 : i32
    return %c0_i32, %c0_i32_0, %c0_i32_1 : i32, i32, i32
  }
  func.func @transform_2(%arg0: i32) -> (i32, i32) {
    %c0_i32 = arith.constant 0 : i32
    %c0_i32_0 = arith.constant 0 : i32
    %c0_i32_1 = arith.constant 0 : i32
    return %c0_i32, %c0_i32_0 : i32, i32
  }
  func.func @transform_3(%arg0: i32) -> (i32, i32) {
    %c0_i32 = arith.constant 0 : i32
    %c0_i32_0 = arith.constant 0 : i32
    %c0_i32_1 = arith.constant 0 : i32
    return %c0_i32, %c0_i32_0 : i32, i32
  }
  func.func @transform_4(%arg0: i32) -> (i32, i32) {
    %c0_i32 = arith.constant 0 : i32
    %c0_i32_0 = arith.constant 0 : i32
    %c0_i32_1 = arith.constant 0 : i32
    return %c0_i32, %c0_i32_0 : i32, i32
  }
  func.func @transform_5(%arg0: i32) -> (i32, i32) {
    %c0_i32 = arith.constant 0 : i32
    %c0_i32_0 = arith.constant 0 : i32
    return %arg0, %c0_i32 : i32, i32
  }
}

</mosaic_0001>

<bundles_post_ra>
// kernel: tpu_custom_call.1
= control target key start
LH: loop header
LB: loop body
LE: loop exit
PB: predicated region body
PF: predicated region fallthrough
CT: control target
= control target key end

     0   :  { %10 = vsyncpa [#allocation3], 0  ;;  %s19017_s0 = inlined_call_operand.vmem [shape: f32[1024,40], index: 0, kind: input, shape index: {}]   ;;  %s19018_s1 = inlined_call_operand.vmem [shape: f32[9,40,40], index: 1, kind: input, shape index: {}]   ;;  %s19019_s2 = inlined_call_operand.vmem [shape: f32[25,40], index: 2, kind: input, shape index: {}]   ;;  %s19020_s3 = inlined_call_operand.vmem [shape: f32[40,128], index: 3, kind: input, shape index: {}]   ;;  %s19021_s4 = inlined_call_operand.vmem [shape: f32[1,128], index: 4, kind: input, shape index: {}]   ;;  %s19022_s5 = inlined_call_operand.hbm [shape: f32[1024,128], index: 5, kind: output, shape index: {}]  }
   0x1   :  { %12 = vsyncpa [#allocation3 + $0x1], 0  ;;  %s13270_s18 = smov 0   ;;  %s13272_s19 = smov 0  }
   0x2   :  { %s13274_s20 = smov 0   ;;  %s13276_s21 = smov 0  }
   0x3 LB: > { %s13291_s22 = sadd.s32 4294967295, %s13235_s21   ;;  %s9911_s23 = sadd.s32 4294967294, %s13235_s21   ;;  %s13235_s21 = sphi %s13276_s21, %s19028_s21   ;;  %s13231_s20 = sphi %s13274_s20, %s19027_s20   ;;  %s13227_s19 = sphi %s13272_s19, %s19026_s19   ;;  %s13223_s18 = sphi %s13270_s18, %s19025_s18  }
   0x4   : > { %s13295_s24 = sadd.s32 1, %s13235_s21   ;;  %s135_s25 = sadd.s32 1, %s13231_s20 }
   0x5   : > { %s132_s26 = ssub.s32 %s13235_s21, %s13295_s24  ;;  %p145_p0 = scmp.ne.s32.totalorder %s13231_s20, %s13227_s19 }
   0x6   : > { %p133_p1 = scmp.eq.s32.totalorder %s132_s26, 0  ;;  %p146_p2 = scmp.eq.s32.totalorder %s13291_s22, 3 }
   0x7   : > { %p151_p3 = scmp.ne.s32.totalorder %s13227_s19, %s13223_s18  ;;  %p152_p4 = scmp.eq.s32.totalorder %s9911_s23, 3 }
   0x8   : > { %s13306_s27 = scalar_select %p133_p1, %s13231_s20, %s135_s25  }
   0x9   : > { %p13308_p5 = por %p146_p2, %p145_p0  ;;  %p13312_p6 = por %p152_p4, %p151_p3 }
   0xa   : > { %p9914_p7 = scmp.ge.s32.totalorder %s13235_s21, 1  ;;  %p191_p8 = scmp.lt.s32.totalorder %s13235_s21, 5 }
   0xc   : > { %p192_p9 = pnand %p9914_p7, %p191_p8 }
   0xd   : > { %v258_v0 = vld [vmem:[%s19018_s1] sm:$0xff] (!%p192_p9)  ;;  %v259_v1 = vld [vmem:[%s19018_s1 + $0x8] sm:$0xff] (!%p192_p9)  ;;  %v260_v2 = vld [vmem:[%s19018_s1 + $0x10] sm:$0xff] (!%p192_p9)  ;;  %s9916_s11 = sshll.u32 (!%p192_p9), %s13291_s22, 5  ;;  %vm268_vm0 = vcmask (!%p192_p9), 326656   ;;  %s216_s16 = sand.u32 (!%p192_p9), 1, %s13227_s19  }
   0xe   : > { %195 = sbr.rel (%p192_p9) target bundleno = 3905 (0xf41), region = 40  ;;  %v11516_v3 = vpack.c.bf16 (!%p192_p9), %v259_v1, %v258_v0  ;;  %v261_v4 = vld [vmem:[%s19018_s1 + $0x18] sm:$0xff] (!%p192_p9)  ;;  %p220_p10 = scmp.lt.s32.totalorder (!%p192_p9), %s9916_s11, 127  ;;  %v262_v6 = vld [vmem:[%s19018_s1 + $0x20] sm:$0xff] (!%p192_p9) }
   0xf   : > { %v11520_v5 = vpack.c.bf16 (!%p192_p9), %v261_v4, %v260_v2  ;;  %v13406_v39 = vld [vmem:[%s19019_s2] ss:$0 sm:$0xff] (!%p192_p9)  ;;  %s9915_s17 = sshll.u32 (!%p192_p9), %s216_s16, 8  ;;  %s10565_s30 = sshll.u32 (!%p192_p9), %s13291_s22, 12 }
  0x10   : > { %11517 = vmatprep.subr.bf16.mxu0 (!%p192_p9), %v11516_v3  ;;  %s18901_s26 = scalar_lea.vmem (!%p192_p9), [#allocation2], %s9915_s17  ;;  %s18967_s9 = scalar_lea.hbm (!%p192_p9), %s19022_s5, %s10565_s30 }
  0x11   : > { %11519 = vmatpush3.bf16.msra.mxu0 (!%p192_p9), %v11516_v3  ;;  %s9849_s6 = sshll.u32 (!%p192_p9), %s18901_s26, 4  ;;  %s18976_s22 = scalar_lea.sflag (!%p192_p9), [#allocation3], %s216_s16  ;;  %s18969_s6 = int_to_ptr.vmem [resolvable:$true] %s9849_s6 }
  0x12   : > { %11521 = vmatprep.subr.bf16.mxu0 (!%p192_p9), %v11520_v5  ;;  %s13173_s10 = scalar_lea.vmem (!%p192_p9), %s18969_s6, 4096 }
  0x13   : > { %p13174_p11 = scmp.ne.s32.totalorder (!%p192_p9), %s18969_s6, %s13173_s10 }
  0x15   : > { %s19030_s11 = smov (!%p220_p10, %s9916_s11), 127  ;;  %11523 = vmatpush3.bf16.msra.mxu0 %v11520_v5  ;;  %p13175_p12 = pnand %p13174_p11, %p13308_p5 }
  0x16   : > { %s9917_s14 = sshll.u32 %s19030_s11, 3  ;;  %10944 = vmatprep.subr.mxu0 %v262_v6  ;;  %s13237_s11 = smov [#allocation2]  }
  0x17   : > { %s13337_s25 = scalar_lea.vmem %s19017_s0, %s9917_s14  ;;  %p13176_p13 = pneg %p13175_p12 }
  0x18   : > { %v226_v7 = vld [vmem:[%s13337_s25] sm:$0xff]  ;;  %v227_v8 = vld [vmem:[%s13337_s25 + $0x8] sm:$0xff]  ;;  %v228_v9 = vld [vmem:[%s13337_s25 + $0x10] sm:$0xff]  ;;  %s13177_s12 = sshll.u32 %s13237_s11, 4  ;;  %s13178_s12 = int_to_ptr.vmem [resolvable:$false] %s13177_s12 }
  0x19   : > { %10946 = vmatprep.mubr.msk.f32.mxu0 %vm268_vm0, %v226_v7  ;;  %10945 = vmatpush3.msra.mxu0 %v262_v6  ;;  %v229_v10 = vld [vmem:[%s13337_s25 + $0x18] sm:$0xff]  ;;  %v230_v11 = vld [vmem:[%s13337_s25 + $0x20] sm:$0xff]  ;;  %v231_v12 = vld [vmem:[%s13337_s25 + $0x28] sm:$0xff]  ;;  %s13179_s13 = scalar_lea.vmem %s13178_s12, 8192  ;;  %p13180_p0 = scmp.lt.s32.totalorder %s18969_s6, %s13178_s12 }
  0x1a   : > { %10947 = vmatmul.mubr.msk.f32.vlgmr.msra.gmra.mrb[0].mxu0 %vm268_vm0, %v227_v8  ;;  %v232_v13 = vld [vmem:[%s13337_s25 + $0x30] sm:$0xff]  ;;  %v233_v14 = vld [vmem:[%s13337_s25 + $0x38] sm:$0xff]  ;;  %v234_v15 = vld [vmem:[%s13337_s25 + $0x40] sm:$0xff]  ;;  %p13181_p1 = scmp.lt.s32.totalorder %s13179_s13, %s13173_s10 }
  0x1b   : > { %10949 = vmatprep.mubr.msk.f32.mxu0 %vm268_vm0, %v228_v9  ;;  %v235_v16 = vld [vmem:[%s13337_s25 + $0x48] sm:$0xff]  ;;  %v236_v17 = vld [vmem:[%s13337_s25 + $0x50] sm:$0xff]  ;;  %v237_v18 = vld [vmem:[%s13337_s25 + $0x58] sm:$0xff] }
  0x1c   : > { %v238_v19 = vld [vmem:[%s13337_s25 + $0x60] sm:$0xff]  ;;  %v239_v20 = vld [vmem:[%s13337_s25 + $0x68] sm:$0xff]  ;;  %v240_v21 = vld [vmem:[%s13337_s25 + $0x70] sm:$0xff]  ;;  %p13182_p2 = por %p13181_p1, %p13180_p0 }
  0x1d   : > { %v241_v22 = vld [vmem:[%s13337_s25 + $0x78] sm:$0xff]  ;;  %v242_v23 = vld [vmem:[%s13337_s25 + $0x80] sm:$0xff]  ;;  %v243_v24 = vld [vmem:[%s13337_s25 + $0x88] sm:$0xff] }
  0x1e   : > { %10950 = vmatmul.mubr.msk.f32.gmra.mrb[2].mxu0 %vm268_vm0, %v229_v10  ;;  %v244_v25 = vld [vmem:[%s13337_s25 + $0x90] sm:$0xff]  ;;  %v245_v26 = vld [vmem:[%s13337_s25 + $0x98] sm:$0xff]  ;;  %v246_v27 = vld [vmem:[%s13337_s25 + $0xa0] sm:$0xff]  ;;  %p13183_p3 = pnand %p13182_p2, %p13176_p13 }
  0x1f   : > { %10952 = vmatprep.mubr.msk.f32.mxu0 %vm268_vm0, %v230_v11  ;;  %v247_v28 = vld [vmem:[%s13337_s25 + $0xa8] sm:$0xff]  ;;  %v248_v29 = vld [vmem:[%s13337_s25 + $0xb0] sm:$0xff]  ;;  %v249_v30 = vld [vmem:[%s13337_s25 + $0xb8] sm:$0xff] }
  0x20   : > { %v250_v31 = vld [vmem:[%s13337_s25 + $0xc0] sm:$0xff]  ;;  %v251_v32 = vld [vmem:[%s13337_s25 + $0xc8] sm:$0xff]  ;;  %v252_v33 = vld [vmem:[%s13337_s25 + $0xd0] sm:$0xff] }
  0x21   : > { %v253_v34 = vld [vmem:[%s13337_s25 + $0xd8] sm:$0xff]  ;;  %v254_v35 = vld [vmem:[%s13337_s25 + $0xe0] sm:$0xff]  ;;  %v255_v36 = vld [vmem:[%s13337_s25 + $0xe8] sm:$0xff] }
  0x22   : > { %10953 = vmatmul.mubr.msk.f32.gmra.mrb[4].mxu0 %vm268_vm0, %v231_v12  ;;  %v256_v37 = vld [vmem:[%s13337_s25 + $0xf0] sm:$0xff]  ;;  %v257_v38 = vld [vmem:[%s13337_s25 + $0xf8] sm:$0xff] }
  0x23   : > { %10955 = vmatprep.mubr.msk.f32.mxu0 %vm268_vm0, %v232_v13 }
  0x26   : > { %10956 = vmatmul.mubr.msk.f32.gmra.mrb[6].mxu0 %vm268_vm0, %v233_v14 }
  0x27   : > { %10958 = vmatprep.mubr.msk.f32.mxu0 %vm268_vm0, %v234_v15 }
  0x2a   : > { %10959 = vmatmul.mubr.msk.f32.gmra.mrb[8].mxu0 %vm268_vm0, %v235_v16 }
  0x2b   : > { %10961 = vmatprep.mubr.msk.f32.mxu0 %vm268_vm0, %v236_v17 }
  0x2e   : > { %10962 = vmatmul.mubr.msk.f32.gmra.mrb[10].mxu0 %vm268_vm0, %v237_v18 }
  0x2f   : > { %10964 = vmatprep.mubr.msk.f32.mxu0 %vm268_vm0, %v238_v19 }
  0x32   : > { %10965 = vmatmul.mubr.msk.f32.gmra.mrb[12].mxu0 %vm268_vm0, %v239_v20 }
  0x33   : > { %10967 = vmatprep.mubr.msk.f32.mxu0 %vm268_vm0, %v240_v21 }
  0x36   : > { %10968 = vmatmul.mubr.msk.f32.gmra.mrb[14].mxu0 %vm268_vm0, %v241_v22 }
  0x37   : > { %10970 = vmatprep.mubr.msk.f32.mxu0 %vm268_vm0, %v242_v23 }
  0x3a   : > { %10971 = vmatmul.mubr.msk.f32.gmra.mrb[16].mxu0 %vm268_vm0, %v243_v24 }
  0x3b   : > { %10973 = vmatprep.mubr.msk.f32.mxu0 %vm268_vm0, %v244_v25 }
  0x3e   : > { %10974 = vmatmul.mubr.msk.f32.gmra.mrb[18].mxu0 %vm268_vm0, %v245_v26 }
  0x3f   : > { %10976 = vmatprep.mubr.msk.f32.mxu0 %vm268_vm0, %v246_v27 }
  0x42   : > { %10977 = vmatmul.mubr.msk.f32.gmra.mrb[20].mxu0 %vm268_vm0, %v247_v28 }
  0x43   : > { %10979 = vmatprep.mubr.msk.f32.mxu0 %vm268_vm0, %v248_v29 }
  0x46   : > { %10980 = vmatmul.mubr.msk.f32.gmra.mrb[22].mxu0 %vm268_vm0, %v249_v30 }
  0x47   : > { %10982 = vmatprep.mubr.msk.f32.mxu0 %vm268_vm0, %v250_v31 }
  0x4a   : > { %10983 = vmatmul.mubr.msk.f32.gmra.mrb[24].mxu0 %vm268_vm0, %v251_v32 }
  0x4b   : > { %10985 = vmatprep.mubr.msk.f32.mxu0 %vm268_vm0, %v252_v33 }
  0x4e   : > { %10986 = vmatmul.mubr.msk.f32.gmra.mrb[26].mxu0 %vm268_vm0, %v253_v34 }
  0x4f   : > { %10988 = vmatprep.mubr.msk.f32.mxu0 %vm268_vm0, %v254_v35 }
  0x52   : > { %10989 = vmatmul.mubr.msk.f32.gmra.mrb[28].mxu0 %vm268_vm0, %v255_v36 }
  0x53   : > { %10991 = vmatprep.mubr.msk.f32.mxu0 %vm268_vm0, %v256_v37 }
  0x56   : > { %10992 = vmatmul.mubr.msk.f32.gmra.mrb[30].mxu0 %vm268_vm0, %v257_v38 }
  0xed   : > { %v10948_v40 = vpop.f32.mrb[0].mxu0 }
  0xee   : > { %v437_v41 = vadd.f32 %v10948_v40, %v13406_v39  ;;  %v431_v42 = vpop.f32.mrb[1].mxu0 }
  0xef   : > { %v432_v43 = vadd.f32 %v13406_v39, %v431_v42 }
  0xf0   : > { %v9952_v44 = vmul.f32 -1.442695, %v437_v41 }
  0xf1   : > { %v9951_v45 = vmul.f32 -1.442695, %v432_v43  ;;  %v10951_v46 = vpop.f32.mrb[2].mxu0 }
  0xf2   : > { %11637 = vpow2.f32 %v9952_v44  ;;  %v13411_v47 = vadd.f32 %v10951_v46, %v13406_v39  ;;  %v441_v48 = vpop.f32.mrb[3].mxu0 }
  0xf3   : > { %11639 = vpow2.f32 %v9951_v45  ;;  %v13414_v49 = vadd.f32 %v13406_v39, %v441_v48 }
  0xf4   : > { %v9954_v50 = vmul.f32 -1.442695, %v13411_v47 }
  0xf5   : > { %v9953_v51 = vmul.f32 -1.442695, %v13414_v49  ;;  %v10954_v52 = vpop.f32.mrb[4].mxu0 }
  0xf6   : > { %11641 = vpow2.f32 %v9954_v50  ;;  %v13419_v53 = vadd.f32 %v10954_v52, %v13406_v39  ;;  %v451_v54 = vpop.f32.mrb[5].mxu0 }
  0xf7   : > { %11643 = vpow2.f32 %v9953_v51  ;;  %v13422_v55 = vadd.f32 %v13406_v39, %v451_v54 }
  0xf8   : > { %v9956_v56 = vmul.f32 -1.442695, %v13419_v53 }
  0xf9   : > { %v9955_v57 = vmul.f32 -1.442695, %v13422_v55  ;;  %v10957_v58 = vpop.f32.mrb[6].mxu0 }
  0xfa   : > { %v461_v59 = vpop.f32.mrb[7].mxu0  ;;  %v13430_v0 = vadd.f32 %v10957_v58, %v13406_v39 }
  0xfb   : > { %11645 = vpow2.f32 %v9955_v57  ;;  %v13427_v60 = vadd.f32 %v13406_v39, %v461_v59 }
  0xfc   : > { %v11638_v61 = vpop.eup %11637  ;;  %11647 = vpow2.f32 %v9956_v56  ;;  %v9958_v7 = vmul.f32 -1.442695, %v13430_v0 }
  0xfd   : > { %v11640_v62 = vpop.eup %11639  ;;  %v687_v63 = vadd.f32 1.0, %v11638_v61  ;;  %v10960_v1 = vpop.f32.mrb[8].mxu0  ;;  %v9957_v3 = vmul.f32 -1.442695, %v13427_v60 }
  0xfe   : > { %v686_v2 = vadd.f32 1.0, %v11640_v62  ;;  %v471_v4 = vpop.f32.mrb[9].mxu0  ;;  %v13438_v14 = vadd.f32 %v10960_v1, %v13406_v39 }
  0xff   : > { %11649 = vrcp.f32 %v687_v63  ;;  %v13435_v11 = vadd.f32 %v13406_v39, %v471_v4 }
 0x100   : > { %v11642_v5 = vpop.eup %11641  ;;  %11651 = vrcp.f32 %v686_v2  ;;  %v9960_v21 = vmul.f32 -1.442695, %v13438_v14 }
 0x101   : > { %v11644_v6 = vpop.eup %11643  ;;  %v10963_v8 = vpop.f32.mrb[10].mxu0  ;;  %v689_v9 = vadd.f32 1.0, %v11642_v5  ;;  %11653 = vpow2.f32 %v9957_v3  ;;  %v9959_v16 = vmul.f32 -1.442695, %v13435_v11 }
 0x102   : > { %v688_v10 = vadd.f32 1.0, %v11644_v6  ;;  %v481_v12 = vpop.f32.mrb[11].mxu0  ;;  %v13454_v31 = vadd.f32 %v10963_v8, %v13406_v39 }
 0x103   : > { %v13447_v26 = vadd.f32 %v13406_v39, %v481_v12 }
 0x104   : > { %11655 = vrcp.f32 %v688_v10  ;;  %v9962_v45 = vmul.f32 -1.442695, %v13454_v31 }
 0x105   : > { %v11646_v13 = vpop.eup %11645  ;;  %11657 = vpow2.f32 %v9958_v7  ;;  %v10966_v15 = vpop.f32.mrb[12].mxu0  ;;  %v9961_v35 = vmul.f32 -1.442695, %v13447_v26 }
 0x106   : > { %11659 = vrcp.f32 %v689_v9  ;;  %v491_v17 = vpop.f32.mrb[13].mxu0  ;;  %v11648_v18 = vpop.eup %11647  ;;  %v690_v19 = vadd.f32 1.0, %v11646_v13  ;;  %v13488_v59 = vadd.f32 %v10966_v15, %v13406_v39 }
 0x107   : > { %v691_v25 = vadd.f32 1.0, %v11648_v18  ;;  %11661 = vpow2.f32 %v9959_v16  ;;  %v13475_v50 = vadd.f32 %v13406_v39, %v491_v17 }
 0x108   : > { %11663 = vrcp.f32 %v690_v19  ;;  %v9964_v7 = vmul.f32 -1.442695, %v13488_v59 }
 0x109   : > { %v11650_v20 = vpop.eup %11649  ;;  %v13442_v22 = vpop.f32.mrb[14].mxu0  ;;  %11665 = vpow2.f32 %v9960_v21 }
 0x10a   : > { %v11652_v23 = vpop.eup %11651  ;;  %v13444_v24 = vmul.f32 %v11650_v20, %v437_v41  ;;  %v501_v27 = vpop.f32.mrb[15].mxu0  ;;  %11667 = vrcp.f32 %v691_v25  ;;  %v13521_v19 = vadd.f32 %v13442_v22, %v13406_v39 }
 0x10b   : > { %v13449_v28 = vmul.f32 %v11652_v23, %v432_v43  ;;  %v11654_v29 = vpop.eup %11653  ;;  %11669 = vpow2.f32 %v9961_v35  ;;  %v13507_v10 = vadd.f32 %v13406_v39, %v501_v27 }
 0x10c   : > { %v817_v30 = vsel %vm268_vm0, %v13444_v24, 0.0  ;;  %v911_v32 = vmul.f32 %v13444_v24, %v13444_v24  ;;  %v692_v38 = vadd.f32 1.0, %v11654_v29 }
 0x10d   : > { %818 = vadd.xlane.f32.xlu0 %v817_v30  ;;  %v13458_v33 = vpop.f32.mrb[16].mxu0  ;;  %v910_v41 = vmul.f32 %v13449_v28, %v13449_v28  ;;  %v814_v44 = vsel %vm268_vm0, %v13449_v28, 0.0  ;;  %v9965_v20 = vmul.f32 -1.442695, %v13507_v10 }
 0x10e   : > { %v11656_v34 = vpop.eup %11655  ;;  %v13461_v36 = vpop.f32.mrb[17].mxu0  ;;  %v945_v40 = vsel %vm268_vm0, %v911_v32, 0.0  ;;  %11671 = vrcp.f32 %v692_v38 }
 0x10f   : > { %v11658_v37 = vpop.eup %11657  ;;  %v13467_v43 = vmul.f32 %v11656_v34, %v13414_v49  ;;  %946 = vadd.xlane.f32.xlu1 %v945_v40  ;;  %v942_v49 = vsel %vm268_vm0, %v910_v41, 0.0  ;;  %11673 = vpow2.f32 %v9962_v45  ;;  %v9966_v34 = vmul.f32 -1.442695, %v13521_v19 }
 0x110   : > { %v11660_v42 = vpop.eup %11659  ;;  %v693_v48 = vadd.f32 1.0, %v11658_v37  ;;  %v13541_v38 = vadd.f32 %v13406_v39, %v13461_v36  ;;  %v13555_v36 = vadd.f32 %v13458_v33, %v13406_v39 }
 0x111   : > { %815 = vadd.xlane.f32.xlu0 %v814_v44  ;;  %v13472_v46 = vpop.f32.mrb[18].mxu0  ;;  %v13480_v52 = vmul.f32 %v11660_v42, %v13411_v47  ;;  %v11662_v54 = vpop.eup %11661  ;;  %v820_v56 = vsel %vm268_vm0, %v13467_v43, 0.0  ;;  %v912_v57 = vmul.f32 %v13467_v43, %v13467_v43  ;;  %v9963_v47 = vmul.f32 -1.442695, %v13475_v50 }
 0x112   : > { %v13477_v51 = vpop.f32.mrb[19].mxu0  ;;  %v11664_v58 = vpop.eup %11663  ;;  %11675 = vrcp.f32 %v693_v48  ;;  %v694_v1 = vadd.f32 1.0, %v11662_v54 }
 0x113   : > { %943 = vadd.xlane.f32.xlu1 %v942_v49  ;;  %v11666_v63 = vpop.eup %11665  ;;  %v823_v2 = vsel %vm268_vm0, %v13480_v52, 0.0  ;;  %v913_v3 = vmul.f32 %v13480_v52, %v13480_v52  ;;  %v13500_v5 = vmul.f32 %v11664_v58, %v13422_v55  ;;  %v948_v6 = vsel %vm268_vm0, %v912_v57, 0.0 }
 0x114   : > { %v11668_v4 = vpop.eup %11667  ;;  %v695_v9 = vadd.f32 1.0, %v11666_v63  ;;  %11677 = vpow2.f32 %v9963_v47  ;;  %v9967_v49 = vmul.f32 -1.442695, %v13541_v38 }
 0x115   : > { %821 = vadd.xlane.f32.xlu0 %v820_v56  ;;  %v13490_v61 = vpop.f32.mrb[20].mxu0  ;;  %v13512_v13 = vmul.f32 %v11668_v4, %v13419_v53  ;;  %11679 = vrcp.f32 %v694_v1  ;;  %v951_v55 = vsel %vm268_vm0, %v913_v3, 0.0  ;;  %v11670_v15 = vpop.eup %11669  ;;  %v826_v16 = vsel %vm268_vm0, %v13500_v5, 0.0 }
 0x116   : > { %v13493_v62 = vpop.f32.mrb[21].mxu0  ;;  %v914_v17 = vmul.f32 %v13500_v5, %v13500_v5  ;;  %11681 = vpow2.f32 %v9964_v7  ;;  %v696_v25 = vadd.f32 1.0, %v11670_v15 }
 0x117   : > { %824 = vadd.xlane.f32.xlu1 %v823_v2  ;;  %11683 = vrcp.f32 %v695_v9  ;;  %v829_v27 = vsel %vm268_vm0, %v13512_v13, 0.0  ;;  %v915_v29 = vmul.f32 %v13512_v13, %v13512_v13  ;;  %v9968_v2 = vmul.f32 -1.442695, %v13555_v36 }
 0x118   : > { %v11672_v18 = vpop.eup %11671  ;;  %v954_v32 = vsel %vm268_vm0, %v914_v17, 0.0  ;;  %11685 = vpow2.f32 %v9965_v20 }
 0x119   : > { %949 = vadd.xlane.f32.xlu0 %v948_v6  ;;  %v13504_v8 = vpop.f32.mrb[22].mxu0  ;;  %v11674_v23 = vpop.eup %11673  ;;  %v13533_v22 = vmul.f32 %v11672_v18, %v13427_v60  ;;  %11687 = vrcp.f32 %v696_v25  ;;  %v957_v60 = vsel %vm268_vm0, %v915_v29, 0.0  ;;  %v13575_v6 = vadd.f32 %v13406_v39, %v13477_v51 }
 0x11a   : > { %v13509_v12 = vpop.f32.mrb[23].mxu0  ;;  %v697_v37 = vadd.f32 1.0, %v11674_v23  ;;  %11689 = vpow2.f32 %v9966_v34  ;;  %v13589_v51 = vadd.f32 %v13472_v46, %v13406_v39  ;;  %v13603_v34 = vadd.f32 %v13406_v39, %v13493_v62 }
 0x11b   : > { %952 = vadd.xlane.f32.xlu1 %v951_v55  ;;  %v832_v44 = vsel %vm268_vm0, %v13533_v22, 0.0  ;;  %v916_v45 = vmul.f32 %v13533_v22, %v13533_v22  ;;  %v13615_v62 = vadd.f32 %v13490_v61, %v13406_v39  ;;  %v9988_v61 = vld [vmem:[%s19018_s1 + $0x40] sm:$0xff] }
 0x11c   : > { %v11676_v30 = vpop.eup %11675  ;;  %11691 = vrcp.f32 %v697_v37 }
 0x11d   : > { %827 = vadd.xlane.f32.xlu0 %v826_v16  ;;  %v13523_v53 = vpop.f32.mrb[24].mxu0  ;;  %v13546_v41 = vmul.f32 %v11676_v30, %v13430_v0  ;;  %v960_v1 = vsel %vm268_vm0, %v916_v45, 0.0  ;;  %11693 = vpow2.f32 %v9967_v49  ;;  %v9970_v30 = vmul.f32 -1.442695, %v13589_v51 }
 0x11e   : > { %v13526_v21 = vpop.f32.mrb[25].mxu0  ;;  %v11678_v42 = vpop.eup %11677  ;;  %v9971_v49 = vmul.f32 -1.442695, %v13603_v34 }
 0x11f   : > { %830 = vadd.xlane.f32.xlu1 %v829_v27  ;;  %v11680_v48 = vpop.eup %11679  ;;  %v698_v57 = vadd.f32 1.0, %v11678_v42  ;;  %v835_v58 = vsel %vm268_vm0, %v13546_v41, 0.0  ;;  %v917_v47 = vmul.f32 %v13546_v41, %v13546_v41 }
 0x120   : > { %v11682_v56 = vpop.eup %11681  ;;  %v13567_v33 = vmul.f32 %v11680_v48, %v13435_v11  ;;  %v9986_v48 = vld [vmem:[%s19018_s1 + $0x30] sm:$0xff] }
 0x121   : > { %955 = vadd.xlane.f32.xlu0 %v954_v32  ;;  %v13537_v35 = vpop.f32.mrb[26].mxu0  ;;  %v11684_v63 = vpop.eup %11683  ;;  %v699_v4 = vadd.f32 1.0, %v11682_v56  ;;  %11695 = vrcp.f32 %v698_v57  ;;  %v963_v11 = vsel %vm268_vm0, %v917_v47, 0.0  ;;  %v9987_v56 = vld [vmem:[%s19018_s1 + $0x38] sm:$0xff] }
 0x122   : > { %v13543_v40 = vpop.f32.mrb[27].mxu0  ;;  %v13580_v9 = vmul.f32 %v11684_v63, %v13438_v14  ;;  %v11686_v55 = vpop.eup %11685  ;;  %v838_v15 = vsel %vm268_vm0, %v13567_v33, 0.0  ;;  %v918_v16 = vmul.f32 %v13567_v33, %v13567_v33  ;;  %11697 = vpow2.f32 %v9968_v2 }
 0x123   : > { %958 = vadd.xlane.f32.xlu1 %v957_v60  ;;  %v11688_v17 = vpop.eup %11687  ;;  %11699 = vrcp.f32 %v699_v4  ;;  %v9969_v14 = vmul.f32 -1.442695, %v13575_v6  ;;  %v700_v20 = vadd.f32 1.0, %v11686_v55  ;;  %v11528_v55 = vpack.c.bf16 %v9988_v61, %v9987_v56 }
 0x124   : > { %v11690_v18 = vpop.eup %11689  ;;  %v841_v23 = vsel %vm268_vm0, %v13580_v9, 0.0  ;;  %v919_v25 = vmul.f32 %v13580_v9, %v13580_v9  ;;  %v13597_v29 = vmul.f32 %v11688_v17, %v13447_v26  ;;  %v966_v46 = vsel %vm268_vm0, %v918_v16, 0.0 }
 0x125   : > { %833 = vadd.xlane.f32.xlu0 %v832_v44  ;;  %v13557_v0 = vpop.f32.mrb[28].mxu0  ;;  %v701_v32 = vadd.f32 1.0, %v11690_v18  ;;  %11701 = vpow2.f32 %v9969_v14  ;;  %v13641_v17 = vadd.f32 %v13406_v39, %v13509_v12  ;;  %v13653_v12 = vadd.f32 %v13504_v8, %v13406_v39 }
 0x126   : > { %v13560_v54 = vpop.f32.mrb[29].mxu0  ;;  %v11692_v27 = vpop.eup %11691  ;;  %11703 = vrcp.f32 %v700_v20  ;;  %v969_v60 = vsel %vm268_vm0, %v919_v25, 0.0  ;;  %v844_v42 = vsel %vm268_vm0, %v13597_v29, 0.0  ;;  %v920_v44 = vmul.f32 %v13597_v29, %v13597_v29 }
 0x127   : > { %836 = vadd.xlane.f32.xlu1 %v835_v58  ;;  %v13606_v37 = vmul.f32 %v11692_v27, %v13454_v31  ;;  %v11694_v26 = vpop.eup %11693  ;;  %11705 = vpow2.f32 %v9970_v30  ;;  %v9985_v31 = vld [vmem:[%s19018_s1 + $0x28] sm:$0xff]  ;;  %v9973_v27 = vmul.f32 -1.442695, %v13641_v17 }
 0x128   : > { %11707 = vrcp.f32 %v701_v32  ;;  %v702_v58 = vadd.f32 1.0, %v11694_v26  ;;  %v972_v4 = vsel %vm268_vm0, %v920_v44, 0.0  ;;  %v9974_v44 = vmul.f32 -1.442695, %v13653_v12 }
 0x129   : > { %961 = vadd.xlane.f32.xlu0 %v960_v1  ;;  %v13571_v3 = vpop.f32.mrb[30].mxu0  ;;  %v847_v47 = vsel %vm268_vm0, %v13606_v37, 0.0  ;;  %v921_v63 = vmul.f32 %v13606_v37, %v13606_v37  ;;  %11709 = vpow2.f32 %v9971_v49 }
 0x12a   : > { %v13577_v7 = vpop.f32.mrb[31].mxu0  ;;  %11711 = vrcp.f32 %v702_v58 }
 0x12b   : > { %964 = vadd.xlane.f32.xlu1 %v963_v11  ;;  %v11696_v45 = vpop.eup %11695  ;;  %v11524_v11 = vpack.c.bf16 %v9986_v48, %v9985_v31  ;;  %v13670_v31 = vadd.f32 %v13406_v39, %v13526_v21  ;;  %v13682_v21 = vadd.f32 %v13523_v53, %v13406_v39 }
 0x12c   : > { %v11698_v57 = vpop.eup %11697  ;;  %v13635_v2 = vmul.f32 %v11696_v45, %v13475_v50  ;;  %v975_v50 = vsel %vm268_vm0, %v921_v63, 0.0 }
 0x12d   : > { %839 = vadd.xlane.f32.xlu0 %v838_v15  ;;  %v11700_v1 = vpop.eup %11699  ;;  %v9972_v15 = vmul.f32 -1.442695, %v13615_v62  ;;  %v703_v16 = vadd.f32 1.0, %v11698_v57  ;;  %11525 = vmatprep.subr.bf16.mxu1 %v11524_v11 }
 0x12e   : > { %v13644_v14 = vmul.f32 %v11700_v1, %v13488_v59  ;;  %11527 = vmatpush3.bf16.msra.mxu1 %v11524_v11  ;;  %v850_v20 = vsel %vm268_vm0, %v13635_v2, 0.0  ;;  %v9989_v59 = vld [vmem:[%s19018_s1 + $0x48] sm:$0xff] }
 0x12f   : > { %842 = vadd.xlane.f32.xlu1 %v841_v23  ;;  %v11702_v18 = vpop.eup %11701  ;;  %v922_v23 = vmul.f32 %v13635_v2, %v13635_v2  ;;  %11529 = vmatprep.subr.bf16.mxu1 %v11528_v55  ;;  %11713 = vpow2.f32 %v9972_v15 }
 0x130   : > { %v11704_v25 = vpop.eup %11703  ;;  %11715 = vrcp.f32 %v703_v16  ;;  %v704_v30 = vadd.f32 1.0, %v11702_v18  ;;  %v853_v32 = vsel %vm268_vm0, %v13644_v14, 0.0  ;;  %v13696_v16 = vadd.f32 %v13406_v39, %v13543_v40 }
 0x131   : > { %967 = vadd.xlane.f32.xlu0 %v966_v46  ;;  %v11706_v46 = vpop.eup %11705  ;;  %v13664_v8 = vmul.f32 %v11704_v25, %v13507_v10  ;;  %11717 = vpow2.f32 %v9973_v27  ;;  %v13708_v40 = vadd.f32 %v13537_v35, %v13406_v39 }
 0x132   : > { %11531 = vmatpush3.bf16.msra.mxu1 %v11528_v55  ;;  %v11708_v26 = vpop.eup %11707  ;;  %v705_v45 = vadd.f32 1.0, %v11706_v46  ;;  %11719 = vrcp.f32 %v704_v30  ;;  %v9976_v55 = vmul.f32 -1.442695, %v13682_v21 }
 0x133   : > { %970 = vadd.xlane.f32.xlu1 %v969_v60  ;;  %v923_v60 = vmul.f32 %v13644_v14, %v13644_v14  ;;  %11002 = vmatprep.subr.mxu1 %v9989_v59  ;;  %v13673_v48 = vmul.f32 %v11708_v26, %v13521_v19  ;;  %v11710_v49 = vpop.eup %11709  ;;  %v856_v56 = vsel %vm268_vm0, %v13664_v8, 0.0  ;;  %v924_v61 = vmul.f32 %v13664_v8, %v13664_v8 }
 0x134   : > { %v11712_v57 = vpop.eup %11711  ;;  %11721 = vpow2.f32 %v9974_v44  ;;  %v9975_v19 = vmul.f32 -1.442695, %v13670_v31  ;;  %v9978_v26 = vmul.f32 -1.442695, %v13708_v40  ;;  %v13722_v44 = vadd.f32 %v13406_v39, %v13560_v54 }
 0x135   : > { %845 = vadd.xlane.f32.xlu0 %v844_v42  ;;  %v978_v42 = vsel %vm268_vm0, %v922_v23, 0.0  ;;  %v981_v10 = vsel %vm268_vm0, %v923_v60, 0.0  ;;  %11723 = vrcp.f32 %v705_v45  ;;  %v859_v63 = vsel %vm268_vm0, %v13673_v48, 0.0 }
 0x136   : > { %11003 = vmatpush3.msra.mxu1 %v9989_v59  ;;  %v925_v1 = vmul.f32 %v13673_v48, %v13673_v48  ;;  %v13690_v11 = vmul.f32 %v11712_v57, %v13541_v38  ;;  %v984_v53 = vsel %vm268_vm0, %v924_v61, 0.0  ;;  %11725 = vpow2.f32 %v9975_v19 }
 0x137   : > { %848 = vadd.xlane.f32.xlu1 %v847_v47  ;;  %v706_v47 = vadd.f32 1.0, %v11710_v49  ;;  %v13734_v54 = vadd.f32 %v13557_v0, %v13406_v39 }
 0x138   : > { %v987_v18 = vsel %vm268_vm0, %v925_v1, 0.0  ;;  %v926_v23 = vmul.f32 %v13690_v11, %v13690_v11 }
 0x139   : > { %973 = vadd.xlane.f32.xlu0 %v972_v4  ;;  %v11714_v58 = vpop.eup %11713  ;;  %11727 = vrcp.f32 %v706_v47 }
 0x13a   : > { %v11716_v4 = vpop.eup %11715  ;;  %v707_v15 = vadd.f32 1.0, %v11714_v58  ;;  %11729 = vpow2.f32 %v9976_v55  ;;  %v990_v35 = vsel %vm268_vm0, %v926_v23, 0.0  ;;  %v13748_v55 = vadd.f32 %v13406_v39, %v13577_v7 }
 0x13b   : > { %976 = vadd.xlane.f32.xlu1 %v975_v50  ;;  %v13699_v50 = vmul.f32 %v11716_v4, %v13555_v36  ;;  %v11718_v38 = vpop.eup %11717  ;;  %v9977_v36 = vmul.f32 -1.442695, %v13696_v16  ;;  %v9980_v4 = vmul.f32 -1.442695, %v13734_v54  ;;  %v13760_v7 = vadd.f32 %v13571_v3, %v13406_v39 }
 0x13c   : > { %v11720_v25 = vpop.eup %11719  ;;  %11731 = vrcp.f32 %v707_v15  ;;  %v708_v27 = vadd.f32 1.0, %v11718_v38 }
 0x13d   : > { %851 = vadd.xlane.f32.xlu0 %v850_v20  ;;  %v862_v20 = vsel %vm268_vm0, %v13690_v11, 0.0  ;;  %v865_v46 = vsel %vm268_vm0, %v13699_v50, 0.0  ;;  %v927_v30 = vmul.f32 %v13699_v50, %v13699_v50  ;;  %v13716_v60 = vmul.f32 %v11720_v25, %v13575_v6 }
 0x13e   : > { %v11722_v59 = vpop.eup %11721  ;;  %11733 = vpow2.f32 %v9977_v36  ;;  %v9982_v3 = vmul.f32 -1.442695, %v13760_v7 }
 0x13f   : > { %854 = vadd.xlane.f32.xlu1 %v853_v32  ;;  %v11724_v32 = vpop.eup %11723  ;;  %11735 = vrcp.f32 %v708_v27  ;;  %v868_v49 = vsel %vm268_vm0, %v13716_v60, 0.0 }
 0x140   : > { %v13725_v45 = vmul.f32 %v11724_v32, %v13589_v51  ;;  %v11726_v6 = vpop.eup %11725  ;;  %11737 = vpow2.f32 %v9978_v26  ;;  %v9979_v51 = vmul.f32 -1.442695, %v13722_v44 }
 0x141   : > { %979 = vadd.xlane.f32.xlu0 %v978_v42  ;;  %v709_v42 = vadd.f32 1.0, %v11722_v59  ;;  %v710_v19 = vadd.f32 1.0, %v11726_v6 }
 0x142   : > { %v871_v58 = vsel %vm268_vm0, %v13725_v45, 0.0  ;;  %v929_v47 = vmul.f32 %v13725_v45, %v13725_v45 }
 0x143   : > { %982 = vadd.xlane.f32.xlu1 %v981_v10  ;;  %v993_v10 = vsel %vm268_vm0, %v927_v30, 0.0  ;;  %v11728_v61 = vpop.eup %11727  ;;  %11739 = vrcp.f32 %v709_v42 }
 0x144   : > { %v11730_v57 = vpop.eup %11729  ;;  %v13742_v1 = vmul.f32 %v11728_v61, %v13603_v34  ;;  %11741 = vpow2.f32 %v9979_v51 }
 0x145   : > { %857 = vadd.xlane.f32.xlu0 %v856_v56  ;;  %v928_v56 = vmul.f32 %v13716_v60, %v13716_v60  ;;  %11743 = vrcp.f32 %v710_v19 }
 0x146   : > { %v874_v38 = vsel %vm268_vm0, %v13742_v1, 0.0  ;;  %11745 = vpow2.f32 %v9980_v4 }
 0x147   : > { %860 = vadd.xlane.f32.xlu1 %v859_v63  ;;  %v11732_v63 = vpop.eup %11731  ;;  %v996_v0 = vsel %vm268_vm0, %v928_v56, 0.0 }
 0x148   : > { %v13751_v15 = vmul.f32 %v11732_v63, %v13615_v62  ;;  %v11734_v34 = vpop.eup %11733  ;;  %v9981_v62 = vmul.f32 -1.442695, %v13748_v55 }
 0x149   : > { %985 = vadd.xlane.f32.xlu0 %v984_v53  ;;  %v711_v53 = vadd.f32 1.0, %v11730_v57  ;;  %v11736_v23 = vpop.eup %11735  ;;  %v712_v36 = vadd.f32 1.0, %v11734_v34 }
 0x14a   : > { %v11738_v25 = vpop.eup %11737  ;;  %v877_v59 = vsel %vm268_vm0, %v13751_v15, 0.0  ;;  %v931_v27 = vmul.f32 %v13751_v15, %v13751_v15  ;;  %v13768_v30 = vmul.f32 %v11736_v23, %v13641_v17 }
 0x14b   : > { %988 = vadd.xlane.f32.xlu1 %v987_v18  ;;  %v999_v18 = vsel %vm268_vm0, %v929_v47, 0.0  ;;  %11747 = vrcp.f32 %v711_v53  ;;  %v713_v32 = vadd.f32 1.0, %v11738_v25 }
 0x14c   : > { %11749 = vpow2.f32 %v9981_v62  ;;  %v1005_v26 = vsel %vm268_vm0, %v931_v27, 0.0  ;;  %v880_v17 = vsel %vm268_vm0, %v13768_v30, 0.0 }
 0x14d   : > { %863 = vadd.xlane.f32.xlu0 %v862_v20  ;;  %v930_v20 = vmul.f32 %v13742_v1, %v13742_v1  ;;  %11751 = vrcp.f32 %v712_v36 }
 0x14e   : > { %11753 = vpow2.f32 %v9982_v3 }
 0x14f   : > { %866 = vadd.xlane.f32.xlu1 %v865_v46  ;;  %v11740_v46 = vpop.eup %11739  ;;  %v1002_v39 = vsel %vm268_vm0, %v930_v20, 0.0  ;;  %11755 = vrcp.f32 %v713_v32 }
 0x150   : > { %v11742_v42 = vpop.eup %11741 }
 0x151   : > { %991 = vadd.xlane.f32.xlu0 %v990_v35  ;;  %v13773_v35 = vmul.f32 %v11740_v46, %v13653_v12  ;;  %v11744_v6 = vpop.eup %11743  ;;  %v714_v56 = vadd.f32 1.0, %v11742_v42 }
 0x152   : > { %v13785_v57 = vmul.f32 %v11744_v6, %v13670_v31 }
 0x153   : > { %994 = vadd.xlane.f32.xlu1 %v993_v10  ;;  %v932_v10 = vmul.f32 %v13768_v30, %v13768_v30  ;;  %v883_v12 = vsel %vm268_vm0, %v13773_v35, 0.0  ;;  %v933_v61 = vmul.f32 %v13773_v35, %v13773_v35  ;;  %11757 = vrcp.f32 %v714_v56 }
 0x154   : > { %v886_v4 = vsel %vm268_vm0, %v13785_v57, 0.0  ;;  %v934_v31 = vmul.f32 %v13785_v57, %v13785_v57 }
 0x155   : > { %869 = vadd.xlane.f32.xlu0 %v868_v49  ;;  %v11746_v49 = vpop.eup %11745  ;;  %v1008_v19 = vsel %vm268_vm0, %v932_v10, 0.0  ;;  %v1011_v63 = vsel %vm268_vm0, %v933_v61, 0.0 }
 0x156   : > { %v11748_v51 = vpop.eup %11747  ;;  %v1014_v62 = vsel %vm268_vm0, %v934_v31, 0.0 }
 0x157   : > { %872 = vadd.xlane.f32.xlu1 %v871_v58  ;;  %v715_v58 = vadd.f32 1.0, %v11746_v49  ;;  %v13789_v47 = vmul.f32 %v11748_v51, %v13682_v21 }
 0x159   : > { %997 = vadd.xlane.f32.xlu0 %v996_v0  ;;  %v11750_v0 = vpop.eup %11749  ;;  %11759 = vrcp.f32 %v715_v58  ;;  %v889_v21 = vsel %vm268_vm0, %v13789_v47, 0.0 }
 0x15a   : > { %v11752_v53 = vpop.eup %11751  ;;  %v716_v34 = vadd.f32 1.0, %v11750_v0 }
 0x15b   : > { %1000 = vadd.xlane.f32.xlu1 %v999_v18  ;;  %v11754_v18 = vpop.eup %11753  ;;  %v13801_v23 = vmul.f32 %v11752_v53, %v13696_v16 }
 0x15c   : > { %v11756_v20 = vpop.eup %11755  ;;  %v717_v25 = vadd.f32 1.0, %v11754_v18  ;;  %11761 = vrcp.f32 %v716_v34 }
 0x15d   : > { %875 = vadd.xlane.f32.xlu0 %v874_v38  ;;  %v935_v38 = vmul.f32 %v13789_v47, %v13789_v47  ;;  %v13805_v36 = vmul.f32 %v11756_v20, %v13708_v40  ;;  %v892_v27 = vsel %vm268_vm0, %v13801_v23, 0.0  ;;  %v936_v46 = vmul.f32 %v13801_v23, %v13801_v23  ;;  %v11758_v16 = vpop.eup %11757 }
 0x15e   : > { %11763 = vrcp.f32 %v717_v25  ;;  %v13817_v32 = vmul.f32 %v11758_v16, %v13722_v44 }
 0x15f   : > { %878 = vadd.xlane.f32.xlu1 %v877_v59  ;;  %v1017_v59 = vsel %vm268_vm0, %v935_v38, 0.0  ;;  %v937_v40 = vmul.f32 %v13805_v36, %v13805_v36 }
 0x160   : > { %v898_v10 = vsel %vm268_vm0, %v13817_v32, 0.0  ;;  %v938_v6 = vmul.f32 %v13817_v32, %v13817_v32 }
 0x161   : > { %1003 = vadd.xlane.f32.xlu0 %v1002_v39  ;;  %v895_v39 = vsel %vm268_vm0, %v13805_v36, 0.0 }
 0x162   : > { %v1026_v61 = vsel %vm268_vm0, %v938_v6, 0.0 }
 0x163   : > { %1006 = vadd.xlane.f32.xlu1 %v1005_v26  ;;  %v11760_v3 = vpop.eup %11759  ;;  %v1020_v26 = vsel %vm268_vm0, %v936_v46, 0.0 }
 0x164   : > { %v13821_v42 = vmul.f32 %v11760_v3, %v13734_v54 }
 0x165   : > { %881 = vadd.xlane.f32.xlu0 %v880_v17  ;;  %v1023_v17 = vsel %vm268_vm0, %v937_v40, 0.0 }
 0x166   : > { %v11762_v49 = vpop.eup %11761  ;;  %v901_v44 = vsel %vm268_vm0, %v13821_v42, 0.0  ;;  %v939_v56 = vmul.f32 %v13821_v42, %v13821_v42 }
 0x167   : > { %884 = vadd.xlane.f32.xlu1 %v883_v12  ;;  %v13833_v54 = vmul.f32 %v11762_v49, %v13748_v55 }
 0x168   : > { %v11764_v12 = vpop.eup %11763 }
 0x169   : > { %1009 = vadd.xlane.f32.xlu0 %v1008_v19  ;;  %v13837_v51 = vmul.f32 %v11764_v12, %v13760_v7  ;;  %v1029_v19 = vsel %vm268_vm0, %v939_v56, 0.0  ;;  %v904_v58 = vsel %vm268_vm0, %v13833_v54, 0.0 }
 0x16b   : > { %1012 = vadd.xlane.f32.xlu1 %v1011_v63  ;;  %v940_v63 = vmul.f32 %v13833_v54, %v13833_v54  ;;  %v907_v55 = vsel %vm268_vm0, %v13837_v51, 0.0  ;;  %v941_v0 = vmul.f32 %v13837_v51, %v13837_v51 }
 0x16d   : > { %887 = vadd.xlane.f32.xlu0 %v886_v4  ;;  %v1032_v7 = vsel %vm268_vm0, %v940_v63, 0.0  ;;  %v1035_v4 = vsel %vm268_vm0, %v941_v0, 0.0 }
 0x16f   : > { %890 = vadd.xlane.f32.xlu1 %v889_v21 }
 0x171   : > { %1015 = vadd.xlane.f32.xlu0 %v1014_v62 }
 0x173   : > { %1018 = vadd.xlane.f32.xlu1 %v1017_v59 }
 0x175   : > { %893 = vadd.xlane.f32.xlu0 %v892_v27 }
 0x177   : > { %896 = vadd.xlane.f32.xlu1 %v895_v39 }
 0x179   : > { %1021 = vadd.xlane.f32.xlu0 %v1020_v26 }
 0x17b   : > { %1024 = vadd.xlane.f32.xlu1 %v1023_v17 }
 0x17d   : > { %899 = vadd.xlane.f32.xlu0 %v898_v10 }
 0x17f   : > { %902 = vadd.xlane.f32.xlu1 %v901_v44 }
 0x181   : > { %1027 = vadd.xlane.f32.xlu0 %v1026_v61 }
 0x183   : > { %1030 = vadd.xlane.f32.xlu1 %v1029_v19 }
 0x185   : > { %905 = vadd.xlane.f32.xlu0 %v904_v58 }
 0x187   : > { %908 = vadd.xlane.f32.xlu1 %v907_v55 }
 0x189   : > { %1033 = vadd.xlane.f32.xlu0 %v1032_v7 }
 0x18b   : > { %1036 = vadd.xlane.f32.xlu1 %v1035_v4 }
 0x19a   : > { %v819_v31 = vpop.xlane.xlu0 %818 }
 0x19b   : > { %v1039_v53 = vmul.f32 0.025, %v819_v31 }
 0x19c   : > { %v947_v34 = vpop.xlane.xlu1 %946 }
 0x19d   : > { %v1103_v18 = vmul.f32 %v1039_v53, %v1039_v53  ;;  %v1071_v21 = vmul.f32 0.025, %v947_v34  ;;  %v1231_v4 = vsub.f32 %v13444_v24, %v1039_v53 }
 0x19e   : > { %v816_v38 = vpop.xlane.xlu0 %815 }
 0x19f   : > { %v1038_v20 = vmul.f32 0.025, %v816_v38  ;;  %v1135_v62 = vsub.f32 %v1071_v21, %v1103_v18 }
 0x1a0   : > { %v944_v59 = vpop.xlane.xlu1 %943 }
 0x1a1   : > { %v1102_v25 = vmul.f32 %v1038_v20, %v1038_v20  ;;  %v1167_v27 = vadd.f32 1e-05, %v1135_v62  ;;  %v1070_v46 = vmul.f32 0.025, %v944_v59 }
 0x1a2   : > { %v822_v16 = vpop.xlane.xlu0 %821 }
 0x1a3   : > { %v1040_v39 = vmul.f32 0.025, %v822_v16  ;;  %11765 = vrsqrt.f32 %v1167_v27  ;;  %v1134_v40 = vsub.f32 %v1070_v46, %v1102_v25  ;;  %v1230_v25 = vsub.f32 %v13449_v28, %v1038_v20  ;;  %v13865_v46 = vld [vmem:[%s19019_s2 + $0x5] ss:$0 sm:$0xff] }
 0x1a4   : > { %v825_v3 = vpop.xlane.xlu1 %824 }
 0x1a5   : > { %v1166_v26 = vadd.f32 1e-05, %v1134_v40  ;;  %v13850_v17 = vmul.f32 0.025, %v825_v3  ;;  %v1104_v6 = vmul.f32 %v1040_v39, %v1040_v39 }
 0x1a6   : > { %v950_v10 = vpop.xlane.xlu0 %949 }
 0x1a7   : > { %v1072_v49 = vmul.f32 0.025, %v950_v10  ;;  %11767 = vrsqrt.f32 %v1166_v26  ;;  %v1105_v12 = vmul.f32 %v13850_v17, %v13850_v17 }
 0x1a8   : > { %v953_v56 = vpop.xlane.xlu1 %952 }
 0x1a9   : > { %v1136_v44 = vsub.f32 %v1072_v49, %v1104_v6  ;;  %v1073_v61 = vmul.f32 0.025, %v953_v56  ;;  %v1232_v56 = vsub.f32 %v13467_v43, %v1040_v39 }
 0x1aa   : > { %v828_v19 = vpop.xlane.xlu0 %827 }
 0x1ab   : > { %v1168_v58 = vadd.f32 1e-05, %v1136_v44  ;;  %v13854_v63 = vmul.f32 0.025, %v828_v19  ;;  %v1137_v55 = vsub.f32 %v1073_v61, %v1105_v12  ;;  %v13876_v44 = vld [vmem:[%s19019_s2 + $0x9] ss:$0 sm:$0xff] }
 0x1ac   : > { %v831_v0 = vpop.xlane.xlu1 %830 }
 0x1ad   : > { %11769 = vrsqrt.f32 %v1168_v58  ;;  %v11766_v7 = vpop.eup %11765  ;;  %v1169_v31 = vadd.f32 1e-05, %v1137_v55  ;;  %v13857_v18 = vmul.f32 0.025, %v831_v0  ;;  %v1106_v21 = vmul.f32 %v13854_v63, %v13854_v63 }
 0x1ae   : > { %v956_v34 = vpop.xlane.xlu0 %955  ;;  %v1263_v62 = vmul.f32 %v11766_v7, %v1231_v4 }
 0x1af   : > { %v1074_v38 = vmul.f32 0.025, %v956_v34  ;;  %11771 = vrsqrt.f32 %v1169_v31  ;;  %v1107_v53 = vmul.f32 %v13857_v18, %v13857_v18  ;;  %v1233_v34 = vsub.f32 %v13480_v52, %v13850_v17 }
 0x1b0   : > { %v959_v27 = vpop.xlane.xlu1 %958  ;;  %v1300_v28 = vmul.f32 %v13865_v46, %v1263_v62 }
 0x1b1   : > { %v1138_v59 = vsub.f32 %v1074_v38, %v1106_v21  ;;  %v11768_v24 = vpop.eup %11767  ;;  %v1075_v16 = vmul.f32 0.025, %v959_v27 }
 0x1b2   : > { %v834_v40 = vpop.xlane.xlu0 %833  ;;  %v1262_v10 = vmul.f32 %v11768_v24, %v1230_v25  ;;  %v1337_v4 = vadd.f32 %v13876_v44, %v1300_v28 }
 0x1b3   : > { %v1170_v3 = vadd.f32 1e-05, %v1138_v59  ;;  %v13869_v26 = vmul.f32 0.025, %v834_v40  ;;  %v1139_v6 = vsub.f32 %v1075_v16, %v1107_v53 }
 0x1b4   : > { %v837_v20 = vpop.xlane.xlu1 %836  ;;  %v1299_v49 = vmul.f32 %v13865_v46, %v1262_v10 }
 0x1b5   : > { %11773 = vrsqrt.f32 %v1170_v3  ;;  %v1171_v12 = vadd.f32 1e-05, %v1139_v6  ;;  %v13879_v61 = vmul.f32 0.025, %v837_v20  ;;  %v1108_v55 = vmul.f32 %v13869_v26, %v13869_v26 }
 0x1b6   : > { %v962_v19 = vpop.xlane.xlu0 %961  ;;  %v1336_v7 = vadd.f32 %v13876_v44, %v1299_v49  ;;  %v1234_v3 = vsub.f32 %v13500_v5, %v13854_v63 }
 0x1b7   : > { %v11770_v58 = vpop.eup %11769  ;;  %v1076_v0 = vmul.f32 0.025, %v962_v19  ;;  %11775 = vrsqrt.f32 %v1171_v12  ;;  %v1109_v38 = vmul.f32 %v13879_v61, %v13879_v61 }
 0x1b8   : > { %v1264_v31 = vmul.f32 %v11770_v58, %v1232_v56  ;;  %v965_v43 = vpop.xlane.xlu1 %964  ;;  %11004 = vmatprep.mubr.msk.f32.mxu1 %vm268_vm0, %v1336_v7  ;;  %v1235_v58 = vsub.f32 %v13512_v13, %v13857_v18 }
 0x1b9   : > { %v1140_v21 = vsub.f32 %v1076_v0, %v1108_v55  ;;  %v11772_v39 = vpop.eup %11771  ;;  %v1077_v62 = vmul.f32 0.025, %v965_v43  ;;  %11005 = vmatmul.mubr.msk.f32.vlgmr.msra.gmra.mrb[0].mxu1 %vm268_vm0, %v1337_v4 }
 0x1ba   : > { %v840_v25 = vpop.xlane.xlu0 %839  ;;  %v1301_v59 = vmul.f32 %v13865_v46, %v1264_v31  ;;  %v1265_v53 = vmul.f32 %v11772_v39, %v1233_v34 }
 0x1bb   : > { %v1172_v27 = vadd.f32 1e-05, %v1140_v21  ;;  %v13892_v24 = vmul.f32 0.025, %v840_v25  ;;  %v1141_v16 = vsub.f32 %v1077_v62, %v1109_v38  ;;  %v1236_v62 = vsub.f32 %v13533_v22, %v13869_v26 }
 0x1bc   : > { %v1338_v52 = vadd.f32 %v13876_v44, %v1301_v59  ;;  %v843_v17 = vpop.xlane.xlu1 %842  ;;  %v1302_v40 = vmul.f32 %v13865_v46, %v1265_v53 }
 0x1bd   : > { %11777 = vrsqrt.f32 %v1172_v27  ;;  %v1173_v10 = vadd.f32 1e-05, %v1141_v16  ;;  %v13898_v6 = vmul.f32 0.025, %v843_v17  ;;  %v1110_v49 = vmul.f32 %v13892_v24, %v13892_v24 }
 0x1be   : > { %11007 = vmatprep.mubr.msk.f32.mxu1 %vm268_vm0, %v1338_v52  ;;  %v968_v28 = vpop.xlane.xlu0 %967  ;;  %v1339_v12 = vadd.f32 %v13876_v44, %v1302_v40 }
 0x1bf   : > { %v11774_v20 = vpop.eup %11773  ;;  %v1078_v56 = vmul.f32 0.025, %v968_v28  ;;  %11779 = vrsqrt.f32 %v1173_v10  ;;  %v1111_v0 = vmul.f32 %v13898_v6, %v13898_v6 }
 0x1c0   : > { %v1266_v19 = vmul.f32 %v11774_v20, %v1234_v3  ;;  %v971_v5 = vpop.xlane.xlu1 %970  ;;  %11008 = vmatmul.mubr.msk.f32.gmra.mrb[2].mxu1 %vm268_vm0, %v1339_v12  ;;  %v1237_v3 = vsub.f32 %v13546_v41, %v13879_v61 }
 0x1c1   : > { %v1142_v55 = vsub.f32 %v1078_v56, %v1110_v49  ;;  %v11776_v63 = vpop.eup %11775  ;;  %v1079_v7 = vmul.f32 0.025, %v971_v5 }
 0x1c2   : > { %v846_v4 = vpop.xlane.xlu0 %845  ;;  %v1303_v31 = vmul.f32 %v13865_v46, %v1266_v19  ;;  %v1267_v43 = vmul.f32 %v11776_v63, %v1235_v58  ;;  %v1238_v63 = vsub.f32 %v13567_v33, %v13892_v24 }
 0x1c3   : > { %v1174_v34 = vadd.f32 1e-05, %v1142_v55  ;;  %v13910_v21 = vmul.f32 0.025, %v846_v4  ;;  %v1143_v39 = vsub.f32 %v1079_v7, %v1111_v0 }
 0x1c4   : > { %v1340_v38 = vadd.f32 %v13876_v44, %v1303_v31  ;;  %v849_v13 = vpop.xlane.xlu1 %848  ;;  %v1304_v18 = vmul.f32 %v13865_v46, %v1267_v43 }
 0x1c5   : > { %11781 = vrsqrt.f32 %v1174_v34  ;;  %v1175_v25 = vadd.f32 1e-05, %v1143_v39  ;;  %v13916_v59 = vmul.f32 0.025, %v849_v13  ;;  %v1112_v16 = vmul.f32 %v13910_v21, %v13910_v21 }
 0x1c6   : > { %11010 = vmatprep.mubr.msk.f32.mxu1 %vm268_vm0, %v1340_v38  ;;  %v974_v27 = vpop.xlane.xlu0 %973  ;;  %v1341_v17 = vadd.f32 %v13876_v44, %v1304_v18  ;;  %v1239_v13 = vsub.f32 %v13580_v9, %v13898_v6 }
 0x1c7   : > { %v11778_v53 = vpop.eup %11777  ;;  %v1080_v52 = vmul.f32 0.025, %v974_v27  ;;  %11783 = vrsqrt.f32 %v1175_v25  ;;  %v1113_v28 = vmul.f32 %v13916_v59, %v13916_v59 }
 0x1c8   : > { %v1268_v40 = vmul.f32 %v11778_v53, %v1236_v62  ;;  %v977_v22 = vpop.xlane.xlu1 %976  ;;  %11011 = vmatmul.mubr.msk.f32.gmra.mrb[4].mxu1 %vm268_vm0, %v1341_v17 }
 0x1c9   : > { %v1144_v10 = vsub.f32 %v1080_v52, %v1112_v16  ;;  %v11780_v26 = vpop.eup %11779  ;;  %v1081_v20 = vmul.f32 0.025, %v977_v22 }
 0x1ca   : > { %v852_v49 = vpop.xlane.xlu0 %851  ;;  %v1305_v56 = vmul.f32 %v13865_v46, %v1268_v40  ;;  %v1269_v58 = vmul.f32 %v11780_v26, %v1237_v3 }
 0x1cb   : > { %v1176_v12 = vadd.f32 1e-05, %v1144_v10  ;;  %v13928_v19 = vmul.f32 0.025, %v852_v49  ;;  %v1145_v55 = vsub.f32 %v1081_v20, %v1113_v28  ;;  %v1240_v10 = vsub.f32 %v13597_v29, %v13910_v21 }
 0x1cc   : > { %v1342_v5 = vadd.f32 %v13876_v44, %v1305_v56  ;;  %v855_v41 = vpop.xlane.xlu1 %854  ;;  %v1306_v61 = vmul.f32 %v13865_v46, %v1269_v58 }
 0x1cd   : > { %11785 = vrsqrt.f32 %v1176_v12  ;;  %v1177_v0 = vadd.f32 1e-05, %v1145_v55  ;;  %v13934_v7 = vmul.f32 0.025, %v855_v41  ;;  %v1114_v34 = vmul.f32 %v13928_v19, %v13928_v19 }
 0x1ce   : > { %11013 = vmatprep.mubr.msk.f32.mxu1 %vm268_vm0, %v1342_v5  ;;  %v980_v4 = vpop.xlane.xlu0 %979  ;;  %v1343_v39 = vadd.f32 %v13876_v44, %v1306_v61  ;;  %v1241_v55 = vsub.f32 %v13606_v37, %v13916_v59 }
 0x1cf   : > { %v11782_v31 = vpop.eup %11781  ;;  %v1082_v43 = vmul.f32 0.025, %v980_v4  ;;  %11787 = vrsqrt.f32 %v1177_v0  ;;  %v1115_v62 = vmul.f32 %v13934_v7, %v13934_v7 }
 0x1d0   : > { %v1270_v38 = vmul.f32 %v11782_v31, %v1238_v63  ;;  %v983_v33 = vpop.xlane.xlu1 %982  ;;  %11014 = vmatmul.mubr.msk.f32.gmra.mrb[6].mxu1 %vm268_vm0, %v1343_v39 }
 0x1d1   : > { %v1146_v18 = vsub.f32 %v1082_v43, %v1114_v34  ;;  %v11784_v24 = vpop.eup %11783  ;;  %v1083_v25 = vmul.f32 0.025, %v983_v33 }
 0x1d2   : > { %v858_v27 = vpop.xlane.xlu0 %857  ;;  %v1307_v53 = vmul.f32 %v13865_v46, %v1270_v38  ;;  %v1271_v17 = vmul.f32 %v11784_v24, %v1239_v13  ;;  %v1242_v38 = vsub.f32 %v13635_v2, %v13928_v19 }
 0x1d3   : > { %v1178_v16 = vadd.f32 1e-05, %v1146_v18  ;;  %v13946_v52 = vmul.f32 0.025, %v858_v27  ;;  %v1147_v40 = vsub.f32 %v1083_v25, %v1115_v62 }
 0x1d4   : > { %v1344_v3 = vadd.f32 %v13876_v44, %v1307_v53  ;;  %v861_v9 = vpop.xlane.xlu1 %860  ;;  %v1308_v6 = vmul.f32 %v13865_v46, %v1271_v17 }
 0x1d5   : > { %11789 = vrsqrt.f32 %v1178_v16  ;;  %v1179_v22 = vadd.f32 1e-05, %v1147_v40  ;;  %v13952_v26 = vmul.f32 0.025, %v861_v9  ;;  %v1116_v49 = vmul.f32 %v13946_v52, %v13946_v52 }
 0x1d6   : > { %11016 = vmatprep.mubr.msk.f32.mxu1 %vm268_vm0, %v1344_v3  ;;  %v986_v28 = vpop.xlane.xlu0 %985  ;;  %v1345_v12 = vadd.f32 %v13876_v44, %v1308_v6  ;;  %v1243_v16 = vsub.f32 %v13644_v14, %v13934_v7 }
 0x1d7   : > { %v11786_v20 = vpop.eup %11785  ;;  %v1084_v56 = vmul.f32 0.025, %v986_v28  ;;  %11791 = vrsqrt.f32 %v1179_v22  ;;  %v1117_v41 = vmul.f32 %v13952_v26, %v13952_v26 }
 0x1d8   : > { %v1272_v58 = vmul.f32 %v11786_v20, %v1240_v10  ;;  %v989_v29 = vpop.xlane.xlu1 %988  ;;  %11017 = vmatmul.mubr.msk.f32.gmra.mrb[8].mxu1 %vm268_vm0, %v1345_v12 }
 0x1d9   : > { %v1148_v5 = vsub.f32 %v1084_v56, %v1116_v49  ;;  %v11788_v21 = vpop.eup %11787  ;;  %v1085_v61 = vmul.f32 0.025, %v989_v29  ;;  %v1244_v56 = vsub.f32 %v13664_v8, %v13946_v52 }
 0x1da   : > { %v864_v63 = vpop.xlane.xlu0 %863  ;;  %v1309_v0 = vmul.f32 %v13865_v46, %v1272_v58  ;;  %v1273_v34 = vmul.f32 %v11788_v21, %v1241_v55 }
 0x1db   : > { %v1180_v4 = vadd.f32 1e-05, %v1148_v5  ;;  %v13964_v31 = vmul.f32 0.025, %v864_v63  ;;  %v1149_v43 = vsub.f32 %v1085_v61, %v1117_v41  ;;  %v1245_v63 = vsub.f32 %v13673_v48, %v13952_v26 }
 0x1dc   : > { %v1346_v39 = vadd.f32 %v13876_v44, %v1309_v0  ;;  %v867_v37 = vpop.xlane.xlu1 %866  ;;  %v1310_v59 = vmul.f32 %v13865_v46, %v1273_v34 }
 0x1dd   : > { %11793 = vrsqrt.f32 %v1180_v4  ;;  %v1181_v13 = vadd.f32 1e-05, %v1149_v43  ;;  %v13970_v18 = vmul.f32 0.025, %v867_v37  ;;  %v1118_v62 = vmul.f32 %v13964_v31, %v13964_v31 }
 0x1de   : > { %11019 = vmatprep.mubr.msk.f32.mxu1 %vm268_vm0, %v1346_v39  ;;  %v992_v33 = vpop.xlane.xlu0 %991  ;;  %v1347_v27 = vadd.f32 %v13876_v44, %v1310_v59 }
 0x1df   : > { %v11790_v24 = vpop.eup %11789  ;;  %v1086_v25 = vmul.f32 0.025, %v992_v33  ;;  %11795 = vrsqrt.f32 %v1181_v13  ;;  %v1119_v40 = vmul.f32 %v13970_v18, %v13970_v18 }
 0x1e0   : > { %v1274_v53 = vmul.f32 %v11790_v24, %v1242_v38  ;;  %v995_v2 = vpop.xlane.xlu1 %994  ;;  %11020 = vmatmul.mubr.msk.f32.gmra.mrb[10].mxu1 %vm268_vm0, %v1347_v27  ;;  %v1246_v24 = vsub.f32 %v13690_v11, %v13964_v31 }
 0x1e1   : > { %v1150_v17 = vsub.f32 %v1086_v25, %v1118_v62  ;;  %v11792_v19 = vpop.eup %11791  ;;  %v1087_v3 = vmul.f32 0.025, %v995_v2 }
 0x1e2   : > { %v870_v9 = vpop.xlane.xlu0 %869  ;;  %v1311_v6 = vmul.f32 %v13865_v46, %v1274_v53  ;;  %v1275_v28 = vmul.f32 %v11792_v19, %v1243_v16 }
 0x1e3   : > { %v1182_v10 = vadd.f32 1e-05, %v1150_v17  ;;  %v13982_v22 = vmul.f32 0.025, %v870_v9  ;;  %v1151_v20 = vsub.f32 %v1087_v3, %v1119_v40  ;;  %v1247_v40 = vsub.f32 %v13699_v50, %v13970_v18 }
 0x1e4   : > { %v1348_v49 = vadd.f32 %v13876_v44, %v1311_v6  ;;  %v873_v14 = vpop.xlane.xlu1 %872  ;;  %v1312_v7 = vmul.f32 %v13865_v46, %v1275_v28 }
 0x1e5   : > { %11797 = vrsqrt.f32 %v1182_v10  ;;  %v1183_v12 = vadd.f32 1e-05, %v1151_v20  ;;  %v13988_v58 = vmul.f32 0.025, %v873_v14  ;;  %v1120_v29 = vmul.f32 %v13982_v22, %v13982_v22 }
 0x1e6   : > { %11022 = vmatprep.mubr.msk.f32.mxu1 %vm268_vm0, %v1348_v49  ;;  %v998_v55 = vpop.xlane.xlu0 %997  ;;  %v1349_v41 = vadd.f32 %v13876_v44, %v1312_v7 }
 0x1e7   : > { %v11794_v5 = vpop.eup %11793  ;;  %v1088_v21 = vmul.f32 0.025, %v998_v55  ;;  %11799 = vrsqrt.f32 %v1183_v12  ;;  %v1121_v4 = vmul.f32 %v13988_v58, %v13988_v58  ;;  %v1248_v12 = vsub.f32 %v13716_v60, %v13982_v22 }
 0x1e8   : > { %v1276_v61 = vmul.f32 %v11794_v5, %v1244_v56  ;;  %v1001_v8 = vpop.xlane.xlu1 %1000  ;;  %11023 = vmatmul.mubr.msk.f32.gmra.mrb[12].mxu1 %vm268_vm0, %v1349_v41 }
 0x1e9   : > { %v1152_v0 = vsub.f32 %v1088_v21, %v1120_v29  ;;  %v11796_v52 = vpop.eup %11795  ;;  %v1089_v34 = vmul.f32 0.025, %v1001_v8  ;;  %v1249_v8 = vsub.f32 %v13725_v45, %v13988_v58 }
 0x1ea   : > { %v876_v43 = vpop.xlane.xlu0 %875  ;;  %v1313_v39 = vmul.f32 %v13865_v46, %v1276_v61  ;;  %v1277_v38 = vmul.f32 %v11796_v52, %v1245_v63 }
 0x1eb   : > { %v1184_v37 = vadd.f32 1e-05, %v1152_v0  ;;  %v14000_v59 = vmul.f32 0.025, %v876_v43  ;;  %v1153_v13 = vsub.f32 %v1089_v34, %v1121_v4 }
 0x1ec   : > { %v1350_v33 = vadd.f32 %v13876_v44, %v1313_v39  ;;  %v879_v48 = vpop.xlane.xlu1 %878  ;;  %v1314_v26 = vmul.f32 %v13865_v46, %v1277_v38 }
 0x1ed   : > { %11801 = vrsqrt.f32 %v1184_v37  ;;  %v1185_v62 = vadd.f32 1e-05, %v1153_v13  ;;  %v14006_v25 = vmul.f32 0.025, %v879_v48  ;;  %v1122_v16 = vmul.f32 %v14000_v59, %v14000_v59 }
 0x1ee   : > { %11025 = vmatprep.mubr.msk.f32.mxu1 %vm268_vm0, %v1350_v33  ;;  %v1004_v27 = vpop.xlane.xlu0 %1003  ;;  %v1351_v2 = vadd.f32 %v13876_v44, %v1314_v26  ;;  %v1250_v26 = vsub.f32 %v13742_v1, %v14000_v59 }
 0x1ef   : > { %v11798_v53 = vpop.eup %11797  ;;  %v1090_v17 = vmul.f32 0.025, %v1004_v27  ;;  %11803 = vrsqrt.f32 %v1185_v62  ;;  %v1123_v9 = vmul.f32 %v14006_v25, %v14006_v25 }
 0x1f0   : > { %v1278_v19 = vmul.f32 %v11798_v53, %v1246_v24  ;;  %v1007_v11 = vpop.xlane.xlu1 %1006  ;;  %11026 = vmatmul.mubr.msk.f32.gmra.mrb[14].mxu1 %vm268_vm0, %v1351_v2 }
 0x1f1   : > { %v1154_v3 = vsub.f32 %v1090_v17, %v1122_v16  ;;  %v11800_v31 = vpop.eup %11799  ;;  %v1091_v6 = vmul.f32 0.025, %v1007_v11 }
 0x1f2   : > { %v882_v10 = vpop.xlane.xlu0 %881  ;;  %v1315_v28 = vmul.f32 %v13865_v46, %v1278_v19  ;;  %v1279_v14 = vmul.f32 %v11800_v31, %v1247_v40  ;;  %v1251_v40 = vsub.f32 %v13751_v15, %v14006_v25 }
 0x1f3   : > { %v1186_v20 = vadd.f32 1e-05, %v1154_v3  ;;  %v14018_v49 = vmul.f32 0.025, %v882_v10  ;;  %v1155_v7 = vsub.f32 %v1091_v6, %v1123_v9 }
 0x1f4   : > { %v1352_v56 = vadd.f32 %v13876_v44, %v1315_v28  ;;  %v885_v50 = vpop.xlane.xlu1 %884  ;;  %v1316_v18 = vmul.f32 %v13865_v46, %v1279_v14 }
 0x1f5   : > { %11805 = vrsqrt.f32 %v1186_v20  ;;  %v1187_v55 = vadd.f32 1e-05, %v1155_v7  ;;  %v14024_v5 = vmul.f32 0.025, %v885_v50  ;;  %v1124_v41 = vmul.f32 %v14018_v49, %v14018_v49 }
 0x1f6   : > { %11028 = vmatprep.mubr.msk.f32.mxu1 %vm268_vm0, %v1352_v56  ;;  %v1010_v29 = vpop.xlane.xlu0 %1009  ;;  %v1353_v63 = vadd.f32 %v13876_v44, %v1316_v18  ;;  %v1252_v56 = vsub.f32 %v13768_v30, %v14018_v49 }
 0x1f7   : > { %v11802_v21 = vpop.eup %11801  ;;  %v1092_v61 = vmul.f32 0.025, %v1010_v29  ;;  %11807 = vrsqrt.f32 %v1187_v55  ;;  %v1125_v4 = vmul.f32 %v14024_v5, %v14024_v5 }
 0x1f8   : > { %v1280_v0 = vmul.f32 %v11802_v21, %v1248_v12  ;;  %v1013_v60 = vpop.xlane.xlu1 %1012  ;;  %11029 = vmatmul.mubr.msk.f32.gmra.mrb[16].mxu1 %vm268_vm0, %v1353_v63  ;;  %v1253_v63 = vsub.f32 %v13773_v35, %v14024_v5 }
 0x1f9   : > { %v1156_v52 = vsub.f32 %v1092_v61, %v1124_v41  ;;  %v11804_v22 = vpop.eup %11803  ;;  %v1093_v34 = vmul.f32 0.025, %v1013_v60 }
 0x1fa   : > { %v888_v43 = vpop.xlane.xlu0 %887  ;;  %v1317_v39 = vmul.f32 %v13865_v46, %v1280_v0  ;;  %v1281_v13 = vmul.f32 %v11804_v22, %v1249_v8 }
 0x1fb   : > { %v1188_v37 = vadd.f32 1e-05, %v1156_v52  ;;  %v14036_v38 = vmul.f32 0.025, %v888_v43  ;;  %v1157_v33 = vsub.f32 %v1093_v34, %v1125_v4 }
 0x1fc   : > { %v1354_v48 = vadd.f32 %v13876_v44, %v1317_v39  ;;  %v891_v45 = vpop.xlane.xlu1 %890  ;;  %v1318_v58 = vmul.f32 %v13865_v46, %v1281_v13 }
 0x1fd   : > { %11809 = vrsqrt.f32 %v1188_v37  ;;  %v1189_v24 = vadd.f32 1e-05, %v1157_v33  ;;  %v14042_v62 = vmul.f32 0.025, %v891_v45  ;;  %v1126_v16 = vmul.f32 %v14036_v38, %v14036_v38 }
 0x1fe   : > { %11031 = vmatprep.mubr.msk.f32.mxu1 %vm268_vm0, %v1354_v48  ;;  %v1016_v27 = vpop.xlane.xlu0 %1015  ;;  %v1355_v2 = vadd.f32 %v13876_v44, %v1318_v58  ;;  %v1254_v13 = vsub.f32 %v13785_v57, %v14036_v38 }
 0x1ff   : > { %v11806_v53 = vpop.eup %11805  ;;  %v1094_v17 = vmul.f32 0.025, %v1016_v27  ;;  %11811 = vrsqrt.f32 %v1189_v24  ;;  %v1127_v11 = vmul.f32 %v14042_v62, %v14042_v62 }
 0x200   : > { %v1282_v19 = vmul.f32 %v11806_v53, %v1250_v26  ;;  %v1019_v1 = vpop.xlane.xlu1 %1018  ;;  %11032 = vmatmul.mubr.msk.f32.gmra.mrb[18].mxu1 %vm268_vm0, %v1355_v2 }
 0x201   : > { %v1158_v3 = vsub.f32 %v1094_v17, %v1126_v16  ;;  %v11808_v59 = vpop.eup %11807  ;;  %v1095_v31 = vmul.f32 0.025, %v1019_v1  ;;  %v1255_v16 = vsub.f32 %v13789_v47, %v14042_v62 }
 0x202   : > { %v894_v9 = vpop.xlane.xlu0 %893  ;;  %v1319_v6 = vmul.f32 %v13865_v46, %v1282_v19  ;;  %v1283_v20 = vmul.f32 %v11808_v59, %v1251_v40 }
 0x203   : > { %v1190_v10 = vadd.f32 1e-05, %v1158_v3  ;;  %v14054_v28 = vmul.f32 0.025, %v894_v9  ;;  %v1159_v14 = vsub.f32 %v1095_v31, %v1127_v11 }
 0x204   : > { %v1356_v7 = vadd.f32 %v13876_v44, %v1319_v6  ;;  %v897_v15 = vpop.xlane.xlu1 %896  ;;  %v1320_v25 = vmul.f32 %v13865_v46, %v1283_v20 }
 0x205   : > { %11813 = vrsqrt.f32 %v1190_v10  ;;  %v1191_v50 = vadd.f32 1e-05, %v1159_v14  ;;  %v14060_v18 = vmul.f32 0.025, %v897_v15  ;;  %v1128_v29 = vmul.f32 %v14054_v28, %v14054_v28 }
 0x206   : > { %11034 = vmatprep.mubr.msk.f32.mxu1 %vm268_vm0, %v1356_v7  ;;  %v1022_v12 = vpop.xlane.xlu0 %1021  ;;  %v1357_v41 = vadd.f32 %v13876_v44, %v1320_v25  ;;  %v1256_v6 = vsub.f32 %v13801_v23, %v14054_v28 }
 0x207   : > { %v11810_v55 = vpop.eup %11809  ;;  %v1096_v21 = vmul.f32 0.025, %v1022_v12  ;;  %11815 = vrsqrt.f32 %v1191_v50  ;;  %v1129_v8 = vmul.f32 %v14060_v18, %v14060_v18  ;;  %v1257_v12 = vsub.f32 %v13805_v36, %v14060_v18 }
 0x208   : > { %v1284_v61 = vmul.f32 %v11810_v55, %v1252_v56  ;;  %v1025_v30 = vpop.xlane.xlu1 %1024  ;;  %11035 = vmatmul.mubr.msk.f32.gmra.mrb[20].mxu1 %vm268_vm0, %v1357_v41 }
 0x209   : > { %v1160_v0 = vsub.f32 %v1096_v21, %v1128_v29  ;;  %v11812_v49 = vpop.eup %11811  ;;  %v1097_v52 = vmul.f32 0.025, %v1025_v30 }
 0x20a   : > { %v900_v60 = vpop.xlane.xlu0 %899  ;;  %v1321_v22 = vmul.f32 %v13865_v46, %v1284_v61  ;;  %v1285_v43 = vmul.f32 %v11812_v49, %v1253_v63 }
 0x20b   : > { %v1192_v4 = vadd.f32 1e-05, %v1160_v0  ;;  %v14072_v34 = vmul.f32 0.025, %v900_v60  ;;  %v1161_v39 = vsub.f32 %v1097_v52, %v1129_v8 }
 0x20c   : > { %v1358_v37 = vadd.f32 %v13876_v44, %v1321_v22  ;;  %v903_v35 = vpop.xlane.xlu1 %902  ;;  %v1322_v5 = vmul.f32 %v13865_v46, %v1285_v43 }
 0x20d   : > { %11817 = vrsqrt.f32 %v1192_v4  ;;  %v1193_v33 = vadd.f32 1e-05, %v1161_v39  ;;  %v14078_v48 = vmul.f32 0.025, %v903_v35  ;;  %v1130_v26 = vmul.f32 %v14072_v34, %v14072_v34 }
 0x20e   : > { %11037 = vmatprep.mubr.msk.f32.mxu1 %vm268_vm0, %v1358_v37  ;;  %v1028_v45 = vpop.xlane.xlu0 %1027  ;;  %v1359_v27 = vadd.f32 %v13876_v44, %v1322_v5  ;;  %v1258_v36 = vsub.f32 %v13817_v32, %v14072_v34 }
 0x20f   : > { %v11814_v58 = vpop.eup %11813  ;;  %v1098_v24 = vmul.f32 0.025, %v1028_v45  ;;  %11819 = vrsqrt.f32 %v1193_v33  ;;  %v1131_v2 = vmul.f32 %v14078_v48, %v14078_v48  ;;  %v1259_v22 = vsub.f32 %v13821_v42, %v14078_v48 }
 0x210   : > { %v1286_v53 = vmul.f32 %v11814_v58, %v1254_v13  ;;  %v1031_v57 = vpop.xlane.xlu1 %1030  ;;  %11038 = vmatmul.mubr.msk.f32.gmra.mrb[22].mxu1 %vm268_vm0, %v1359_v27 }
 0x211   : > { %v1162_v17 = vsub.f32 %v1098_v24, %v1130_v26  ;;  %v11816_v38 = vpop.eup %11815  ;;  %v1099_v19 = vmul.f32 0.025, %v1031_v57 }
 0x212   : > { %v906_v40 = vpop.xlane.xlu0 %905  ;;  %v1323_v3 = vmul.f32 %v13865_v46, %v1286_v53  ;;  %v1287_v11 = vmul.f32 %v11816_v38, %v1255_v16 }
 0x213   : > { %v1194_v1 = vadd.f32 1e-05, %v1162_v17  ;;  %v1068_v59 = vmul.f32 0.025, %v906_v40  ;;  %v1163_v31 = vsub.f32 %v1099_v19, %v1131_v2 }
 0x214   : > { %v1360_v9 = vadd.f32 %v13876_v44, %v1323_v3  ;;  %v909_v47 = vpop.xlane.xlu1 %908  ;;  %v1324_v62 = vmul.f32 %v13865_v46, %v1287_v11 }
 0x215   : > { %11821 = vrsqrt.f32 %v1194_v1  ;;  %v1195_v10 = vadd.f32 1e-05, %v1163_v31  ;;  %v1069_v20 = vmul.f32 0.025, %v909_v47  ;;  %v1132_v15 = vmul.f32 %v1068_v59, %v1068_v59 }
 0x216   : > { %11040 = vmatprep.mubr.msk.f32.mxu1 %vm268_vm0, %v1360_v9  ;;  %v1034_v14 = vpop.xlane.xlu0 %1033  ;;  %v1361_v56 = vadd.f32 %v13876_v44, %v1324_v62  ;;  %v1260_v34 = vsub.f32 %v13833_v54, %v1068_v59 }
 0x217   : > { %v11818_v7 = vpop.eup %11817  ;;  %v1100_v25 = vmul.f32 0.025, %v1034_v14  ;;  %11823 = vrsqrt.f32 %v1195_v10  ;;  %v1133_v28 = vmul.f32 %v1069_v20, %v1069_v20  ;;  %v1261_v42 = vsub.f32 %v13837_v51, %v1069_v20  ;;  %v14126_v51 = vld [vmem:[%s19019_s2 + $0x1] ss:$0 sm:$0xff]  ;;  %v10057_v20 = vld [vmem:[%s19018_s1 + $0x50] sm:$0xff]  ;;  %v10058_v14 = vld [vmem:[%s19018_s1 + $0x58] sm:$0xff] }
 0x218   : > { %v1288_v50 = vmul.f32 %v11818_v7, %v1256_v6  ;;  %v1037_v29 = vpop.xlane.xlu1 %1036  ;;  %11041 = vmatmul.mubr.msk.f32.gmra.mrb[24].mxu1 %vm268_vm0, %v1361_v56 }
 0x219   : > { %v1164_v55 = vsub.f32 %v1100_v25, %v1132_v15  ;;  %v11820_v23 = vpop.eup %11819  ;;  %v1101_v21 = vmul.f32 0.025, %v1037_v29  ;;  %v11532_v15 = vpack.c.bf16 %v10058_v14, %v10057_v20 }
 0x21a   : > { %v1325_v41 = vmul.f32 %v13865_v46, %v1288_v50  ;;  %v1289_v63 = vmul.f32 %v11820_v23, %v1257_v12 }
 0x21b   : > { %v1196_v61 = vadd.f32 1e-05, %v1164_v55  ;;  %v1165_v0 = vsub.f32 %v1101_v21, %v1133_v28  ;;  %11533 = vmatprep.subr.bf16.mxu0 %v11532_v15 }
 0x21c   : > { %v1362_v30 = vadd.f32 %v13876_v44, %v1325_v41  ;;  %v1326_v49 = vmul.f32 %v13865_v46, %v1289_v63  ;;  %11535 = vmatpush3.bf16.msra.mxu0 %v11532_v15 }
 0x21d   : > { %11825 = vrsqrt.f32 %v1196_v61  ;;  %v1197_v18 = vadd.f32 1e-05, %v1165_v0  ;;  %v10059_v0 = vld [vmem:[%s19018_s1 + $0x60] sm:$0xff] }
 0x21e   : > { %11043 = vmatprep.mubr.msk.f32.mxu1 %vm268_vm0, %v1362_v30  ;;  %v1363_v52 = vadd.f32 %v13876_v44, %v1326_v49  ;;  %v10060_v30 = vld [vmem:[%s19018_s1 + $0x68] sm:$0xff] }
 0x21f   : > { %v11822_v8 = vpop.eup %11821  ;;  %11827 = vrsqrt.f32 %v1197_v18  ;;  %v11536_v18 = vpack.c.bf16 %v10060_v30, %v10059_v0 }
 0x220   : > { %v1290_v60 = vmul.f32 %v11822_v8, %v1258_v36  ;;  %11044 = vmatmul.mubr.msk.f32.gmra.mrb[26].mxu1 %vm268_vm0, %v1363_v52 }
 0x221   : > { %v11824_v4 = vpop.eup %11823  ;;  %11537 = vmatprep.subr.bf16.mxu0 %v11536_v18 }
 0x222   : > { %v1327_v43 = vmul.f32 %v13865_v46, %v1290_v60  ;;  %v1291_v39 = vmul.f32 %v11824_v4, %v1259_v22  ;;  %11539 = vmatpush3.bf16.msra.mxu0 %v11536_v18 }
 0x224   : > { %v1364_v37 = vadd.f32 %v13876_v44, %v1327_v43  ;;  %v1328_v32 = vmul.f32 %v13865_v46, %v1291_v39 }
 0x226   : > { %11046 = vmatprep.mubr.msk.f32.mxu1 %vm268_vm0, %v1364_v37  ;;  %v1365_v5 = vadd.f32 %v13876_v44, %v1328_v32 }
 0x227   : > { %v11826_v35 = vpop.eup %11825 }
 0x228   : > { %v1292_v13 = vmul.f32 %v11826_v35, %v1260_v34  ;;  %11047 = vmatmul.mubr.msk.f32.gmra.mrb[28].mxu1 %vm268_vm0, %v1365_v5 }
 0x229   : > { %v11828_v33 = vpop.eup %11827 }
 0x22a   : > { %v1329_v48 = vmul.f32 %v13865_v46, %v1292_v13  ;;  %v1293_v45 = vmul.f32 %v11828_v33, %v1261_v42 }
 0x22c   : > { %v1366_v58 = vadd.f32 %v13876_v44, %v1329_v48  ;;  %v1330_v26 = vmul.f32 %v13865_v46, %v1293_v45 }
 0x22e   : > { %11049 = vmatprep.mubr.msk.f32.mxu1 %vm268_vm0, %v1366_v58  ;;  %v1367_v54 = vadd.f32 %v13876_v44, %v1330_v26 }
 0x230   : > { %11050 = vmatmul.mubr.msk.f32.gmra.mrb[30].mxu1 %vm268_vm0, %v1367_v54 }
 0x28c   : > { %v11006_v24 = vpop.f32.mrb[0].mxu1 }
 0x28d   : > { %v1547_v27 = vadd.f32 %v11006_v24, %v14126_v51  ;;  %v1541_v53 = vpop.f32.mrb[1].mxu1 }
 0x28e   : > { %v1542_v16 = vadd.f32 %v14126_v51, %v1541_v53 }
 0x28f   : > { %v10024_v17 = vmul.f32 -1.442695, %v1547_v27 }
 0x290   : > { %v10023_v57 = vmul.f32 -1.442695, %v1542_v16 }
 0x291   : > { %11829 = vpow2.f32 %v10024_v17 }
 0x292   : > { %11831 = vpow2.f32 %v10023_v57 }
 0x293   : > { %v11009_v46 = vpop.f32.mrb[2].mxu1 }
 0x294   : > { %v14131_v44 = vadd.f32 %v11009_v46, %v14126_v51  ;;  %v1551_v38 = vpop.f32.mrb[3].mxu1 }
 0x295   : > { %v14134_v2 = vadd.f32 %v14126_v51, %v1551_v38 }
 0x296   : > { %v10026_v19 = vmul.f32 -1.442695, %v14131_v44 }
 0x297   : > { %v10025_v40 = vmul.f32 -1.442695, %v14134_v2 }
 0x298   : > { %11833 = vpow2.f32 %v10026_v19 }
 0x299   : > { %11835 = vpow2.f32 %v10025_v40 }
 0x29b   : > { %v11830_v3 = vpop.eup %11829  ;;  %v11012_v1 = vpop.f32.mrb[4].mxu1 }
 0x29c   : > { %v11832_v59 = vpop.eup %11831  ;;  %v1797_v11 = vadd.f32 1.0, %v11830_v3  ;;  %v14139_v31 = vadd.f32 %v11012_v1, %v14126_v51  ;;  %v1561_v9 = vpop.f32.mrb[5].mxu1 }
 0x29d   : > { %v1796_v47 = vadd.f32 1.0, %v11832_v59  ;;  %v14142_v62 = vadd.f32 %v14126_v51, %v1561_v9 }
 0x29e   : > { %11837 = vrcp.f32 %v1797_v11  ;;  %v10028_v6 = vmul.f32 -1.442695, %v14139_v31 }
 0x29f   : > { %11839 = vrcp.f32 %v1796_v47  ;;  %v10027_v10 = vmul.f32 -1.442695, %v14142_v62 }
 0x2a0   : > { %11841 = vpow2.f32 %v10028_v6 }
 0x2a1   : > { %11843 = vpow2.f32 %v10027_v10 }
 0x2a2   : > { %v11834_v7 = vpop.eup %11833 }
 0x2a3   : > { %v11836_v25 = vpop.eup %11835  ;;  %v1799_v56 = vadd.f32 1.0, %v11834_v7  ;;  %v11015_v50 = vpop.f32.mrb[6].mxu1 }
 0x2a4   : > { %v1798_v12 = vadd.f32 1.0, %v11836_v25  ;;  %v14153_v55 = vadd.f32 %v11015_v50, %v14126_v51  ;;  %v1571_v29 = vpop.f32.mrb[7].mxu1 }
 0x2a5   : > { %11845 = vrcp.f32 %v1799_v56  ;;  %v14156_v23 = vadd.f32 %v14126_v51, %v1571_v29 }
 0x2a6   : > { %11847 = vrcp.f32 %v1798_v12  ;;  %v10030_v28 = vmul.f32 -1.442695, %v14153_v55 }
 0x2a7   : > { %v10029_v21 = vmul.f32 -1.442695, %v14156_v23 }
 0x2a8   : > { %v11838_v41 = vpop.eup %11837  ;;  %11849 = vpow2.f32 %v10030_v28 }
 0x2a9   : > { %v11840_v61 = vpop.eup %11839  ;;  %v14160_v63 = vmul.f32 %v11838_v41, %v1547_v27  ;;  %11851 = vpow2.f32 %v10029_v21 }
 0x2aa   : > { %v11842_v49 = vpop.eup %11841  ;;  %v14168_v36 = vmul.f32 %v11840_v61, %v1542_v16 }
 0x2ab   : > { %v11844_v8 = vpop.eup %11843  ;;  %v1801_v52 = vadd.f32 1.0, %v11842_v49  ;;  %v11018_v60 = vpop.f32.mrb[8].mxu1  ;;  %v1927_v22 = vsel %vm268_vm0, %v14160_v63, 0.0  ;;  %v2021_v4 = vmul.f32 %v14160_v63, %v14160_v63 }
 0x2ac   : > { %v1800_v43 = vadd.f32 1.0, %v11844_v8  ;;  %v14175_v39 = vadd.f32 %v11018_v60, %v14126_v51  ;;  %1928 = vadd.xlane.f32.xlu1 %v1927_v22  ;;  %v1581_v37 = vpop.f32.mrb[9].mxu1  ;;  %v1924_v32 = vsel %vm268_vm0, %v14168_v36, 0.0  ;;  %v2020_v34 = vmul.f32 %v14168_v36, %v14168_v36 }
 0x2ad   : > { %11853 = vrcp.f32 %v1801_v52  ;;  %v14182_v35 = vadd.f32 %v14126_v51, %v1581_v37  ;;  %1925 = vadd.xlane.f32.xlu0 %v1924_v32  ;;  %v2055_v33 = vsel %vm268_vm0, %v2021_v4, 0.0 }
 0x2ae   : > { %11855 = vrcp.f32 %v1800_v43  ;;  %v10032_v5 = vmul.f32 -1.442695, %v14175_v39  ;;  %v2052_v58 = vsel %vm268_vm0, %v2020_v34, 0.0 }
 0x2af   : > { %v11846_v13 = vpop.eup %11845  ;;  %v10031_v42 = vmul.f32 -1.442695, %v14182_v35 }
 0x2b0   : > { %v11848_v48 = vpop.eup %11847  ;;  %v14188_v45 = vmul.f32 %v11846_v13, %v14131_v44  ;;  %11857 = vpow2.f32 %v10032_v5  ;;  %2056 = vadd.xlane.f32.xlu1 %v2055_v33 }
 0x2b1   : > { %v14192_v26 = vmul.f32 %v11848_v48, %v14134_v2  ;;  %11859 = vpow2.f32 %v10031_v42  ;;  %2053 = vadd.xlane.f32.xlu0 %v2052_v58 }
 0x2b2   : > { %v11850_v54 = vpop.eup %11849  ;;  %v1933_v24 = vsel %vm268_vm0, %v14188_v45, 0.0  ;;  %v2023_v57 = vmul.f32 %v14188_v45, %v14188_v45 }
 0x2b3   : > { %v11852_v27 = vpop.eup %11851  ;;  %v1803_v53 = vadd.f32 1.0, %v11850_v54  ;;  %v11021_v16 = vpop.f32.mrb[10].mxu1  ;;  %v1930_v17 = vsel %vm268_vm0, %v14192_v26, 0.0  ;;  %v2022_v2 = vmul.f32 %v14192_v26, %v14192_v26 }
 0x2b4   : > { %v1802_v46 = vadd.f32 1.0, %v11852_v27  ;;  %v14201_v44 = vadd.f32 %v11021_v16, %v14126_v51  ;;  %1934 = vadd.xlane.f32.xlu1 %v1933_v24  ;;  %v1591_v38 = vpop.f32.mrb[11].mxu1  ;;  %v2061_v59 = vsel %vm268_vm0, %v2023_v57, 0.0 }
 0x2b5   : > { %11861 = vrcp.f32 %v1803_v53  ;;  %v14206_v19 = vadd.f32 %v14126_v51, %v1591_v38  ;;  %1931 = vadd.xlane.f32.xlu0 %v1930_v17  ;;  %v2058_v47 = vsel %vm268_vm0, %v2022_v2, 0.0 }
 0x2b6   : > { %11863 = vrcp.f32 %v1802_v46  ;;  %v10034_v40 = vmul.f32 -1.442695, %v14201_v44 }
 0x2b7   : > { %v11854_v3 = vpop.eup %11853  ;;  %v10033_v1 = vmul.f32 -1.442695, %v14206_v19 }
 0x2b8   : > { %v11856_v11 = vpop.eup %11855  ;;  %v14212_v9 = vmul.f32 %v11854_v3, %v14139_v31  ;;  %11865 = vpow2.f32 %v10034_v40  ;;  %2062 = vadd.xlane.f32.xlu1 %v2061_v59 }
 0x2b9   : > { %v14216_v6 = vmul.f32 %v11856_v11, %v14142_v62  ;;  %11867 = vpow2.f32 %v10033_v1  ;;  %2059 = vadd.xlane.f32.xlu0 %v2058_v47 }
 0x2ba   : > { %v11858_v10 = vpop.eup %11857  ;;  %v1939_v20 = vsel %vm268_vm0, %v14212_v9, 0.0  ;;  %v2025_v25 = vmul.f32 %v14212_v9, %v14212_v9 }
 0x2bb   : > { %v11860_v14 = vpop.eup %11859  ;;  %v1805_v7 = vadd.f32 1.0, %v11858_v10  ;;  %v11024_v15 = vpop.f32.mrb[12].mxu1  ;;  %v1936_v31 = vsel %vm268_vm0, %v14216_v6, 0.0  ;;  %v2024_v12 = vmul.f32 %v14216_v6, %v14216_v6 }
 0x2bc   : > { %v1804_v56 = vadd.f32 1.0, %v11860_v14  ;;  %v14225_v50 = vadd.f32 %v11024_v15, %v14126_v51  ;;  %1940 = vadd.xlane.f32.xlu1 %v1939_v20  ;;  %v1601_v62 = vpop.f32.mrb[13].mxu1  ;;  %v2067_v61 = vsel %vm268_vm0, %v2025_v25, 0.0 }
 0x2bd   : > { %11869 = vrcp.f32 %v1805_v7  ;;  %v14230_v29 = vadd.f32 %v14126_v51, %v1601_v62  ;;  %1937 = vadd.xlane.f32.xlu0 %v1936_v31  ;;  %v2064_v49 = vsel %vm268_vm0, %v2024_v12, 0.0  ;;  %v10061_v31 = vld [vmem:[%s19018_s1 + $0x70] sm:$0xff] }
 0x2be   : > { %11871 = vrcp.f32 %v1804_v56  ;;  %v10036_v28 = vmul.f32 -1.442695, %v14225_v50  ;;  %11060 = vmatprep.subr.mxu0 %v10061_v31 }
 0x2bf   : > { %v11862_v21 = vpop.eup %11861  ;;  %v10035_v41 = vmul.f32 -1.442695, %v14230_v29  ;;  %11061 = vmatpush3.msra.mxu0 %v10061_v31 }
 0x2c0   : > { %v11864_v0 = vpop.eup %11863  ;;  %v14236_v30 = vmul.f32 %v11862_v21, %v14153_v55  ;;  %11873 = vpow2.f32 %v10036_v28  ;;  %2068 = vadd.xlane.f32.xlu1 %v2067_v61 }
 0x2c1   : > { %v14240_v18 = vmul.f32 %v11864_v0, %v14156_v23  ;;  %11875 = vpow2.f32 %v10035_v41  ;;  %2065 = vadd.xlane.f32.xlu0 %v2064_v49 }
 0x2c2   : > { %v11866_v8 = vpop.eup %11865  ;;  %v1945_v52 = vsel %vm268_vm0, %v14236_v30, 0.0  ;;  %v2027_v43 = vmul.f32 %v14236_v30, %v14236_v30 }
 0x2c3   : > { %v11868_v60 = vpop.eup %11867  ;;  %v1807_v22 = vadd.f32 1.0, %v11866_v8  ;;  %v11027_v4 = vpop.f32.mrb[14].mxu1  ;;  %v1942_v55 = vsel %vm268_vm0, %v14240_v18, 0.0  ;;  %v2026_v34 = vmul.f32 %v14240_v18, %v14240_v18 }
 0x2c4   : > { %v1806_v37 = vadd.f32 1.0, %v11868_v60  ;;  %v14249_v32 = vadd.f32 %v11027_v4, %v14126_v51  ;;  %1946 = vadd.xlane.f32.xlu1 %v1945_v52  ;;  %v1611_v23 = vpop.f32.mrb[15].mxu1  ;;  %v2073_v48 = vsel %vm268_vm0, %v2027_v43, 0.0 }
 0x2c5   : > { %11877 = vrcp.f32 %v1807_v22  ;;  %v14254_v5 = vadd.f32 %v14126_v51, %v1611_v23  ;;  %1943 = vadd.xlane.f32.xlu0 %v1942_v55  ;;  %v2070_v24 = vsel %vm268_vm0, %v2026_v34, 0.0 }
 0x2c6   : > { %11879 = vrcp.f32 %v1806_v37  ;;  %v10038_v13 = vmul.f32 -1.442695, %v14249_v32 }
 0x2c7   : > { %v11870_v42 = vpop.eup %11869  ;;  %v10037_v33 = vmul.f32 -1.442695, %v14254_v5 }
 0x2c8   : > { %v11872_v58 = vpop.eup %11871  ;;  %v14260_v54 = vmul.f32 %v11870_v42, %v14175_v39  ;;  %11881 = vpow2.f32 %v10038_v13  ;;  %2074 = vadd.xlane.f32.xlu1 %v2073_v48 }
 0x2c9   : > { %v14264_v27 = vmul.f32 %v11872_v58, %v14182_v35  ;;  %11883 = vpow2.f32 %v10037_v33  ;;  %2071 = vadd.xlane.f32.xlu0 %v2070_v24 }
 0x2ca   : > { %v11874_v53 = vpop.eup %11873  ;;  %v1951_v16 = vsel %vm268_vm0, %v14260_v54, 0.0  ;;  %v2029_v38 = vmul.f32 %v14260_v54, %v14260_v54 }
 0x2cb   : > { %v11876_v17 = vpop.eup %11875  ;;  %v1809_v57 = vadd.f32 1.0, %v11874_v53  ;;  %v11030_v46 = vpop.f32.mrb[16].mxu1  ;;  %v1948_v39 = vsel %vm268_vm0, %v14264_v27, 0.0  ;;  %v2028_v3 = vmul.f32 %v14264_v27, %v14264_v27 }
 0x2cc   : > { %v1808_v2 = vadd.f32 1.0, %v11876_v17  ;;  %v14273_v40 = vadd.f32 %v11030_v46, %v14126_v51  ;;  %1952 = vadd.xlane.f32.xlu1 %v1951_v16  ;;  %v1621_v35 = vpop.f32.mrb[17].mxu1  ;;  %v2079_v10 = vsel %vm268_vm0, %v2029_v38, 0.0 }
 0x2cd   : > { %11885 = vrcp.f32 %v1809_v57  ;;  %v14278_v1 = vadd.f32 %v14126_v51, %v1621_v35  ;;  %1949 = vadd.xlane.f32.xlu0 %v1948_v39  ;;  %v2076_v7 = vsel %vm268_vm0, %v2028_v3, 0.0 }
 0x2ce   : > { %11887 = vrcp.f32 %v1808_v2  ;;  %v10040_v59 = vmul.f32 -1.442695, %v14273_v40 }
 0x2cf   : > { %v11878_v11 = vpop.eup %11877  ;;  %v10039_v47 = vmul.f32 -1.442695, %v14278_v1 }
 0x2d0   : > { %v11880_v20 = vpop.eup %11879  ;;  %v14284_v14 = vmul.f32 %v11878_v11, %v14201_v44  ;;  %11889 = vpow2.f32 %v10040_v59  ;;  %2080 = vadd.xlane.f32.xlu1 %v2079_v10 }
 0x2d1   : > { %v14288_v15 = vmul.f32 %v11880_v20, %v14206_v19  ;;  %11891 = vpow2.f32 %v10039_v47  ;;  %2077 = vadd.xlane.f32.xlu0 %v2076_v7 }
 0x2d2   : > { %v11882_v25 = vpop.eup %11881  ;;  %v1957_v56 = vsel %vm268_vm0, %v14284_v14, 0.0  ;;  %v2031_v19 = vmul.f32 %v14284_v14, %v14284_v14 }
 0x2d3   : > { %v11884_v44 = vpop.eup %11883  ;;  %v1811_v62 = vadd.f32 1.0, %v11882_v25  ;;  %v11033_v12 = vpop.f32.mrb[18].mxu1  ;;  %v1954_v28 = vsel %vm268_vm0, %v14288_v15, 0.0  ;;  %v2030_v0 = vmul.f32 %v14288_v15, %v14288_v15 }
 0x2d4   : > { %v1810_v21 = vadd.f32 1.0, %v11884_v44  ;;  %v14300_v41 = vadd.f32 %v11033_v12, %v14126_v51  ;;  %1958 = vadd.xlane.f32.xlu1 %v1957_v56  ;;  %v1631_v61 = vpop.f32.mrb[19].mxu1  ;;  %v2085_v22 = vsel %vm268_vm0, %v2031_v19, 0.0 }
 0x2d5   : > { %11893 = vrcp.f32 %v1811_v62  ;;  %v14305_v49 = vadd.f32 %v14126_v51, %v1631_v61  ;;  %1955 = vadd.xlane.f32.xlu0 %v1954_v28  ;;  %v2082_v43 = vsel %vm268_vm0, %v2030_v0, 0.0 }
 0x2d6   : > { %11895 = vrcp.f32 %v1810_v21  ;;  %v10042_v8 = vmul.f32 -1.442695, %v14300_v41 }
 0x2d7   : > { %v11886_v52 = vpop.eup %11885  ;;  %v10041_v60 = vmul.f32 -1.442695, %v14305_v49 }
 0x2d8   : > { %v11888_v4 = vpop.eup %11887  ;;  %v14311_v55 = vmul.f32 %v11886_v52, %v14225_v50  ;;  %11897 = vpow2.f32 %v10042_v8  ;;  %2086 = vadd.xlane.f32.xlu1 %v2085_v22 }
 0x2d9   : > { %v14315_v37 = vmul.f32 %v11888_v4, %v14230_v29  ;;  %11899 = vpow2.f32 %v10041_v60  ;;  %2083 = vadd.xlane.f32.xlu0 %v2082_v43 }
 0x2da   : > { %v11890_v23 = vpop.eup %11889  ;;  %v1963_v34 = vsel %vm268_vm0, %v14311_v55, 0.0  ;;  %v2033_v48 = vmul.f32 %v14311_v55, %v14311_v55 }
 0x2db   : > { %v11892_v13 = vpop.eup %11891  ;;  %v1813_v42 = vadd.f32 1.0, %v11890_v23  ;;  %v11036_v33 = vpop.f32.mrb[20].mxu1  ;;  %v1960_v50 = vsel %vm268_vm0, %v14315_v37, 0.0  ;;  %v2032_v53 = vmul.f32 %v14315_v37, %v14315_v37 }
 0x2dc   : > { %v1812_v58 = vadd.f32 1.0, %v11892_v13  ;;  %v14324_v24 = vadd.f32 %v11036_v33, %v14126_v51  ;;  %1964 = vadd.xlane.f32.xlu1 %v1963_v34  ;;  %v1641_v29 = vpop.f32.mrb[21].mxu1  ;;  %v2091_v39 = vsel %vm268_vm0, %v2033_v48, 0.0 }
 0x2dd   : > { %11901 = vrcp.f32 %v1813_v42  ;;  %v14329_v16 = vadd.f32 %v14126_v51, %v1641_v29  ;;  %1961 = vadd.xlane.f32.xlu0 %v1960_v50  ;;  %v2088_v35 = vsel %vm268_vm0, %v2032_v53, 0.0 }
 0x2de   : > { %11903 = vrcp.f32 %v1812_v58  ;;  %v10044_v17 = vmul.f32 -1.442695, %v14324_v24 }
 0x2df   : > { %v11894_v57 = vpop.eup %11893  ;;  %v10043_v46 = vmul.f32 -1.442695, %v14329_v16 }
 0x2e0   : > { %v11896_v38 = vpop.eup %11895  ;;  %v14335_v2 = vmul.f32 %v11894_v57, %v14249_v32  ;;  %11905 = vpow2.f32 %v10044_v17  ;;  %2092 = vadd.xlane.f32.xlu1 %v2091_v39 }
 0x2e1   : > { %v14339_v3 = vmul.f32 %v11896_v38, %v14254_v5  ;;  %11907 = vpow2.f32 %v10043_v46  ;;  %2089 = vadd.xlane.f32.xlu0 %v2088_v35 }
 0x2e2   : > { %v11898_v59 = vpop.eup %11897  ;;  %v1969_v11 = vsel %vm268_vm0, %v14335_v2, 0.0  ;;  %v2035_v7 = vmul.f32 %v14335_v2, %v14335_v2 }
 0x2e3   : > { %v11900_v47 = vpop.eup %11899  ;;  %v1815_v10 = vadd.f32 1.0, %v11898_v59  ;;  %v11039_v20 = vpop.f32.mrb[22].mxu1  ;;  %v1966_v32 = vsel %vm268_vm0, %v14339_v3, 0.0  ;;  %v2034_v56 = vmul.f32 %v14339_v3, %v14339_v3 }
 0x2e4   : > { %v1814_v31 = vadd.f32 1.0, %v11900_v47  ;;  %v14348_v25 = vadd.f32 %v11039_v20, %v14126_v51  ;;  %1970 = vadd.xlane.f32.xlu1 %v1969_v11  ;;  %v1651_v5 = vpop.f32.mrb[23].mxu1  ;;  %v2097_v19 = vsel %vm268_vm0, %v2035_v7, 0.0 }
 0x2e5   : > { %11909 = vrcp.f32 %v1815_v10  ;;  %v14353_v44 = vadd.f32 %v14126_v51, %v1651_v5  ;;  %1967 = vadd.xlane.f32.xlu0 %v1966_v32  ;;  %v2094_v0 = vsel %vm268_vm0, %v2034_v56, 0.0 }
 0x2e6   : > { %11911 = vrcp.f32 %v1814_v31  ;;  %v10046_v62 = vmul.f32 -1.442695, %v14348_v25 }
 0x2e7   : > { %v11902_v12 = vpop.eup %11901  ;;  %v10045_v28 = vmul.f32 -1.442695, %v14353_v44 }
 0x2e8   : > { %v11904_v21 = vpop.eup %11903  ;;  %v14359_v61 = vmul.f32 %v11902_v12, %v14273_v40  ;;  %11913 = vpow2.f32 %v10046_v62  ;;  %2098 = vadd.xlane.f32.xlu1 %v2097_v19 }
 0x2e9   : > { %v14363_v8 = vmul.f32 %v11904_v21, %v14278_v1  ;;  %11915 = vpow2.f32 %v10045_v28  ;;  %2095 = vadd.xlane.f32.xlu0 %v2094_v0 }
 0x2ea   : > { %v11906_v52 = vpop.eup %11905  ;;  %v1975_v60 = vsel %vm268_vm0, %v14359_v61, 0.0  ;;  %v2037_v23 = vmul.f32 %v14359_v61, %v14359_v61 }
 0x2eb   : > { %v11908_v22 = vpop.eup %11907  ;;  %v1817_v4 = vadd.f32 1.0, %v11906_v52  ;;  %v11042_v43 = vpop.f32.mrb[24].mxu1  ;;  %v1972_v40 = vsel %vm268_vm0, %v14363_v8, 0.0  ;;  %v2036_v42 = vmul.f32 %v14363_v8, %v14363_v8 }
 0x2ec   : > { %v1816_v34 = vadd.f32 1.0, %v11908_v22  ;;  %v14372_v13 = vadd.f32 %v11042_v43, %v14126_v51  ;;  %1976 = vadd.xlane.f32.xlu1 %v1975_v60  ;;  %v1661_v1 = vpop.f32.mrb[25].mxu1  ;;  %v2103_v29 = vsel %vm268_vm0, %v2037_v23, 0.0 }
 0x2ed   : > { %11917 = vrcp.f32 %v1817_v4  ;;  %v14377_v33 = vadd.f32 %v14126_v51, %v1661_v1  ;;  %1973 = vadd.xlane.f32.xlu0 %v1972_v40  ;;  %v2100_v57 = vsel %vm268_vm0, %v2036_v42, 0.0 }
 0x2ee   : > { %11919 = vrcp.f32 %v1816_v34  ;;  %v10048_v50 = vmul.f32 -1.442695, %v14372_v13 }
 0x2ef   : > { %v11910_v48 = vpop.eup %11909  ;;  %v10047_v58 = vmul.f32 -1.442695, %v14377_v33 }
 0x2f0   : > { %v11912_v53 = vpop.eup %11911  ;;  %v14383_v17 = vmul.f32 %v11910_v48, %v14300_v41  ;;  %11921 = vpow2.f32 %v10048_v50  ;;  %2104 = vadd.xlane.f32.xlu1 %v2103_v29 }
 0x2f1   : > { %v14387_v46 = vmul.f32 %v11912_v53, %v14305_v49  ;;  %11923 = vpow2.f32 %v10047_v58  ;;  %2101 = vadd.xlane.f32.xlu0 %v2100_v57 }
 0x2f2   : > { %v11914_v39 = vpop.eup %11913  ;;  %v1981_v38 = vsel %vm268_vm0, %v14383_v17, 0.0  ;;  %v2039_v47 = vmul.f32 %v14383_v17, %v14383_v17 }
 0x2f3   : > { %v11916_v35 = vpop.eup %11915  ;;  %v1819_v59 = vadd.f32 1.0, %v11914_v39  ;;  %v11045_v11 = vpop.f32.mrb[26].mxu1  ;;  %v1978_v41 = vsel %vm268_vm0, %v14387_v46, 0.0  ;;  %v2038_v32 = vmul.f32 %v14387_v46, %v14387_v46 }
 0x2f4   : > { %v1818_v10 = vadd.f32 1.0, %v11916_v35  ;;  %v14396_v20 = vadd.f32 %v11045_v11, %v14126_v51  ;;  %1982 = vadd.xlane.f32.xlu1 %v1981_v38  ;;  %v1671_v49 = vpop.f32.mrb[27].mxu1  ;;  %v2109_v62 = vsel %vm268_vm0, %v2039_v47, 0.0 }
 0x2f5   : > { %11925 = vrcp.f32 %v1819_v59  ;;  %v14401_v7 = vadd.f32 %v14126_v51, %v1671_v49  ;;  %1979 = vadd.xlane.f32.xlu0 %v1978_v41  ;;  %v2106_v19 = vsel %vm268_vm0, %v2038_v32, 0.0 }
 0x2f6   : > { %11927 = vrcp.f32 %v1818_v10  ;;  %v10050_v31 = vmul.f32 -1.442695, %v14396_v20 }
 0x2f7   : > { %v11918_v5 = vpop.eup %11917  ;;  %v10049_v56 = vmul.f32 -1.442695, %v14401_v7 }
 0x2f8   : > { %v11920_v12 = vpop.eup %11919  ;;  %v14407_v28 = vmul.f32 %v11918_v5, %v14324_v24  ;;  %11929 = vpow2.f32 %v10050_v31  ;;  %2110 = vadd.xlane.f32.xlu1 %v2109_v62 }
 0x2f9   : > { %v14411_v21 = vmul.f32 %v11920_v12, %v14329_v16  ;;  %11931 = vpow2.f32 %v10049_v56  ;;  %2107 = vadd.xlane.f32.xlu0 %v2106_v19 }
 0x2fa   : > { %v11922_v0 = vpop.eup %11921  ;;  %v1987_v52 = vsel %vm268_vm0, %v14407_v28, 0.0  ;;  %v2041_v43 = vmul.f32 %v14407_v28, %v14407_v28 }
 0x2fb   : > { %v11924_v60 = vpop.eup %11923  ;;  %v1821_v22 = vadd.f32 1.0, %v11922_v0  ;;  %v11048_v4 = vpop.f32.mrb[28].mxu1  ;;  %v1984_v24 = vsel %vm268_vm0, %v14411_v21, 0.0  ;;  %v2040_v34 = vmul.f32 %v14411_v21, %v14411_v21 }
 0x2fc   : > { %v1820_v40 = vadd.f32 1.0, %v11924_v60  ;;  %v14420_v23 = vadd.f32 %v11048_v4, %v14126_v51  ;;  %1988 = vadd.xlane.f32.xlu1 %v1987_v52  ;;  %v1681_v16 = vpop.f32.mrb[29].mxu1  ;;  %v2115_v58 = vsel %vm268_vm0, %v2041_v43, 0.0 }
 0x2fd   : > { %11933 = vrcp.f32 %v1821_v22  ;;  %v14425_v1 = vadd.f32 %v14126_v51, %v1681_v16  ;;  %1985 = vadd.xlane.f32.xlu0 %v1984_v24  ;;  %v2112_v57 = vsel %vm268_vm0, %v2040_v34, 0.0 }
 0x2fe   : > { %11935 = vrcp.f32 %v1820_v40  ;;  %v10052_v42 = vmul.f32 -1.442695, %v14420_v23 }
 0x2ff   : > { %v11926_v50 = vpop.eup %11925  ;;  %v10051_v48 = vmul.f32 -1.442695, %v14425_v1 }
 0x300   : > { %v11928_v29 = vpop.eup %11927  ;;  %v14431_v53 = vmul.f32 %v11926_v50, %v14348_v25  ;;  %11937 = vpow2.f32 %v10052_v42  ;;  %2116 = vadd.xlane.f32.xlu1 %v2115_v58 }
 0x301   : > { %v14435_v39 = vmul.f32 %v11928_v29, %v14353_v44  ;;  %11939 = vpow2.f32 %v10051_v48  ;;  %2113 = vadd.xlane.f32.xlu0 %v2112_v57 }
 0x302   : > { %v11930_v38 = vpop.eup %11929  ;;  %v1993_v35 = vsel %vm268_vm0, %v14431_v53, 0.0  ;;  %v2043_v47 = vmul.f32 %v14431_v53, %v14431_v53 }
 0x303   : > { %v11932_v59 = vpop.eup %11931  ;;  %v1823_v11 = vadd.f32 1.0, %v11930_v38  ;;  %v11051_v41 = vpop.f32.mrb[30].mxu1  ;;  %v1990_v25 = vsel %vm268_vm0, %v14435_v39, 0.0  ;;  %v2042_v32 = vmul.f32 %v14435_v39, %v14435_v39 }
 0x304   : > { %v1822_v10 = vadd.f32 1.0, %v11932_v59  ;;  %v14444_v49 = vadd.f32 %v11051_v41, %v14126_v51  ;;  %1994 = vadd.xlane.f32.xlu1 %v1993_v35  ;;  %v1691_v44 = vpop.f32.mrb[31].mxu1  ;;  %v2121_v12 = vsel %vm268_vm0, %v2043_v47, 0.0 }
 0x305   : > { %11941 = vrcp.f32 %v1823_v11  ;;  %v14449_v31 = vadd.f32 %v14126_v51, %v1691_v44  ;;  %1991 = vadd.xlane.f32.xlu0 %v1990_v25  ;;  %v2118_v52 = vsel %vm268_vm0, %v2042_v32, 0.0 }
 0x306   : > { %11943 = vrcp.f32 %v1822_v10  ;;  %v10054_v5 = vmul.f32 -1.442695, %v14444_v49 }
 0x307   : > { %v11934_v56 = vpop.eup %11933  ;;  %v10053_v62 = vmul.f32 -1.442695, %v14449_v31 }
 0x308   : > { %v11936_v19 = vpop.eup %11935  ;;  %v14455_v0 = vmul.f32 %v11934_v56, %v14372_v13  ;;  %11945 = vpow2.f32 %v10054_v5  ;;  %2122 = vadd.xlane.f32.xlu1 %v2121_v12 }
 0x309   : > { %v14459_v51 = vmul.f32 %v11936_v19, %v14377_v33  ;;  %11947 = vpow2.f32 %v10053_v62  ;;  %2119 = vadd.xlane.f32.xlu0 %v2118_v52 }
 0x30a   : > { %v11938_v60 = vpop.eup %11937  ;;  %v1999_v22 = vsel %vm268_vm0, %v14455_v0, 0.0  ;;  %v2045_v13 = vmul.f32 %v14455_v0, %v14455_v0 }
 0x30b   : > { %v11940_v4 = vpop.eup %11939  ;;  %v1825_v24 = vadd.f32 1.0, %v11938_v60  ;;  %v1996_v43 = vsel %vm268_vm0, %v14459_v51, 0.0  ;;  %v2044_v33 = vmul.f32 %v14459_v51, %v14459_v51 }
 0x30c   : > { %v1824_v40 = vadd.f32 1.0, %v11940_v4  ;;  %2000 = vadd.xlane.f32.xlu1 %v1999_v22  ;;  %v2127_v34 = vsel %vm268_vm0, %v2045_v13, 0.0 }
 0x30d   : > { %11949 = vrcp.f32 %v1825_v24  ;;  %1997 = vadd.xlane.f32.xlu0 %v1996_v43  ;;  %v2124_v48 = vsel %vm268_vm0, %v2044_v33, 0.0 }
 0x30e   : > { %11951 = vrcp.f32 %v1824_v40 }
 0x30f   : > { %v11942_v16 = vpop.eup %11941 }
 0x310   : > { %v11944_v42 = vpop.eup %11943  ;;  %v14471_v50 = vmul.f32 %v11942_v16, %v14396_v20  ;;  %2128 = vadd.xlane.f32.xlu1 %v2127_v34 }
 0x311   : > { %v14475_v58 = vmul.f32 %v11944_v42, %v14401_v7  ;;  %2125 = vadd.xlane.f32.xlu0 %v2124_v48 }
 0x312   : > { %v11946_v29 = vpop.eup %11945  ;;  %v2005_v57 = vsel %vm268_vm0, %v14471_v50, 0.0  ;;  %v2047_v20 = vmul.f32 %v14471_v50, %v14471_v50 }
 0x313   : > { %v11948_v38 = vpop.eup %11947  ;;  %v1827_v35 = vadd.f32 1.0, %v11946_v29  ;;  %v2002_v59 = vsel %vm268_vm0, %v14475_v58, 0.0  ;;  %v2046_v41 = vmul.f32 %v14475_v58, %v14475_v58 }
 0x314   : > { %v1826_v11 = vadd.f32 1.0, %v11948_v38  ;;  %2006 = vadd.xlane.f32.xlu1 %v2005_v57  ;;  %v2133_v25 = vsel %vm268_vm0, %v2047_v20, 0.0 }
 0x315   : > { %11953 = vrcp.f32 %v1827_v35  ;;  %2003 = vadd.xlane.f32.xlu0 %v2002_v59  ;;  %v2130_v44 = vsel %vm268_vm0, %v2046_v41, 0.0 }
 0x316   : > { %11955 = vrcp.f32 %v1826_v11 }
 0x317   : > { %v11950_v7 = vpop.eup %11949 }
 0x318   : > { %v11952_v47 = vpop.eup %11951  ;;  %v14487_v10 = vmul.f32 %v11950_v7, %v14420_v23  ;;  %2134 = vadd.xlane.f32.xlu1 %v2133_v25 }
 0x319   : > { %v14491_v32 = vmul.f32 %v11952_v47, %v14425_v1  ;;  %2131 = vadd.xlane.f32.xlu0 %v2130_v44 }
 0x31a   : > { %v2011_v5 = vsel %vm268_vm0, %v14487_v10, 0.0  ;;  %v2049_v62 = vmul.f32 %v14487_v10, %v14487_v10 }
 0x31b   : > { %v2008_v56 = vsel %vm268_vm0, %v14491_v32, 0.0  ;;  %v2048_v23 = vmul.f32 %v14491_v32, %v14491_v32 }
 0x31c   : > { %2012 = vadd.xlane.f32.xlu1 %v2011_v5  ;;  %v2139_v19 = vsel %vm268_vm0, %v2049_v62, 0.0 }
 0x31d   : > { %2009 = vadd.xlane.f32.xlu0 %v2008_v56  ;;  %v2136_v60 = vsel %vm268_vm0, %v2048_v23, 0.0 }
 0x31f   : > { %v11954_v12 = vpop.eup %11953 }
 0x320   : > { %v11956_v1 = vpop.eup %11955  ;;  %v14503_v52 = vmul.f32 %v11954_v12, %v14444_v49  ;;  %2140 = vadd.xlane.f32.xlu1 %v2139_v19 }
 0x321   : > { %v14507_v22 = vmul.f32 %v11956_v1, %v14449_v31  ;;  %2137 = vadd.xlane.f32.xlu0 %v2136_v60 }
 0x322   : > { %v2017_v4 = vsel %vm268_vm0, %v14503_v52, 0.0  ;;  %v2051_v43 = vmul.f32 %v14503_v52, %v14503_v52 }
 0x323   : > { %v2014_v24 = vsel %vm268_vm0, %v14507_v22, 0.0  ;;  %v2050_v49 = vmul.f32 %v14507_v22, %v14507_v22 }
 0x324   : > { %2018 = vadd.xlane.f32.xlu1 %v2017_v4  ;;  %v2145_v13 = vsel %vm268_vm0, %v2051_v43, 0.0 }
 0x325   : > { %2015 = vadd.xlane.f32.xlu0 %v2014_v24  ;;  %v2142_v31 = vsel %vm268_vm0, %v2050_v49, 0.0 }
 0x328   : > { %2146 = vadd.xlane.f32.xlu1 %v2145_v13 }
 0x329   : > { %2143 = vadd.xlane.f32.xlu0 %v2142_v31 }
 0x339   : > { %v1929_v40 = vpop.xlane.xlu1 %1928 }
 0x33a   : > { %v2149_v33 = vmul.f32 0.025, %v1929_v40  ;;  %v1926_v16 = vpop.xlane.xlu0 %1925 }
 0x33b   : > { %v2148_v34 = vmul.f32 0.025, %v1926_v16 }
 0x33c   : > { %v2213_v48 = vmul.f32 %v2149_v33, %v2149_v33  ;;  %v2341_v40 = vsub.f32 %v14160_v63, %v2149_v33 }
 0x33d   : > { %v2057_v42 = vpop.xlane.xlu1 %2056  ;;  %v2212_v38 = vmul.f32 %v2148_v34, %v2148_v34 }
 0x33e   : > { %v2181_v29 = vmul.f32 0.025, %v2057_v42  ;;  %v2054_v57 = vpop.xlane.xlu0 %2053 }
 0x33f   : > { %v2180_v35 = vmul.f32 0.025, %v2054_v57 }
 0x340   : > { %v2245_v59 = vsub.f32 %v2181_v29, %v2213_v48  ;;  %v2340_v48 = vsub.f32 %v14168_v36, %v2148_v34  ;;  %v14532_v29 = vld [vmem:[%s19019_s2 + $0x6] ss:$0 sm:$0xff] }
 0x341   : > { %v2244_v20 = vsub.f32 %v2180_v35, %v2212_v38  ;;  %v1935_v11 = vpop.xlane.xlu1 %1934 }
 0x342   : > { %v2277_v41 = vadd.f32 1e-05, %v2245_v59  ;;  %v14519_v7 = vmul.f32 0.025, %v1935_v11  ;;  %v1932_v25 = vpop.xlane.xlu0 %1931 }
 0x343   : > { %v2276_v47 = vadd.f32 1e-05, %v2244_v20  ;;  %v2150_v44 = vmul.f32 0.025, %v1932_v25 }
 0x344   : > { %11957 = vrsqrt.f32 %v2277_v41  ;;  %v2215_v56 = vmul.f32 %v14519_v7, %v14519_v7 }
 0x345   : > { %11959 = vrsqrt.f32 %v2276_v47  ;;  %v2063_v5 = vpop.xlane.xlu1 %2062  ;;  %v2214_v12 = vmul.f32 %v2150_v44, %v2150_v44  ;;  %v14542_v47 = vld [vmem:[%s19019_s2 + $0xa] ss:$0 sm:$0xff] }
 0x346   : > { %v2183_v62 = vmul.f32 0.025, %v2063_v5  ;;  %v2060_v23 = vpop.xlane.xlu0 %2059 }
 0x347   : > { %v2182_v19 = vmul.f32 0.025, %v2060_v23 }
 0x348   : > { %v2247_v1 = vsub.f32 %v2183_v62, %v2215_v56 }
 0x349   : > { %v2246_v60 = vsub.f32 %v2182_v19, %v2214_v12  ;;  %v1941_v4 = vpop.xlane.xlu1 %1940 }
 0x34a   : > { %v2279_v24 = vadd.f32 1e-05, %v2247_v1  ;;  %v14523_v43 = vmul.f32 0.025, %v1941_v4  ;;  %v1938_v49 = vpop.xlane.xlu0 %1937 }
 0x34b   : > { %v2278_v13 = vadd.f32 1e-05, %v2246_v60  ;;  %v14525_v31 = vmul.f32 0.025, %v1938_v49  ;;  %v2343_v60 = vsub.f32 %v14188_v45, %v14519_v7 }
 0x34c   : > { %11961 = vrsqrt.f32 %v2279_v24  ;;  %v2217_v57 = vmul.f32 %v14523_v43, %v14523_v43 }
 0x34d   : > { %11963 = vrsqrt.f32 %v2278_v13  ;;  %v2069_v16 = vpop.xlane.xlu1 %2068  ;;  %v2216_v63 = vmul.f32 %v14525_v31, %v14525_v31  ;;  %v2342_v13 = vsub.f32 %v14192_v26, %v2150_v44 }
 0x34e   : > { %v11958_v42 = vpop.eup %11957  ;;  %v2185_v38 = vmul.f32 0.025, %v2069_v16  ;;  %v2066_v35 = vpop.xlane.xlu0 %2065 }
 0x34f   : > { %v11960_v59 = vpop.eup %11959  ;;  %v2373_v20 = vmul.f32 %v11958_v42, %v2341_v40  ;;  %v2184_v33 = vmul.f32 0.025, %v2066_v35 }
 0x350   : > { %v2249_v11 = vsub.f32 %v2185_v38, %v2217_v57  ;;  %v2372_v41 = vmul.f32 %v11960_v59, %v2340_v48 }
 0x351   : > { %v2410_v36 = vmul.f32 %v14532_v29, %v2373_v20  ;;  %v2248_v34 = vsub.f32 %v2184_v33, %v2216_v63  ;;  %v1947_v25 = vpop.xlane.xlu1 %1946 }
 0x352   : > { %v2281_v5 = vadd.f32 1e-05, %v2249_v11  ;;  %v14544_v56 = vmul.f32 0.025, %v1947_v25  ;;  %v1944_v62 = vpop.xlane.xlu0 %1943  ;;  %v2409_v23 = vmul.f32 %v14532_v29, %v2372_v41  ;;  %v2345_v25 = vsub.f32 %v14212_v9, %v14523_v43 }
 0x353   : > { %v2280_v12 = vadd.f32 1e-05, %v2248_v34  ;;  %v14547_v19 = vmul.f32 0.025, %v1944_v62  ;;  %v2447_v24 = vadd.f32 %v14542_v47, %v2410_v36 }
 0x354   : > { %11965 = vrsqrt.f32 %v2281_v5  ;;  %v2446_v1 = vadd.f32 %v14542_v47, %v2409_v23  ;;  %v2219_v40 = vmul.f32 %v14544_v56, %v14544_v56 }
 0x355   : > { %11967 = vrsqrt.f32 %v2280_v12  ;;  %v2075_v4 = vpop.xlane.xlu1 %2074  ;;  %v2218_v57 = vmul.f32 %v14547_v19, %v14547_v19  ;;  %v2344_v12 = vsub.f32 %v14216_v6, %v14525_v31 }
 0x356   : > { %v11962_v49 = vpop.eup %11961  ;;  %v2187_v16 = vmul.f32 0.025, %v2075_v4  ;;  %11062 = vmatprep.mubr.msk.f32.mxu0 %vm268_vm0, %v2446_v1  ;;  %v2072_v42 = vpop.xlane.xlu0 %2071 }
 0x357   : > { %v11964_v48 = vpop.eup %11963  ;;  %v2186_v38 = vmul.f32 0.025, %v2072_v42  ;;  %11063 = vmatmul.mubr.msk.f32.vlgmr.msra.gmra.mrb[32].mxu0 %vm268_vm0, %v2447_v24  ;;  %v2375_v45 = vmul.f32 %v11962_v49, %v2343_v60 }
 0x358   : > { %v2251_v7 = vsub.f32 %v2187_v16, %v2219_v40  ;;  %v2374_v35 = vmul.f32 %v11964_v48, %v2342_v13 }
 0x359   : > { %v2250_v59 = vsub.f32 %v2186_v38, %v2218_v57  ;;  %v1953_v20 = vpop.xlane.xlu1 %1952  ;;  %v2412_v26 = vmul.f32 %v14532_v29, %v2375_v45 }
 0x35a   : > { %v2283_v44 = vadd.f32 1e-05, %v2251_v7  ;;  %v14561_v63 = vmul.f32 0.025, %v1953_v20  ;;  %v1950_v33 = vpop.xlane.xlu0 %1949  ;;  %v2411_v11 = vmul.f32 %v14532_v29, %v2374_v35 }
 0x35b   : > { %v2282_v41 = vadd.f32 1e-05, %v2250_v59  ;;  %v14564_v36 = vmul.f32 0.025, %v1950_v33  ;;  %v2449_v62 = vadd.f32 %v14542_v47, %v2412_v26  ;;  %v2347_v59 = vsub.f32 %v14236_v30, %v14544_v56 }
 0x35c   : > { %11969 = vrsqrt.f32 %v2283_v44  ;;  %v2448_v34 = vadd.f32 %v14542_v47, %v2411_v11  ;;  %v2221_v1 = vmul.f32 %v14561_v63, %v14561_v63  ;;  %v2346_v33 = vsub.f32 %v14240_v18, %v14547_v19 }
 0x35d   : > { %11971 = vrsqrt.f32 %v2282_v41  ;;  %v2081_v5 = vpop.xlane.xlu1 %2080  ;;  %v2220_v49 = vmul.f32 %v14564_v36, %v14564_v36 }
 0x35e   : > { %v11966_v23 = vpop.eup %11965  ;;  %v2189_v60 = vmul.f32 0.025, %v2081_v5  ;;  %11065 = vmatprep.mubr.msk.f32.mxu0 %vm268_vm0, %v2448_v34  ;;  %v2078_v4 = vpop.xlane.xlu0 %2077 }
 0x35f   : > { %v11968_v24 = vpop.eup %11967  ;;  %v2188_v9 = vmul.f32 0.025, %v2078_v4  ;;  %11066 = vmatmul.mubr.msk.f32.gmra.mrb[34].mxu0 %vm268_vm0, %v2449_v62  ;;  %v2377_v43 = vmul.f32 %v11966_v23, %v2345_v25 }
 0x360   : > { %v2253_v13 = vsub.f32 %v2189_v60, %v2221_v1  ;;  %v2376_v40 = vmul.f32 %v11968_v24, %v2344_v12 }
 0x361   : > { %v2252_v16 = vsub.f32 %v2188_v9, %v2220_v49  ;;  %v1959_v42 = vpop.xlane.xlu1 %1958  ;;  %v2414_v6 = vmul.f32 %v14532_v29, %v2377_v43 }
 0x362   : > { %v2285_v31 = vadd.f32 1e-05, %v2253_v13  ;;  %v14579_v48 = vmul.f32 0.025, %v1959_v42  ;;  %v1956_v57 = vpop.xlane.xlu0 %1955  ;;  %v2413_v38 = vmul.f32 %v14532_v29, %v2376_v40  ;;  %v2349_v13 = vsub.f32 %v14260_v54, %v14561_v63 }
 0x363   : > { %v2284_v45 = vadd.f32 1e-05, %v2252_v16  ;;  %v14582_v7 = vmul.f32 0.025, %v1956_v57  ;;  %v2451_v26 = vadd.f32 %v14542_v47, %v2414_v6  ;;  %v2348_v6 = vsub.f32 %v14264_v27, %v14564_v36 }
 0x364   : > { %11973 = vrsqrt.f32 %v2285_v31  ;;  %v2450_v35 = vadd.f32 %v14542_v47, %v2413_v38  ;;  %v2223_v11 = vmul.f32 %v14579_v48, %v14579_v48 }
 0x365   : > { %11975 = vrsqrt.f32 %v2284_v45  ;;  %v2087_v20 = vpop.xlane.xlu1 %2086  ;;  %v2222_v5 = vmul.f32 %v14582_v7, %v14582_v7 }
 0x366   : > { %v11970_v44 = vpop.eup %11969  ;;  %v2191_v41 = vmul.f32 0.025, %v2087_v20  ;;  %11068 = vmatprep.mubr.msk.f32.mxu0 %vm268_vm0, %v2450_v35  ;;  %v2084_v34 = vpop.xlane.xlu0 %2083 }
 0x367   : > { %v11972_v25 = vpop.eup %11971  ;;  %v2190_v30 = vmul.f32 0.025, %v2084_v34  ;;  %11069 = vmatmul.mubr.msk.f32.gmra.mrb[36].mxu0 %vm268_vm0, %v2451_v26  ;;  %v2379_v56 = vmul.f32 %v11970_v44, %v2347_v59 }
 0x368   : > { %v2255_v62 = vsub.f32 %v2191_v41, %v2223_v11  ;;  %v2378_v23 = vmul.f32 %v11972_v25, %v2346_v33 }
 0x369   : > { %v2254_v12 = vsub.f32 %v2190_v30, %v2222_v5  ;;  %v1965_v1 = vpop.xlane.xlu1 %1964  ;;  %v2416_v18 = vmul.f32 %v14532_v29, %v2379_v56  ;;  %v2351_v30 = vsub.f32 %v14284_v14, %v14579_v48 }
 0x36a   : > { %v2287_v19 = vadd.f32 1e-05, %v2255_v62  ;;  %v14597_v60 = vmul.f32 0.025, %v1965_v1  ;;  %v1962_v4 = vpop.xlane.xlu0 %1961  ;;  %v2415_v24 = vmul.f32 %v14532_v29, %v2378_v23 }
 0x36b   : > { %v2286_v49 = vadd.f32 1e-05, %v2254_v12  ;;  %v14600_v9 = vmul.f32 0.025, %v1962_v4  ;;  %v2453_v16 = vadd.f32 %v14542_v47, %v2416_v18  ;;  %v2350_v12 = vsub.f32 %v14288_v15, %v14582_v7 }
 0x36c   : > { %11977 = vrsqrt.f32 %v2287_v19  ;;  %v2452_v43 = vadd.f32 %v14542_v47, %v2415_v24  ;;  %v2225_v31 = vmul.f32 %v14597_v60, %v14597_v60 }
 0x36d   : > { %11979 = vrsqrt.f32 %v2286_v49  ;;  %v2093_v40 = vpop.xlane.xlu1 %2092  ;;  %v2224_v35 = vmul.f32 %v14600_v9, %v14600_v9 }
 0x36e   : > { %v11974_v42 = vpop.eup %11973  ;;  %v2193_v57 = vmul.f32 0.025, %v2093_v40  ;;  %11071 = vmatprep.mubr.msk.f32.mxu0 %vm268_vm0, %v2452_v43  ;;  %v2090_v38 = vpop.xlane.xlu0 %2089 }
 0x36f   : > { %v11976_v45 = vpop.eup %11975  ;;  %v2192_v54 = vmul.f32 0.025, %v2090_v38  ;;  %11072 = vmatmul.mubr.msk.f32.gmra.mrb[38].mxu0 %vm268_vm0, %v2453_v16  ;;  %v2381_v63 = vmul.f32 %v11974_v42, %v2349_v13 }
 0x370   : > { %v2257_v59 = vsub.f32 %v2193_v57, %v2225_v31  ;;  %v2380_v20 = vmul.f32 %v11976_v45, %v2348_v6  ;;  %v2353_v45 = vsub.f32 %v14311_v55, %v14597_v60 }
 0x371   : > { %v2256_v26 = vsub.f32 %v2192_v54, %v2224_v35  ;;  %v1971_v44 = vpop.xlane.xlu1 %1970  ;;  %v2418_v27 = vmul.f32 %v14532_v29, %v2381_v63 }
 0x372   : > { %v2289_v36 = vadd.f32 1e-05, %v2257_v59  ;;  %v14615_v33 = vmul.f32 0.025, %v1971_v44  ;;  %v1968_v11 = vpop.xlane.xlu0 %1967  ;;  %v2417_v41 = vmul.f32 %v14532_v29, %v2380_v20  ;;  %v2352_v59 = vsub.f32 %v14315_v37, %v14600_v9 }
 0x373   : > { %v2288_v34 = vadd.f32 1e-05, %v2256_v26  ;;  %v14618_v25 = vmul.f32 0.025, %v1968_v11  ;;  %v2455_v62 = vadd.f32 %v14542_v47, %v2418_v27 }
 0x374   : > { %11981 = vrsqrt.f32 %v2289_v36  ;;  %v2454_v5 = vadd.f32 %v14542_v47, %v2417_v41  ;;  %v2227_v1 = vmul.f32 %v14615_v33, %v14615_v33 }
 0x375   : > { %11983 = vrsqrt.f32 %v2288_v34  ;;  %v2099_v56 = vpop.xlane.xlu1 %2098  ;;  %v2226_v24 = vmul.f32 %v14618_v25, %v14618_v25 }
 0x376   : > { %v11978_v23 = vpop.eup %11977  ;;  %v2195_v18 = vmul.f32 0.025, %v2099_v56  ;;  %11074 = vmatprep.mubr.msk.f32.mxu0 %vm268_vm0, %v2454_v5  ;;  %v2096_v19 = vpop.xlane.xlu0 %2095 }
 0x377   : > { %v11980_v4 = vpop.eup %11979  ;;  %v2194_v14 = vmul.f32 0.025, %v2096_v19  ;;  %11075 = vmatmul.mubr.msk.f32.gmra.mrb[40].mxu0 %vm268_vm0, %v2455_v62  ;;  %v2383_v48 = vmul.f32 %v11978_v23, %v2351_v30 }
 0x378   : > { %v2259_v49 = vsub.f32 %v2195_v18, %v2227_v1  ;;  %v2382_v43 = vmul.f32 %v11980_v4, %v2350_v12  ;;  %v2355_v18 = vsub.f32 %v14335_v2, %v14615_v33 }
 0x379   : > { %v2258_v13 = vsub.f32 %v2194_v14, %v2226_v24  ;;  %v1977_v40 = vpop.xlane.xlu1 %1976  ;;  %v2420_v15 = vmul.f32 %v14532_v29, %v2383_v48  ;;  %v2354_v14 = vsub.f32 %v14339_v3, %v14618_v25 }
 0x37a   : > { %v2291_v7 = vadd.f32 1e-05, %v2259_v49  ;;  %v14633_v16 = vmul.f32 0.025, %v1977_v40  ;;  %v1974_v42 = vpop.xlane.xlu0 %1973  ;;  %v2419_v6 = vmul.f32 %v14532_v29, %v2382_v43 }
 0x37b   : > { %v2290_v31 = vadd.f32 1e-05, %v2258_v13  ;;  %v14636_v57 = vmul.f32 0.025, %v1974_v42  ;;  %v2457_v54 = vadd.f32 %v14542_v47, %v2420_v15 }
 0x37c   : > { %11985 = vrsqrt.f32 %v2291_v7  ;;  %v2456_v38 = vadd.f32 %v14542_v47, %v2419_v6  ;;  %v2229_v20 = vmul.f32 %v14633_v16, %v14633_v16 }
 0x37d   : > { %11987 = vrsqrt.f32 %v2290_v31  ;;  %v2105_v35 = vpop.xlane.xlu1 %2104  ;;  %v2228_v36 = vmul.f32 %v14636_v57, %v14636_v57 }
 0x37e   : > { %v11982_v63 = vpop.eup %11981  ;;  %v2197_v26 = vmul.f32 0.025, %v2105_v35  ;;  %11077 = vmatprep.mubr.msk.f32.mxu0 %vm268_vm0, %v2456_v38  ;;  %v2102_v44 = vpop.xlane.xlu0 %2101 }
 0x37f   : > { %v11984_v27 = vpop.eup %11983  ;;  %v2196_v55 = vmul.f32 0.025, %v2102_v44  ;;  %11078 = vmatmul.mubr.msk.f32.gmra.mrb[42].mxu0 %vm268_vm0, %v2457_v54  ;;  %v2385_v60 = vmul.f32 %v11982_v63, %v2353_v45 }
 0x380   : > { %v2261_v11 = vsub.f32 %v2197_v26, %v2229_v20  ;;  %v2384_v41 = vmul.f32 %v11984_v27, %v2352_v59  ;;  %v2357_v59 = vsub.f32 %v14359_v61, %v14633_v16  ;;  %v2356_v27 = vsub.f32 %v14363_v8, %v14636_v57 }
 0x381   : > { %v2260_v34 = vsub.f32 %v2196_v55, %v2228_v36  ;;  %v1983_v5 = vpop.xlane.xlu1 %1982  ;;  %v2422_v37 = vmul.f32 %v14532_v29, %v2385_v60 }
 0x382   : > { %v2293_v9 = vadd.f32 1e-05, %v2261_v11  ;;  %v14651_v30 = vmul.f32 0.025, %v1983_v5  ;;  %v1980_v56 = vpop.xlane.xlu0 %1979  ;;  %v2421_v62 = vmul.f32 %v14532_v29, %v2384_v41 }
 0x383   : > { %v2292_v23 = vadd.f32 1e-05, %v2260_v34  ;;  %v14654_v12 = vmul.f32 0.025, %v1980_v56  ;;  %v2459_v4 = vadd.f32 %v14542_v47, %v2422_v37 }
 0x384   : > { %11989 = vrsqrt.f32 %v2293_v9  ;;  %v2458_v1 = vadd.f32 %v14542_v47, %v2421_v62  ;;  %v2231_v48 = vmul.f32 %v14651_v30, %v14651_v30 }
 0x385   : > { %11991 = vrsqrt.f32 %v2292_v23  ;;  %v2111_v19 = vpop.xlane.xlu1 %2110  ;;  %v2230_v40 = vmul.f32 %v14654_v12, %v14654_v12 }
 0x386   : > { %v11986_v24 = vpop.eup %11985  ;;  %v2199_v49 = vmul.f32 0.025, %v2111_v19  ;;  %11080 = vmatprep.mubr.msk.f32.mxu0 %vm268_vm0, %v2458_v1  ;;  %v2108_v43 = vpop.xlane.xlu0 %2107 }
 0x387   : > { %v11988_v13 = vpop.eup %11987  ;;  %v2198_v2 = vmul.f32 0.025, %v2108_v43  ;;  %11081 = vmatmul.mubr.msk.f32.gmra.mrb[44].mxu0 %vm268_vm0, %v2459_v4  ;;  %v2387_v33 = vmul.f32 %v11986_v24, %v2355_v18  ;;  %v2359_v4 = vsub.f32 %v14383_v17, %v14651_v30 }
 0x388   : > { %v2263_v15 = vsub.f32 %v2199_v49, %v2231_v48  ;;  %v2386_v7 = vmul.f32 %v11988_v13, %v2354_v14  ;;  %v2358_v49 = vsub.f32 %v14387_v46, %v14654_v12 }
 0x389   : > { %v2262_v42 = vsub.f32 %v2198_v2, %v2230_v40  ;;  %v1989_v6 = vpop.xlane.xlu1 %1988  ;;  %v2424_v3 = vmul.f32 %v14532_v29, %v2387_v33 }
 0x38a   : > { %v2295_v25 = vadd.f32 1e-05, %v2263_v15  ;;  %v14669_v31 = vmul.f32 0.025, %v1989_v6  ;;  %v1986_v38 = vpop.xlane.xlu0 %1985  ;;  %v2423_v45 = vmul.f32 %v14532_v29, %v2386_v7 }
 0x38b   : > { %v2294_v35 = vadd.f32 1e-05, %v2262_v42  ;;  %v14672_v54 = vmul.f32 0.025, %v1986_v38  ;;  %v2461_v26 = vadd.f32 %v14542_v47, %v2424_v3 }
 0x38c   : > { %11993 = vrsqrt.f32 %v2295_v25  ;;  %v2460_v63 = vadd.f32 %v14542_v47, %v2423_v45  ;;  %v2233_v36 = vmul.f32 %v14669_v31, %v14669_v31 }
 0x38d   : > { %11995 = vrsqrt.f32 %v2294_v35  ;;  %v2117_v20 = vpop.xlane.xlu1 %2116  ;;  %v2232_v41 = vmul.f32 %v14672_v54, %v14672_v54 }
 0x38e   : > { %v11990_v44 = vpop.eup %11989  ;;  %v2201_v55 = vmul.f32 0.025, %v2117_v20  ;;  %11083 = vmatprep.mubr.msk.f32.mxu0 %vm268_vm0, %v2460_v63  ;;  %v2114_v60 = vpop.xlane.xlu0 %2113 }
 0x38f   : > { %v11992_v11 = vpop.eup %11991  ;;  %v2200_v61 = vmul.f32 0.025, %v2114_v60  ;;  %11084 = vmatmul.mubr.msk.f32.gmra.mrb[46].mxu0 %vm268_vm0, %v2461_v26  ;;  %v2389_v16 = vmul.f32 %v11990_v44, %v2357_v59  ;;  %v2361_v59 = vsub.f32 %v14407_v28, %v14669_v31 }
 0x390   : > { %v2265_v34 = vsub.f32 %v2201_v55, %v2233_v36  ;;  %v2388_v5 = vmul.f32 %v11992_v11, %v2356_v27  ;;  %v2360_v27 = vsub.f32 %v14411_v21, %v14672_v54 }
 0x391   : > { %v2264_v37 = vsub.f32 %v2200_v61, %v2232_v41  ;;  %v1995_v9 = vpop.xlane.xlu1 %1994  ;;  %v2426_v8 = vmul.f32 %v14532_v29, %v2389_v16 }
 0x392   : > { %v2297_v57 = vadd.f32 1e-05, %v2265_v34  ;;  %v14687_v56 = vmul.f32 0.025, %v1995_v9  ;;  %v1992_v62 = vpop.xlane.xlu0 %1991  ;;  %v2425_v23 = vmul.f32 %v14532_v29, %v2388_v5 }
 0x393   : > { %v2296_v1 = vadd.f32 1e-05, %v2264_v37  ;;  %v14690_v18 = vmul.f32 0.025, %v1992_v62  ;;  %v2463_v14 = vadd.f32 %v14542_v47, %v2426_v8 }
 0x394   : > { %11997 = vrsqrt.f32 %v2297_v57  ;;  %v2462_v19 = vadd.f32 %v14542_v47, %v2425_v23  ;;  %v2235_v43 = vmul.f32 %v14687_v56, %v14687_v56 }
 0x395   : > { %11999 = vrsqrt.f32 %v2296_v1  ;;  %v2123_v24 = vpop.xlane.xlu1 %2122  ;;  %v2234_v33 = vmul.f32 %v14690_v18, %v14690_v18  ;;  %v2363_v1 = vsub.f32 %v14431_v53, %v14687_v56 }
 0x396   : > { %v11994_v48 = vpop.eup %11993  ;;  %v2203_v13 = vmul.f32 0.025, %v2123_v24  ;;  %11086 = vmatprep.mubr.msk.f32.mxu0 %vm268_vm0, %v2462_v19  ;;  %v2120_v40 = vpop.xlane.xlu0 %2119 }
 0x397   : > { %v11996_v2 = vpop.eup %11995  ;;  %v2202_v17 = vmul.f32 0.025, %v2120_v40  ;;  %11087 = vmatmul.mubr.msk.f32.gmra.mrb[48].mxu0 %vm268_vm0, %v2463_v14  ;;  %v2391_v30 = vmul.f32 %v11994_v48, %v2359_v4  ;;  %v2362_v14 = vsub.f32 %v14435_v39, %v14690_v18 }
 0x398   : > { %v2267_v15 = vsub.f32 %v2203_v13, %v2235_v43  ;;  %v2390_v7 = vmul.f32 %v11996_v2, %v2358_v49 }
 0x399   : > { %v2266_v42 = vsub.f32 %v2202_v17, %v2234_v33  ;;  %v2001_v6 = vpop.xlane.xlu1 %2000  ;;  %v2428_v46 = vmul.f32 %v14532_v29, %v2391_v30 }
 0x39a   : > { %v2299_v12 = vadd.f32 1e-05, %v2267_v15  ;;  %v14705_v3 = vmul.f32 0.025, %v2001_v6  ;;  %v1998_v25 = vpop.xlane.xlu0 %1997  ;;  %v2427_v38 = vmul.f32 %v14532_v29, %v2390_v7 }
 0x39b   : > { %v2298_v45 = vadd.f32 1e-05, %v2266_v42  ;;  %v14708_v35 = vmul.f32 0.025, %v1998_v25  ;;  %v2465_v26 = vadd.f32 %v14542_v47, %v2428_v46 }
 0x39c   : > { %12001 = vrsqrt.f32 %v2299_v12  ;;  %v2464_v63 = vadd.f32 %v14542_v47, %v2427_v38  ;;  %v2237_v36 = vmul.f32 %v14705_v3, %v14705_v3  ;;  %v2365_v25 = vsub.f32 %v14455_v0, %v14705_v3 }
 0x39d   : > { %12003 = vrsqrt.f32 %v2298_v45  ;;  %v2129_v20 = vpop.xlane.xlu1 %2128  ;;  %v2236_v41 = vmul.f32 %v14708_v35, %v14708_v35 }
 0x39e   : > { %v11998_v44 = vpop.eup %11997  ;;  %v2205_v55 = vmul.f32 0.025, %v2129_v20  ;;  %11089 = vmatprep.mubr.msk.f32.mxu0 %vm268_vm0, %v2464_v63  ;;  %v2126_v60 = vpop.xlane.xlu0 %2125 }
 0x39f   : > { %v12000_v11 = vpop.eup %11999  ;;  %v2204_v28 = vmul.f32 0.025, %v2126_v60  ;;  %11090 = vmatmul.mubr.msk.f32.gmra.mrb[50].mxu0 %vm268_vm0, %v2465_v26  ;;  %v2393_v31 = vmul.f32 %v11998_v44, %v2361_v59  ;;  %v2364_v59 = vsub.f32 %v14459_v51, %v14708_v35 }
 0x3a0   : > { %v2269_v61 = vsub.f32 %v2205_v55, %v2237_v36  ;;  %v2392_v16 = vmul.f32 %v12000_v11, %v2360_v27 }
 0x3a1   : > { %v2268_v34 = vsub.f32 %v2204_v28, %v2236_v41  ;;  %v2007_v5 = vpop.xlane.xlu1 %2006  ;;  %v2430_v21 = vmul.f32 %v14532_v29, %v2393_v31 }
 0x3a2   : > { %v2301_v54 = vadd.f32 1e-05, %v2269_v61  ;;  %v14723_v37 = vmul.f32 0.025, %v2007_v5  ;;  %v2004_v9 = vpop.xlane.xlu0 %2003  ;;  %v2429_v8 = vmul.f32 %v14532_v29, %v2392_v16 }
 0x3a3   : > { %v2300_v57 = vadd.f32 1e-05, %v2268_v34  ;;  %v14726_v62 = vmul.f32 0.025, %v2004_v9  ;;  %v2467_v4 = vadd.f32 %v14542_v47, %v2430_v21 }
 0x3a4   : > { %12005 = vrsqrt.f32 %v2301_v54  ;;  %v2466_v23 = vadd.f32 %v14542_v47, %v2429_v8  ;;  %v2239_v48 = vmul.f32 %v14723_v37, %v14723_v37  ;;  %v2367_v21 = vsub.f32 %v14471_v50, %v14723_v37 }
 0x3a5   : > { %12007 = vrsqrt.f32 %v2300_v57  ;;  %v2135_v19 = vpop.xlane.xlu1 %2134  ;;  %v2238_v40 = vmul.f32 %v14726_v62, %v14726_v62  ;;  %v2366_v57 = vsub.f32 %v14475_v58, %v14726_v62 }
 0x3a6   : > { %v12002_v24 = vpop.eup %12001  ;;  %v2207_v49 = vmul.f32 0.025, %v2135_v19  ;;  %11092 = vmatprep.mubr.msk.f32.mxu0 %vm268_vm0, %v2466_v23  ;;  %v2132_v43 = vpop.xlane.xlu0 %2131 }
 0x3a7   : > { %v12004_v13 = vpop.eup %12003  ;;  %v2206_v53 = vmul.f32 0.025, %v2132_v43  ;;  %11093 = vmatmul.mubr.msk.f32.gmra.mrb[52].mxu0 %vm268_vm0, %v2467_v4  ;;  %v2395_v56 = vmul.f32 %v12002_v24, %v2363_v1 }
 0x3a8   : > { %v2271_v2 = vsub.f32 %v2207_v49, %v2239_v48  ;;  %v2394_v33 = vmul.f32 %v12004_v13, %v2362_v14 }
 0x3a9   : > { %v2270_v17 = vsub.f32 %v2206_v53, %v2238_v40  ;;  %v2013_v30 = vpop.xlane.xlu1 %2012  ;;  %v2432_v39 = vmul.f32 %v14532_v29, %v2395_v56 }
 0x3aa   : > { %v2303_v18 = vadd.f32 1e-05, %v2271_v2  ;;  %v14741_v15 = vmul.f32 0.025, %v2013_v30  ;;  %v2010_v7 = vpop.xlane.xlu0 %2009  ;;  %v2431_v42 = vmul.f32 %v14532_v29, %v2394_v33 }
 0x3ab   : > { %v2302_v6 = vadd.f32 1e-05, %v2270_v17  ;;  %v14744_v46 = vmul.f32 0.025, %v2010_v7  ;;  %v2469_v45 = vadd.f32 %v14542_v47, %v2432_v39 }
 0x3ac   : > { %12009 = vrsqrt.f32 %v2303_v18  ;;  %v2468_v12 = vadd.f32 %v14542_v47, %v2431_v42  ;;  %v2241_v20 = vmul.f32 %v14741_v15, %v14741_v15  ;;  %v2369_v53 = vsub.f32 %v14487_v10, %v14741_v15 }
 0x3ad   : > { %12011 = vrsqrt.f32 %v2302_v6  ;;  %v2141_v38 = vpop.xlane.xlu1 %2140  ;;  %v2240_v36 = vmul.f32 %v14744_v46, %v14744_v46  ;;  %v2368_v33 = vsub.f32 %v14491_v32, %v14744_v46 }
 0x3ae   : > { %v12006_v63 = vpop.eup %12005  ;;  %v2209_v26 = vmul.f32 0.025, %v2141_v38  ;;  %11095 = vmatprep.mubr.msk.f32.mxu0 %vm268_vm0, %v2468_v12  ;;  %v2138_v44 = vpop.xlane.xlu0 %2137 }
 0x3af   : > { %v12008_v27 = vpop.eup %12007  ;;  %v2208_v0 = vmul.f32 0.025, %v2138_v44  ;;  %11096 = vmatmul.mubr.msk.f32.gmra.mrb[54].mxu0 %vm268_vm0, %v2469_v45  ;;  %v2397_v3 = vmul.f32 %v12006_v63, %v2365_v25 }
 0x3b0   : > { %v2273_v55 = vsub.f32 %v2209_v26, %v2241_v20  ;;  %v2396_v60 = vmul.f32 %v12008_v27, %v2364_v59 }
 0x3b1   : > { %v2272_v11 = vsub.f32 %v2208_v0, %v2240_v36  ;;  %v2019_v41 = vpop.xlane.xlu1 %2018  ;;  %v2434_v51 = vmul.f32 %v14532_v29, %v2397_v3 }
 0x3b2   : > { %v2305_v35 = vadd.f32 1e-05, %v2273_v55  ;;  %v2179_v28 = vmul.f32 0.025, %v2019_v41  ;;  %v2016_v31 = vpop.xlane.xlu0 %2015  ;;  %v2433_v61 = vmul.f32 %v14532_v29, %v2396_v60 }
 0x3b3   : > { %v2304_v16 = vadd.f32 1e-05, %v2272_v11  ;;  %v2178_v34 = vmul.f32 0.025, %v2016_v31  ;;  %v2471_v9 = vadd.f32 %v14542_v47, %v2434_v51 }
 0x3b4   : > { %12013 = vrsqrt.f32 %v2305_v35  ;;  %v2470_v5 = vadd.f32 %v14542_v47, %v2433_v61  ;;  %v2243_v23 = vmul.f32 %v2179_v28, %v2179_v28  ;;  %v2371_v15 = vsub.f32 %v14503_v52, %v2179_v28 }
 0x3b5   : > { %12015 = vrsqrt.f32 %v2304_v16  ;;  %v2147_v54 = vpop.xlane.xlu1 %2146  ;;  %v2242_v24 = vmul.f32 %v2178_v34, %v2178_v34  ;;  %v2370_v32 = vsub.f32 %v14507_v22, %v2178_v34  ;;  %v14795_v22 = vld [vmem:[%s19019_s2 + $0x2] ss:$0 sm:$0xff] }
 0x3b6   : > { %v12010_v8 = vpop.eup %12009  ;;  %v2211_v1 = vmul.f32 0.025, %v2147_v54  ;;  %11098 = vmatprep.mubr.msk.f32.mxu0 %vm268_vm0, %v2470_v5  ;;  %v2144_v19 = vpop.xlane.xlu0 %2143  ;;  %v10130_v54 = vld [vmem:[%s19018_s1 + $0x80] sm:$0xff] }
 0x3b7   : > { %v12012_v4 = vpop.eup %12011  ;;  %v2210_v14 = vmul.f32 0.025, %v2144_v19  ;;  %11099 = vmatmul.mubr.msk.f32.gmra.mrb[56].mxu0 %vm268_vm0, %v2471_v9  ;;  %v2399_v48 = vmul.f32 %v12010_v8, %v2367_v21  ;;  %v10129_v21 = vld [vmem:[%s19018_s1 + $0x78] sm:$0xff] }
 0x3b8   : > { %v2275_v50 = vsub.f32 %v2211_v1, %v2243_v23  ;;  %v2398_v37 = vmul.f32 %v12012_v4, %v2366_v57  ;;  %v11540_v8 = vpack.c.bf16 %v10130_v54, %v10129_v21 }
 0x3b9   : > { %v2274_v49 = vsub.f32 %v2210_v14, %v2242_v24  ;;  %v2436_v43 = vmul.f32 %v14532_v29, %v2399_v48 }
 0x3ba   : > { %v2307_v13 = vadd.f32 1e-05, %v2275_v50  ;;  %v2435_v40 = vmul.f32 %v14532_v29, %v2398_v37  ;;  %11541 = vmatprep.subr.bf16.mxu1 %v11540_v8 }
 0x3bb   : > { %v2306_v58 = vadd.f32 1e-05, %v2274_v49  ;;  %v2473_v56 = vadd.f32 %v14542_v47, %v2436_v43  ;;  %11543 = vmatpush3.bf16.msra.mxu1 %v11540_v8 }
 0x3bc   : > { %12017 = vrsqrt.f32 %v2307_v13  ;;  %v2472_v62 = vadd.f32 %v14542_v47, %v2435_v40  ;;  %v10131_v13 = vld [vmem:[%s19018_s1 + $0x88] sm:$0xff]  ;;  %v10132_v40 = vld [vmem:[%s19018_s1 + $0x90] sm:$0xff] }
 0x3bd   : > { %12019 = vrsqrt.f32 %v2306_v58 }
 0x3be   : > { %v12014_v2 = vpop.eup %12013  ;;  %11101 = vmatprep.mubr.msk.f32.mxu0 %vm268_vm0, %v2472_v62  ;;  %v11544_v62 = vpack.c.bf16 %v10132_v40, %v10131_v13 }
 0x3bf   : > { %v12016_v17 = vpop.eup %12015  ;;  %11102 = vmatmul.mubr.msk.f32.gmra.mrb[58].mxu0 %vm268_vm0, %v2473_v56  ;;  %v2401_v30 = vmul.f32 %v12014_v2, %v2369_v53 }
 0x3c0   : > { %v2400_v39 = vmul.f32 %v12016_v17, %v2368_v33  ;;  %11545 = vmatprep.subr.bf16.mxu1 %v11544_v62 }
 0x3c1   : > { %v2438_v18 = vmul.f32 %v14532_v29, %v2401_v30  ;;  %11547 = vmatpush3.bf16.msra.mxu1 %v11544_v62 }
 0x3c2   : > { %v2437_v7 = vmul.f32 %v14532_v29, %v2400_v39 }
 0x3c3   : > { %v2475_v42 = vadd.f32 %v14542_v47, %v2438_v18 }
 0x3c4   : > { %v2474_v10 = vadd.f32 %v14542_v47, %v2437_v7 }
 0x3c6   : > { %v12018_v6 = vpop.eup %12017  ;;  %11104 = vmatprep.mubr.msk.f32.mxu0 %vm268_vm0, %v2474_v10 }
 0x3c7   : > { %v12020_v46 = vpop.eup %12019  ;;  %11105 = vmatmul.mubr.msk.f32.gmra.mrb[60].mxu0 %vm268_vm0, %v2475_v42  ;;  %v2403_v12 = vmul.f32 %v12018_v6, %v2371_v15 }
 0x3c8   : > { %v2402_v25 = vmul.f32 %v12020_v46, %v2370_v32 }
 0x3c9   : > { %v2440_v38 = vmul.f32 %v14532_v29, %v2403_v12 }
 0x3ca   : > { %v2439_v45 = vmul.f32 %v14532_v29, %v2402_v25 }
 0x3cb   : > { %v2477_v52 = vadd.f32 %v14542_v47, %v2440_v38 }
 0x3cc   : > { %v2476_v63 = vadd.f32 %v14542_v47, %v2439_v45 }
 0x3ce   : > { %11107 = vmatprep.mubr.msk.f32.mxu0 %vm268_vm0, %v2476_v63 }
 0x3cf   : > { %11108 = vmatmul.mubr.msk.f32.gmra.mrb[62].mxu0 %vm268_vm0, %v2477_v52 }
 0x42a   : > { %v11064_v59 = vpop.f32.mrb[32].mxu0 }
 0x42b   : > { %v2657_v20 = vadd.f32 %v11064_v59, %v14795_v22  ;;  %v2651_v26 = vpop.f32.mrb[33].mxu0 }
 0x42c   : > { %v2652_v44 = vadd.f32 %v14795_v22, %v2651_v26 }
 0x42d   : > { %v10096_v29 = vmul.f32 -1.442695, %v2657_v20 }
 0x42e   : > { %v10095_v27 = vmul.f32 -1.442695, %v2652_v44 }
 0x42f   : > { %12021 = vpow2.f32 %v10096_v29 }
 0x430   : > { %12023 = vpow2.f32 %v10095_v27 }
 0x432   : > { %v11067_v47 = vpop.f32.mrb[34].mxu0 }
 0x433   : > { %v14800_v36 = vadd.f32 %v11067_v47, %v14795_v22  ;;  %v2661_v0 = vpop.f32.mrb[35].mxu0 }
 0x434   : > { %v14803_v3 = vadd.f32 %v14795_v22, %v2661_v0 }
 0x435   : > { %v10098_v55 = vmul.f32 -1.442695, %v14800_v36 }
 0x436   : > { %v10097_v60 = vmul.f32 -1.442695, %v14803_v3 }
 0x437   : > { %12025 = vpow2.f32 %v10098_v55 }
 0x438   : > { %12027 = vpow2.f32 %v10097_v60 }
 0x439   : > { %v12022_v11 = vpop.eup %12021 }
 0x43a   : > { %v12024_v41 = vpop.eup %12023  ;;  %v2907_v51 = vadd.f32 1.0, %v12022_v11  ;;  %v11070_v35 = vpop.f32.mrb[36].mxu0 }
 0x43b   : > { %v2906_v28 = vadd.f32 1.0, %v12024_v41  ;;  %v14808_v31 = vadd.f32 %v11070_v35, %v14795_v22  ;;  %v2671_v61 = vpop.f32.mrb[37].mxu0 }
 0x43c   : > { %12029 = vrcp.f32 %v2907_v51  ;;  %v14811_v16 = vadd.f32 %v14795_v22, %v2671_v61 }
 0x43d   : > { %12031 = vrcp.f32 %v2906_v28  ;;  %v10100_v34 = vmul.f32 -1.442695, %v14808_v31 }
 0x43e   : > { %v10099_v5 = vmul.f32 -1.442695, %v14811_v16 }
 0x43f   : > { %12033 = vpow2.f32 %v10100_v34 }
 0x440   : > { %12035 = vpow2.f32 %v10099_v5 }
 0x441   : > { %v12026_v9 = vpop.eup %12025 }
 0x442   : > { %v12028_v57 = vpop.eup %12027  ;;  %v2909_v23 = vadd.f32 1.0, %v12026_v9  ;;  %v11073_v1 = vpop.f32.mrb[38].mxu0 }
 0x443   : > { %v2908_v19 = vadd.f32 1.0, %v12028_v57  ;;  %v14822_v4 = vadd.f32 %v11073_v1, %v14795_v22  ;;  %v2681_v24 = vpop.f32.mrb[39].mxu0 }
 0x444   : > { %12037 = vrcp.f32 %v2909_v23  ;;  %v14825_v14 = vadd.f32 %v14795_v22, %v2681_v24 }
 0x445   : > { %12039 = vrcp.f32 %v2908_v19  ;;  %v10102_v48 = vmul.f32 -1.442695, %v14822_v4 }
 0x446   : > { %v12030_v50 = vpop.eup %12029  ;;  %v10101_v37 = vmul.f32 -1.442695, %v14825_v14 }
 0x447   : > { %v12032_v49 = vpop.eup %12031  ;;  %v14829_v43 = vmul.f32 %v12030_v50, %v2657_v20  ;;  %12041 = vpow2.f32 %v10102_v48 }
 0x448   : > { %v14837_v58 = vmul.f32 %v12032_v49, %v2652_v44  ;;  %12043 = vpow2.f32 %v10101_v37 }
 0x449   : > { %v12034_v53 = vpop.eup %12033  ;;  %v3037_v56 = vsel %vm268_vm0, %v14829_v43, 0.0  ;;  %v3131_v2 = vmul.f32 %v14829_v43, %v14829_v43 }
 0x44a   : > { %v12036_v33 = vpop.eup %12035  ;;  %v2911_v17 = vadd.f32 1.0, %v12034_v53  ;;  %3038 = vadd.xlane.f32.xlu1 %v3037_v56  ;;  %v11076_v30 = vpop.f32.mrb[40].mxu0  ;;  %v3034_v39 = vsel %vm268_vm0, %v14837_v58, 0.0  ;;  %v3130_v18 = vmul.f32 %v14837_v58, %v14837_v58 }
 0x44b   : > { %v2910_v7 = vadd.f32 1.0, %v12036_v33  ;;  %v14848_v10 = vadd.f32 %v11076_v30, %v14795_v22  ;;  %3035 = vadd.xlane.f32.xlu0 %v3034_v39  ;;  %v2691_v15 = vpop.f32.mrb[41].mxu0  ;;  %v3165_v32 = vsel %vm268_vm0, %v3131_v2, 0.0 }
 0x44c   : > { %12045 = vrcp.f32 %v2911_v17  ;;  %v14851_v42 = vadd.f32 %v14795_v22, %v2691_v15  ;;  %v3162_v25 = vsel %vm268_vm0, %v3130_v18, 0.0 }
 0x44d   : > { %12047 = vrcp.f32 %v2910_v7  ;;  %v10104_v6 = vmul.f32 -1.442695, %v14848_v10 }
 0x44e   : > { %v12038_v46 = vpop.eup %12037  ;;  %v10103_v12 = vmul.f32 -1.442695, %v14851_v42  ;;  %3166 = vadd.xlane.f32.xlu1 %v3165_v32 }
 0x44f   : > { %v12040_v38 = vpop.eup %12039  ;;  %v14858_v45 = vmul.f32 %v12038_v46, %v14800_v36  ;;  %12049 = vpow2.f32 %v10104_v6  ;;  %3163 = vadd.xlane.f32.xlu0 %v3162_v25 }
 0x450   : > { %v14861_v63 = vmul.f32 %v12040_v38, %v14803_v3  ;;  %12051 = vpow2.f32 %v10103_v12 }
 0x451   : > { %v12042_v52 = vpop.eup %12041  ;;  %v3043_v59 = vsel %vm268_vm0, %v14858_v45, 0.0  ;;  %v3133_v20 = vmul.f32 %v14858_v45, %v14858_v45 }
 0x452   : > { %v12044_v26 = vpop.eup %12043  ;;  %v2913_v44 = vadd.f32 1.0, %v12042_v52  ;;  %3044 = vadd.xlane.f32.xlu1 %v3043_v59  ;;  %v11079_v29 = vpop.f32.mrb[42].mxu0  ;;  %v3040_v27 = vsel %vm268_vm0, %v14861_v63, 0.0  ;;  %v3132_v47 = vmul.f32 %v14861_v63, %v14861_v63 }
 0x453   : > { %v2912_v36 = vadd.f32 1.0, %v12044_v26  ;;  %v14872_v0 = vadd.f32 %v11079_v29, %v14795_v22  ;;  %3041 = vadd.xlane.f32.xlu0 %v3040_v27  ;;  %v2701_v3 = vpop.f32.mrb[43].mxu0  ;;  %v3171_v11 = vsel %vm268_vm0, %v3133_v20, 0.0 }
 0x454   : > { %12053 = vrcp.f32 %v2913_v44  ;;  %v14875_v55 = vadd.f32 %v14795_v22, %v2701_v3  ;;  %v3168_v35 = vsel %vm268_vm0, %v3132_v47, 0.0 }
 0x455   : > { %12055 = vrcp.f32 %v2912_v36  ;;  %v10106_v60 = vmul.f32 -1.442695, %v14872_v0 }
 0x456   : > { %v12046_v41 = vpop.eup %12045  ;;  %v10105_v51 = vmul.f32 -1.442695, %v14875_v55  ;;  %3172 = vadd.xlane.f32.xlu1 %v3171_v11 }
 0x457   : > { %v12048_v28 = vpop.eup %12047  ;;  %v14882_v61 = vmul.f32 %v12046_v41, %v14808_v31  ;;  %12057 = vpow2.f32 %v10106_v60  ;;  %3169 = vadd.xlane.f32.xlu0 %v3168_v35 }
 0x458   : > { %v14885_v34 = vmul.f32 %v12048_v28, %v14811_v16  ;;  %12059 = vpow2.f32 %v10105_v51 }
 0x459   : > { %v12050_v5 = vpop.eup %12049  ;;  %v3049_v21 = vsel %vm268_vm0, %v14882_v61, 0.0  ;;  %v3135_v54 = vmul.f32 %v14882_v61, %v14882_v61 }
 0x45a   : > { %v12052_v9 = vpop.eup %12051  ;;  %v2915_v8 = vadd.f32 1.0, %v12050_v5  ;;  %3050 = vadd.xlane.f32.xlu1 %v3049_v21  ;;  %v11082_v57 = vpop.f32.mrb[44].mxu0  ;;  %v3046_v31 = vsel %vm268_vm0, %v14885_v34, 0.0  ;;  %v3134_v23 = vmul.f32 %v14885_v34, %v14885_v34 }
 0x45b   : > { %v2914_v16 = vadd.f32 1.0, %v12052_v9  ;;  %v14896_v1 = vadd.f32 %v11082_v57, %v14795_v22  ;;  %3047 = vadd.xlane.f32.xlu0 %v3046_v31  ;;  %v2711_v19 = vpop.f32.mrb[45].mxu0  ;;  %v3177_v50 = vsel %vm268_vm0, %v3135_v54, 0.0 }
 0x45c   : > { %12061 = vrcp.f32 %v2915_v8  ;;  %v14899_v24 = vadd.f32 %v14795_v22, %v2711_v19  ;;  %v3174_v13 = vsel %vm268_vm0, %v3134_v23, 0.0  ;;  %v10133_v8 = vld [vmem:[%s19018_s1 + $0x98] sm:$0xff] }
 0x45d   : > { %12063 = vrcp.f32 %v2914_v16  ;;  %v10108_v48 = vmul.f32 -1.442695, %v14896_v1  ;;  %11118 = vmatprep.subr.mxu1 %v10133_v8 }
 0x45e   : > { %v12054_v37 = vpop.eup %12053  ;;  %v10107_v49 = vmul.f32 -1.442695, %v14899_v24  ;;  %3178 = vadd.xlane.f32.xlu1 %v3177_v50  ;;  %11119 = vmatpush3.msra.mxu1 %v10133_v8 }
 0x45f   : > { %v12056_v40 = vpop.eup %12055  ;;  %v14906_v62 = vmul.f32 %v12054_v37, %v14822_v4  ;;  %12065 = vpow2.f32 %v10108_v48  ;;  %3175 = vadd.xlane.f32.xlu0 %v3174_v13 }
 0x460   : > { %v14909_v53 = vmul.f32 %v12056_v40, %v14825_v14  ;;  %12067 = vpow2.f32 %v10107_v49 }
 0x461   : > { %v12058_v56 = vpop.eup %12057  ;;  %v3055_v2 = vsel %vm268_vm0, %v14906_v62, 0.0  ;;  %v3137_v33 = vmul.f32 %v14906_v62, %v14906_v62 }
 0x462   : > { %v12060_v17 = vpop.eup %12059  ;;  %v2917_v30 = vadd.f32 1.0, %v12058_v56  ;;  %3056 = vadd.xlane.f32.xlu1 %v3055_v2  ;;  %v11085_v39 = vpop.f32.mrb[46].mxu0  ;;  %v3052_v4 = vsel %vm268_vm0, %v14909_v53, 0.0  ;;  %v3136_v18 = vmul.f32 %v14909_v53, %v14909_v53 }
 0x463   : > { %v2916_v14 = vadd.f32 1.0, %v12060_v17  ;;  %v14920_v7 = vadd.f32 %v11085_v39, %v14795_v22  ;;  %3053 = vadd.xlane.f32.xlu0 %v3052_v4  ;;  %v2721_v15 = vpop.f32.mrb[47].mxu0  ;;  %v3183_v46 = vsel %vm268_vm0, %v3137_v33, 0.0 }
 0x464   : > { %12069 = vrcp.f32 %v2917_v30  ;;  %v14923_v6 = vadd.f32 %v14795_v22, %v2721_v15  ;;  %v3180_v38 = vsel %vm268_vm0, %v3136_v18, 0.0 }
 0x465   : > { %12071 = vrcp.f32 %v2916_v14  ;;  %v10110_v32 = vmul.f32 -1.442695, %v14920_v7 }
 0x466   : > { %v12062_v12 = vpop.eup %12061  ;;  %v10109_v25 = vmul.f32 -1.442695, %v14923_v6  ;;  %3184 = vadd.xlane.f32.xlu1 %v3183_v46 }
 0x467   : > { %v12064_v52 = vpop.eup %12063  ;;  %v14930_v59 = vmul.f32 %v12062_v12, %v14848_v10  ;;  %12073 = vpow2.f32 %v10110_v32  ;;  %3181 = vadd.xlane.f32.xlu0 %v3180_v38 }
 0x468   : > { %v14933_v20 = vmul.f32 %v12064_v52, %v14851_v42  ;;  %12075 = vpow2.f32 %v10109_v25 }
 0x469   : > { %v12066_v26 = vpop.eup %12065  ;;  %v3061_v44 = vsel %vm268_vm0, %v14930_v59, 0.0  ;;  %v3139_v29 = vmul.f32 %v14930_v59, %v14930_v59 }
 0x46a   : > { %v12068_v27 = vpop.eup %12067  ;;  %v2919_v47 = vadd.f32 1.0, %v12066_v26  ;;  %3062 = vadd.xlane.f32.xlu1 %v3061_v44  ;;  %v11088_v36 = vpop.f32.mrb[48].mxu0  ;;  %v3058_v10 = vsel %vm268_vm0, %v14933_v20, 0.0  ;;  %v3138_v3 = vmul.f32 %v14933_v20, %v14933_v20 }
 0x46b   : > { %v2918_v42 = vadd.f32 1.0, %v12068_v27  ;;  %v14944_v60 = vadd.f32 %v11088_v36, %v14795_v22  ;;  %3059 = vadd.xlane.f32.xlu0 %v3058_v10  ;;  %v2731_v11 = vpop.f32.mrb[49].mxu0  ;;  %v3189_v35 = vsel %vm268_vm0, %v3139_v29, 0.0 }
 0x46c   : > { %12077 = vrcp.f32 %v2919_v47  ;;  %v14947_v41 = vadd.f32 %v14795_v22, %v2731_v11  ;;  %v3186_v21 = vsel %vm268_vm0, %v3138_v3, 0.0 }
 0x46d   : > { %12079 = vrcp.f32 %v2918_v42  ;;  %v10112_v51 = vmul.f32 -1.442695, %v14944_v60 }
 0x46e   : > { %v12070_v28 = vpop.eup %12069  ;;  %v10111_v5 = vmul.f32 -1.442695, %v14947_v41  ;;  %3190 = vadd.xlane.f32.xlu1 %v3189_v35 }
 0x46f   : > { %v12072_v54 = vpop.eup %12071  ;;  %v14954_v9 = vmul.f32 %v12070_v28, %v14872_v0  ;;  %12081 = vpow2.f32 %v10112_v51  ;;  %3187 = vadd.xlane.f32.xlu0 %v3186_v21 }
 0x470   : > { %v14960_v57 = vmul.f32 %v12072_v54, %v14875_v55  ;;  %12083 = vpow2.f32 %v10111_v5 }
 0x471   : > { %v12074_v31 = vpop.eup %12073  ;;  %v3067_v23 = vsel %vm268_vm0, %v14954_v9, 0.0  ;;  %v3141_v16 = vmul.f32 %v14954_v9, %v14954_v9 }
 0x472   : > { %v12076_v0 = vpop.eup %12075  ;;  %v2921_v19 = vadd.f32 1.0, %v12074_v31  ;;  %3068 = vadd.xlane.f32.xlu1 %v3067_v23  ;;  %v11091_v48 = vpop.f32.mrb[50].mxu0  ;;  %v3064_v50 = vsel %vm268_vm0, %v14960_v57, 0.0  ;;  %v3140_v55 = vmul.f32 %v14960_v57, %v14960_v57 }
 0x473   : > { %v2920_v37 = vadd.f32 1.0, %v12076_v0  ;;  %v14971_v49 = vadd.f32 %v11091_v48, %v14795_v22  ;;  %3065 = vadd.xlane.f32.xlu0 %v3064_v50  ;;  %v2741_v13 = vpop.f32.mrb[51].mxu0  ;;  %v3195_v2 = vsel %vm268_vm0, %v3141_v16, 0.0 }
 0x474   : > { %12085 = vrcp.f32 %v2921_v19  ;;  %v14974_v40 = vadd.f32 %v14795_v22, %v2741_v13  ;;  %v3192_v30 = vsel %vm268_vm0, %v3140_v55, 0.0 }
 0x475   : > { %12087 = vrcp.f32 %v2920_v37  ;;  %v10114_v56 = vmul.f32 -1.442695, %v14971_v49 }
 0x476   : > { %v12078_v33 = vpop.eup %12077  ;;  %v10113_v17 = vmul.f32 -1.442695, %v14974_v40  ;;  %3196 = vadd.xlane.f32.xlu1 %v3195_v2 }
 0x477   : > { %v12080_v39 = vpop.eup %12079  ;;  %v14981_v4 = vmul.f32 %v12078_v33, %v14896_v1  ;;  %12089 = vpow2.f32 %v10114_v56  ;;  %3193 = vadd.xlane.f32.xlu0 %v3192_v30 }
 0x478   : > { %v14984_v18 = vmul.f32 %v12080_v39, %v14899_v24  ;;  %12091 = vpow2.f32 %v10113_v17 }
 0x479   : > { %v12082_v14 = vpop.eup %12081  ;;  %v3073_v15 = vsel %vm268_vm0, %v14981_v4, 0.0  ;;  %v3143_v32 = vmul.f32 %v14981_v4, %v14981_v4 }
 0x47a   : > { %v12084_v46 = vpop.eup %12083  ;;  %v2923_v12 = vadd.f32 1.0, %v12082_v14  ;;  %3074 = vadd.xlane.f32.xlu1 %v3073_v15  ;;  %v11094_v25 = vpop.f32.mrb[52].mxu0  ;;  %v3070_v1 = vsel %vm268_vm0, %v14984_v18, 0.0  ;;  %v3142_v38 = vmul.f32 %v14984_v18, %v14984_v18 }
 0x47b   : > { %v2922_v24 = vadd.f32 1.0, %v12084_v46  ;;  %v14995_v52 = vadd.f32 %v11094_v25, %v14795_v22  ;;  %3071 = vadd.xlane.f32.xlu0 %v3070_v1  ;;  %v2751_v26 = vpop.f32.mrb[53].mxu0  ;;  %v3201_v27 = vsel %vm268_vm0, %v3143_v32, 0.0 }
 0x47c   : > { %12093 = vrcp.f32 %v2923_v12  ;;  %v14998_v44 = vadd.f32 %v14795_v22, %v2751_v26  ;;  %v3198_v10 = vsel %vm268_vm0, %v3142_v38, 0.0 }
 0x47d   : > { %12095 = vrcp.f32 %v2922_v24  ;;  %v10116_v29 = vmul.f32 -1.442695, %v14995_v52 }
 0x47e   : > { %v12086_v47 = vpop.eup %12085  ;;  %v10115_v36 = vmul.f32 -1.442695, %v14998_v44  ;;  %3202 = vadd.xlane.f32.xlu1 %v3201_v27 }
 0x47f   : > { %v12088_v3 = vpop.eup %12087  ;;  %v15005_v42 = vmul.f32 %v12086_v47, %v14920_v7  ;;  %12097 = vpow2.f32 %v10116_v29  ;;  %3199 = vadd.xlane.f32.xlu0 %v3198_v10 }
 0x480   : > { %v15008_v11 = vmul.f32 %v12088_v3, %v14923_v6  ;;  %12099 = vpow2.f32 %v10115_v36 }
 0x481   : > { %v12090_v51 = vpop.eup %12089  ;;  %v3079_v35 = vsel %vm268_vm0, %v15005_v42, 0.0  ;;  %v3145_v28 = vmul.f32 %v15005_v42, %v15005_v42 }
 0x482   : > { %v12092_v5 = vpop.eup %12091  ;;  %v2925_v21 = vadd.f32 1.0, %v12090_v51  ;;  %3080 = vadd.xlane.f32.xlu1 %v3079_v35  ;;  %v11097_v54 = vpop.f32.mrb[54].mxu0  ;;  %v3076_v7 = vsel %vm268_vm0, %v15008_v11, 0.0  ;;  %v3144_v8 = vmul.f32 %v15008_v11, %v15008_v11 }
 0x483   : > { %v2924_v6 = vadd.f32 1.0, %v12092_v5  ;;  %v15019_v31 = vadd.f32 %v11097_v54, %v14795_v22  ;;  %3077 = vadd.xlane.f32.xlu0 %v3076_v7  ;;  %v2761_v23 = vpop.f32.mrb[55].mxu0  ;;  %v3207_v19 = vsel %vm268_vm0, %v3145_v28, 0.0 }
 0x484   : > { %12101 = vrcp.f32 %v2925_v21  ;;  %v15022_v16 = vadd.f32 %v14795_v22, %v2761_v23  ;;  %v3204_v55 = vsel %vm268_vm0, %v3144_v8, 0.0 }
 0x485   : > { %12103 = vrcp.f32 %v2924_v6  ;;  %v10118_v0 = vmul.f32 -1.442695, %v15019_v31 }
 0x486   : > { %v12094_v48 = vpop.eup %12093  ;;  %v10117_v50 = vmul.f32 -1.442695, %v15022_v16  ;;  %3208 = vadd.xlane.f32.xlu1 %v3207_v19 }
 0x487   : > { %v12096_v37 = vpop.eup %12095  ;;  %v15029_v13 = vmul.f32 %v12094_v48, %v14944_v60  ;;  %12105 = vpow2.f32 %v10118_v0  ;;  %3205 = vadd.xlane.f32.xlu0 %v3204_v55 }
 0x488   : > { %v15032_v56 = vmul.f32 %v12096_v37, %v14947_v41  ;;  %12107 = vpow2.f32 %v10117_v50 }
 0x489   : > { %v12098_v2 = vpop.eup %12097  ;;  %v3085_v33 = vsel %vm268_vm0, %v15029_v13, 0.0  ;;  %v3147_v17 = vmul.f32 %v15029_v13, %v15029_v13 }
 0x48a   : > { %v12100_v30 = vpop.eup %12099  ;;  %v2927_v39 = vadd.f32 1.0, %v12098_v2  ;;  %3086 = vadd.xlane.f32.xlu1 %v3085_v33  ;;  %v11100_v14 = vpop.f32.mrb[56].mxu0  ;;  %v3082_v60 = vsel %vm268_vm0, %v15032_v56, 0.0  ;;  %v3146_v15 = vmul.f32 %v15032_v56, %v15032_v56 }
 0x48b   : > { %v2926_v41 = vadd.f32 1.0, %v12100_v30  ;;  %v15043_v32 = vadd.f32 %v11100_v14, %v14795_v22  ;;  %3083 = vadd.xlane.f32.xlu0 %v3082_v60  ;;  %v2771_v46 = vpop.f32.mrb[57].mxu0  ;;  %v3213_v1 = vsel %vm268_vm0, %v3147_v17, 0.0 }
 0x48c   : > { %12109 = vrcp.f32 %v2927_v39  ;;  %v15046_v12 = vadd.f32 %v14795_v22, %v2771_v46  ;;  %v3210_v26 = vsel %vm268_vm0, %v3146_v15, 0.0 }
 0x48d   : > { %12111 = vrcp.f32 %v2926_v41  ;;  %v10120_v25 = vmul.f32 -1.442695, %v15043_v32 }
 0x48e   : > { %v12102_v38 = vpop.eup %12101  ;;  %v10119_v24 = vmul.f32 -1.442695, %v15046_v12  ;;  %3214 = vadd.xlane.f32.xlu1 %v3213_v1 }
 0x48f   : > { %v12104_v29 = vpop.eup %12103  ;;  %v15053_v27 = vmul.f32 %v12102_v38, %v14971_v49  ;;  %12113 = vpow2.f32 %v10120_v25  ;;  %3211 = vadd.xlane.f32.xlu0 %v3210_v26 }
 0x490   : > { %v15056_v47 = vmul.f32 %v12104_v29, %v14974_v40  ;;  %12115 = vpow2.f32 %v10119_v24 }
 0x491   : > { %v12106_v36 = vpop.eup %12105  ;;  %v3091_v10 = vsel %vm268_vm0, %v15053_v27, 0.0  ;;  %v3149_v3 = vmul.f32 %v15053_v27, %v15053_v27 }
 0x492   : > { %v12108_v51 = vpop.eup %12107  ;;  %v2929_v35 = vadd.f32 1.0, %v12106_v36  ;;  %3092 = vadd.xlane.f32.xlu1 %v3091_v10  ;;  %v11103_v28 = vpop.f32.mrb[58].mxu0  ;;  %v3088_v49 = vsel %vm268_vm0, %v15056_v47, 0.0  ;;  %v3148_v5 = vmul.f32 %v15056_v47, %v15056_v47 }
 0x493   : > { %v2928_v40 = vadd.f32 1.0, %v12108_v51  ;;  %v15067_v21 = vadd.f32 %v11103_v28, %v14795_v22  ;;  %3089 = vadd.xlane.f32.xlu0 %v3088_v49  ;;  %v2781_v54 = vpop.f32.mrb[59].mxu0  ;;  %v3219_v6 = vsel %vm268_vm0, %v3149_v3, 0.0 }
 0x494   : > { %12117 = vrcp.f32 %v2929_v35  ;;  %v15070_v7 = vadd.f32 %v14795_v22, %v2781_v54  ;;  %v3216_v19 = vsel %vm268_vm0, %v3148_v5, 0.0 }
 0x495   : > { %12119 = vrcp.f32 %v2928_v40  ;;  %v10122_v8 = vmul.f32 -1.442695, %v15067_v21 }
 0x496   : > { %v12110_v23 = vpop.eup %12109  ;;  %v10121_v0 = vmul.f32 -1.442695, %v15070_v7  ;;  %3220 = vadd.xlane.f32.xlu1 %v3219_v6 }
 0x497   : > { %v12112_v48 = vpop.eup %12111  ;;  %v15077_v50 = vmul.f32 %v12110_v23, %v14995_v52  ;;  %12121 = vpow2.f32 %v10122_v8  ;;  %3217 = vadd.xlane.f32.xlu0 %v3216_v19 }
 0x498   : > { %v15080_v55 = vmul.f32 %v12112_v48, %v14998_v44  ;;  %12123 = vpow2.f32 %v10121_v0 }
 0x499   : > { %v12114_v37 = vpop.eup %12113  ;;  %v3097_v2 = vsel %vm268_vm0, %v15077_v50, 0.0  ;;  %v3151_v33 = vmul.f32 %v15077_v50, %v15077_v50 }
 0x49a   : > { %v12116_v17 = vpop.eup %12115  ;;  %v2931_v30 = vadd.f32 1.0, %v12114_v37  ;;  %3098 = vadd.xlane.f32.xlu1 %v3097_v2  ;;  %v11106_v39 = vpop.f32.mrb[60].mxu0  ;;  %v3094_v52 = vsel %vm268_vm0, %v15080_v55, 0.0  ;;  %v3150_v14 = vmul.f32 %v15080_v55, %v15080_v55 }
 0x49b   : > { %v2930_v44 = vadd.f32 1.0, %v12116_v17  ;;  %v15091_v60 = vadd.f32 %v11106_v39, %v14795_v22  ;;  %3095 = vadd.xlane.f32.xlu0 %v3094_v52  ;;  %v2791_v15 = vpop.f32.mrb[61].mxu0  ;;  %v3225_v25 = vsel %vm268_vm0, %v3151_v33, 0.0 }
 0x49c   : > { %12125 = vrcp.f32 %v2931_v30  ;;  %v15094_v41 = vadd.f32 %v14795_v22, %v2791_v15  ;;  %v3222_v24 = vsel %vm268_vm0, %v3150_v14, 0.0 }
 0x49d   : > { %12127 = vrcp.f32 %v2930_v44  ;;  %v10124_v46 = vmul.f32 -1.442695, %v15091_v60 }
 0x49e   : > { %v12118_v1 = vpop.eup %12117  ;;  %v10123_v38 = vmul.f32 -1.442695, %v15094_v41  ;;  %3226 = vadd.xlane.f32.xlu1 %v3225_v25 }
 0x49f   : > { %v12120_v26 = vpop.eup %12119  ;;  %v15101_v29 = vmul.f32 %v12118_v1, %v15019_v31  ;;  %12129 = vpow2.f32 %v10124_v46  ;;  %3223 = vadd.xlane.f32.xlu0 %v3222_v24 }
 0x4a0   : > { %v15104_v36 = vmul.f32 %v12120_v26, %v15022_v16  ;;  %12131 = vpow2.f32 %v10123_v38 }
 0x4a1   : > { %v12122_v10 = vpop.eup %12121  ;;  %v3103_v3 = vsel %vm268_vm0, %v15101_v29, 0.0  ;;  %v3153_v51 = vmul.f32 %v15101_v29, %v15101_v29 }
 0x4a2   : > { %v12124_v35 = vpop.eup %12123  ;;  %v2933_v28 = vadd.f32 1.0, %v12122_v10  ;;  %3104 = vadd.xlane.f32.xlu1 %v3103_v3  ;;  %v11109_v49 = vpop.f32.mrb[62].mxu0  ;;  %v3100_v31 = vsel %vm268_vm0, %v15104_v36, 0.0  ;;  %v3152_v5 = vmul.f32 %v15104_v36, %v15104_v36 }
 0x4a3   : > { %v2932_v16 = vadd.f32 1.0, %v12124_v35  ;;  %v15115_v40 = vadd.f32 %v11109_v49, %v14795_v22  ;;  %3101 = vadd.xlane.f32.xlu0 %v3100_v31  ;;  %v2801_v54 = vpop.f32.mrb[63].mxu0  ;;  %v3231_v23 = vsel %vm268_vm0, %v3153_v51, 0.0 }
 0x4a4   : > { %12133 = vrcp.f32 %v2933_v28  ;;  %v15118_v8 = vadd.f32 %v14795_v22, %v2801_v54  ;;  %v3228_v48 = vsel %vm268_vm0, %v3152_v5, 0.0 }
 0x4a5   : > { %12135 = vrcp.f32 %v2932_v16  ;;  %v10126_v6 = vmul.f32 -1.442695, %v15115_v40 }
 0x4a6   : > { %v12126_v0 = vpop.eup %12125  ;;  %v10125_v19 = vmul.f32 -1.442695, %v15118_v8  ;;  %3232 = vadd.xlane.f32.xlu1 %v3231_v23 }
 0x4a7   : > { %v12128_v37 = vpop.eup %12127  ;;  %v15125_v2 = vmul.f32 %v12126_v0, %v15043_v32  ;;  %12137 = vpow2.f32 %v10126_v6  ;;  %3229 = vadd.xlane.f32.xlu0 %v3228_v48 }
 0x4a8   : > { %v15128_v22 = vmul.f32 %v12128_v37, %v15046_v12  ;;  %12139 = vpow2.f32 %v10125_v19 }
 0x4a9   : > { %v12130_v33 = vpop.eup %12129  ;;  %v3109_v17 = vsel %vm268_vm0, %v15125_v2, 0.0  ;;  %v3155_v30 = vmul.f32 %v15125_v2, %v15125_v2 }
 0x4aa   : > { %v12132_v39 = vpop.eup %12131  ;;  %v2935_v52 = vadd.f32 1.0, %v12130_v33  ;;  %3110 = vadd.xlane.f32.xlu1 %v3109_v17  ;;  %v3106_v32 = vsel %vm268_vm0, %v15128_v22, 0.0  ;;  %v3154_v14 = vmul.f32 %v15128_v22, %v15128_v22 }
 0x4ab   : > { %v2934_v44 = vadd.f32 1.0, %v12132_v39  ;;  %3107 = vadd.xlane.f32.xlu0 %v3106_v32  ;;  %v3237_v12 = vsel %vm268_vm0, %v3155_v30, 0.0 }
 0x4ac   : > { %12141 = vrcp.f32 %v2935_v52  ;;  %v3234_v46 = vsel %vm268_vm0, %v3154_v14, 0.0 }
 0x4ad   : > { %12143 = vrcp.f32 %v2934_v44 }
 0x4ae   : > { %v12134_v15 = vpop.eup %12133  ;;  %3238 = vadd.xlane.f32.xlu1 %v3237_v12 }
 0x4af   : > { %v12136_v25 = vpop.eup %12135  ;;  %v15141_v1 = vmul.f32 %v12134_v15, %v15067_v21  ;;  %3235 = vadd.xlane.f32.xlu0 %v3234_v46 }
 0x4b0   : > { %v15144_v38 = vmul.f32 %v12136_v25, %v15070_v7 }
 0x4b1   : > { %v12138_v24 = vpop.eup %12137  ;;  %v3115_v26 = vsel %vm268_vm0, %v15141_v1, 0.0  ;;  %v3157_v10 = vmul.f32 %v15141_v1, %v15141_v1 }
 0x4b2   : > { %v12140_v3 = vpop.eup %12139  ;;  %v2937_v51 = vadd.f32 1.0, %v12138_v24  ;;  %3116 = vadd.xlane.f32.xlu1 %v3115_v26  ;;  %v3112_v35 = vsel %vm268_vm0, %v15144_v38, 0.0  ;;  %v3156_v21 = vmul.f32 %v15144_v38, %v15144_v38 }
 0x4b3   : > { %v2936_v28 = vadd.f32 1.0, %v12140_v3  ;;  %3113 = vadd.xlane.f32.xlu0 %v3112_v35  ;;  %v3243_v7 = vsel %vm268_vm0, %v3157_v10, 0.0 }
 0x4b4   : > { %12145 = vrcp.f32 %v2937_v51  ;;  %v3240_v31 = vsel %vm268_vm0, %v3156_v21, 0.0 }
 0x4b5   : > { %12147 = vrcp.f32 %v2936_v28 }
 0x4b6   : > { %v12142_v49 = vpop.eup %12141  ;;  %3244 = vadd.xlane.f32.xlu1 %v3243_v7 }
 0x4b7   : > { %v12144_v5 = vpop.eup %12143  ;;  %v15157_v16 = vmul.f32 %v12142_v49, %v15091_v60  ;;  %3241 = vadd.xlane.f32.xlu0 %v3240_v31 }
 0x4b8   : > { %v15160_v54 = vmul.f32 %v12144_v5, %v15094_v41 }
 0x4b9   : > { %v3121_v6 = vsel %vm268_vm0, %v15157_v16, 0.0  ;;  %v3159_v23 = vmul.f32 %v15157_v16, %v15157_v16 }
 0x4ba   : > { %3122 = vadd.xlane.f32.xlu1 %v3121_v6  ;;  %v3118_v0 = vsel %vm268_vm0, %v15160_v54, 0.0  ;;  %v3158_v19 = vmul.f32 %v15160_v54, %v15160_v54 }
 0x4bb   : > { %3119 = vadd.xlane.f32.xlu0 %v3118_v0  ;;  %v3249_v60 = vsel %vm268_vm0, %v3159_v23, 0.0 }
 0x4bc   : > { %v3246_v41 = vsel %vm268_vm0, %v3158_v19, 0.0 }
 0x4be   : > { %v12146_v48 = vpop.eup %12145  ;;  %3250 = vadd.xlane.f32.xlu1 %v3249_v60 }
 0x4bf   : > { %v12148_v37 = vpop.eup %12147  ;;  %v15173_v33 = vmul.f32 %v12146_v48, %v15115_v40  ;;  %3247 = vadd.xlane.f32.xlu0 %v3246_v41 }
 0x4c0   : > { %v15176_v17 = vmul.f32 %v12148_v37, %v15118_v8 }
 0x4c1   : > { %v3127_v30 = vsel %vm268_vm0, %v15173_v33, 0.0  ;;  %v3161_v39 = vmul.f32 %v15173_v33, %v15173_v33 }
 0x4c2   : > { %3128 = vadd.xlane.f32.xlu1 %v3127_v30  ;;  %v3124_v52 = vsel %vm268_vm0, %v15176_v17, 0.0  ;;  %v3160_v32 = vmul.f32 %v15176_v17, %v15176_v17 }
 0x4c3   : > { %3125 = vadd.xlane.f32.xlu0 %v3124_v52  ;;  %v3255_v40 = vsel %vm268_vm0, %v3161_v39, 0.0 }
 0x4c4   : > { %v3252_v8 = vsel %vm268_vm0, %v3160_v32, 0.0 }
 0x4c6   : > { %3256 = vadd.xlane.f32.xlu1 %v3255_v40 }
 0x4c7   : > { %3253 = vadd.xlane.f32.xlu0 %v3252_v8 }
 0x4d7   : > { %v3039_v14 = vpop.xlane.xlu1 %3038 }
 0x4d8   : > { %v3259_v44 = vmul.f32 0.025, %v3039_v14  ;;  %v3036_v12 = vpop.xlane.xlu0 %3035 }
 0x4d9   : > { %v3258_v15 = vmul.f32 0.025, %v3036_v12 }
 0x4da   : > { %v3323_v25 = vmul.f32 %v3259_v44, %v3259_v44  ;;  %v3451_v14 = vsub.f32 %v14829_v43, %v3259_v44 }
 0x4db   : > { %v3167_v46 = vpop.xlane.xlu1 %3166  ;;  %v3322_v10 = vmul.f32 %v3258_v15, %v3258_v15 }
 0x4dc   : > { %v3291_v24 = vmul.f32 0.025, %v3167_v46  ;;  %v3164_v26 = vpop.xlane.xlu0 %3163 }
 0x4dd   : > { %v3290_v3 = vmul.f32 0.025, %v3164_v26 }
 0x4de   : > { %v3355_v51 = vsub.f32 %v3291_v24, %v3323_v25  ;;  %v3450_v25 = vsub.f32 %v14837_v58, %v3258_v15  ;;  %v15201_v24 = vld [vmem:[%s19019_s2 + $0x7] ss:$0 sm:$0xff] }
 0x4df   : > { %v3354_v35 = vsub.f32 %v3290_v3, %v3322_v10  ;;  %v3045_v21 = vpop.xlane.xlu1 %3044 }
 0x4e0   : > { %v3387_v28 = vadd.f32 1e-05, %v3355_v51  ;;  %v15188_v7 = vmul.f32 0.025, %v3045_v21  ;;  %v3042_v49 = vpop.xlane.xlu0 %3041 }
 0x4e1   : > { %v3386_v31 = vadd.f32 1e-05, %v3354_v35  ;;  %v3260_v5 = vmul.f32 0.025, %v3042_v49 }
 0x4e2   : > { %12149 = vrsqrt.f32 %v3387_v28  ;;  %v3325_v23 = vmul.f32 %v15188_v7, %v15188_v7 }
 0x4e3   : > { %12151 = vrsqrt.f32 %v3386_v31  ;;  %v3173_v6 = vpop.xlane.xlu1 %3172  ;;  %v3324_v60 = vmul.f32 %v3260_v5, %v3260_v5  ;;  %v15211_v31 = vld [vmem:[%s19019_s2 + $0xb] ss:$0 sm:$0xff] }
 0x4e4   : > { %v3293_v0 = vmul.f32 0.025, %v3173_v6  ;;  %v3170_v19 = vpop.xlane.xlu0 %3169 }
 0x4e5   : > { %v3292_v48 = vmul.f32 0.025, %v3170_v19 }
 0x4e6   : > { %v3357_v41 = vsub.f32 %v3293_v0, %v3325_v23 }
 0x4e7   : > { %v3356_v37 = vsub.f32 %v3292_v48, %v3324_v60  ;;  %v3051_v30 = vpop.xlane.xlu1 %3050 }
 0x4e8   : > { %v3389_v39 = vadd.f32 1e-05, %v3357_v41  ;;  %v15192_v52 = vmul.f32 0.025, %v3051_v30  ;;  %v3048_v32 = vpop.xlane.xlu0 %3047 }
 0x4e9   : > { %v3388_v40 = vadd.f32 1e-05, %v3356_v37  ;;  %v15194_v8 = vmul.f32 0.025, %v3048_v32  ;;  %v3453_v37 = vsub.f32 %v14858_v45, %v15188_v7 }
 0x4ea   : > { %12153 = vrsqrt.f32 %v3389_v39  ;;  %v3327_v26 = vmul.f32 %v15192_v52, %v15192_v52 }
 0x4eb   : > { %12155 = vrsqrt.f32 %v3388_v40  ;;  %v3179_v12 = vpop.xlane.xlu1 %3178  ;;  %v3326_v43 = vmul.f32 %v15194_v8, %v15194_v8  ;;  %v3452_v40 = vsub.f32 %v14861_v63, %v3260_v5 }
 0x4ec   : > { %v12150_v46 = vpop.eup %12149  ;;  %v3295_v10 = vmul.f32 0.025, %v3179_v12  ;;  %v3176_v3 = vpop.xlane.xlu0 %3175 }
 0x4ed   : > { %v12152_v51 = vpop.eup %12151  ;;  %v3483_v35 = vmul.f32 %v12150_v46, %v3451_v14  ;;  %v3294_v44 = vmul.f32 0.025, %v3176_v3 }
 0x4ee   : > { %v3359_v21 = vsub.f32 %v3295_v10, %v3327_v26  ;;  %v3482_v28 = vmul.f32 %v12152_v51, %v3450_v25 }
 0x4ef   : > { %v3520_v58 = vmul.f32 %v15201_v24, %v3483_v35  ;;  %v3358_v15 = vsub.f32 %v3294_v44, %v3326_v43  ;;  %v3057_v49 = vpop.xlane.xlu1 %3056 }
 0x4f0   : > { %v3391_v6 = vadd.f32 1e-05, %v3359_v21  ;;  %v15213_v23 = vmul.f32 0.025, %v3057_v49  ;;  %v3054_v0 = vpop.xlane.xlu0 %3053  ;;  %v3519_v19 = vmul.f32 %v15201_v24, %v3482_v28  ;;  %v3455_v49 = vsub.f32 %v14882_v61, %v15192_v52 }
 0x4f1   : > { %v3390_v60 = vadd.f32 1e-05, %v3358_v15  ;;  %v15216_v48 = vmul.f32 0.025, %v3054_v0  ;;  %v3557_v39 = vadd.f32 %v15211_v31, %v3520_v58 }
 0x4f2   : > { %12157 = vrsqrt.f32 %v3391_v6  ;;  %v3556_v41 = vadd.f32 %v15211_v31, %v3519_v19  ;;  %v3329_v14 = vmul.f32 %v15213_v23, %v15213_v23 }
 0x4f3   : > { %12159 = vrsqrt.f32 %v3390_v60  ;;  %v3185_v30 = vpop.xlane.xlu1 %3184  ;;  %v3328_v26 = vmul.f32 %v15216_v48, %v15216_v48  ;;  %v3454_v60 = vsub.f32 %v14885_v34, %v15194_v8 }
 0x4f4   : > { %v12154_v32 = vpop.eup %12153  ;;  %v3297_v12 = vmul.f32 0.025, %v3185_v30  ;;  %11120 = vmatprep.mubr.msk.f32.mxu1 %vm268_vm0, %v3556_v41  ;;  %v3182_v46 = vpop.xlane.xlu0 %3181 }
 0x4f5   : > { %v12156_v25 = vpop.eup %12155  ;;  %v3296_v10 = vmul.f32 0.025, %v3182_v46  ;;  %11121 = vmatmul.mubr.msk.f32.vlgmr.msra.gmra.mrb[32].mxu1 %vm268_vm0, %v3557_v39  ;;  %v3485_v45 = vmul.f32 %v12154_v32, %v3453_v37 }
 0x4f6   : > { %v3361_v7 = vsub.f32 %v3297_v12, %v3329_v14  ;;  %v3484_v3 = vmul.f32 %v12156_v25, %v3452_v40 }
 0x4f7   : > { %v3360_v51 = vsub.f32 %v3296_v10, %v3328_v26  ;;  %v3063_v35 = vpop.xlane.xlu1 %3062  ;;  %v3522_v63 = vmul.f32 %v15201_v24, %v3485_v45 }
 0x4f8   : > { %v3393_v5 = vadd.f32 1e-05, %v3361_v7  ;;  %v15230_v43 = vmul.f32 0.025, %v3063_v35  ;;  %v3060_v44 = vpop.xlane.xlu0 %3059  ;;  %v3521_v21 = vmul.f32 %v15201_v24, %v3484_v3 }
 0x4f9   : > { %v3392_v28 = vadd.f32 1e-05, %v3360_v51  ;;  %v15233_v58 = vmul.f32 0.025, %v3060_v44  ;;  %v3559_v0 = vadd.f32 %v15211_v31, %v3522_v63  ;;  %v3457_v51 = vsub.f32 %v14906_v62, %v15213_v23 }
 0x4fa   : > { %12161 = vrsqrt.f32 %v3393_v5  ;;  %v3558_v15 = vadd.f32 %v15211_v31, %v3521_v21  ;;  %v3331_v41 = vmul.f32 %v15230_v43, %v15230_v43  ;;  %v3456_v44 = vsub.f32 %v14909_v53, %v15216_v48 }
 0x4fb   : > { %12163 = vrsqrt.f32 %v3392_v28  ;;  %v3191_v6 = vpop.xlane.xlu1 %3190  ;;  %v3330_v32 = vmul.f32 %v15233_v58, %v15233_v58 }
 0x4fc   : > { %v12158_v19 = vpop.eup %12157  ;;  %v3299_v37 = vmul.f32 0.025, %v3191_v6  ;;  %11123 = vmatprep.mubr.msk.f32.mxu1 %vm268_vm0, %v3558_v15  ;;  %v3188_v30 = vpop.xlane.xlu0 %3187 }
 0x4fd   : > { %v12160_v39 = vpop.eup %12159  ;;  %v3298_v61 = vmul.f32 0.025, %v3188_v30  ;;  %11124 = vmatmul.mubr.msk.f32.gmra.mrb[34].mxu1 %vm268_vm0, %v3559_v0  ;;  %v3487_v52 = vmul.f32 %v12158_v19, %v3455_v49 }
 0x4fe   : > { %v3363_v40 = vsub.f32 %v3299_v37, %v3331_v41  ;;  %v3486_v14 = vmul.f32 %v12160_v39, %v3454_v60 }
 0x4ff   : > { %v3362_v12 = vsub.f32 %v3298_v61, %v3330_v32  ;;  %v3069_v46 = vpop.xlane.xlu1 %3068  ;;  %v3524_v34 = vmul.f32 %v15201_v24, %v3487_v52 }
 0x500   : > { %v3395_v8 = vadd.f32 1e-05, %v3363_v40  ;;  %v15248_v25 = vmul.f32 0.025, %v3069_v46  ;;  %v3066_v26 = vpop.xlane.xlu0 %3065  ;;  %v3523_v10 = vmul.f32 %v15201_v24, %v3486_v14  ;;  %v3459_v40 = vsub.f32 %v14930_v59, %v15230_v43 }
 0x501   : > { %v3394_v45 = vadd.f32 1e-05, %v3362_v12  ;;  %v15251_v7 = vmul.f32 0.025, %v3066_v26  ;;  %v3561_v63 = vadd.f32 %v15211_v31, %v3524_v34  ;;  %v3458_v34 = vsub.f32 %v14933_v20, %v15233_v58 }
 0x502   : > { %12165 = vrsqrt.f32 %v3395_v8  ;;  %v3560_v3 = vadd.f32 %v15211_v31, %v3523_v10  ;;  %v3333_v21 = vmul.f32 %v15248_v25, %v15248_v25 }
 0x503   : > { %12167 = vrsqrt.f32 %v3394_v45  ;;  %v3197_v35 = vpop.xlane.xlu1 %3196  ;;  %v3332_v6 = vmul.f32 %v15251_v7, %v15251_v7 }
 0x504   : > { %v12162_v5 = vpop.eup %12161  ;;  %v3301_v28 = vmul.f32 0.025, %v3197_v35  ;;  %11126 = vmatprep.mubr.msk.f32.mxu1 %vm268_vm0, %v3560_v3  ;;  %v3194_v15 = vpop.xlane.xlu0 %3193 }
 0x505   : > { %v12164_v49 = vpop.eup %12163  ;;  %v3300_v62 = vmul.f32 0.025, %v3194_v15  ;;  %11127 = vmatmul.mubr.msk.f32.gmra.mrb[36].mxu1 %vm268_vm0, %v3561_v63  ;;  %v3489_v23 = vmul.f32 %v12162_v5, %v3457_v51 }
 0x506   : > { %v3365_v0 = vsub.f32 %v3301_v28, %v3333_v21  ;;  %v3488_v19 = vmul.f32 %v12164_v49, %v3456_v44 }
 0x507   : > { %v3364_v60 = vsub.f32 %v3300_v62, %v3332_v6  ;;  %v3075_v41 = vpop.xlane.xlu1 %3074  ;;  %v3526_v53 = vmul.f32 %v15201_v24, %v3489_v23  ;;  %v3461_v62 = vsub.f32 %v14954_v9, %v15248_v25 }
 0x508   : > { %v3397_v48 = vadd.f32 1e-05, %v3365_v0  ;;  %v15266_v37 = vmul.f32 0.025, %v3075_v41  ;;  %v3072_v30 = vpop.xlane.xlu0 %3071  ;;  %v3525_v39 = vmul.f32 %v15201_v24, %v3488_v19 }
 0x509   : > { %v3396_v32 = vadd.f32 1e-05, %v3364_v60  ;;  %v15269_v61 = vmul.f32 0.025, %v3072_v30  ;;  %v3563_v12 = vadd.f32 %v15211_v31, %v3526_v53  ;;  %v3460_v60 = vsub.f32 %v14960_v57, %v15251_v7 }
 0x50a   : > { %12169 = vrsqrt.f32 %v3397_v48  ;;  %v3562_v52 = vadd.f32 %v15211_v31, %v3525_v39  ;;  %v3335_v8 = vmul.f32 %v15266_v37, %v15266_v37 }
 0x50b   : > { %12171 = vrsqrt.f32 %v3396_v32  ;;  %v3203_v14 = vpop.xlane.xlu1 %3202  ;;  %v3334_v3 = vmul.f32 %v15269_v61, %v15269_v61 }
 0x50c   : > { %v12166_v46 = vpop.eup %12165  ;;  %v3303_v26 = vmul.f32 0.025, %v3203_v14  ;;  %11129 = vmatprep.mubr.msk.f32.mxu1 %vm268_vm0, %v3562_v52  ;;  %v3200_v10 = vpop.xlane.xlu0 %3199 }
 0x50d   : > { %v12168_v45 = vpop.eup %12167  ;;  %v3302_v59 = vmul.f32 0.025, %v3200_v10  ;;  %11130 = vmatmul.mubr.msk.f32.gmra.mrb[38].mxu1 %vm268_vm0, %v3563_v12  ;;  %v3491_v43 = vmul.f32 %v12166_v46, %v3459_v40 }
 0x50e   : > { %v3367_v51 = vsub.f32 %v3303_v26, %v3335_v8  ;;  %v3490_v35 = vmul.f32 %v12168_v45, %v3458_v34  ;;  %v3463_v45 = vsub.f32 %v14981_v4, %v15266_v37 }
 0x50f   : > { %v3366_v63 = vsub.f32 %v3302_v59, %v3334_v3  ;;  %v3081_v5 = vpop.xlane.xlu1 %3080  ;;  %v3528_v20 = vmul.f32 %v15201_v24, %v3491_v43 }
 0x510   : > { %v3399_v58 = vadd.f32 1e-05, %v3367_v51  ;;  %v15284_v44 = vmul.f32 0.025, %v3081_v5  ;;  %v3078_v21 = vpop.xlane.xlu0 %3077  ;;  %v3527_v28 = vmul.f32 %v15201_v24, %v3490_v35  ;;  %v3462_v51 = vsub.f32 %v14984_v18, %v15269_v61 }
 0x511   : > { %v3398_v15 = vadd.f32 1e-05, %v3366_v63  ;;  %v15287_v49 = vmul.f32 0.025, %v3078_v21  ;;  %v3565_v0 = vadd.f32 %v15211_v31, %v3528_v20 }
 0x512   : > { %12173 = vrsqrt.f32 %v3399_v58  ;;  %v3564_v6 = vadd.f32 %v15211_v31, %v3527_v28  ;;  %v3337_v41 = vmul.f32 %v15284_v44, %v15284_v44 }
 0x513   : > { %12175 = vrsqrt.f32 %v3398_v15  ;;  %v3209_v23 = vpop.xlane.xlu1 %3208  ;;  %v3336_v39 = vmul.f32 %v15287_v49, %v15287_v49 }
 0x514   : > { %v12170_v19 = vpop.eup %12169  ;;  %v3305_v53 = vmul.f32 0.025, %v3209_v23  ;;  %11132 = vmatprep.mubr.msk.f32.mxu1 %vm268_vm0, %v3564_v6  ;;  %v3206_v48 = vpop.xlane.xlu0 %3205 }
 0x515   : > { %v12172_v30 = vpop.eup %12171  ;;  %v3304_v9 = vmul.f32 0.025, %v3206_v48  ;;  %11133 = vmatmul.mubr.msk.f32.gmra.mrb[40].mxu1 %vm268_vm0, %v3565_v0  ;;  %v3493_v25 = vmul.f32 %v12170_v19, %v3461_v62 }
 0x516   : > { %v3369_v32 = vsub.f32 %v3305_v53, %v3337_v41  ;;  %v3492_v52 = vmul.f32 %v12172_v30, %v3460_v60  ;;  %v3465_v53 = vsub.f32 %v15005_v42, %v15284_v44 }
 0x517   : > { %v3368_v40 = vsub.f32 %v3304_v9, %v3336_v39  ;;  %v3087_v14 = vpop.xlane.xlu1 %3086  ;;  %v3530_v57 = vmul.f32 %v15201_v24, %v3493_v25  ;;  %v3464_v9 = vsub.f32 %v15008_v11, %v15287_v49 }
 0x518   : > { %v3401_v7 = vadd.f32 1e-05, %v3369_v32  ;;  %v15302_v12 = vmul.f32 0.025, %v3087_v14  ;;  %v3084_v46 = vpop.xlane.xlu0 %3083  ;;  %v3529_v34 = vmul.f32 %v15201_v24, %v3492_v52 }
 0x519   : > { %v3400_v8 = vadd.f32 1e-05, %v3368_v40  ;;  %v15305_v26 = vmul.f32 0.025, %v3084_v46  ;;  %v3567_v59 = vadd.f32 %v15211_v31, %v3530_v57 }
 0x51a   : > { %12177 = vrsqrt.f32 %v3401_v7  ;;  %v3566_v10 = vadd.f32 %v15211_v31, %v3529_v34  ;;  %v3339_v35 = vmul.f32 %v15302_v12, %v15302_v12 }
 0x51b   : > { %12179 = vrsqrt.f32 %v3400_v8  ;;  %v3215_v3 = vpop.xlane.xlu1 %3214  ;;  %v3338_v58 = vmul.f32 %v15305_v26, %v15305_v26 }
 0x51c   : > { %v12174_v43 = vpop.eup %12173  ;;  %v3307_v63 = vmul.f32 0.025, %v3215_v3  ;;  %11135 = vmatprep.mubr.msk.f32.mxu1 %vm268_vm0, %v3566_v10  ;;  %v3212_v5 = vpop.xlane.xlu0 %3211 }
 0x51d   : > { %v12176_v20 = vpop.eup %12175  ;;  %v3306_v4 = vmul.f32 0.025, %v3212_v5  ;;  %11136 = vmatmul.mubr.msk.f32.gmra.mrb[42].mxu1 %vm268_vm0, %v3567_v59  ;;  %v3495_v37 = vmul.f32 %v12174_v43, %v3463_v45 }
 0x51e   : > { %v3371_v21 = vsub.f32 %v3307_v63, %v3339_v35  ;;  %v3494_v28 = vmul.f32 %v12176_v20, %v3462_v51  ;;  %v3467_v51 = vsub.f32 %v15029_v13, %v15302_v12  ;;  %v3466_v20 = vsub.f32 %v15032_v56, %v15305_v26 }
 0x51f   : > { %v3370_v15 = vsub.f32 %v3306_v4, %v3338_v58  ;;  %v3093_v6 = vpop.xlane.xlu1 %3092  ;;  %v3532_v18 = vmul.f32 %v15201_v24, %v3495_v37 }
 0x520   : > { %v3403_v61 = vadd.f32 1e-05, %v3371_v21  ;;  %v15320_v62 = vmul.f32 0.025, %v3093_v6  ;;  %v3090_v23 = vpop.xlane.xlu0 %3089  ;;  %v3531_v0 = vmul.f32 %v15201_v24, %v3494_v28 }
 0x521   : > { %v3402_v19 = vadd.f32 1e-05, %v3370_v15  ;;  %v15323_v60 = vmul.f32 0.025, %v3090_v23  ;;  %v3569_v30 = vadd.f32 %v15211_v31, %v3532_v18 }
 0x522   : > { %12181 = vrsqrt.f32 %v3403_v61  ;;  %v3568_v41 = vadd.f32 %v15211_v31, %v3531_v0  ;;  %v3341_v25 = vmul.f32 %v15320_v62, %v15320_v62 }
 0x523   : > { %12183 = vrsqrt.f32 %v3402_v19  ;;  %v3221_v48 = vpop.xlane.xlu1 %3220  ;;  %v3340_v14 = vmul.f32 %v15323_v60, %v15323_v60 }
 0x524   : > { %v12178_v39 = vpop.eup %12177  ;;  %v3309_v32 = vmul.f32 0.025, %v3221_v48  ;;  %11138 = vmatprep.mubr.msk.f32.mxu1 %vm268_vm0, %v3568_v41  ;;  %v3218_v52 = vpop.xlane.xlu0 %3217 }
 0x525   : > { %v12180_v40 = vpop.eup %12179  ;;  %v3308_v42 = vmul.f32 0.025, %v3218_v52  ;;  %11139 = vmatmul.mubr.msk.f32.gmra.mrb[44].mxu1 %vm268_vm0, %v3569_v30  ;;  %v3497_v44 = vmul.f32 %v12178_v39, %v3465_v53  ;;  %v3469_v30 = vsub.f32 %v15053_v27, %v15320_v62 }
 0x526   : > { %v3373_v57 = vsub.f32 %v3309_v32, %v3341_v25  ;;  %v3496_v7 = vmul.f32 %v12180_v40, %v3464_v9  ;;  %v3468_v32 = vsub.f32 %v15056_v47, %v15323_v60 }
 0x527   : > { %v3372_v46 = vsub.f32 %v3308_v42, %v3340_v14  ;;  %v3099_v34 = vpop.xlane.xlu1 %3098  ;;  %v3534_v11 = vmul.f32 %v15201_v24, %v3497_v44 }
 0x528   : > { %v3405_v49 = vadd.f32 1e-05, %v3373_v57  ;;  %v15338_v8 = vmul.f32 0.025, %v3099_v34  ;;  %v3096_v10 = vpop.xlane.xlu0 %3095  ;;  %v3533_v45 = vmul.f32 %v15201_v24, %v3496_v7 }
 0x529   : > { %v3404_v3 = vadd.f32 1e-05, %v3372_v46  ;;  %v15341_v59 = vmul.f32 0.025, %v3096_v10  ;;  %v3571_v63 = vadd.f32 %v15211_v31, %v3534_v11 }
 0x52a   : > { %12185 = vrsqrt.f32 %v3405_v49  ;;  %v3570_v43 = vadd.f32 %v15211_v31, %v3533_v45  ;;  %v3343_v58 = vmul.f32 %v15338_v8, %v15338_v8 }
 0x52b   : > { %12187 = vrsqrt.f32 %v3404_v3  ;;  %v3227_v35 = vpop.xlane.xlu1 %3226  ;;  %v3342_v28 = vmul.f32 %v15341_v59, %v15341_v59 }
 0x52c   : > { %v12182_v5 = vpop.eup %12181  ;;  %v3311_v4 = vmul.f32 0.025, %v3227_v35  ;;  %11141 = vmatprep.mubr.msk.f32.mxu1 %vm268_vm0, %v3570_v43  ;;  %v3224_v37 = vpop.xlane.xlu0 %3223 }
 0x52d   : > { %v12184_v21 = vpop.eup %12183  ;;  %v3310_v13 = vmul.f32 0.025, %v3224_v37  ;;  %11142 = vmatmul.mubr.msk.f32.gmra.mrb[46].mxu1 %vm268_vm0, %v3571_v63  ;;  %v3499_v12 = vmul.f32 %v12182_v5, %v3467_v51  ;;  %v3471_v51 = vsub.f32 %v15077_v50, %v15338_v8 }
 0x52e   : > { %v3375_v15 = vsub.f32 %v3311_v4, %v3343_v58  ;;  %v3498_v6 = vmul.f32 %v12184_v21, %v3466_v20  ;;  %v3470_v20 = vsub.f32 %v15080_v55, %v15341_v59 }
 0x52f   : > { %v3374_v18 = vsub.f32 %v3310_v13, %v3342_v28  ;;  %v3105_v61 = vpop.xlane.xlu1 %3104  ;;  %v3536_v56 = vmul.f32 %v15201_v24, %v3499_v12 }
 0x530   : > { %v3407_v26 = vadd.f32 1e-05, %v3375_v15  ;;  %v15356_v23 = vmul.f32 0.025, %v3105_v61  ;;  %v3102_v0 = vpop.xlane.xlu0 %3101  ;;  %v3535_v19 = vmul.f32 %v15201_v24, %v3498_v6 }
 0x531   : > { %v3406_v41 = vadd.f32 1e-05, %v3374_v18  ;;  %v15359_v53 = vmul.f32 0.025, %v3102_v0  ;;  %v3573_v9 = vadd.f32 %v15211_v31, %v3536_v56 }
 0x532   : > { %12189 = vrsqrt.f32 %v3407_v26  ;;  %v3572_v48 = vadd.f32 %v15211_v31, %v3535_v19  ;;  %v3345_v52 = vmul.f32 %v15356_v23, %v15356_v23 }
 0x533   : > { %12191 = vrsqrt.f32 %v3406_v41  ;;  %v3233_v39 = vpop.xlane.xlu1 %3232  ;;  %v3344_v44 = vmul.f32 %v15359_v53, %v15359_v53  ;;  %v3473_v41 = vsub.f32 %v15101_v29, %v15356_v23 }
 0x534   : > { %v12186_v25 = vpop.eup %12185  ;;  %v3313_v40 = vmul.f32 0.025, %v3233_v39  ;;  %11144 = vmatprep.mubr.msk.f32.mxu1 %vm268_vm0, %v3572_v48  ;;  %v3230_v14 = vpop.xlane.xlu0 %3229 }
 0x535   : > { %v12188_v42 = vpop.eup %12187  ;;  %v3312_v27 = vmul.f32 0.025, %v3230_v14  ;;  %11145 = vmatmul.mubr.msk.f32.gmra.mrb[48].mxu1 %vm268_vm0, %v3573_v9  ;;  %v3501_v62 = vmul.f32 %v12186_v25, %v3469_v30  ;;  %v3472_v9 = vsub.f32 %v15104_v36, %v15359_v53 }
 0x536   : > { %v3377_v57 = vsub.f32 %v3313_v40, %v3345_v52  ;;  %v3500_v7 = vmul.f32 %v12188_v42, %v3468_v32 }
 0x537   : > { %v3376_v46 = vsub.f32 %v3312_v27, %v3344_v44  ;;  %v3111_v34 = vpop.xlane.xlu1 %3110  ;;  %v3538_v47 = vmul.f32 %v15201_v24, %v3501_v62 }
 0x538   : > { %v3409_v60 = vadd.f32 1e-05, %v3377_v57  ;;  %v15374_v11 = vmul.f32 0.025, %v3111_v34  ;;  %v3108_v49 = vpop.xlane.xlu0 %3107  ;;  %v3537_v10 = vmul.f32 %v15201_v24, %v3500_v7 }
 0x539   : > { %v3408_v45 = vadd.f32 1e-05, %v3376_v46  ;;  %v15377_v3 = vmul.f32 0.025, %v3108_v49  ;;  %v3575_v63 = vadd.f32 %v15211_v31, %v3538_v47 }
 0x53a   : > { %12193 = vrsqrt.f32 %v3409_v60  ;;  %v3574_v43 = vadd.f32 %v15211_v31, %v3537_v10  ;;  %v3347_v58 = vmul.f32 %v15374_v11, %v15374_v11  ;;  %v3475_v49 = vsub.f32 %v15125_v2, %v15374_v11 }
 0x53b   : > { %12195 = vrsqrt.f32 %v3408_v45  ;;  %v3239_v35 = vpop.xlane.xlu1 %3238  ;;  %v3346_v28 = vmul.f32 %v15377_v3, %v15377_v3 }
 0x53c   : > { %v12190_v5 = vpop.eup %12189  ;;  %v3315_v4 = vmul.f32 0.025, %v3239_v35  ;;  %11147 = vmatprep.mubr.msk.f32.mxu1 %vm268_vm0, %v3574_v43  ;;  %v3236_v37 = vpop.xlane.xlu0 %3235 }
 0x53d   : > { %v12192_v21 = vpop.eup %12191  ;;  %v3314_v50 = vmul.f32 0.025, %v3236_v37  ;;  %11148 = vmatmul.mubr.msk.f32.gmra.mrb[50].mxu1 %vm268_vm0, %v3575_v63  ;;  %v3503_v8 = vmul.f32 %v12190_v5, %v3471_v51  ;;  %v3474_v51 = vsub.f32 %v15128_v22, %v15377_v3 }
 0x53e   : > { %v3379_v13 = vsub.f32 %v3315_v4, %v3347_v58  ;;  %v3502_v12 = vmul.f32 %v12192_v21, %v3470_v20 }
 0x53f   : > { %v3378_v15 = vsub.f32 %v3314_v50, %v3346_v28  ;;  %v3117_v6 = vpop.xlane.xlu1 %3116  ;;  %v3540_v55 = vmul.f32 %v15201_v24, %v3503_v8 }
 0x540   : > { %v3411_v59 = vadd.f32 1e-05, %v3379_v13  ;;  %v15392_v18 = vmul.f32 0.025, %v3117_v6  ;;  %v3114_v61 = vpop.xlane.xlu0 %3113  ;;  %v3539_v56 = vmul.f32 %v15201_v24, %v3502_v12 }
 0x541   : > { %v3410_v26 = vadd.f32 1e-05, %v3378_v15  ;;  %v15395_v0 = vmul.f32 0.025, %v3114_v61  ;;  %v3577_v30 = vadd.f32 %v15211_v31, %v3540_v55 }
 0x542   : > { %12197 = vrsqrt.f32 %v3411_v59  ;;  %v3576_v19 = vadd.f32 %v15211_v31, %v3539_v56  ;;  %v3349_v25 = vmul.f32 %v15392_v18, %v15392_v18  ;;  %v3477_v55 = vsub.f32 %v15141_v1, %v15392_v18 }
 0x543   : > { %12199 = vrsqrt.f32 %v3410_v26  ;;  %v3245_v48 = vpop.xlane.xlu1 %3244  ;;  %v3348_v14 = vmul.f32 %v15395_v0, %v15395_v0  ;;  %v3476_v26 = vsub.f32 %v15144_v38, %v15395_v0 }
 0x544   : > { %v12194_v39 = vpop.eup %12193  ;;  %v3317_v32 = vmul.f32 0.025, %v3245_v48  ;;  %11150 = vmatprep.mubr.msk.f32.mxu1 %vm268_vm0, %v3576_v19  ;;  %v3242_v52 = vpop.xlane.xlu0 %3241 }
 0x545   : > { %v12196_v40 = vpop.eup %12195  ;;  %v3316_v29 = vmul.f32 0.025, %v3242_v52  ;;  %11151 = vmatmul.mubr.msk.f32.gmra.mrb[52].mxu1 %vm268_vm0, %v3577_v30  ;;  %v3505_v23 = vmul.f32 %v12194_v39, %v3473_v41 }
 0x546   : > { %v3381_v42 = vsub.f32 %v3317_v32, %v3349_v25  ;;  %v3504_v44 = vmul.f32 %v12196_v40, %v3472_v9 }
 0x547   : > { %v3380_v27 = vsub.f32 %v3316_v29, %v3348_v14  ;;  %v3123_v62 = vpop.xlane.xlu1 %3122  ;;  %v3542_v36 = vmul.f32 %v15201_v24, %v3505_v23 }
 0x548   : > { %v3413_v53 = vadd.f32 1e-05, %v3381_v42  ;;  %v15410_v57 = vmul.f32 0.025, %v3123_v62  ;;  %v3120_v7 = vpop.xlane.xlu0 %3119  ;;  %v3541_v46 = vmul.f32 %v15201_v24, %v3504_v44 }
 0x549   : > { %v3412_v34 = vadd.f32 1e-05, %v3380_v27  ;;  %v15413_v47 = vmul.f32 0.025, %v3120_v7  ;;  %v3579_v45 = vadd.f32 %v15211_v31, %v3542_v36 }
 0x54a   : > { %12201 = vrsqrt.f32 %v3413_v53  ;;  %v3578_v60 = vadd.f32 %v15211_v31, %v3541_v46  ;;  %v3351_v35 = vmul.f32 %v15410_v57, %v15410_v57  ;;  %v3479_v29 = vsub.f32 %v15157_v16, %v15410_v57 }
 0x54b   : > { %12203 = vrsqrt.f32 %v3412_v34  ;;  %v3251_v10 = vpop.xlane.xlu1 %3250  ;;  %v3350_v58 = vmul.f32 %v15413_v47, %v15413_v47  ;;  %v3478_v44 = vsub.f32 %v15160_v54, %v15413_v47 }
 0x54c   : > { %v12198_v43 = vpop.eup %12197  ;;  %v3319_v63 = vmul.f32 0.025, %v3251_v10  ;;  %11153 = vmatprep.mubr.msk.f32.mxu1 %vm268_vm0, %v3578_v60  ;;  %v3248_v5 = vpop.xlane.xlu0 %3247 }
 0x54d   : > { %v12200_v20 = vpop.eup %12199  ;;  %v3318_v2 = vmul.f32 0.025, %v3248_v5  ;;  %11154 = vmatmul.mubr.msk.f32.gmra.mrb[54].mxu1 %vm268_vm0, %v3579_v45  ;;  %v3507_v11 = vmul.f32 %v12198_v43, %v3475_v49 }
 0x54e   : > { %v3383_v4 = vsub.f32 %v3319_v63, %v3351_v35  ;;  %v3506_v37 = vmul.f32 %v12200_v20, %v3474_v51 }
 0x54f   : > { %v3382_v21 = vsub.f32 %v3318_v2, %v3350_v58  ;;  %v3129_v28 = vpop.xlane.xlu1 %3128  ;;  %v3544_v22 = vmul.f32 %v15201_v24, %v3507_v11 }
 0x550   : > { %v3415_v3 = vadd.f32 1e-05, %v3383_v4  ;;  %v3289_v50 = vmul.f32 0.025, %v3129_v28  ;;  %v3126_v8 = vpop.xlane.xlu0 %3125  ;;  %v3543_v13 = vmul.f32 %v15201_v24, %v3506_v37 }
 0x551   : > { %v3414_v12 = vadd.f32 1e-05, %v3382_v21  ;;  %v3288_v15 = vmul.f32 0.025, %v3126_v8  ;;  %v3581_v61 = vadd.f32 %v15211_v31, %v3544_v22 }
 0x552   : > { %12205 = vrsqrt.f32 %v3415_v3  ;;  %v3580_v6 = vadd.f32 %v15211_v31, %v3543_v13  ;;  %v3353_v19 = vmul.f32 %v3289_v50, %v3289_v50  ;;  %v3481_v57 = vsub.f32 %v15173_v33, %v3289_v50 }
 0x553   : > { %12207 = vrsqrt.f32 %v3414_v12  ;;  %v3257_v59 = vpop.xlane.xlu1 %3256  ;;  %v3352_v39 = vmul.f32 %v3288_v15, %v3288_v15  ;;  %v3480_v54 = vsub.f32 %v15176_v17, %v3288_v15  ;;  %v15464_v17 = vld [vmem:[%s19019_s2 + $0x3] ss:$0 sm:$0xff] }
 0x554   : > { %v12202_v56 = vpop.eup %12201  ;;  %v3321_v41 = vmul.f32 0.025, %v3257_v59  ;;  %11156 = vmatprep.mubr.msk.f32.mxu1 %vm268_vm0, %v3580_v6  ;;  %v3254_v48 = vpop.xlane.xlu0 %3253  ;;  %v10202_v59 = vld [vmem:[%s19018_s1 + $0xa8] sm:$0xff] }
 0x555   : > { %v12204_v30 = vpop.eup %12203  ;;  %v3320_v9 = vmul.f32 0.025, %v3254_v48  ;;  %11157 = vmatmul.mubr.msk.f32.gmra.mrb[56].mxu1 %vm268_vm0, %v3581_v61  ;;  %v3509_v25 = vmul.f32 %v12202_v56, %v3477_v55  ;;  %v10201_v55 = vld [vmem:[%s19018_s1 + $0xa0] sm:$0xff] }
 0x556   : > { %v3385_v1 = vsub.f32 %v3321_v41, %v3353_v19  ;;  %v3508_v18 = vmul.f32 %v12204_v30, %v3476_v26  ;;  %v11548_v56 = vpack.c.bf16 %v10202_v59, %v10201_v55 }
 0x557   : > { %v3384_v32 = vsub.f32 %v3320_v9, %v3352_v39  ;;  %v3546_v52 = vmul.f32 %v15201_v24, %v3509_v25 }
 0x558   : > { %v3417_v40 = vadd.f32 1e-05, %v3385_v1  ;;  %v3545_v14 = vmul.f32 %v15201_v24, %v3508_v18  ;;  %11549 = vmatprep.subr.bf16.mxu0 %v11548_v56 }
 0x559   : > { %v3416_v38 = vadd.f32 1e-05, %v3384_v32  ;;  %v3583_v23 = vadd.f32 %v15211_v31, %v3546_v52  ;;  %11551 = vmatpush3.bf16.msra.mxu0 %v11548_v56 }
 0x55a   : > { %12209 = vrsqrt.f32 %v3417_v40  ;;  %v3582_v0 = vadd.f32 %v15211_v31, %v3545_v14  ;;  %v10203_v40 = vld [vmem:[%s19018_s1 + $0xb0] sm:$0xff]  ;;  %v10204_v14 = vld [vmem:[%s19018_s1 + $0xb8] sm:$0xff] }
 0x55b   : > { %12211 = vrsqrt.f32 %v3416_v38 }
 0x55c   : > { %v12206_v42 = vpop.eup %12205  ;;  %11159 = vmatprep.mubr.msk.f32.mxu1 %vm268_vm0, %v3582_v0  ;;  %v11552_v0 = vpack.c.bf16 %v10204_v14, %v10203_v40 }
 0x55d   : > { %v12208_v27 = vpop.eup %12207  ;;  %11160 = vmatmul.mubr.msk.f32.gmra.mrb[58].mxu1 %vm268_vm0, %v3583_v23  ;;  %v3511_v62 = vmul.f32 %v12206_v42, %v3479_v29 }
 0x55e   : > { %v3510_v36 = vmul.f32 %v12208_v27, %v3478_v44  ;;  %11553 = vmatprep.subr.bf16.mxu0 %v11552_v0 }
 0x55f   : > { %v3548_v53 = vmul.f32 %v15201_v24, %v3511_v62  ;;  %11555 = vmatpush3.bf16.msra.mxu0 %v11552_v0 }
 0x560   : > { %v3547_v7 = vmul.f32 %v15201_v24, %v3510_v36 }
 0x561   : > { %v3585_v46 = vadd.f32 %v15211_v31, %v3548_v53 }
 0x562   : > { %v3584_v16 = vadd.f32 %v15211_v31, %v3547_v7 }
 0x564   : > { %v12210_v34 = vpop.eup %12209  ;;  %11162 = vmatprep.mubr.msk.f32.mxu1 %vm268_vm0, %v3584_v16 }
 0x565   : > { %v12212_v47 = vpop.eup %12211  ;;  %11163 = vmatmul.mubr.msk.f32.gmra.mrb[60].mxu1 %vm268_vm0, %v3585_v46  ;;  %v3513_v60 = vmul.f32 %v12210_v34, %v3481_v57 }
 0x566   : > { %v3512_v49 = vmul.f32 %v12212_v47, %v3480_v54 }
 0x567   : > { %v3550_v10 = vmul.f32 %v15201_v24, %v3513_v60 }
 0x568   : > { %v3549_v45 = vmul.f32 %v15201_v24, %v3512_v49 }
 0x569   : > { %v3587_v33 = vadd.f32 %v15211_v31, %v3550_v10 }
 0x56a   : > { %v3586_v43 = vadd.f32 %v15211_v31, %v3549_v45 }
 0x56c   : > { %11165 = vmatprep.mubr.msk.f32.mxu1 %vm268_vm0, %v3586_v43 }
 0x56d   : > { %11166 = vmatmul.mubr.msk.f32.gmra.mrb[62].mxu1 %vm268_vm0, %v3587_v33 }
 0x5c8   : > { %v11122_v51 = vpop.f32.mrb[32].mxu1 }
 0x5c9   : > { %v3767_v35 = vadd.f32 %v11122_v51, %v15464_v17  ;;  %v3761_v63 = vpop.f32.mrb[33].mxu1 }
 0x5ca   : > { %v3762_v5 = vadd.f32 %v15464_v17, %v3761_v63 }
 0x5cb   : > { %v10168_v24 = vmul.f32 -1.442695, %v3767_v35 }
 0x5cc   : > { %v10167_v20 = vmul.f32 -1.442695, %v3762_v5 }
 0x5cd   : > { %12213 = vpow2.f32 %v10168_v24 }
 0x5ce   : > { %12215 = vpow2.f32 %v10167_v20 }
 0x5d0   : > { %v11125_v31 = vpop.f32.mrb[34].mxu1 }
 0x5d1   : > { %v15469_v58 = vadd.f32 %v11125_v31, %v15464_v17  ;;  %v3771_v2 = vpop.f32.mrb[35].mxu1 }
 0x5d2   : > { %v15472_v11 = vadd.f32 %v15464_v17, %v3771_v2 }
 0x5d3   : > { %v10170_v4 = vmul.f32 -1.442695, %v15469_v58 }
 0x5d4   : > { %v10169_v37 = vmul.f32 -1.442695, %v15472_v11 }
 0x5d5   : > { %12217 = vpow2.f32 %v10170_v4 }
 0x5d6   : > { %12219 = vpow2.f32 %v10169_v37 }
 0x5d7   : > { %v12214_v21 = vpop.eup %12213 }
 0x5d8   : > { %v12216_v28 = vpop.eup %12215  ;;  %v4017_v22 = vadd.f32 1.0, %v12214_v21  ;;  %v11128_v3 = vpop.f32.mrb[36].mxu1 }
 0x5d9   : > { %v4016_v50 = vadd.f32 1.0, %v12216_v28  ;;  %v15477_v8 = vadd.f32 %v11128_v3, %v15464_v17  ;;  %v3781_v13 = vpop.f32.mrb[37].mxu1 }
 0x5da   : > { %12221 = vrcp.f32 %v4017_v22  ;;  %v15480_v12 = vadd.f32 %v15464_v17, %v3781_v13 }
 0x5db   : > { %12223 = vrcp.f32 %v4016_v50  ;;  %v10172_v15 = vmul.f32 -1.442695, %v15477_v8 }
 0x5dc   : > { %v10171_v6 = vmul.f32 -1.442695, %v15480_v12 }
 0x5dd   : > { %12225 = vpow2.f32 %v10172_v15 }
 0x5de   : > { %12227 = vpow2.f32 %v10171_v6 }
 0x5df   : > { %v12218_v61 = vpop.eup %12217 }
 0x5e0   : > { %v12220_v26 = vpop.eup %12219  ;;  %v4019_v19 = vadd.f32 1.0, %v12218_v61  ;;  %v11131_v41 = vpop.f32.mrb[38].mxu1 }
 0x5e1   : > { %v4018_v48 = vadd.f32 1.0, %v12220_v26  ;;  %v15491_v30 = vadd.f32 %v11131_v41, %v15464_v17  ;;  %v3791_v39 = vpop.f32.mrb[39].mxu1 }
 0x5e2   : > { %12229 = vrcp.f32 %v4019_v19  ;;  %v15494_v9 = vadd.f32 %v15464_v17, %v3791_v39 }
 0x5e3   : > { %12231 = vrcp.f32 %v4018_v48  ;;  %v10174_v25 = vmul.f32 -1.442695, %v15491_v30 }
 0x5e4   : > { %v12222_v1 = vpop.eup %12221  ;;  %v10173_v18 = vmul.f32 -1.442695, %v15494_v9 }
 0x5e5   : > { %v12224_v32 = vpop.eup %12223  ;;  %v15498_v52 = vmul.f32 %v12222_v1, %v3767_v35  ;;  %12233 = vpow2.f32 %v10174_v25 }
 0x5e6   : > { %v15506_v38 = vmul.f32 %v12224_v32, %v3762_v5  ;;  %12235 = vpow2.f32 %v10173_v18 }
 0x5e7   : > { %v12226_v29 = vpop.eup %12225  ;;  %v4147_v23 = vsel %vm268_vm0, %v15498_v52, 0.0  ;;  %v4241_v42 = vmul.f32 %v15498_v52, %v15498_v52 }
 0x5e8   : > { %v12228_v44 = vpop.eup %12227  ;;  %v4021_v27 = vadd.f32 1.0, %v12226_v29  ;;  %4148 = vadd.xlane.f32.xlu1 %v4147_v23  ;;  %v11134_v62 = vpop.f32.mrb[40].mxu1  ;;  %v4144_v36 = vsel %vm268_vm0, %v15506_v38, 0.0  ;;  %v4240_v53 = vmul.f32 %v15506_v38, %v15506_v38 }
 0x5e9   : > { %v4020_v7 = vadd.f32 1.0, %v12228_v44  ;;  %v15517_v16 = vadd.f32 %v11134_v62, %v15464_v17  ;;  %4145 = vadd.xlane.f32.xlu0 %v4144_v36  ;;  %v3801_v57 = vpop.f32.mrb[41].mxu1  ;;  %v4275_v54 = vsel %vm268_vm0, %v4241_v42, 0.0 }
 0x5ea   : > { %12237 = vrcp.f32 %v4021_v27  ;;  %v15520_v46 = vadd.f32 %v15464_v17, %v3801_v57  ;;  %v4272_v49 = vsel %vm268_vm0, %v4240_v53, 0.0 }
 0x5eb   : > { %12239 = vrcp.f32 %v4020_v7  ;;  %v10176_v34 = vmul.f32 -1.442695, %v15517_v16 }
 0x5ec   : > { %v12230_v47 = vpop.eup %12229  ;;  %v10175_v60 = vmul.f32 -1.442695, %v15520_v46  ;;  %4276 = vadd.xlane.f32.xlu1 %v4275_v54 }
 0x5ed   : > { %v12232_v10 = vpop.eup %12231  ;;  %v15527_v45 = vmul.f32 %v12230_v47, %v15469_v58  ;;  %12241 = vpow2.f32 %v10176_v34  ;;  %4273 = vadd.xlane.f32.xlu0 %v4272_v49 }
 0x5ee   : > { %v15530_v43 = vmul.f32 %v12232_v10, %v15472_v11  ;;  %12243 = vpow2.f32 %v10175_v60 }
 0x5ef   : > { %v12234_v33 = vpop.eup %12233  ;;  %v4153_v51 = vsel %vm268_vm0, %v15527_v45, 0.0  ;;  %v4243_v35 = vmul.f32 %v15527_v45, %v15527_v45 }
 0x5f0   : > { %v12236_v63 = vpop.eup %12235  ;;  %v4023_v5 = vadd.f32 1.0, %v12234_v33  ;;  %4154 = vadd.xlane.f32.xlu1 %v4153_v51  ;;  %v11137_v24 = vpop.f32.mrb[42].mxu1  ;;  %v4150_v20 = vsel %vm268_vm0, %v15530_v43, 0.0  ;;  %v4242_v31 = vmul.f32 %v15530_v43, %v15530_v43 }
 0x5f1   : > { %v4022_v58 = vadd.f32 1.0, %v12236_v63  ;;  %v15541_v2 = vadd.f32 %v11137_v24, %v15464_v17  ;;  %4151 = vadd.xlane.f32.xlu0 %v4150_v20  ;;  %v3811_v11 = vpop.f32.mrb[43].mxu1  ;;  %v4281_v21 = vsel %vm268_vm0, %v4243_v35, 0.0 }
 0x5f2   : > { %12245 = vrcp.f32 %v4023_v5  ;;  %v15544_v4 = vadd.f32 %v15464_v17, %v3811_v11  ;;  %v4278_v3 = vsel %vm268_vm0, %v4242_v31, 0.0 }
 0x5f3   : > { %12247 = vrcp.f32 %v4022_v58  ;;  %v10178_v37 = vmul.f32 -1.442695, %v15541_v2 }
 0x5f4   : > { %v12238_v28 = vpop.eup %12237  ;;  %v10177_v22 = vmul.f32 -1.442695, %v15544_v4  ;;  %4282 = vadd.xlane.f32.xlu1 %v4281_v21 }
 0x5f5   : > { %v12240_v50 = vpop.eup %12239  ;;  %v15551_v13 = vmul.f32 %v12238_v28, %v15477_v8  ;;  %12249 = vpow2.f32 %v10178_v37  ;;  %4279 = vadd.xlane.f32.xlu0 %v4278_v3 }
 0x5f6   : > { %v15554_v15 = vmul.f32 %v12240_v50, %v15480_v12  ;;  %12251 = vpow2.f32 %v10177_v22 }
 0x5f7   : > { %v12242_v6 = vpop.eup %12241  ;;  %v4159_v55 = vsel %vm268_vm0, %v15551_v13, 0.0  ;;  %v4245_v59 = vmul.f32 %v15551_v13, %v15551_v13 }
 0x5f8   : > { %v12244_v61 = vpop.eup %12243  ;;  %v4025_v56 = vadd.f32 1.0, %v12242_v6  ;;  %4160 = vadd.xlane.f32.xlu1 %v4159_v55  ;;  %v11140_v26 = vpop.f32.mrb[44].mxu1  ;;  %v4156_v8 = vsel %vm268_vm0, %v15554_v15, 0.0  ;;  %v4244_v19 = vmul.f32 %v15554_v15, %v15554_v15 }
 0x5f9   : > { %v4024_v12 = vadd.f32 1.0, %v12244_v61  ;;  %v15565_v41 = vadd.f32 %v11140_v26, %v15464_v17  ;;  %4157 = vadd.xlane.f32.xlu0 %v4156_v8  ;;  %v3821_v48 = vpop.f32.mrb[45].mxu1  ;;  %v4287_v1 = vsel %vm268_vm0, %v4245_v59, 0.0 }
 0x5fa   : > { %12253 = vrcp.f32 %v4025_v56  ;;  %v15568_v39 = vadd.f32 %v15464_v17, %v3821_v48  ;;  %v4284_v40 = vsel %vm268_vm0, %v4244_v19, 0.0  ;;  %v10205_v56 = vld [vmem:[%s19018_s1 + $0xc0] sm:$0xff] }
 0x5fb   : > { %12255 = vrcp.f32 %v4024_v12  ;;  %v10180_v25 = vmul.f32 -1.442695, %v15565_v41  ;;  %11176 = vmatprep.subr.mxu0 %v10205_v56 }
 0x5fc   : > { %v12246_v18 = vpop.eup %12245  ;;  %v10179_v32 = vmul.f32 -1.442695, %v15568_v39  ;;  %4288 = vadd.xlane.f32.xlu1 %v4287_v1  ;;  %11177 = vmatpush3.msra.mxu0 %v10205_v56 }
 0x5fd   : > { %v12248_v14 = vpop.eup %12247  ;;  %v15575_v0 = vmul.f32 %v12246_v18, %v15491_v30  ;;  %12257 = vpow2.f32 %v10180_v25  ;;  %4285 = vadd.xlane.f32.xlu0 %v4284_v40 }
 0x5fe   : > { %v15578_v29 = vmul.f32 %v12248_v14, %v15494_v9  ;;  %12259 = vpow2.f32 %v10179_v32 }
 0x5ff   : > { %v12250_v23 = vpop.eup %12249  ;;  %v4165_v42 = vsel %vm268_vm0, %v15575_v0, 0.0  ;;  %v4247_v44 = vmul.f32 %v15575_v0, %v15575_v0 }
 0x600   : > { %v12252_v27 = vpop.eup %12251  ;;  %v4027_v62 = vadd.f32 1.0, %v12250_v23  ;;  %4166 = vadd.xlane.f32.xlu1 %v4165_v42  ;;  %v11143_v36 = vpop.f32.mrb[46].mxu1  ;;  %v4162_v30 = vsel %vm268_vm0, %v15578_v29, 0.0  ;;  %v4246_v53 = vmul.f32 %v15578_v29, %v15578_v29 }
 0x601   : > { %v4026_v9 = vadd.f32 1.0, %v12252_v27  ;;  %v15589_v7 = vadd.f32 %v11143_v36, %v15464_v17  ;;  %4163 = vadd.xlane.f32.xlu0 %v4162_v30  ;;  %v3831_v57 = vpop.f32.mrb[47].mxu1  ;;  %v4293_v47 = vsel %vm268_vm0, %v4247_v44, 0.0 }
 0x602   : > { %12261 = vrcp.f32 %v4027_v62  ;;  %v15592_v34 = vadd.f32 %v15464_v17, %v3831_v57  ;;  %v4290_v10 = vsel %vm268_vm0, %v4246_v53, 0.0 }
 0x603   : > { %12263 = vrcp.f32 %v4026_v9  ;;  %v10182_v54 = vmul.f32 -1.442695, %v15589_v7 }
 0x604   : > { %v12254_v60 = vpop.eup %12253  ;;  %v10181_v49 = vmul.f32 -1.442695, %v15592_v34  ;;  %4294 = vadd.xlane.f32.xlu1 %v4293_v47 }
 0x605   : > { %v12256_v33 = vpop.eup %12255  ;;  %v15599_v51 = vmul.f32 %v12254_v60, %v15517_v16  ;;  %12265 = vpow2.f32 %v10182_v54  ;;  %4291 = vadd.xlane.f32.xlu0 %v4290_v10 }
 0x606   : > { %v15602_v35 = vmul.f32 %v12256_v33, %v15520_v46  ;;  %12267 = vpow2.f32 %v10181_v49 }
 0x607   : > { %v12258_v63 = vpop.eup %12257  ;;  %v4171_v5 = vsel %vm268_vm0, %v15599_v51, 0.0  ;;  %v4249_v24 = vmul.f32 %v15599_v51, %v15599_v51 }
 0x608   : > { %v12260_v20 = vpop.eup %12259  ;;  %v4029_v31 = vadd.f32 1.0, %v12258_v63  ;;  %4172 = vadd.xlane.f32.xlu1 %v4171_v5  ;;  %v11146_v58 = vpop.f32.mrb[48].mxu1  ;;  %v4168_v16 = vsel %vm268_vm0, %v15602_v35, 0.0  ;;  %v4248_v11 = vmul.f32 %v15602_v35, %v15602_v35 }
 0x609   : > { %v4028_v46 = vadd.f32 1.0, %v12260_v20  ;;  %v15613_v37 = vadd.f32 %v11146_v58, %v15464_v17  ;;  %4169 = vadd.xlane.f32.xlu0 %v4168_v16  ;;  %v3841_v21 = vpop.f32.mrb[49].mxu1  ;;  %v4299_v3 = vsel %vm268_vm0, %v4249_v24, 0.0 }
 0x60a   : > { %12269 = vrcp.f32 %v4029_v31  ;;  %v15616_v28 = vadd.f32 %v15464_v17, %v3841_v21  ;;  %v4296_v55 = vsel %vm268_vm0, %v4248_v11, 0.0 }
 0x60b   : > { %12271 = vrcp.f32 %v4028_v46  ;;  %v10184_v22 = vmul.f32 -1.442695, %v15613_v37 }
 0x60c   : > { %v12262_v50 = vpop.eup %12261  ;;  %v10183_v6 = vmul.f32 -1.442695, %v15616_v28  ;;  %4300 = vadd.xlane.f32.xlu1 %v4299_v3 }
 0x60d   : > { %v12264_v59 = vpop.eup %12263  ;;  %v15623_v61 = vmul.f32 %v12262_v50, %v15541_v2  ;;  %12273 = vpow2.f32 %v10184_v22  ;;  %4297 = vadd.xlane.f32.xlu0 %v4296_v55 }
 0x60e   : > { %v15629_v26 = vmul.f32 %v12264_v59, %v15544_v4  ;;  %12275 = vpow2.f32 %v10183_v6 }
 0x60f   : > { %v12266_v8 = vpop.eup %12265  ;;  %v4177_v19 = vsel %vm268_vm0, %v15623_v61, 0.0  ;;  %v4251_v12 = vmul.f32 %v15623_v61, %v15623_v61 }
 0x610   : > { %v12268_v2 = vpop.eup %12267  ;;  %v4031_v48 = vadd.f32 1.0, %v12266_v8  ;;  %4178 = vadd.xlane.f32.xlu1 %v4177_v19  ;;  %v11149_v25 = vpop.f32.mrb[50].mxu1  ;;  %v4174_v1 = vsel %vm268_vm0, %v15629_v26, 0.0  ;;  %v4250_v4 = vmul.f32 %v15629_v26, %v15629_v26 }
 0x611   : > { %v4030_v18 = vadd.f32 1.0, %v12268_v2  ;;  %v15640_v32 = vadd.f32 %v11149_v25, %v15464_v17  ;;  %4175 = vadd.xlane.f32.xlu0 %v4174_v1  ;;  %v3851_v40 = vpop.f32.mrb[51].mxu1  ;;  %v4305_v42 = vsel %vm268_vm0, %v4251_v12, 0.0 }
 0x612   : > { %12277 = vrcp.f32 %v4031_v48  ;;  %v15643_v14 = vadd.f32 %v15464_v17, %v3851_v40  ;;  %v4302_v62 = vsel %vm268_vm0, %v4250_v4, 0.0 }
 0x613   : > { %12279 = vrcp.f32 %v4030_v18  ;;  %v10186_v23 = vmul.f32 -1.442695, %v15640_v32 }
 0x614   : > { %v12270_v44 = vpop.eup %12269  ;;  %v10185_v27 = vmul.f32 -1.442695, %v15643_v14  ;;  %4306 = vadd.xlane.f32.xlu1 %v4305_v42 }
 0x615   : > { %v12272_v36 = vpop.eup %12271  ;;  %v15650_v30 = vmul.f32 %v12270_v44, %v15565_v41  ;;  %12281 = vpow2.f32 %v10186_v23  ;;  %4303 = vadd.xlane.f32.xlu0 %v4302_v62 }
 0x616   : > { %v15653_v53 = vmul.f32 %v12272_v36, %v15568_v39  ;;  %12283 = vpow2.f32 %v10185_v27 }
 0x617   : > { %v12274_v9 = vpop.eup %12273  ;;  %v4183_v57 = vsel %vm268_vm0, %v15650_v30, 0.0  ;;  %v4253_v54 = vmul.f32 %v15650_v30, %v15650_v30 }
 0x618   : > { %v12276_v47 = vpop.eup %12275  ;;  %v4033_v60 = vadd.f32 1.0, %v12274_v9  ;;  %4184 = vadd.xlane.f32.xlu1 %v4183_v57  ;;  %v11152_v49 = vpop.f32.mrb[52].mxu1  ;;  %v4180_v41 = vsel %vm268_vm0, %v15653_v53, 0.0  ;;  %v4252_v10 = vmul.f32 %v15653_v53, %v15653_v53 }
 0x619   : > { %v4032_v39 = vadd.f32 1.0, %v12276_v47  ;;  %v15664_v33 = vadd.f32 %v11152_v49, %v15464_v17  ;;  %4181 = vadd.xlane.f32.xlu0 %v4180_v41  ;;  %v3861_v63 = vpop.f32.mrb[53].mxu1  ;;  %v4311_v20 = vsel %vm268_vm0, %v4253_v54, 0.0 }
 0x61a   : > { %12285 = vrcp.f32 %v4033_v60  ;;  %v15667_v5 = vadd.f32 %v15464_v17, %v3861_v63  ;;  %v4308_v16 = vsel %vm268_vm0, %v4252_v10, 0.0 }
 0x61b   : > { %12287 = vrcp.f32 %v4032_v39  ;;  %v10188_v24 = vmul.f32 -1.442695, %v15664_v33 }
 0x61c   : > { %v12278_v31 = vpop.eup %12277  ;;  %v10187_v58 = vmul.f32 -1.442695, %v15667_v5  ;;  %4312 = vadd.xlane.f32.xlu1 %v4311_v20 }
 0x61d   : > { %v12280_v11 = vpop.eup %12279  ;;  %v15674_v46 = vmul.f32 %v12278_v31, %v15589_v7  ;;  %12289 = vpow2.f32 %v10188_v24  ;;  %4309 = vadd.xlane.f32.xlu0 %v4308_v16 }
 0x61e   : > { %v15677_v21 = vmul.f32 %v12280_v11, %v15592_v34  ;;  %12291 = vpow2.f32 %v10187_v58 }
 0x61f   : > { %v12282_v22 = vpop.eup %12281  ;;  %v4189_v3 = vsel %vm268_vm0, %v15674_v46, 0.0  ;;  %v4255_v50 = vmul.f32 %v15674_v46, %v15674_v46 }
 0x620   : > { %v12284_v6 = vpop.eup %12283  ;;  %v4035_v55 = vadd.f32 1.0, %v12282_v22  ;;  %4190 = vadd.xlane.f32.xlu1 %v4189_v3  ;;  %v11155_v59 = vpop.f32.mrb[54].mxu1  ;;  %v4186_v7 = vsel %vm268_vm0, %v15677_v21, 0.0  ;;  %v4254_v56 = vmul.f32 %v15677_v21, %v15677_v21 }
 0x621   : > { %v4034_v34 = vadd.f32 1.0, %v12284_v6  ;;  %v15688_v8 = vadd.f32 %v11155_v59, %v15464_v17  ;;  %4187 = vadd.xlane.f32.xlu0 %v4186_v7  ;;  %v3871_v19 = vpop.f32.mrb[55].mxu1  ;;  %v4317_v48 = vsel %vm268_vm0, %v4255_v50, 0.0 }
 0x622   : > { %12293 = vrcp.f32 %v4035_v55  ;;  %v15691_v12 = vadd.f32 %v15464_v17, %v3871_v19  ;;  %v4314_v4 = vsel %vm268_vm0, %v4254_v56, 0.0 }
 0x623   : > { %12295 = vrcp.f32 %v4034_v34  ;;  %v10190_v2 = vmul.f32 -1.442695, %v15688_v8 }
 0x624   : > { %v12286_v25 = vpop.eup %12285  ;;  %v10189_v1 = vmul.f32 -1.442695, %v15691_v12  ;;  %4318 = vadd.xlane.f32.xlu1 %v4317_v48 }
 0x625   : > { %v12288_v18 = vpop.eup %12287  ;;  %v15698_v40 = vmul.f32 %v12286_v25, %v15613_v37  ;;  %12297 = vpow2.f32 %v10190_v2  ;;  %4315 = vadd.xlane.f32.xlu0 %v4314_v4 }
 0x626   : > { %v15701_v23 = vmul.f32 %v12288_v18, %v15616_v28  ;;  %12299 = vpow2.f32 %v10189_v1 }
 0x627   : > { %v12290_v42 = vpop.eup %12289  ;;  %v4195_v44 = vsel %vm268_vm0, %v15698_v40, 0.0  ;;  %v4257_v27 = vmul.f32 %v15698_v40, %v15698_v40 }
 0x628   : > { %v12292_v62 = vpop.eup %12291  ;;  %v4037_v36 = vadd.f32 1.0, %v12290_v42  ;;  %4196 = vadd.xlane.f32.xlu1 %v4195_v44  ;;  %v11158_v9 = vpop.f32.mrb[56].mxu1  ;;  %v4192_v37 = vsel %vm268_vm0, %v15701_v23, 0.0  ;;  %v4256_v57 = vmul.f32 %v15701_v23, %v15701_v23 }
 0x629   : > { %v4036_v28 = vadd.f32 1.0, %v12292_v62  ;;  %v15712_v54 = vadd.f32 %v11158_v9, %v15464_v17  ;;  %4193 = vadd.xlane.f32.xlu0 %v4192_v37  ;;  %v3881_v47 = vpop.f32.mrb[57].mxu1  ;;  %v4323_v41 = vsel %vm268_vm0, %v4257_v27, 0.0 }
 0x62a   : > { %12301 = vrcp.f32 %v4037_v36  ;;  %v15715_v60 = vadd.f32 %v15464_v17, %v3881_v47  ;;  %v4320_v63 = vsel %vm268_vm0, %v4256_v57, 0.0 }
 0x62b   : > { %12303 = vrcp.f32 %v4036_v28  ;;  %v10192_v49 = vmul.f32 -1.442695, %v15712_v54 }
 0x62c   : > { %v12294_v10 = vpop.eup %12293  ;;  %v10191_v39 = vmul.f32 -1.442695, %v15715_v60  ;;  %4324 = vadd.xlane.f32.xlu1 %v4323_v41 }
 0x62d   : > { %v12296_v24 = vpop.eup %12295  ;;  %v15722_v20 = vmul.f32 %v12294_v10, %v15640_v32  ;;  %12305 = vpow2.f32 %v10192_v49  ;;  %4321 = vadd.xlane.f32.xlu0 %v4320_v63 }
 0x62e   : > { %v15725_v31 = vmul.f32 %v12296_v24, %v15643_v14  ;;  %12307 = vpow2.f32 %v10191_v39 }
 0x62f   : > { %v12298_v58 = vpop.eup %12297  ;;  %v4201_v16 = vsel %vm268_vm0, %v15722_v20, 0.0  ;;  %v4259_v11 = vmul.f32 %v15722_v20, %v15722_v20 }
 0x630   : > { %v12300_v22 = vpop.eup %12299  ;;  %v4039_v3 = vadd.f32 1.0, %v12298_v58  ;;  %4202 = vadd.xlane.f32.xlu1 %v4201_v16  ;;  %v11161_v50 = vpop.f32.mrb[58].mxu1  ;;  %v4198_v32 = vsel %vm268_vm0, %v15725_v31, 0.0  ;;  %v4258_v6 = vmul.f32 %v15725_v31, %v15725_v31 }
 0x631   : > { %v4038_v14 = vadd.f32 1.0, %v12300_v22  ;;  %v15736_v55 = vadd.f32 %v11161_v50, %v15464_v17  ;;  %4199 = vadd.xlane.f32.xlu0 %v4198_v32  ;;  %v3891_v59 = vpop.f32.mrb[59].mxu1  ;;  %v4329_v34 = vsel %vm268_vm0, %v4259_v11, 0.0 }
 0x632   : > { %12309 = vrcp.f32 %v4039_v3  ;;  %v15739_v7 = vadd.f32 %v15464_v17, %v3891_v59  ;;  %v4326_v48 = vsel %vm268_vm0, %v4258_v6, 0.0 }
 0x633   : > { %12311 = vrcp.f32 %v4038_v14  ;;  %v10194_v56 = vmul.f32 -1.442695, %v15736_v55 }
 0x634   : > { %v12302_v19 = vpop.eup %12301  ;;  %v10193_v2 = vmul.f32 -1.442695, %v15739_v7  ;;  %4330 = vadd.xlane.f32.xlu1 %v4329_v34 }
 0x635   : > { %v12304_v25 = vpop.eup %12303  ;;  %v15746_v1 = vmul.f32 %v12302_v19, %v15664_v33  ;;  %12313 = vpow2.f32 %v10194_v56  ;;  %4327 = vadd.xlane.f32.xlu0 %v4326_v48 }
 0x636   : > { %v15749_v4 = vmul.f32 %v12304_v25, %v15667_v5  ;;  %12315 = vpow2.f32 %v10193_v2 }
 0x637   : > { %v12306_v18 = vpop.eup %12305  ;;  %v4207_v42 = vsel %vm268_vm0, %v15746_v1, 0.0  ;;  %v4261_v44 = vmul.f32 %v15746_v1, %v15746_v1 }
 0x638   : > { %v12308_v27 = vpop.eup %12307  ;;  %v4041_v62 = vadd.f32 1.0, %v12306_v18  ;;  %4208 = vadd.xlane.f32.xlu1 %v4207_v42  ;;  %v11164_v36 = vpop.f32.mrb[60].mxu1  ;;  %v4204_v33 = vsel %vm268_vm0, %v15749_v4, 0.0  ;;  %v4260_v9 = vmul.f32 %v15749_v4, %v15749_v4 }
 0x639   : > { %v4040_v5 = vadd.f32 1.0, %v12308_v27  ;;  %v15760_v37 = vadd.f32 %v11164_v36, %v15464_v17  ;;  %4205 = vadd.xlane.f32.xlu0 %v4204_v33  ;;  %v3901_v57 = vpop.f32.mrb[61].mxu1  ;;  %v4335_v49 = vsel %vm268_vm0, %v4261_v44, 0.0 }
 0x63a   : > { %12317 = vrcp.f32 %v4041_v62  ;;  %v15763_v28 = vadd.f32 %v15464_v17, %v3901_v57  ;;  %v4332_v39 = vsel %vm268_vm0, %v4260_v9, 0.0 }
 0x63b   : > { %12319 = vrcp.f32 %v4040_v5  ;;  %v10196_v47 = vmul.f32 -1.442695, %v15760_v37 }
 0x63c   : > { %v12310_v41 = vpop.eup %12309  ;;  %v10195_v10 = vmul.f32 -1.442695, %v15763_v28  ;;  %4336 = vadd.xlane.f32.xlu1 %v4335_v49 }
 0x63d   : > { %v12312_v63 = vpop.eup %12311  ;;  %v15770_v24 = vmul.f32 %v12310_v41, %v15688_v8  ;;  %12321 = vpow2.f32 %v10196_v47  ;;  %4333 = vadd.xlane.f32.xlu0 %v4332_v39 }
 0x63e   : > { %v15773_v58 = vmul.f32 %v12312_v63, %v15691_v12  ;;  %12323 = vpow2.f32 %v10195_v10 }
 0x63f   : > { %v12314_v16 = vpop.eup %12313  ;;  %v4213_v11 = vsel %vm268_vm0, %v15770_v24, 0.0  ;;  %v4263_v22 = vmul.f32 %v15770_v24, %v15770_v24 }
 0x640   : > { %v12316_v3 = vpop.eup %12315  ;;  %v4043_v50 = vadd.f32 1.0, %v12314_v16  ;;  %4214 = vadd.xlane.f32.xlu1 %v4213_v11  ;;  %v11167_v32 = vpop.f32.mrb[62].mxu1  ;;  %v4210_v8 = vsel %vm268_vm0, %v15773_v58, 0.0  ;;  %v4262_v6 = vmul.f32 %v15773_v58, %v15773_v58 }
 0x641   : > { %v4042_v12 = vadd.f32 1.0, %v12316_v3  ;;  %v15784_v14 = vadd.f32 %v11167_v32, %v15464_v17  ;;  %4211 = vadd.xlane.f32.xlu0 %v4210_v8  ;;  %v3911_v59 = vpop.f32.mrb[63].mxu1  ;;  %v4341_v19 = vsel %vm268_vm0, %v4263_v22, 0.0 }
 0x642   : > { %12325 = vrcp.f32 %v4043_v50  ;;  %v15787_v56 = vadd.f32 %v15464_v17, %v3911_v59  ;;  %v4338_v25 = vsel %vm268_vm0, %v4262_v6, 0.0 }
 0x643   : > { %12327 = vrcp.f32 %v4042_v12  ;;  %v10198_v34 = vmul.f32 -1.442695, %v15784_v14 }
 0x644   : > { %v12318_v2 = vpop.eup %12317  ;;  %v10197_v48 = vmul.f32 -1.442695, %v15787_v56  ;;  %4342 = vadd.xlane.f32.xlu1 %v4341_v19 }
 0x645   : > { %v12320_v18 = vpop.eup %12319  ;;  %v15794_v42 = vmul.f32 %v12318_v2, %v15712_v54  ;;  %12329 = vpow2.f32 %v10198_v34  ;;  %4339 = vadd.xlane.f32.xlu0 %v4338_v25 }
 0x646   : > { %v15797_v17 = vmul.f32 %v12320_v18, %v15715_v60  ;;  %12331 = vpow2.f32 %v10197_v48 }
 0x647   : > { %v12322_v44 = vpop.eup %12321  ;;  %v4219_v27 = vsel %vm268_vm0, %v15794_v42, 0.0  ;;  %v4265_v62 = vmul.f32 %v15794_v42, %v15794_v42 }
 0x648   : > { %v12324_v36 = vpop.eup %12323  ;;  %v4045_v33 = vadd.f32 1.0, %v12322_v44  ;;  %4220 = vadd.xlane.f32.xlu1 %v4219_v27  ;;  %v4216_v54 = vsel %vm268_vm0, %v15797_v17, 0.0  ;;  %v4264_v9 = vmul.f32 %v15797_v17, %v15797_v17 }
 0x649   : > { %v4044_v5 = vadd.f32 1.0, %v12324_v36  ;;  %4217 = vadd.xlane.f32.xlu0 %v4216_v54  ;;  %v4347_v60 = vsel %vm268_vm0, %v4265_v62, 0.0 }
 0x64a   : > { %12333 = vrcp.f32 %v4045_v33  ;;  %v4344_v47 = vsel %vm268_vm0, %v4264_v9, 0.0 }
 0x64b   : > { %12335 = vrcp.f32 %v4044_v5 }
 0x64c   : > { %v12326_v57 = vpop.eup %12325  ;;  %4348 = vadd.xlane.f32.xlu1 %v4347_v60 }
 0x64d   : > { %v12328_v49 = vpop.eup %12327  ;;  %v15810_v41 = vmul.f32 %v12326_v57, %v15736_v55  ;;  %4345 = vadd.xlane.f32.xlu0 %v4344_v47 }
 0x64e   : > { %v15813_v10 = vmul.f32 %v12328_v49, %v15739_v7 }
 0x64f   : > { %v12330_v39 = vpop.eup %12329  ;;  %v4225_v63 = vsel %vm268_vm0, %v15810_v41, 0.0  ;;  %v4267_v16 = vmul.f32 %v15810_v41, %v15810_v41 }
 0x650   : > { %v12332_v11 = vpop.eup %12331  ;;  %v4047_v22 = vadd.f32 1.0, %v12330_v39  ;;  %4226 = vadd.xlane.f32.xlu1 %v4225_v63  ;;  %v4222_v3 = vsel %vm268_vm0, %v15813_v10, 0.0  ;;  %v4266_v55 = vmul.f32 %v15813_v10, %v15813_v10 }
 0x651   : > { %v4046_v50 = vadd.f32 1.0, %v12332_v11  ;;  %4223 = vadd.xlane.f32.xlu0 %v4222_v3  ;;  %v4353_v7 = vsel %vm268_vm0, %v4267_v16, 0.0 }
 0x652   : > { %12337 = vrcp.f32 %v4047_v22  ;;  %v4350_v8 = vsel %vm268_vm0, %v4266_v55, 0.0 }
 0x653   : > { %12339 = vrcp.f32 %v4046_v50 }
 0x654   : > { %v12334_v32 = vpop.eup %12333  ;;  %4354 = vadd.xlane.f32.xlu1 %v4353_v7 }
 0x655   : > { %v12336_v6 = vpop.eup %12335  ;;  %v15826_v12 = vmul.f32 %v12334_v32, %v15760_v37  ;;  %4351 = vadd.xlane.f32.xlu0 %v4350_v8 }
 0x656   : > { %v15829_v59 = vmul.f32 %v12336_v6, %v15763_v28 }
 0x657   : > { %v4231_v34 = vsel %vm268_vm0, %v15826_v12, 0.0  ;;  %v4269_v19 = vmul.f32 %v15826_v12, %v15826_v12 }
 0x658   : > { %4232 = vadd.xlane.f32.xlu1 %v4231_v34  ;;  %v4228_v2 = vsel %vm268_vm0, %v15829_v59, 0.0  ;;  %v4268_v48 = vmul.f32 %v15829_v59, %v15829_v59 }
 0x659   : > { %4229 = vadd.xlane.f32.xlu0 %v4228_v2  ;;  %v4359_v37 = vsel %vm268_vm0, %v4269_v19, 0.0 }
 0x65a   : > { %v4356_v28 = vsel %vm268_vm0, %v4268_v48, 0.0 }
 0x65c   : > { %v12338_v25 = vpop.eup %12337  ;;  %4360 = vadd.xlane.f32.xlu1 %v4359_v37 }
 0x65d   : > { %v12340_v18 = vpop.eup %12339  ;;  %v15842_v44 = vmul.f32 %v12338_v25, %v15784_v14  ;;  %4357 = vadd.xlane.f32.xlu0 %v4356_v28 }
 0x65e   : > { %v15845_v27 = vmul.f32 %v12340_v18, %v15787_v56 }
 0x65f   : > { %v4237_v62 = vsel %vm268_vm0, %v15842_v44, 0.0  ;;  %v4271_v36 = vmul.f32 %v15842_v44, %v15842_v44 }
 0x660   : > { %4238 = vadd.xlane.f32.xlu1 %v4237_v62  ;;  %v4234_v33 = vsel %vm268_vm0, %v15845_v27, 0.0  ;;  %v4270_v54 = vmul.f32 %v15845_v27, %v15845_v27 }
 0x661   : > { %4235 = vadd.xlane.f32.xlu0 %v4234_v33  ;;  %v4365_v14 = vsel %vm268_vm0, %v4271_v36, 0.0 }
 0x662   : > { %v4362_v56 = vsel %vm268_vm0, %v4270_v54, 0.0 }
 0x664   : > { %4366 = vadd.xlane.f32.xlu1 %v4365_v14 }
 0x665   : > { %4363 = vadd.xlane.f32.xlu0 %v4362_v56 }
 0x675   : > { %v4149_v9 = vpop.xlane.xlu1 %4148 }
 0x676   : > { %v4369_v5 = vmul.f32 0.025, %v4149_v9  ;;  %v4146_v60 = vpop.xlane.xlu0 %4145 }
 0x677   : > { %v4368_v57 = vmul.f32 0.025, %v4146_v60 }
 0x678   : > { %v4433_v49 = vmul.f32 %v4369_v5, %v4369_v5  ;;  %v4561_v9 = vsub.f32 %v15498_v52, %v4369_v5 }
 0x679   : > { %v4277_v47 = vpop.xlane.xlu1 %4276  ;;  %v4432_v16 = vmul.f32 %v4368_v57, %v4368_v57 }
 0x67a   : > { %v4401_v39 = vmul.f32 0.025, %v4277_v47  ;;  %v4274_v63 = vpop.xlane.xlu0 %4273 }
 0x67b   : > { %v4400_v11 = vmul.f32 0.025, %v4274_v63 }
 0x67c   : > { %v4465_v22 = vsub.f32 %v4401_v39, %v4433_v49  ;;  %v4560_v49 = vsub.f32 %v15506_v38, %v4368_v57  ;;  %v15874_v39 = vld [vmem:[%s19019_s2 + $0x8] ss:$0 sm:$0xff]  ;;  %v10240_v57 = vld [vmem:[%s19018_s1 + $0xd0] sm:$0xff] }
 0x67d   : > { %v4464_v3 = vsub.f32 %v4400_v11, %v4432_v16  ;;  %v4155_v55 = vpop.xlane.xlu1 %4154  ;;  %v10239_v38 = vld [vmem:[%s19018_s1 + $0xc8] sm:$0xff] }
 0x67e   : > { %v4497_v50 = vadd.f32 1e-05, %v4465_v22  ;;  %v15857_v7 = vmul.f32 0.025, %v4155_v55  ;;  %v4152_v32 = vpop.xlane.xlu0 %4151  ;;  %v10241_v55 = vld [vmem:[%s19018_s1 + $0xd8] sm:$0xff] }
 0x67f   : > { %v4496_v8 = vadd.f32 1e-05, %v4464_v3  ;;  %v15859_v6 = vmul.f32 0.025, %v4152_v32 }
 0x680   : > { %12341 = vrsqrt.f32 %v4497_v50  ;;  %v4435_v19 = vmul.f32 %v15857_v7, %v15857_v7 }
 0x681   : > { %12343 = vrsqrt.f32 %v4496_v8  ;;  %v4283_v34 = vpop.xlane.xlu1 %4282  ;;  %v4434_v37 = vmul.f32 %v15859_v6, %v15859_v6  ;;  %v11556_v8 = vpack.c.bf16 %v10240_v57, %v10239_v38 }
 0x682   : > { %v4403_v2 = vmul.f32 0.025, %v4283_v34  ;;  %v4280_v48 = vpop.xlane.xlu0 %4279  ;;  %v10242_v34 = vld [vmem:[%s19018_s1 + $0xe0] sm:$0xff] }
 0x683   : > { %v4402_v25 = vmul.f32 0.025, %v4280_v48  ;;  %11557 = vmatprep.subr.bf16.mxu1 %v11556_v8 }
 0x684   : > { %v4467_v28 = vsub.f32 %v4403_v2, %v4435_v19  ;;  %11559 = vmatpush3.bf16.msra.mxu1 %v11556_v8 }
 0x685   : > { %v4466_v18 = vsub.f32 %v4402_v25, %v4434_v37  ;;  %v4161_v62 = vpop.xlane.xlu1 %4160  ;;  %v15896_v37 = vld [vmem:[%s19019_s2 + $0xc] ss:$0 sm:$0xff]  ;;  %v11560_v25 = vpack.c.bf16 %v10242_v34, %v10241_v55 }
 0x686   : > { %v4499_v36 = vadd.f32 1e-05, %v4467_v28  ;;  %v15865_v33 = vmul.f32 0.025, %v4161_v62  ;;  %v4158_v54 = vpop.xlane.xlu0 %4157 }
 0x687   : > { %v4498_v14 = vadd.f32 1e-05, %v4466_v18  ;;  %v15867_v56 = vmul.f32 0.025, %v4158_v54  ;;  %11561 = vmatprep.subr.bf16.mxu1 %v11560_v25 }
 0x688   : > { %12345 = vrsqrt.f32 %v4499_v36  ;;  %v4437_v63 = vmul.f32 %v15865_v33, %v15865_v33  ;;  %11563 = vmatpush3.bf16.msra.mxu1 %v11560_v25 }
 0x689   : > { %12347 = vrsqrt.f32 %v4498_v14  ;;  %v4289_v60 = vpop.xlane.xlu1 %4288  ;;  %v4436_v52 = vmul.f32 %v15867_v56, %v15867_v56 }
 0x68a   : > { %v12342_v47 = vpop.eup %12341  ;;  %v4405_v16 = vmul.f32 0.025, %v4289_v60  ;;  %v4286_v11 = vpop.xlane.xlu0 %4285  ;;  %v4563_v60 = vsub.f32 %v15527_v45, %v15857_v7 }
 0x68b   : > { %v12344_v22 = vpop.eup %12343  ;;  %v4593_v3 = vmul.f32 %v12342_v47, %v4561_v9  ;;  %v4404_v5 = vmul.f32 0.025, %v4286_v11  ;;  %v4562_v11 = vsub.f32 %v15530_v43, %v15859_v6 }
 0x68c   : > { %v4469_v50 = vsub.f32 %v4405_v16, %v4437_v63  ;;  %v4592_v32 = vmul.f32 %v12344_v22, %v4560_v49  ;;  %v10243_v63 = vld [vmem:[%s19018_s1 + $0xe8] sm:$0xff] }
 0x68d   : > { %v4630_v19 = vmul.f32 %v15874_v39, %v4593_v3  ;;  %v4468_v2 = vsub.f32 %v4404_v5, %v4436_v52  ;;  %v4167_v48 = vpop.xlane.xlu1 %4166  ;;  %11234 = vmatprep.subr.mxu1 %v10243_v63 }
 0x68e   : > { %v4501_v28 = vadd.f32 1e-05, %v4469_v50  ;;  %v15898_v18 = vmul.f32 0.025, %v4167_v48  ;;  %v4164_v62 = vpop.xlane.xlu0 %4163  ;;  %v4629_v36 = vmul.f32 %v15874_v39, %v4592_v32  ;;  %11235 = vmatpush3.msra.mxu1 %v10243_v63 }
 0x68f   : > { %v4500_v54 = vadd.f32 1e-05, %v4468_v2  ;;  %v15901_v14 = vmul.f32 0.025, %v4164_v62  ;;  %v4667_v49 = vadd.f32 %v15896_v37, %v4630_v19 }
 0x690   : > { %12349 = vrsqrt.f32 %v4501_v28  ;;  %v4666_v9 = vadd.f32 %v15896_v37, %v4629_v36  ;;  %v4439_v22 = vmul.f32 %v15898_v18, %v15898_v18  ;;  %v4565_v28 = vsub.f32 %v15551_v13, %v15865_v33 }
 0x691   : > { %12351 = vrsqrt.f32 %v4500_v54  ;;  %v4295_v47 = vpop.xlane.xlu1 %4294  ;;  %v4438_v7 = vmul.f32 %v15901_v14, %v15901_v14 }
 0x692   : > { %v12346_v16 = vpop.eup %12345  ;;  %v4407_v3 = vmul.f32 0.025, %v4295_v47  ;;  %11178 = vmatprep.mubr.msk.f32.mxu0 %vm268_vm0, %v4666_v9  ;;  %v4292_v52 = vpop.xlane.xlu0 %4291  ;;  %v4564_v9 = vsub.f32 %v15554_v15, %v15867_v56 }
 0x693   : > { %v12348_v45 = vpop.eup %12347  ;;  %v4406_v5 = vmul.f32 0.025, %v4292_v52  ;;  %11179 = vmatmul.mubr.msk.f32.vlgmr.msra.gmra.mrb[64].mxu0 %vm268_vm0, %v4667_v49  ;;  %v4595_v38 = vmul.f32 %v12346_v16, %v4563_v60 }
 0x694   : > { %v4471_v57 = vsub.f32 %v4407_v3, %v4439_v22  ;;  %v4594_v55 = vmul.f32 %v12348_v45, %v4562_v11 }
 0x695   : > { %v4470_v43 = vsub.f32 %v4406_v5, %v4438_v7  ;;  %v4173_v6 = vpop.xlane.xlu1 %4172  ;;  %v4632_v50 = vmul.f32 %v15874_v39, %v4595_v38 }
 0x696   : > { %v4503_v32 = vadd.f32 1e-05, %v4471_v57  ;;  %v15919_v8 = vmul.f32 0.025, %v4173_v6  ;;  %v4170_v34 = vpop.xlane.xlu0 %4169  ;;  %v4631_v19 = vmul.f32 %v15874_v39, %v4594_v55 }
 0x697   : > { %v4502_v2 = vadd.f32 1e-05, %v4470_v43  ;;  %v15922_v48 = vmul.f32 0.025, %v4170_v34  ;;  %v4669_v36 = vadd.f32 %v15896_v37, %v4632_v50  ;;  %v4567_v43 = vsub.f32 %v15575_v0, %v15898_v18 }
 0x698   : > { %12353 = vrsqrt.f32 %v4503_v32  ;;  %v4668_v25 = vadd.f32 %v15896_v37, %v4631_v19  ;;  %v4441_v60 = vmul.f32 %v15919_v8, %v15919_v8  ;;  %v4566_v34 = vsub.f32 %v15578_v29, %v15901_v14 }
 0x699   : > { %12355 = vrsqrt.f32 %v4502_v2  ;;  %v4301_v62 = vpop.xlane.xlu1 %4300  ;;  %v4440_v16 = vmul.f32 %v15922_v48, %v15922_v48 }
 0x69a   : > { %v12350_v54 = vpop.eup %12349  ;;  %v4409_v47 = vmul.f32 0.025, %v4301_v62  ;;  %11181 = vmatprep.mubr.msk.f32.mxu0 %vm268_vm0, %v4668_v25  ;;  %v4298_v49 = vpop.xlane.xlu0 %4297 }
 0x69b   : > { %v12352_v63 = vpop.eup %12351  ;;  %v4408_v13 = vmul.f32 0.025, %v4298_v49  ;;  %11182 = vmatmul.mubr.msk.f32.gmra.mrb[66].mxu0 %vm268_vm0, %v4669_v36  ;;  %v4597_v33 = vmul.f32 %v12350_v54, %v4565_v28 }
 0x69c   : > { %v4473_v11 = vsub.f32 %v4409_v47, %v4441_v60  ;;  %v4596_v22 = vmul.f32 %v12352_v63, %v4564_v9 }
 0x69d   : > { %v4472_v3 = vsub.f32 %v4408_v13, %v4440_v16  ;;  %v4179_v52 = vpop.xlane.xlu1 %4178  ;;  %v4634_v15 = vmul.f32 %v15874_v39, %v4597_v33 }
 0x69e   : > { %v4505_v56 = vadd.f32 1e-05, %v4473_v11  ;;  %v15937_v45 = vmul.f32 0.025, %v4179_v52  ;;  %v4176_v7 = vpop.xlane.xlu0 %4175  ;;  %v4633_v5 = vmul.f32 %v15874_v39, %v4596_v22  ;;  %v4569_v11 = vsub.f32 %v15599_v51, %v15919_v8 }
 0x69f   : > { %v4504_v38 = vadd.f32 1e-05, %v4472_v3  ;;  %v15940_v57 = vmul.f32 0.025, %v4176_v7  ;;  %v4671_v50 = vadd.f32 %v15896_v37, %v4634_v15  ;;  %v4568_v15 = vsub.f32 %v15602_v35, %v15922_v48 }
 0x6a0   : > { %12357 = vrsqrt.f32 %v4505_v56  ;;  %v4670_v55 = vadd.f32 %v15896_v37, %v4633_v5  ;;  %v4443_v19 = vmul.f32 %v15937_v45, %v15937_v45 }
 0x6a1   : > { %12359 = vrsqrt.f32 %v4504_v38  ;;  %v4307_v6 = vpop.xlane.xlu1 %4306  ;;  %v4442_v62 = vmul.f32 %v15940_v57, %v15940_v57 }
 0x6a2   : > { %v12354_v32 = vpop.eup %12353  ;;  %v4411_v2 = vmul.f32 0.025, %v4307_v6  ;;  %11184 = vmatprep.mubr.msk.f32.mxu0 %vm268_vm0, %v4670_v55  ;;  %v4304_v25 = vpop.xlane.xlu0 %4303 }
 0x6a3   : > { %v12356_v28 = vpop.eup %12355  ;;  %v4410_v0 = vmul.f32 0.025, %v4304_v25  ;;  %11185 = vmatmul.mubr.msk.f32.gmra.mrb[68].mxu0 %vm268_vm0, %v4671_v50  ;;  %v4599_v18 = vmul.f32 %v12354_v32, %v4567_v43 }
 0x6a4   : > { %v4475_v36 = vsub.f32 %v4411_v2, %v4443_v19  ;;  %v4598_v54 = vmul.f32 %v12356_v28, %v4566_v34 }
 0x6a5   : > { %v4474_v9 = vsub.f32 %v4410_v0, %v4442_v62  ;;  %v4185_v60 = vpop.xlane.xlu1 %4184  ;;  %v4636_v29 = vmul.f32 %v15874_v39, %v4599_v18  ;;  %v4571_v0 = vsub.f32 %v15623_v61, %v15937_v45 }
 0x6a6   : > { %v4507_v14 = vadd.f32 1e-05, %v4475_v36  ;;  %v15955_v47 = vmul.f32 0.025, %v4185_v60  ;;  %v4182_v49 = vpop.xlane.xlu0 %4181  ;;  %v4635_v63 = vmul.f32 %v15874_v39, %v4598_v54 }
 0x6a7   : > { %v4506_v16 = vadd.f32 1e-05, %v4474_v9  ;;  %v15958_v13 = vmul.f32 0.025, %v4182_v49  ;;  %v4673_v3 = vadd.f32 %v15896_v37, %v4636_v29  ;;  %v4570_v9 = vsub.f32 %v15629_v26, %v15940_v57 }
 0x6a8   : > { %12361 = vrsqrt.f32 %v4507_v14  ;;  %v4672_v33 = vadd.f32 %v15896_v37, %v4635_v63  ;;  %v4445_v56 = vmul.f32 %v15955_v47, %v15955_v47 }
 0x6a9   : > { %12363 = vrsqrt.f32 %v4506_v16  ;;  %v4313_v22 = vpop.xlane.xlu1 %4312  ;;  %v4444_v55 = vmul.f32 %v15958_v13, %v15958_v13 }
 0x6aa   : > { %v12358_v52 = vpop.eup %12357  ;;  %v4413_v7 = vmul.f32 0.025, %v4313_v22  ;;  %11187 = vmatprep.mubr.msk.f32.mxu0 %vm268_vm0, %v4672_v33  ;;  %v4310_v5 = vpop.xlane.xlu0 %4309 }
 0x6ab   : > { %v12360_v38 = vpop.eup %12359  ;;  %v4412_v51 = vmul.f32 0.025, %v4310_v5  ;;  %11188 = vmatmul.mubr.msk.f32.gmra.mrb[70].mxu0 %vm268_vm0, %v4673_v3  ;;  %v4601_v8 = vmul.f32 %v12358_v52, %v4569_v11 }
 0x6ac   : > { %v4477_v43 = vsub.f32 %v4413_v7, %v4445_v56  ;;  %v4600_v6 = vmul.f32 %v12360_v38, %v4568_v15  ;;  %v4573_v38 = vsub.f32 %v15650_v30, %v15955_v47 }
 0x6ad   : > { %v4476_v50 = vsub.f32 %v4412_v51, %v4444_v55  ;;  %v4191_v32 = vpop.xlane.xlu1 %4190  ;;  %v4638_v35 = vmul.f32 %v15874_v39, %v4601_v8 }
 0x6ae   : > { %v4509_v48 = vadd.f32 1e-05, %v4477_v43  ;;  %v15973_v34 = vmul.f32 0.025, %v4191_v32  ;;  %v4188_v19 = vpop.xlane.xlu0 %4187  ;;  %v4637_v2 = vmul.f32 %v15874_v39, %v4600_v6  ;;  %v4572_v43 = vsub.f32 %v15653_v53, %v15958_v13 }
 0x6af   : > { %v4508_v25 = vadd.f32 1e-05, %v4476_v50  ;;  %v15976_v28 = vmul.f32 0.025, %v4188_v19  ;;  %v4675_v36 = vadd.f32 %v15896_v37, %v4638_v35 }
 0x6b0   : > { %12365 = vrsqrt.f32 %v4509_v48  ;;  %v4674_v62 = vadd.f32 %v15896_v37, %v4637_v2  ;;  %v4447_v60 = vmul.f32 %v15973_v34, %v15973_v34 }
 0x6b1   : > { %12367 = vrsqrt.f32 %v4508_v25  ;;  %v4319_v18 = vpop.xlane.xlu1 %4318  ;;  %v4446_v63 = vmul.f32 %v15976_v28, %v15976_v28 }
 0x6b2   : > { %v12362_v54 = vpop.eup %12361  ;;  %v4415_v29 = vmul.f32 0.025, %v4319_v18  ;;  %11190 = vmatprep.mubr.msk.f32.mxu0 %vm268_vm0, %v4674_v62  ;;  %v4316_v14 = vpop.xlane.xlu0 %4315 }
 0x6b3   : > { %v12364_v49 = vpop.eup %12363  ;;  %v4414_v61 = vmul.f32 0.025, %v4316_v14  ;;  %11191 = vmatmul.mubr.msk.f32.gmra.mrb[72].mxu0 %vm268_vm0, %v4675_v36  ;;  %v4603_v45 = vmul.f32 %v12362_v54, %v4571_v0 }
 0x6b4   : > { %v4479_v16 = vsub.f32 %v4415_v29, %v4447_v60  ;;  %v4602_v33 = vmul.f32 %v12364_v49, %v4570_v9  ;;  %v4575_v29 = vsub.f32 %v15674_v46, %v15973_v34 }
 0x6b5   : > { %v4478_v11 = vsub.f32 %v4414_v61, %v4446_v63  ;;  %v4197_v22 = vpop.xlane.xlu1 %4196  ;;  %v4640_v26 = vmul.f32 %v15874_v39, %v4603_v45  ;;  %v4574_v61 = vsub.f32 %v15677_v21, %v15976_v28 }
 0x6b6   : > { %v4511_v57 = vadd.f32 1e-05, %v4479_v16  ;;  %v15991_v3 = vmul.f32 0.025, %v4197_v22  ;;  %v4194_v52 = vpop.xlane.xlu0 %4193  ;;  %v4639_v15 = vmul.f32 %v15874_v39, %v4602_v33 }
 0x6b7   : > { %v4510_v56 = vadd.f32 1e-05, %v4478_v11  ;;  %v15994_v7 = vmul.f32 0.025, %v4194_v52  ;;  %v4677_v51 = vadd.f32 %v15896_v37, %v4640_v26 }
 0x6b8   : > { %12369 = vrsqrt.f32 %v4511_v57  ;;  %v4676_v5 = vadd.f32 %v15896_v37, %v4639_v15  ;;  %v4449_v6 = vmul.f32 %v15991_v3, %v15991_v3 }
 0x6b9   : > { %12371 = vrsqrt.f32 %v4510_v56  ;;  %v4325_v55 = vpop.xlane.xlu1 %4324  ;;  %v4448_v48 = vmul.f32 %v15994_v7, %v15994_v7 }
 0x6ba   : > { %v12366_v8 = vpop.eup %12365  ;;  %v4417_v50 = vmul.f32 0.025, %v4325_v55  ;;  %11193 = vmatprep.mubr.msk.f32.mxu0 %vm268_vm0, %v4676_v5  ;;  %v4322_v32 = vpop.xlane.xlu0 %4321 }
 0x6bb   : > { %v12368_v35 = vpop.eup %12367  ;;  %v4416_v30 = vmul.f32 0.025, %v4322_v32  ;;  %11194 = vmatmul.mubr.msk.f32.gmra.mrb[74].mxu0 %vm268_vm0, %v4677_v51  ;;  %v4605_v47 = vmul.f32 %v12366_v8, %v4573_v38 }
 0x6bc   : > { %v4481_v19 = vsub.f32 %v4417_v50, %v4449_v6  ;;  %v4604_v2 = vmul.f32 %v12368_v35, %v4572_v43  ;;  %v4577_v43 = vsub.f32 %v15698_v40, %v15991_v3  ;;  %v4576_v35 = vsub.f32 %v15701_v23, %v15994_v7 }
 0x6bd   : > { %v4480_v25 = vsub.f32 %v4416_v30, %v4448_v48  ;;  %v4203_v62 = vpop.xlane.xlu1 %4202  ;;  %v4642_v53 = vmul.f32 %v15874_v39, %v4605_v47 }
 0x6be   : > { %v4513_v13 = vadd.f32 1e-05, %v4481_v19  ;;  %v16009_v0 = vmul.f32 0.025, %v4203_v62  ;;  %v4200_v18 = vpop.xlane.xlu0 %4199  ;;  %v4641_v36 = vmul.f32 %v15874_v39, %v4604_v2 }
 0x6bf   : > { %v4512_v54 = vadd.f32 1e-05, %v4480_v25  ;;  %v16012_v9 = vmul.f32 0.025, %v4200_v18  ;;  %v4679_v49 = vadd.f32 %v15896_v37, %v4642_v53 }
 0x6c0   : > { %12373 = vrsqrt.f32 %v4513_v13  ;;  %v4678_v60 = vadd.f32 %v15896_v37, %v4641_v36  ;;  %v4451_v45 = vmul.f32 %v16009_v0, %v16009_v0 }
 0x6c1   : > { %12375 = vrsqrt.f32 %v4512_v54  ;;  %v4331_v14 = vpop.xlane.xlu1 %4330  ;;  %v4450_v22 = vmul.f32 %v16012_v9, %v16012_v9 }
 0x6c2   : > { %v12370_v63 = vpop.eup %12369  ;;  %v4419_v16 = vmul.f32 0.025, %v4331_v14  ;;  %11196 = vmatprep.mubr.msk.f32.mxu0 %vm268_vm0, %v4678_v60  ;;  %v4328_v33 = vpop.xlane.xlu0 %4327 }
 0x6c3   : > { %v12372_v11 = vpop.eup %12371  ;;  %v4418_v46 = vmul.f32 0.025, %v4328_v33  ;;  %11197 = vmatmul.mubr.msk.f32.gmra.mrb[76].mxu0 %vm268_vm0, %v4679_v49  ;;  %v4607_v34 = vmul.f32 %v12370_v63, %v4575_v29  ;;  %v4579_v49 = vsub.f32 %v15722_v20, %v16009_v0 }
 0x6c4   : > { %v4483_v26 = vsub.f32 %v4419_v16, %v4451_v45  ;;  %v4606_v57 = vmul.f32 %v12372_v11, %v4574_v61  ;;  %v4578_v16 = vsub.f32 %v15725_v31, %v16012_v9 }
 0x6c5   : > { %v4482_v52 = vsub.f32 %v4418_v46, %v4450_v22  ;;  %v4209_v15 = vpop.xlane.xlu1 %4208  ;;  %v4644_v21 = vmul.f32 %v15874_v39, %v4607_v34 }
 0x6c6   : > { %v4515_v28 = vadd.f32 1e-05, %v4483_v26  ;;  %v16027_v56 = vmul.f32 0.025, %v4209_v15  ;;  %v4206_v5 = vpop.xlane.xlu0 %4205  ;;  %v4643_v38 = vmul.f32 %v15874_v39, %v4606_v57 }
 0x6c7   : > { %v4514_v55 = vadd.f32 1e-05, %v4482_v52  ;;  %v16030_v51 = vmul.f32 0.025, %v4206_v5  ;;  %v4681_v50 = vadd.f32 %v15896_v37, %v4644_v21 }
 0x6c8   : > { %12377 = vrsqrt.f32 %v4515_v28  ;;  %v4680_v8 = vadd.f32 %v15896_v37, %v4643_v38  ;;  %v4453_v48 = vmul.f32 %v16027_v56, %v16027_v56 }
 0x6c9   : > { %12379 = vrsqrt.f32 %v4514_v55  ;;  %v4337_v6 = vpop.xlane.xlu1 %4336  ;;  %v4452_v2 = vmul.f32 %v16030_v51, %v16030_v51 }
 0x6ca   : > { %v12374_v32 = vpop.eup %12373  ;;  %v4421_v30 = vmul.f32 0.025, %v4337_v6  ;;  %11199 = vmatprep.mubr.msk.f32.mxu0 %vm268_vm0, %v4680_v8  ;;  %v4334_v47 = vpop.xlane.xlu0 %4333 }
 0x6cb   : > { %v12376_v19 = vpop.eup %12375  ;;  %v4420_v40 = vmul.f32 0.025, %v4334_v47  ;;  %11200 = vmatmul.mubr.msk.f32.gmra.mrb[78].mxu0 %vm268_vm0, %v4681_v50  ;;  %v4609_v3 = vmul.f32 %v12374_v32, %v4577_v43  ;;  %v4581_v43 = vsub.f32 %v15746_v1, %v16027_v56 }
 0x6cc   : > { %v4485_v25 = vsub.f32 %v4421_v30, %v4453_v48  ;;  %v4608_v62 = vmul.f32 %v12376_v19, %v4576_v35  ;;  %v4580_v35 = vsub.f32 %v15749_v4, %v16030_v51 }
 0x6cd   : > { %v4484_v53 = vsub.f32 %v4420_v40, %v4452_v2  ;;  %v4215_v13 = vpop.xlane.xlu1 %4214  ;;  %v4646_v23 = vmul.f32 %v15874_v39, %v4609_v3 }
 0x6ce   : > { %v4517_v7 = vadd.f32 1e-05, %v4485_v25  ;;  %v16045_v18 = vmul.f32 0.025, %v4215_v13  ;;  %v4212_v36 = vpop.xlane.xlu0 %4211  ;;  %v4645_v54 = vmul.f32 %v15874_v39, %v4608_v62 }
 0x6cf   : > { %v4516_v60 = vadd.f32 1e-05, %v4484_v53  ;;  %v16048_v29 = vmul.f32 0.025, %v4212_v36  ;;  %v4683_v61 = vadd.f32 %v15896_v37, %v4646_v23 }
 0x6d0   : > { %12381 = vrsqrt.f32 %v4517_v7  ;;  %v4682_v14 = vadd.f32 %v15896_v37, %v4645_v54  ;;  %v4455_v33 = vmul.f32 %v16045_v18, %v16045_v18 }
 0x6d1   : > { %12383 = vrsqrt.f32 %v4516_v60  ;;  %v4343_v63 = vpop.xlane.xlu1 %4342  ;;  %v4454_v34 = vmul.f32 %v16048_v29, %v16048_v29  ;;  %v4583_v60 = vsub.f32 %v15770_v24, %v16045_v18 }
 0x6d2   : > { %v12378_v45 = vpop.eup %12377  ;;  %v4423_v11 = vmul.f32 0.025, %v4343_v63  ;;  %11202 = vmatprep.mubr.msk.f32.mxu0 %vm268_vm0, %v4682_v14  ;;  %v4340_v22 = vpop.xlane.xlu0 %4339 }
 0x6d3   : > { %v12380_v46 = vpop.eup %12379  ;;  %v4422_v20 = vmul.f32 0.025, %v4340_v22  ;;  %11203 = vmatmul.mubr.msk.f32.gmra.mrb[80].mxu0 %vm268_vm0, %v4683_v61  ;;  %v4611_v0 = vmul.f32 %v12378_v45, %v4579_v49  ;;  %v4582_v61 = vsub.f32 %v15773_v58, %v16048_v29 }
 0x6d4   : > { %v4487_v26 = vsub.f32 %v4423_v11, %v4455_v33  ;;  %v4610_v57 = vmul.f32 %v12380_v46, %v4578_v16 }
 0x6d5   : > { %v4486_v52 = vsub.f32 %v4422_v20, %v4454_v34  ;;  %v4221_v15 = vpop.xlane.xlu1 %4220  ;;  %v4648_v31 = vmul.f32 %v15874_v39, %v4611_v0 }
 0x6d6   : > { %v4519_v9 = vadd.f32 1e-05, %v4487_v26  ;;  %v16063_v21 = vmul.f32 0.025, %v4221_v15  ;;  %v4218_v28 = vpop.xlane.xlu0 %4217  ;;  %v4647_v5 = vmul.f32 %v15874_v39, %v4610_v57 }
 0x6d7   : > { %v4518_v38 = vadd.f32 1e-05, %v4486_v52  ;;  %v16066_v55 = vmul.f32 0.025, %v4218_v28  ;;  %v4685_v50 = vadd.f32 %v15896_v37, %v4648_v31 }
 0x6d8   : > { %12385 = vrsqrt.f32 %v4519_v9  ;;  %v4684_v8 = vadd.f32 %v15896_v37, %v4647_v5  ;;  %v4457_v48 = vmul.f32 %v16063_v21, %v16063_v21  ;;  %v4585_v28 = vsub.f32 %v15794_v42, %v16063_v21 }
 0x6d9   : > { %12387 = vrsqrt.f32 %v4518_v38  ;;  %v4349_v6 = vpop.xlane.xlu1 %4348  ;;  %v4456_v2 = vmul.f32 %v16066_v55, %v16066_v55 }
 0x6da   : > { %v12382_v32 = vpop.eup %12381  ;;  %v4425_v30 = vmul.f32 0.025, %v4349_v6  ;;  %11205 = vmatprep.mubr.msk.f32.mxu0 %vm268_vm0, %v4684_v8  ;;  %v4346_v47 = vpop.xlane.xlu0 %4345 }
 0x6db   : > { %v12384_v19 = vpop.eup %12383  ;;  %v4424_v1 = vmul.f32 0.025, %v4346_v47  ;;  %11206 = vmatmul.mubr.msk.f32.gmra.mrb[82].mxu0 %vm268_vm0, %v4685_v50  ;;  %v4613_v56 = vmul.f32 %v12382_v32, %v4581_v43  ;;  %v4584_v43 = vsub.f32 %v15797_v17, %v16066_v55 }
 0x6dc   : > { %v4489_v40 = vsub.f32 %v4425_v30, %v4457_v48  ;;  %v4612_v3 = vmul.f32 %v12384_v19, %v4580_v35 }
 0x6dd   : > { %v4488_v25 = vsub.f32 %v4424_v1, %v4456_v2  ;;  %v4227_v62 = vpop.xlane.xlu1 %4226  ;;  %v4650_v4 = vmul.f32 %v15874_v39, %v4613_v56 }
 0x6de   : > { %v4521_v51 = vadd.f32 1e-05, %v4489_v40  ;;  %v16081_v53 = vmul.f32 0.025, %v4227_v62  ;;  %v4224_v13 = vpop.xlane.xlu0 %4223  ;;  %v4649_v23 = vmul.f32 %v15874_v39, %v4612_v3 }
 0x6df   : > { %v4520_v7 = vadd.f32 1e-05, %v4488_v25  ;;  %v16084_v36 = vmul.f32 0.025, %v4224_v13  ;;  %v4687_v49 = vadd.f32 %v15896_v37, %v4650_v4 }
 0x6e0   : > { %12389 = vrsqrt.f32 %v4521_v51  ;;  %v4686_v54 = vadd.f32 %v15896_v37, %v4649_v23  ;;  %v4459_v45 = vmul.f32 %v16081_v53, %v16081_v53  ;;  %v4587_v4 = vsub.f32 %v15810_v41, %v16081_v53 }
 0x6e1   : > { %12391 = vrsqrt.f32 %v4520_v7  ;;  %v4355_v14 = vpop.xlane.xlu1 %4354  ;;  %v4458_v22 = vmul.f32 %v16084_v36, %v16084_v36  ;;  %v4586_v7 = vsub.f32 %v15813_v10, %v16084_v36 }
 0x6e2   : > { %v12386_v63 = vpop.eup %12385  ;;  %v4427_v16 = vmul.f32 0.025, %v4355_v14  ;;  %11208 = vmatprep.mubr.msk.f32.mxu0 %vm268_vm0, %v4686_v54  ;;  %v4352_v33 = vpop.xlane.xlu0 %4351 }
 0x6e3   : > { %v12388_v11 = vpop.eup %12387  ;;  %v4426_v24 = vmul.f32 0.025, %v4352_v33  ;;  %11209 = vmatmul.mubr.msk.f32.gmra.mrb[84].mxu0 %vm268_vm0, %v4687_v49  ;;  %v4615_v18 = vmul.f32 %v12386_v63, %v4583_v60 }
 0x6e4   : > { %v4491_v46 = vsub.f32 %v4427_v16, %v4459_v45  ;;  %v4614_v34 = vmul.f32 %v12388_v11, %v4582_v61 }
 0x6e5   : > { %v4490_v20 = vsub.f32 %v4426_v24, %v4458_v22  ;;  %v4233_v0 = vpop.xlane.xlu1 %4232  ;;  %v4652_v58 = vmul.f32 %v15874_v39, %v4615_v18 }
 0x6e6   : > { %v4523_v29 = vadd.f32 1e-05, %v4491_v46  ;;  %v16099_v26 = vmul.f32 0.025, %v4233_v0  ;;  %v4230_v57 = vpop.xlane.xlu0 %4229  ;;  %v4651_v52 = vmul.f32 %v15874_v39, %v4614_v34 }
 0x6e7   : > { %v4522_v15 = vadd.f32 1e-05, %v4490_v20  ;;  %v16102_v31 = vmul.f32 0.025, %v4230_v57  ;;  %v4689_v38 = vadd.f32 %v15896_v37, %v4652_v58 }
 0x6e8   : > { %12393 = vrsqrt.f32 %v4523_v29  ;;  %v4688_v9 = vadd.f32 %v15896_v37, %v4651_v52  ;;  %v4461_v6 = vmul.f32 %v16099_v26, %v16099_v26  ;;  %v4589_v24 = vsub.f32 %v15826_v12, %v16099_v26 }
 0x6e9   : > { %12395 = vrsqrt.f32 %v4522_v15  ;;  %v4361_v5 = vpop.xlane.xlu1 %4360  ;;  %v4460_v48 = vmul.f32 %v16102_v31, %v16102_v31  ;;  %v4588_v34 = vsub.f32 %v15829_v59, %v16102_v31 }
 0x6ea   : > { %v12390_v8 = vpop.eup %12389  ;;  %v4429_v50 = vmul.f32 0.025, %v4361_v5  ;;  %11211 = vmatprep.mubr.msk.f32.mxu0 %vm268_vm0, %v4688_v9  ;;  %v4358_v32 = vpop.xlane.xlu0 %4357 }
 0x6eb   : > { %v12392_v35 = vpop.eup %12391  ;;  %v4428_v42 = vmul.f32 0.025, %v4358_v32  ;;  %11212 = vmatmul.mubr.msk.f32.gmra.mrb[86].mxu0 %vm268_vm0, %v4689_v38  ;;  %v4617_v21 = vmul.f32 %v12390_v8, %v4585_v28 }
 0x6ec   : > { %v4493_v30 = vsub.f32 %v4429_v50, %v4461_v6  ;;  %v4616_v47 = vmul.f32 %v12392_v35, %v4584_v43 }
 0x6ed   : > { %v4492_v19 = vsub.f32 %v4428_v42, %v4460_v48  ;;  %v4239_v2 = vpop.xlane.xlu1 %4238  ;;  %v4654_v17 = vmul.f32 %v15874_v39, %v4617_v21 }
 0x6ee   : > { %v4525_v55 = vadd.f32 1e-05, %v4493_v30  ;;  %v4399_v1 = vmul.f32 0.025, %v4239_v2  ;;  %v4236_v56 = vpop.xlane.xlu0 %4235  ;;  %v4653_v40 = vmul.f32 %v15874_v39, %v4616_v47 }
 0x6ef   : > { %v4524_v3 = vadd.f32 1e-05, %v4492_v19  ;;  %v4398_v25 = vmul.f32 0.025, %v4236_v56  ;;  %v4691_v13 = vadd.f32 %v15896_v37, %v4654_v17 }
 0x6f0   : > { %12397 = vrsqrt.f32 %v4525_v55  ;;  %v4690_v62 = vadd.f32 %v15896_v37, %v4653_v40  ;;  %v4463_v54 = vmul.f32 %v4399_v1, %v4399_v1  ;;  %v4591_v26 = vsub.f32 %v15842_v44, %v4399_v1 }
 0x6f1   : > { %12399 = vrsqrt.f32 %v4524_v3  ;;  %v4367_v51 = vpop.xlane.xlu1 %4366  ;;  %v4462_v63 = vmul.f32 %v4398_v25, %v4398_v25  ;;  %v4590_v59 = vsub.f32 %v15845_v27, %v4398_v25  ;;  %v16153_v27 = vld [vmem:[%s19019_s2 + $0x4] ss:$0 sm:$0xff] }
 0x6f2   : > { %v12394_v23 = vpop.eup %12393  ;;  %v4431_v60 = vmul.f32 0.025, %v4367_v51  ;;  %11214 = vmatprep.mubr.msk.f32.mxu0 %vm268_vm0, %v4690_v62  ;;  %v4364_v14 = vpop.xlane.xlu0 %4363 }
 0x6f3   : > { %v12396_v49 = vpop.eup %12395  ;;  %v4430_v61 = vmul.f32 0.025, %v4364_v14  ;;  %11215 = vmatmul.mubr.msk.f32.gmra.mrb[88].mxu0 %vm268_vm0, %v4691_v13  ;;  %v4619_v45 = vmul.f32 %v12394_v23, %v4587_v4 }
 0x6f4   : > { %v4495_v41 = vsub.f32 %v4431_v60, %v4463_v54  ;;  %v4618_v53 = vmul.f32 %v12396_v49, %v4586_v7 }
 0x6f5   : > { %v4494_v16 = vsub.f32 %v4430_v61, %v4462_v63  ;;  %v4656_v33 = vmul.f32 %v15874_v39, %v4619_v45 }
 0x6f6   : > { %v4527_v11 = vadd.f32 1e-05, %v4495_v41  ;;  %v4655_v22 = vmul.f32 %v15874_v39, %v4618_v53 }
 0x6f7   : > { %v4526_v10 = vadd.f32 1e-05, %v4494_v16  ;;  %v4693_v18 = vadd.f32 %v15896_v37, %v4656_v33 }
 0x6f8   : > { %12401 = vrsqrt.f32 %v4527_v11  ;;  %v4692_v36 = vadd.f32 %v15896_v37, %v4655_v22 }
 0x6f9   : > { %12403 = vrsqrt.f32 %v4526_v10 }
 0x6fa   : > { %v12398_v46 = vpop.eup %12397  ;;  %11217 = vmatprep.mubr.msk.f32.mxu0 %vm268_vm0, %v4692_v36 }
 0x6fb   : > { %v12400_v20 = vpop.eup %12399  ;;  %11218 = vmatmul.mubr.msk.f32.gmra.mrb[90].mxu0 %vm268_vm0, %v4693_v18  ;;  %v4621_v0 = vmul.f32 %v12398_v46, %v4589_v24 }
 0x6fc   : > { %v4620_v58 = vmul.f32 %v12400_v20, %v4588_v34 }
 0x6fd   : > { %v4658_v29 = vmul.f32 %v15874_v39, %v4621_v0 }
 0x6fe   : > { %v4657_v57 = vmul.f32 %v15874_v39, %v4620_v58 }
 0x6ff   : > { %v4695_v52 = vadd.f32 %v15896_v37, %v4658_v29 }
 0x700   : > { %v4694_v12 = vadd.f32 %v15896_v37, %v4657_v57 }
 0x702   : > { %v12402_v15 = vpop.eup %12401  ;;  %11220 = vmatprep.mubr.msk.f32.mxu0 %vm268_vm0, %v4694_v12 }
 0x703   : > { %v12404_v31 = vpop.eup %12403  ;;  %11221 = vmatmul.mubr.msk.f32.gmra.mrb[92].mxu0 %vm268_vm0, %v4695_v52  ;;  %v4623_v9 = vmul.f32 %v12402_v15, %v4591_v26 }
 0x704   : > { %v4622_v28 = vmul.f32 %v12404_v31, %v4590_v59 }
 0x705   : > { %v4660_v5 = vmul.f32 %v15874_v39, %v4623_v9 }
 0x706   : > { %v4659_v38 = vmul.f32 %v15874_v39, %v4622_v28 }
 0x707   : > { %v4697_v44 = vadd.f32 %v15896_v37, %v4660_v5 }
 0x708   : > { %v4696_v8 = vadd.f32 %v15896_v37, %v4659_v38 }
 0x70a   : > { %11223 = vmatprep.mubr.msk.f32.mxu0 %vm268_vm0, %v4696_v8 }
 0x70b   : > { %11224 = vmatmul.mubr.msk.f32.gmra.mrb[94].mxu0 %vm268_vm0, %v4697_v44 }
 0x766   : > { %v11180_v43 = vpop.f32.mrb[64].mxu0 }
 0x767   : > { %v4871_v6 = vpop.f32.mrb[65].mxu0  ;;  %v4877_v32 = vadd.f32 %v11180_v43, %v16153_v27 }
 0x768   : > { %v4872_v50 = vadd.f32 %v16153_v27, %v4871_v6  ;;  %v16222_v6 = vld [vmem:[%s19019_s2 + $0xd] ss:$0 sm:$0xff] }
 0x76a   : > { %11236 = vmatprep.mubr.msk.f32.mxu1 %vm268_vm0, %v4872_v50 }
 0x76b   : > { %11237 = vmatmul.mubr.msk.f32.vlgmr.msra.gmra.mrb[64].mxu1 %vm268_vm0, %v4877_v32 }
 0x76e   : > { %v11183_v39 = vpop.f32.mrb[66].mxu0 }
 0x76f   : > { %v4881_v37 = vpop.f32.mrb[67].mxu0  ;;  %v4887_v48 = vadd.f32 %v11183_v39, %v16153_v27 }
 0x770   : > { %v4882_v35 = vadd.f32 %v16153_v27, %v4881_v37 }
 0x772   : > { %11239 = vmatprep.mubr.msk.f32.mxu1 %vm268_vm0, %v4882_v35 }
 0x773   : > { %11240 = vmatmul.mubr.msk.f32.gmra.mrb[66].mxu1 %vm268_vm0, %v4887_v48 }
 0x776   : > { %v11186_v42 = vpop.f32.mrb[68].mxu0 }
 0x777   : > { %v4891_v21 = vpop.f32.mrb[69].mxu0  ;;  %v4897_v47 = vadd.f32 %v11186_v42, %v16153_v27 }
 0x778   : > { %v4892_v30 = vadd.f32 %v16153_v27, %v4891_v21 }
 0x77a   : > { %11242 = vmatprep.mubr.msk.f32.mxu1 %vm268_vm0, %v4892_v30 }
 0x77b   : > { %11243 = vmatmul.mubr.msk.f32.gmra.mrb[68].mxu1 %vm268_vm0, %v4897_v47 }
 0x77e   : > { %v11189_v19 = vpop.f32.mrb[70].mxu0 }
 0x77f   : > { %v4901_v2 = vpop.f32.mrb[71].mxu0  ;;  %v4907_v55 = vadd.f32 %v11189_v19, %v16153_v27 }
 0x780   : > { %v4902_v17 = vadd.f32 %v16153_v27, %v4901_v2 }
 0x782   : > { %11245 = vmatprep.mubr.msk.f32.mxu1 %vm268_vm0, %v4902_v17 }
 0x783   : > { %11246 = vmatmul.mubr.msk.f32.gmra.mrb[70].mxu1 %vm268_vm0, %v4907_v55 }
 0x786   : > { %v11192_v1 = vpop.f32.mrb[72].mxu0 }
 0x787   : > { %v4911_v56 = vpop.f32.mrb[73].mxu0  ;;  %v4917_v3 = vadd.f32 %v11192_v1, %v16153_v27 }
 0x788   : > { %v4912_v40 = vadd.f32 %v16153_v27, %v4911_v56 }
 0x78a   : > { %11248 = vmatprep.mubr.msk.f32.mxu1 %vm268_vm0, %v4912_v40 }
 0x78b   : > { %11249 = vmatmul.mubr.msk.f32.gmra.mrb[72].mxu1 %vm268_vm0, %v4917_v3 }
 0x78e   : > { %v11195_v25 = vpop.f32.mrb[74].mxu0 }
 0x78f   : > { %v4921_v62 = vpop.f32.mrb[75].mxu0  ;;  %v4927_v51 = vadd.f32 %v11195_v25, %v16153_v27 }
 0x790   : > { %v4922_v4 = vadd.f32 %v16153_v27, %v4921_v62 }
 0x792   : > { %11251 = vmatprep.mubr.msk.f32.mxu1 %vm268_vm0, %v4922_v4 }
 0x793   : > { %11252 = vmatmul.mubr.msk.f32.gmra.mrb[74].mxu1 %vm268_vm0, %v4927_v51  ;;  %v10311_v51 = vld [vmem:[%s19018_s1 + $0xf0] sm:$0xff] }
 0x796   : > { %v11198_v13 = vpop.f32.mrb[76].mxu0 }
 0x797   : > { %v4931_v23 = vpop.f32.mrb[77].mxu0  ;;  %v4937_v54 = vadd.f32 %v11198_v13, %v16153_v27  ;;  %v10312_v13 = vld [vmem:[%s19018_s1 + $0xf8] sm:$0xff] }
 0x798   : > { %v4932_v7 = vadd.f32 %v16153_v27, %v4931_v23 }
 0x79a   : > { %11254 = vmatprep.mubr.msk.f32.mxu1 %vm268_vm0, %v4932_v7  ;;  %v11564_v7 = vpack.c.bf16 %v10312_v13, %v10311_v51 }
 0x79b   : > { %11255 = vmatmul.mubr.msk.f32.gmra.mrb[76].mxu1 %vm268_vm0, %v4937_v54 }
 0x79c   : > { %11565 = vmatprep.subr.bf16.mxu0 %v11564_v7 }
 0x79d   : > { %11567 = vmatpush3.bf16.msra.mxu0 %v11564_v7 }
 0x79e   : > { %v11201_v60 = vpop.f32.mrb[78].mxu0 }
 0x79f   : > { %v4941_v14 = vpop.f32.mrb[79].mxu0  ;;  %v4947_v63 = vadd.f32 %v11201_v60, %v16153_v27 }
 0x7a0   : > { %v4942_v49 = vadd.f32 %v16153_v27, %v4941_v14 }
 0x7a2   : > { %11257 = vmatprep.mubr.msk.f32.mxu1 %vm268_vm0, %v4942_v49 }
 0x7a3   : > { %11258 = vmatmul.mubr.msk.f32.gmra.mrb[78].mxu1 %vm268_vm0, %v4947_v63 }
 0x7a6   : > { %v11204_v61 = vpop.f32.mrb[80].mxu0 }
 0x7a7   : > { %v4951_v45 = vpop.f32.mrb[81].mxu0  ;;  %v4957_v53 = vadd.f32 %v11204_v61, %v16153_v27 }
 0x7a8   : > { %v4952_v41 = vadd.f32 %v16153_v27, %v4951_v45 }
 0x7aa   : > { %11260 = vmatprep.mubr.msk.f32.mxu1 %vm268_vm0, %v4952_v41 }
 0x7ab   : > { %11261 = vmatmul.mubr.msk.f32.gmra.mrb[80].mxu1 %vm268_vm0, %v4957_v53 }
 0x7ae   : > { %v11207_v16 = vpop.f32.mrb[82].mxu0 }
 0x7af   : > { %v4961_v33 = vpop.f32.mrb[83].mxu0  ;;  %v4967_v22 = vadd.f32 %v11207_v16, %v16153_v27 }
 0x7b0   : > { %v4962_v11 = vadd.f32 %v16153_v27, %v4961_v33 }
 0x7b2   : > { %11263 = vmatprep.mubr.msk.f32.mxu1 %vm268_vm0, %v4962_v11 }
 0x7b3   : > { %11264 = vmatmul.mubr.msk.f32.gmra.mrb[82].mxu1 %vm268_vm0, %v4967_v22  ;;  %v10313_v22 = vld [vmem:[%s19018_s1 + $0x100] sm:$0xff] }
 0x7b6   : > { %v11210_v10 = vpop.f32.mrb[84].mxu0 }
 0x7b7   : > { %v4971_v36 = vpop.f32.mrb[85].mxu0  ;;  %v4977_v18 = vadd.f32 %v11210_v10, %v16153_v27  ;;  %v10314_v10 = vld [vmem:[%s19018_s1 + $0x108] sm:$0xff] }
 0x7b8   : > { %v4972_v24 = vadd.f32 %v16153_v27, %v4971_v36 }
 0x7ba   : > { %11266 = vmatprep.mubr.msk.f32.mxu1 %vm268_vm0, %v4972_v24  ;;  %v11568_v24 = vpack.c.bf16 %v10314_v10, %v10313_v22 }
 0x7bb   : > { %11267 = vmatmul.mubr.msk.f32.gmra.mrb[84].mxu1 %vm268_vm0, %v4977_v18 }
 0x7bc   : > { %11569 = vmatprep.subr.bf16.mxu0 %v11568_v24 }
 0x7bd   : > { %11571 = vmatpush3.bf16.msra.mxu0 %v11568_v24 }
 0x7be   : > { %v11213_v46 = vpop.f32.mrb[86].mxu0 }
 0x7bf   : > { %v4981_v34 = vpop.f32.mrb[87].mxu0  ;;  %v4987_v0 = vadd.f32 %v11213_v46, %v16153_v27 }
 0x7c0   : > { %v4982_v20 = vadd.f32 %v16153_v27, %v4981_v34 }
 0x7c2   : > { %11269 = vmatprep.mubr.msk.f32.mxu1 %vm268_vm0, %v4982_v20 }
 0x7c3   : > { %11270 = vmatmul.mubr.msk.f32.gmra.mrb[86].mxu1 %vm268_vm0, %v4987_v0 }
 0x7c6   : > { %v11216_v58 = vpop.f32.mrb[88].mxu0 }
 0x7c7   : > { %v4991_v29 = vpop.f32.mrb[89].mxu0  ;;  %v4997_v12 = vadd.f32 %v11216_v58, %v16153_v27 }
 0x7c8   : > { %v4992_v57 = vadd.f32 %v16153_v27, %v4991_v29 }
 0x7ca   : > { %11272 = vmatprep.mubr.msk.f32.mxu1 %vm268_vm0, %v4992_v57 }
 0x7cb   : > { %11273 = vmatmul.mubr.msk.f32.gmra.mrb[88].mxu1 %vm268_vm0, %v4997_v12 }
 0x7ce   : > { %v11219_v26 = vpop.f32.mrb[90].mxu0 }
 0x7cf   : > { %v5001_v52 = vpop.f32.mrb[91].mxu0  ;;  %v5007_v59 = vadd.f32 %v11219_v26, %v16153_v27 }
 0x7d0   : > { %v5002_v15 = vadd.f32 %v16153_v27, %v5001_v52 }
 0x7d2   : > { %11275 = vmatprep.mubr.msk.f32.mxu1 %vm268_vm0, %v5002_v15 }
 0x7d3   : > { %11276 = vmatmul.mubr.msk.f32.gmra.mrb[90].mxu1 %vm268_vm0, %v5007_v59 }
 0x7d6   : > { %v11222_v31 = vpop.f32.mrb[92].mxu0 }
 0x7d7   : > { %v5011_v9 = vpop.f32.mrb[93].mxu0  ;;  %v5017_v5 = vadd.f32 %v11222_v31, %v16153_v27 }
 0x7d8   : > { %v5012_v28 = vadd.f32 %v16153_v27, %v5011_v9 }
 0x7da   : > { %11278 = vmatprep.mubr.msk.f32.mxu1 %vm268_vm0, %v5012_v28 }
 0x7db   : > { %11279 = vmatmul.mubr.msk.f32.gmra.mrb[92].mxu1 %vm268_vm0, %v5017_v5 }
 0x7de   : > { %v11225_v38 = vpop.f32.mrb[94].mxu0 }
 0x7df   : > { %v5021_v8 = vpop.f32.mrb[95].mxu0  ;;  %v5027_v43 = vadd.f32 %v11225_v38, %v16153_v27 }
 0x7e0   : > { %v5022_v44 = vadd.f32 %v16153_v27, %v5021_v8 }
 0x7e2   : > { %11281 = vmatprep.mubr.msk.f32.mxu1 %vm268_vm0, %v5022_v44 }
 0x7e3   : > { %11282 = vmatmul.mubr.msk.f32.gmra.mrb[94].mxu1 %vm268_vm0, %v5027_v43 }
 0x83e   : > { %v11238_v50 = vpop.f32.mrb[64].mxu1 }
 0x83f   : > { %v5209_v32 = vadd.f32 %v11238_v50, %v16222_v6  ;;  %v5203_v39 = vpop.f32.mrb[65].mxu1 }
 0x840   : > { %v5204_v37 = vadd.f32 %v16222_v6, %v5203_v39 }
 0x841   : > { %v10278_v35 = vmul.f32 -1.442695, %v5209_v32 }
 0x842   : > { %v10277_v48 = vmul.f32 -1.442695, %v5204_v37 }
 0x843   : > { %12405 = vpow2.f32 %v10278_v35 }
 0x844   : > { %12407 = vpow2.f32 %v10277_v48 }
 0x846   : > { %v11241_v27 = vpop.f32.mrb[66].mxu1 }
 0x847   : > { %v16227_v42 = vadd.f32 %v11241_v27, %v16222_v6  ;;  %v5213_v21 = vpop.f32.mrb[67].mxu1 }
 0x848   : > { %v16230_v30 = vadd.f32 %v16222_v6, %v5213_v21 }
 0x849   : > { %v10280_v47 = vmul.f32 -1.442695, %v16227_v42 }
 0x84a   : > { %v10279_v19 = vmul.f32 -1.442695, %v16230_v30 }
 0x84b   : > { %12409 = vpow2.f32 %v10280_v47 }
 0x84c   : > { %12411 = vpow2.f32 %v10279_v19 }
 0x84d   : > { %v12406_v2 = vpop.eup %12405 }
 0x84e   : > { %v12408_v17 = vpop.eup %12407  ;;  %v5459_v55 = vadd.f32 1.0, %v12406_v2  ;;  %v11244_v1 = vpop.f32.mrb[68].mxu1 }
 0x84f   : > { %v5458_v56 = vadd.f32 1.0, %v12408_v17  ;;  %v16235_v40 = vadd.f32 %v11244_v1, %v16222_v6  ;;  %v5223_v3 = vpop.f32.mrb[69].mxu1 }
 0x850   : > { %12413 = vrcp.f32 %v5459_v55  ;;  %v16238_v25 = vadd.f32 %v16222_v6, %v5223_v3 }
 0x851   : > { %12415 = vrcp.f32 %v5458_v56  ;;  %v10282_v62 = vmul.f32 -1.442695, %v16235_v40 }
 0x852   : > { %v10281_v4 = vmul.f32 -1.442695, %v16238_v25 }
 0x853   : > { %12417 = vpow2.f32 %v10282_v62 }
 0x854   : > { %12419 = vpow2.f32 %v10281_v4 }
 0x855   : > { %v12410_v23 = vpop.eup %12409 }
 0x856   : > { %v12412_v54 = vpop.eup %12411  ;;  %v5461_v60 = vadd.f32 1.0, %v12410_v23  ;;  %v11247_v14 = vpop.f32.mrb[70].mxu1 }
 0x857   : > { %v5460_v49 = vadd.f32 1.0, %v12412_v54  ;;  %v16249_v63 = vadd.f32 %v11247_v14, %v16222_v6  ;;  %v5233_v61 = vpop.f32.mrb[71].mxu1 }
 0x858   : > { %12421 = vrcp.f32 %v5461_v60  ;;  %v16252_v45 = vadd.f32 %v16222_v6, %v5233_v61 }
 0x859   : > { %12423 = vrcp.f32 %v5460_v49  ;;  %v10284_v41 = vmul.f32 -1.442695, %v16249_v63 }
 0x85a   : > { %v12414_v53 = vpop.eup %12413  ;;  %v10283_v16 = vmul.f32 -1.442695, %v16252_v45 }
 0x85b   : > { %v12416_v33 = vpop.eup %12415  ;;  %v16256_v11 = vmul.f32 %v12414_v53, %v5209_v32  ;;  %12425 = vpow2.f32 %v10284_v41 }
 0x85c   : > { %v16264_v36 = vmul.f32 %v12416_v33, %v5204_v37  ;;  %12427 = vpow2.f32 %v10283_v16 }
 0x85d   : > { %v12418_v18 = vpop.eup %12417  ;;  %v5589_v46 = vsel %vm268_vm0, %v16256_v11, 0.0  ;;  %v5683_v34 = vmul.f32 %v16256_v11, %v16256_v11 }
 0x85e   : > { %v12420_v20 = vpop.eup %12419  ;;  %v5463_v0 = vadd.f32 1.0, %v12418_v18  ;;  %5590 = vadd.xlane.f32.xlu1 %v5589_v46  ;;  %v11250_v58 = vpop.f32.mrb[72].mxu1  ;;  %v5586_v29 = vsel %vm268_vm0, %v16264_v36, 0.0  ;;  %v5682_v57 = vmul.f32 %v16264_v36, %v16264_v36 }
 0x85f   : > { %v5462_v12 = vadd.f32 1.0, %v12420_v20  ;;  %v16275_v26 = vadd.f32 %v11250_v58, %v16222_v6  ;;  %5587 = vadd.xlane.f32.xlu0 %v5586_v29  ;;  %v5243_v52 = vpop.f32.mrb[73].mxu1  ;;  %v5717_v31 = vsel %vm268_vm0, %v5683_v34, 0.0 }
 0x860   : > { %12429 = vrcp.f32 %v5463_v0  ;;  %v16278_v15 = vadd.f32 %v16222_v6, %v5243_v52  ;;  %v5714_v5 = vsel %vm268_vm0, %v5682_v57, 0.0 }
 0x861   : > { %12431 = vrcp.f32 %v5462_v12  ;;  %v10286_v59 = vmul.f32 -1.442695, %v16275_v26 }
 0x862   : > { %v12422_v9 = vpop.eup %12421  ;;  %v10285_v28 = vmul.f32 -1.442695, %v16278_v15  ;;  %5718 = vadd.xlane.f32.xlu1 %v5717_v31 }
 0x863   : > { %v12424_v38 = vpop.eup %12423  ;;  %v16285_v8 = vmul.f32 %v12422_v9, %v16227_v42  ;;  %12433 = vpow2.f32 %v10286_v59  ;;  %5715 = vadd.xlane.f32.xlu0 %v5714_v5 }
 0x864   : > { %v16288_v44 = vmul.f32 %v12424_v38, %v16230_v30  ;;  %12435 = vpow2.f32 %v10285_v28 }
 0x865   : > { %v12426_v43 = vpop.eup %12425  ;;  %v5595_v50 = vsel %vm268_vm0, %v16285_v8, 0.0  ;;  %v5685_v32 = vmul.f32 %v16285_v8, %v16285_v8 }
 0x866   : > { %v12428_v39 = vpop.eup %12427  ;;  %v5465_v37 = vadd.f32 1.0, %v12426_v43  ;;  %5596 = vadd.xlane.f32.xlu1 %v5595_v50  ;;  %v11253_v35 = vpop.f32.mrb[74].mxu1  ;;  %v5592_v48 = vsel %vm268_vm0, %v16288_v44, 0.0  ;;  %v5684_v27 = vmul.f32 %v16288_v44, %v16288_v44 }
 0x867   : > { %v5464_v42 = vadd.f32 1.0, %v12428_v39  ;;  %v16299_v21 = vadd.f32 %v11253_v35, %v16222_v6  ;;  %5593 = vadd.xlane.f32.xlu0 %v5592_v48  ;;  %v5253_v30 = vpop.f32.mrb[75].mxu1  ;;  %v5723_v2 = vsel %vm268_vm0, %v5685_v32, 0.0 }
 0x868   : > { %12437 = vrcp.f32 %v5465_v37  ;;  %v16302_v47 = vadd.f32 %v16222_v6, %v5253_v30  ;;  %v5720_v1 = vsel %vm268_vm0, %v5684_v27, 0.0 }
 0x869   : > { %12439 = vrcp.f32 %v5464_v42  ;;  %v10288_v19 = vmul.f32 -1.442695, %v16299_v21 }
 0x86a   : > { %v12430_v17 = vpop.eup %12429  ;;  %v10287_v55 = vmul.f32 -1.442695, %v16302_v47  ;;  %5724 = vadd.xlane.f32.xlu1 %v5723_v2 }
 0x86b   : > { %v12432_v56 = vpop.eup %12431  ;;  %v16309_v3 = vmul.f32 %v12430_v17, %v16235_v40  ;;  %12441 = vpow2.f32 %v10288_v19  ;;  %5721 = vadd.xlane.f32.xlu0 %v5720_v1 }
 0x86c   : > { %v16312_v62 = vmul.f32 %v12432_v56, %v16238_v25  ;;  %12443 = vpow2.f32 %v10287_v55 }
 0x86d   : > { %v12434_v4 = vpop.eup %12433  ;;  %v5601_v51 = vsel %vm268_vm0, %v16309_v3, 0.0  ;;  %v5687_v13 = vmul.f32 %v16309_v3, %v16309_v3 }
 0x86e   : > { %v12436_v23 = vpop.eup %12435  ;;  %v5467_v7 = vadd.f32 1.0, %v12434_v4  ;;  %5602 = vadd.xlane.f32.xlu1 %v5601_v51  ;;  %v11256_v54 = vpop.f32.mrb[76].mxu1  ;;  %v5598_v40 = vsel %vm268_vm0, %v16312_v62, 0.0  ;;  %v5686_v60 = vmul.f32 %v16312_v62, %v16312_v62 }
 0x86f   : > { %v5466_v25 = vadd.f32 1.0, %v12436_v23  ;;  %v16323_v14 = vadd.f32 %v11256_v54, %v16222_v6  ;;  %5599 = vadd.xlane.f32.xlu0 %v5598_v40  ;;  %v5263_v49 = vpop.f32.mrb[77].mxu1  ;;  %v5729_v53 = vsel %vm268_vm0, %v5687_v13, 0.0 }
 0x870   : > { %12445 = vrcp.f32 %v5467_v7  ;;  %v16326_v61 = vadd.f32 %v16222_v6, %v5263_v49  ;;  %v5726_v22 = vsel %vm268_vm0, %v5686_v60, 0.0  ;;  %v10315_v7 = vld [vmem:[%s19018_s1 + $0x110] sm:$0xff] }
 0x871   : > { %12447 = vrcp.f32 %v5466_v25  ;;  %v10290_v41 = vmul.f32 -1.442695, %v16323_v14  ;;  %11292 = vmatprep.subr.mxu0 %v10315_v7 }
 0x872   : > { %v12438_v16 = vpop.eup %12437  ;;  %v10289_v33 = vmul.f32 -1.442695, %v16326_v61  ;;  %5730 = vadd.xlane.f32.xlu1 %v5729_v53  ;;  %11293 = vmatpush3.msra.mxu0 %v10315_v7 }
 0x873   : > { %v12440_v10 = vpop.eup %12439  ;;  %v16333_v24 = vmul.f32 %v12438_v16, %v16249_v63  ;;  %12449 = vpow2.f32 %v10290_v41  ;;  %5727 = vadd.xlane.f32.xlu0 %v5726_v22 }
 0x874   : > { %v16336_v18 = vmul.f32 %v12440_v10, %v16252_v45  ;;  %12451 = vpow2.f32 %v10289_v33 }
 0x875   : > { %v12442_v46 = vpop.eup %12441  ;;  %v5607_v34 = vsel %vm268_vm0, %v16333_v24, 0.0  ;;  %v5689_v20 = vmul.f32 %v16333_v24, %v16333_v24 }
 0x876   : > { %v12444_v0 = vpop.eup %12443  ;;  %v5469_v58 = vadd.f32 1.0, %v12442_v46  ;;  %5608 = vadd.xlane.f32.xlu1 %v5607_v34  ;;  %v11259_v29 = vpop.f32.mrb[78].mxu1  ;;  %v5604_v63 = vsel %vm268_vm0, %v16336_v18, 0.0  ;;  %v5688_v57 = vmul.f32 %v16336_v18, %v16336_v18 }
 0x877   : > { %v5468_v45 = vadd.f32 1.0, %v12444_v0  ;;  %v16347_v12 = vadd.f32 %v11259_v29, %v16222_v6  ;;  %5605 = vadd.xlane.f32.xlu0 %v5604_v63  ;;  %v5273_v52 = vpop.f32.mrb[79].mxu1  ;;  %v5735_v9 = vsel %vm268_vm0, %v5689_v20, 0.0 }
 0x878   : > { %12453 = vrcp.f32 %v5469_v58  ;;  %v16350_v59 = vadd.f32 %v16222_v6, %v5273_v52  ;;  %v5732_v38 = vsel %vm268_vm0, %v5688_v57, 0.0 }
 0x879   : > { %12455 = vrcp.f32 %v5468_v45  ;;  %v10292_v31 = vmul.f32 -1.442695, %v16347_v12 }
 0x87a   : > { %v12446_v28 = vpop.eup %12445  ;;  %v10291_v5 = vmul.f32 -1.442695, %v16350_v59  ;;  %5736 = vadd.xlane.f32.xlu1 %v5735_v9 }
 0x87b   : > { %v12448_v43 = vpop.eup %12447  ;;  %v16357_v50 = vmul.f32 %v12446_v28, %v16275_v26  ;;  %12457 = vpow2.f32 %v10292_v31  ;;  %5733 = vadd.xlane.f32.xlu0 %v5732_v38 }
 0x87c   : > { %v16360_v32 = vmul.f32 %v12448_v43, %v16278_v15  ;;  %12459 = vpow2.f32 %v10291_v5 }
 0x87d   : > { %v12450_v39 = vpop.eup %12449  ;;  %v5613_v37 = vsel %vm268_vm0, %v16357_v50, 0.0  ;;  %v5691_v35 = vmul.f32 %v16357_v50, %v16357_v50 }
 0x87e   : > { %v12452_v48 = vpop.eup %12451  ;;  %v5471_v27 = vadd.f32 1.0, %v12450_v39  ;;  %5614 = vadd.xlane.f32.xlu1 %v5613_v37  ;;  %v11262_v42 = vpop.f32.mrb[80].mxu1  ;;  %v5610_v26 = vsel %vm268_vm0, %v16360_v32, 0.0  ;;  %v5690_v30 = vmul.f32 %v16360_v32, %v16360_v32 }
 0x87f   : > { %v5470_v15 = vadd.f32 1.0, %v12452_v48  ;;  %v16371_v19 = vadd.f32 %v11262_v42, %v16222_v6  ;;  %5611 = vadd.xlane.f32.xlu0 %v5610_v26  ;;  %v5283_v2 = vpop.f32.mrb[81].mxu1  ;;  %v5741_v1 = vsel %vm268_vm0, %v5691_v35, 0.0 }
 0x880   : > { %12461 = vrcp.f32 %v5471_v27  ;;  %v16374_v17 = vadd.f32 %v16222_v6, %v5283_v2  ;;  %v5738_v51 = vsel %vm268_vm0, %v5690_v30, 0.0 }
 0x881   : > { %12463 = vrcp.f32 %v5470_v15  ;;  %v10294_v55 = vmul.f32 -1.442695, %v16371_v19 }
 0x882   : > { %v12454_v56 = vpop.eup %12453  ;;  %v10293_v4 = vmul.f32 -1.442695, %v16374_v17  ;;  %5742 = vadd.xlane.f32.xlu1 %v5741_v1 }
 0x883   : > { %v12456_v13 = vpop.eup %12455  ;;  %v16381_v23 = vmul.f32 %v12454_v56, %v16299_v21  ;;  %12465 = vpow2.f32 %v10294_v55  ;;  %5739 = vadd.xlane.f32.xlu0 %v5738_v51 }
 0x884   : > { %v16387_v54 = vmul.f32 %v12456_v13, %v16302_v47  ;;  %12467 = vpow2.f32 %v10293_v4 }
 0x885   : > { %v12458_v40 = vpop.eup %12457  ;;  %v5619_v60 = vsel %vm268_vm0, %v16381_v23, 0.0  ;;  %v5693_v25 = vmul.f32 %v16381_v23, %v16381_v23 }
 0x886   : > { %v12460_v21 = vpop.eup %12459  ;;  %v5473_v49 = vadd.f32 1.0, %v12458_v40  ;;  %5620 = vadd.xlane.f32.xlu1 %v5619_v60  ;;  %v11265_v41 = vpop.f32.mrb[82].mxu1  ;;  %v5616_v53 = vsel %vm268_vm0, %v16387_v54, 0.0  ;;  %v5692_v47 = vmul.f32 %v16387_v54, %v16387_v54 }
 0x887   : > { %v5472_v16 = vadd.f32 1.0, %v12460_v21  ;;  %v16398_v33 = vadd.f32 %v11265_v41, %v16222_v6  ;;  %5617 = vadd.xlane.f32.xlu0 %v5616_v53  ;;  %v5293_v22 = vpop.f32.mrb[83].mxu1  ;;  %v5747_v34 = vsel %vm268_vm0, %v5693_v25, 0.0 }
 0x888   : > { %12469 = vrcp.f32 %v5473_v49  ;;  %v16401_v10 = vadd.f32 %v16222_v6, %v5293_v22  ;;  %v5744_v58 = vsel %vm268_vm0, %v5692_v47, 0.0 }
 0x889   : > { %12471 = vrcp.f32 %v5472_v16  ;;  %v10296_v46 = vmul.f32 -1.442695, %v16398_v33 }
 0x88a   : > { %v12462_v20 = vpop.eup %12461  ;;  %v10295_v0 = vmul.f32 -1.442695, %v16401_v10  ;;  %5748 = vadd.xlane.f32.xlu1 %v5747_v34 }
 0x88b   : > { %v12464_v29 = vpop.eup %12463  ;;  %v16408_v63 = vmul.f32 %v12462_v20, %v16323_v14  ;;  %12473 = vpow2.f32 %v10296_v46  ;;  %5745 = vadd.xlane.f32.xlu0 %v5744_v58 }
 0x88c   : > { %v16411_v57 = vmul.f32 %v12464_v29, %v16326_v61  ;;  %12475 = vpow2.f32 %v10295_v0 }
 0x88d   : > { %v12466_v45 = vpop.eup %12465  ;;  %v5625_v52 = vsel %vm268_vm0, %v16408_v63, 0.0  ;;  %v5695_v31 = vmul.f32 %v16408_v63, %v16408_v63 }
 0x88e   : > { %v12468_v9 = vpop.eup %12467  ;;  %v5475_v28 = vadd.f32 1.0, %v12466_v45  ;;  %5626 = vadd.xlane.f32.xlu1 %v5625_v52  ;;  %v11268_v5 = vpop.f32.mrb[84].mxu1  ;;  %v5622_v14 = vsel %vm268_vm0, %v16411_v57, 0.0  ;;  %v5694_v38 = vmul.f32 %v16411_v57, %v16411_v57 }
 0x88f   : > { %v5474_v61 = vadd.f32 1.0, %v12468_v9  ;;  %v16422_v43 = vadd.f32 %v11268_v5, %v16222_v6  ;;  %5623 = vadd.xlane.f32.xlu0 %v5622_v14  ;;  %v5303_v39 = vpop.f32.mrb[85].mxu1  ;;  %v5753_v48 = vsel %vm268_vm0, %v5695_v31, 0.0 }
 0x890   : > { %12477 = vrcp.f32 %v5475_v28  ;;  %v16425_v37 = vadd.f32 %v16222_v6, %v5303_v39  ;;  %v5750_v26 = vsel %vm268_vm0, %v5694_v38, 0.0 }
 0x891   : > { %12479 = vrcp.f32 %v5474_v61  ;;  %v10298_v35 = vmul.f32 -1.442695, %v16422_v43 }
 0x892   : > { %v12470_v27 = vpop.eup %12469  ;;  %v10297_v42 = vmul.f32 -1.442695, %v16425_v37  ;;  %5754 = vadd.xlane.f32.xlu1 %v5753_v48 }
 0x893   : > { %v12472_v30 = vpop.eup %12471  ;;  %v16432_v15 = vmul.f32 %v12470_v27, %v16347_v12  ;;  %12481 = vpow2.f32 %v10298_v35  ;;  %5751 = vadd.xlane.f32.xlu0 %v5750_v26 }
 0x894   : > { %v16435_v2 = vmul.f32 %v12472_v30, %v16350_v59  ;;  %12483 = vpow2.f32 %v10297_v42 }
 0x895   : > { %v12474_v55 = vpop.eup %12473  ;;  %v5631_v1 = vsel %vm268_vm0, %v16432_v15, 0.0  ;;  %v5697_v56 = vmul.f32 %v16432_v15, %v16432_v15 }
 0x896   : > { %v12476_v4 = vpop.eup %12475  ;;  %v5477_v51 = vadd.f32 1.0, %v12474_v55  ;;  %5632 = vadd.xlane.f32.xlu1 %v5631_v1  ;;  %v11271_v13 = vpop.f32.mrb[86].mxu1  ;;  %v5628_v12 = vsel %vm268_vm0, %v16435_v2, 0.0  ;;  %v5696_v7 = vmul.f32 %v16435_v2, %v16435_v2 }
 0x897   : > { %v5476_v59 = vadd.f32 1.0, %v12476_v4  ;;  %v16446_v40 = vadd.f32 %v11271_v13, %v16222_v6  ;;  %5629 = vadd.xlane.f32.xlu0 %v5628_v12  ;;  %v5313_v60 = vpop.f32.mrb[87].mxu1  ;;  %v5759_v49 = vsel %vm268_vm0, %v5697_v56, 0.0 }
 0x898   : > { %12485 = vrcp.f32 %v5477_v51  ;;  %v16449_v25 = vadd.f32 %v16222_v6, %v5313_v60  ;;  %v5756_v47 = vsel %vm268_vm0, %v5696_v7, 0.0 }
 0x899   : > { %12487 = vrcp.f32 %v5476_v59  ;;  %v10300_v21 = vmul.f32 -1.442695, %v16446_v40 }
 0x89a   : > { %v12478_v41 = vpop.eup %12477  ;;  %v10299_v53 = vmul.f32 -1.442695, %v16449_v25  ;;  %5760 = vadd.xlane.f32.xlu1 %v5759_v49 }
 0x89b   : > { %v12480_v16 = vpop.eup %12479  ;;  %v16456_v22 = vmul.f32 %v12478_v41, %v16371_v19  ;;  %12489 = vpow2.f32 %v10300_v21  ;;  %5757 = vadd.xlane.f32.xlu0 %v5756_v47 }
 0x89c   : > { %v16459_v46 = vmul.f32 %v12480_v16, %v16374_v17  ;;  %12491 = vpow2.f32 %v10299_v53 }
 0x89d   : > { %v12482_v34 = vpop.eup %12481  ;;  %v5637_v20 = vsel %vm268_vm0, %v16456_v22, 0.0  ;;  %v5699_v0 = vmul.f32 %v16456_v22, %v16456_v22 }
 0x89e   : > { %v12484_v58 = vpop.eup %12483  ;;  %v5479_v29 = vadd.f32 1.0, %v12482_v34  ;;  %5638 = vadd.xlane.f32.xlu1 %v5637_v20  ;;  %v11274_v45 = vpop.f32.mrb[88].mxu1  ;;  %v5634_v19 = vsel %vm268_vm0, %v16459_v46, 0.0  ;;  %v5698_v52 = vmul.f32 %v16459_v46, %v16459_v46 }
 0x89f   : > { %v5478_v17 = vadd.f32 1.0, %v12484_v58  ;;  %v16470_v31 = vadd.f32 %v11274_v45, %v16222_v6  ;;  %5635 = vadd.xlane.f32.xlu0 %v5634_v19  ;;  %v5323_v9 = vpop.f32.mrb[89].mxu1  ;;  %v5765_v14 = vsel %vm268_vm0, %v5699_v0, 0.0 }
 0x8a0   : > { %12493 = vrcp.f32 %v5479_v29  ;;  %v16473_v28 = vadd.f32 %v16222_v6, %v5323_v9  ;;  %v5762_v39 = vsel %vm268_vm0, %v5698_v52, 0.0 }
 0x8a1   : > { %12495 = vrcp.f32 %v5478_v17  ;;  %v10302_v5 = vmul.f32 -1.442695, %v16470_v31 }
 0x8a2   : > { %v12486_v38 = vpop.eup %12485  ;;  %v10301_v61 = vmul.f32 -1.442695, %v16473_v28  ;;  %5766 = vadd.xlane.f32.xlu1 %v5765_v14 }
 0x8a3   : > { %v12488_v35 = vpop.eup %12487  ;;  %v16480_v48 = vmul.f32 %v12486_v38, %v16398_v33  ;;  %12497 = vpow2.f32 %v10302_v5  ;;  %5763 = vadd.xlane.f32.xlu0 %v5762_v39 }
 0x8a4   : > { %v16483_v27 = vmul.f32 %v12488_v35, %v16401_v10  ;;  %12499 = vpow2.f32 %v10301_v61 }
 0x8a5   : > { %v12490_v42 = vpop.eup %12489  ;;  %v5643_v26 = vsel %vm268_vm0, %v16480_v48, 0.0  ;;  %v5701_v30 = vmul.f32 %v16480_v48, %v16480_v48 }
 0x8a6   : > { %v12492_v55 = vpop.eup %12491  ;;  %v5481_v1 = vadd.f32 1.0, %v12490_v42  ;;  %5644 = vadd.xlane.f32.xlu1 %v5643_v26  ;;  %v11277_v56 = vpop.f32.mrb[90].mxu1  ;;  %v5640_v33 = vsel %vm268_vm0, %v16483_v27, 0.0  ;;  %v5700_v4 = vmul.f32 %v16483_v27, %v16483_v27 }
 0x8a7   : > { %v5480_v10 = vadd.f32 1.0, %v12492_v55  ;;  %v16494_v51 = vadd.f32 %v11277_v56, %v16222_v6  ;;  %5641 = vadd.xlane.f32.xlu0 %v5640_v33  ;;  %v5333_v13 = vpop.f32.mrb[91].mxu1  ;;  %v5771_v59 = vsel %vm268_vm0, %v5701_v30, 0.0 }
 0x8a8   : > { %12501 = vrcp.f32 %v5481_v1  ;;  %v16497_v12 = vadd.f32 %v16222_v6, %v5333_v13  ;;  %v5768_v49 = vsel %vm268_vm0, %v5700_v4, 0.0 }
 0x8a9   : > { %12503 = vrcp.f32 %v5480_v10  ;;  %v10304_v7 = vmul.f32 -1.442695, %v16494_v51 }
 0x8aa   : > { %v12494_v60 = vpop.eup %12493  ;;  %v10303_v21 = vmul.f32 -1.442695, %v16497_v12  ;;  %5772 = vadd.xlane.f32.xlu1 %v5771_v59 }
 0x8ab   : > { %v12496_v41 = vpop.eup %12495  ;;  %v16504_v53 = vmul.f32 %v12494_v60, %v16422_v43  ;;  %12505 = vpow2.f32 %v10304_v7  ;;  %5769 = vadd.xlane.f32.xlu0 %v5768_v49 }
 0x8ac   : > { %v16507_v47 = vmul.f32 %v12496_v41, %v16425_v37  ;;  %12507 = vpow2.f32 %v10303_v21 }
 0x8ad   : > { %v12498_v16 = vpop.eup %12497  ;;  %v5649_v34 = vsel %vm268_vm0, %v16504_v53, 0.0  ;;  %v5703_v20 = vmul.f32 %v16504_v53, %v16504_v53 }
 0x8ae   : > { %v12500_v0 = vpop.eup %12499  ;;  %v5483_v58 = vadd.f32 1.0, %v12498_v16  ;;  %5650 = vadd.xlane.f32.xlu1 %v5649_v34  ;;  %v11280_v29 = vpop.f32.mrb[92].mxu1  ;;  %v5646_v43 = vsel %vm268_vm0, %v16507_v47, 0.0  ;;  %v5702_v45 = vmul.f32 %v16507_v47, %v16507_v47 }
 0x8af   : > { %v5482_v37 = vadd.f32 1.0, %v12500_v0  ;;  %v16518_v19 = vadd.f32 %v11280_v29, %v16222_v6  ;;  %5647 = vadd.xlane.f32.xlu0 %v5646_v43  ;;  %v5343_v52 = vpop.f32.mrb[93].mxu1  ;;  %v5777_v5 = vsel %vm268_vm0, %v5703_v20, 0.0 }
 0x8b0   : > { %12509 = vrcp.f32 %v5483_v58  ;;  %v16521_v17 = vadd.f32 %v16222_v6, %v5343_v52  ;;  %v5774_v61 = vsel %vm268_vm0, %v5702_v45, 0.0 }
 0x8b1   : > { %12511 = vrcp.f32 %v5482_v37  ;;  %v10306_v9 = vmul.f32 -1.442695, %v16518_v19 }
 0x8b2   : > { %v12502_v14 = vpop.eup %12501  ;;  %v10305_v38 = vmul.f32 -1.442695, %v16521_v17  ;;  %5778 = vadd.xlane.f32.xlu1 %v5777_v5 }
 0x8b3   : > { %v12504_v39 = vpop.eup %12503  ;;  %v16528_v35 = vmul.f32 %v12502_v14, %v16446_v40  ;;  %12513 = vpow2.f32 %v10306_v9  ;;  %5775 = vadd.xlane.f32.xlu0 %v5774_v61 }
 0x8b4   : > { %v16531_v42 = vmul.f32 %v12504_v39, %v16449_v25  ;;  %12515 = vpow2.f32 %v10305_v38 }
 0x8b5   : > { %v12506_v26 = vpop.eup %12505  ;;  %v5655_v30 = vsel %vm268_vm0, %v16528_v35, 0.0  ;;  %v5705_v55 = vmul.f32 %v16528_v35, %v16528_v35 }
 0x8b6   : > { %v12508_v1 = vpop.eup %12507  ;;  %v5485_v56 = vadd.f32 1.0, %v12506_v26  ;;  %5656 = vadd.xlane.f32.xlu1 %v5655_v30  ;;  %v11283_v33 = vpop.f32.mrb[94].mxu1  ;;  %v5652_v40 = vsel %vm268_vm0, %v16531_v42, 0.0  ;;  %v5704_v4 = vmul.f32 %v16531_v42, %v16531_v42 }
 0x8b7   : > { %v5484_v25 = vadd.f32 1.0, %v12508_v1  ;;  %v16542_v10 = vadd.f32 %v11283_v33, %v16222_v6  ;;  %5653 = vadd.xlane.f32.xlu0 %v5652_v40  ;;  %v5353_v13 = vpop.f32.mrb[95].mxu1  ;;  %v5783_v60 = vsel %vm268_vm0, %v5705_v55, 0.0 }
 0x8b8   : > { %12517 = vrcp.f32 %v5485_v56  ;;  %v16545_v7 = vadd.f32 %v16222_v6, %v5353_v13  ;;  %v5780_v41 = vsel %vm268_vm0, %v5704_v4, 0.0 }
 0x8b9   : > { %12519 = vrcp.f32 %v5484_v25  ;;  %v10308_v59 = vmul.f32 -1.442695, %v16542_v10 }
 0x8ba   : > { %v12510_v21 = vpop.eup %12509  ;;  %v10307_v49 = vmul.f32 -1.442695, %v16545_v7  ;;  %5784 = vadd.xlane.f32.xlu1 %v5783_v60 }
 0x8bb   : > { %v12512_v16 = vpop.eup %12511  ;;  %v16552_v34 = vmul.f32 %v12510_v21, %v16470_v31  ;;  %12521 = vpow2.f32 %v10308_v59  ;;  %5781 = vadd.xlane.f32.xlu0 %v5780_v41 }
 0x8bc   : > { %v16555_v6 = vmul.f32 %v12512_v16, %v16473_v28  ;;  %12523 = vpow2.f32 %v10307_v49 }
 0x8bd   : > { %v12514_v20 = vpop.eup %12513  ;;  %v5661_v0 = vsel %vm268_vm0, %v16552_v34, 0.0  ;;  %v5707_v58 = vmul.f32 %v16552_v34, %v16552_v34 }
 0x8be   : > { %v12516_v29 = vpop.eup %12515  ;;  %v5487_v43 = vadd.f32 1.0, %v12514_v20  ;;  %5662 = vadd.xlane.f32.xlu1 %v5661_v0  ;;  %v5658_v31 = vsel %vm268_vm0, %v16555_v6, 0.0  ;;  %v5706_v45 = vmul.f32 %v16555_v6, %v16555_v6 }
 0x8bf   : > { %v5486_v37 = vadd.f32 1.0, %v12516_v29  ;;  %5659 = vadd.xlane.f32.xlu0 %v5658_v31  ;;  %v5789_v28 = vsel %vm268_vm0, %v5707_v58, 0.0 }
 0x8c0   : > { %12525 = vrcp.f32 %v5487_v43  ;;  %v5786_v9 = vsel %vm268_vm0, %v5706_v45, 0.0 }
 0x8c1   : > { %12527 = vrcp.f32 %v5486_v37 }
 0x8c2   : > { %v12518_v52 = vpop.eup %12517  ;;  %5790 = vadd.xlane.f32.xlu1 %v5789_v28 }
 0x8c3   : > { %v12520_v5 = vpop.eup %12519  ;;  %v16568_v14 = vmul.f32 %v12518_v52, %v16494_v51  ;;  %5787 = vadd.xlane.f32.xlu0 %v5786_v9 }
 0x8c4   : > { %v16571_v38 = vmul.f32 %v12520_v5, %v16497_v12 }
 0x8c5   : > { %v12522_v61 = vpop.eup %12521  ;;  %v5667_v39 = vsel %vm268_vm0, %v16568_v14, 0.0  ;;  %v5709_v26 = vmul.f32 %v16568_v14, %v16568_v14 }
 0x8c6   : > { %v12524_v30 = vpop.eup %12523  ;;  %v5489_v55 = vadd.f32 1.0, %v12522_v61  ;;  %5668 = vadd.xlane.f32.xlu1 %v5667_v39  ;;  %v5664_v1 = vsel %vm268_vm0, %v16571_v38, 0.0  ;;  %v5708_v51 = vmul.f32 %v16571_v38, %v16571_v38 }
 0x8c7   : > { %v5488_v56 = vadd.f32 1.0, %v12524_v30  ;;  %5665 = vadd.xlane.f32.xlu0 %v5664_v1  ;;  %v5795_v12 = vsel %vm268_vm0, %v5709_v26, 0.0 }
 0x8c8   : > { %12529 = vrcp.f32 %v5489_v55  ;;  %v5792_v40 = vsel %vm268_vm0, %v5708_v51, 0.0 }
 0x8c9   : > { %12531 = vrcp.f32 %v5488_v56 }
 0x8ca   : > { %v12526_v33 = vpop.eup %12525  ;;  %5796 = vadd.xlane.f32.xlu1 %v5795_v12 }
 0x8cb   : > { %v12528_v4 = vpop.eup %12527  ;;  %v16584_v25 = vmul.f32 %v12526_v33, %v16518_v19  ;;  %5793 = vadd.xlane.f32.xlu0 %v5792_v40 }
 0x8cc   : > { %v16587_v13 = vmul.f32 %v12528_v4, %v16521_v17 }
 0x8cd   : > { %v5673_v59 = vsel %vm268_vm0, %v16584_v25, 0.0  ;;  %v5711_v60 = vmul.f32 %v16584_v25, %v16584_v25 }
 0x8ce   : > { %5674 = vadd.xlane.f32.xlu1 %v5673_v59  ;;  %v5670_v21 = vsel %vm268_vm0, %v16587_v13, 0.0  ;;  %v5710_v49 = vmul.f32 %v16587_v13, %v16587_v13 }
 0x8cf   : > { %5671 = vadd.xlane.f32.xlu0 %v5670_v21  ;;  %v5801_v19 = vsel %vm268_vm0, %v5711_v60, 0.0 }
 0x8d0   : > { %v5798_v17 = vsel %vm268_vm0, %v5710_v49, 0.0 }
 0x8d2   : > { %v12530_v41 = vpop.eup %12529  ;;  %5802 = vadd.xlane.f32.xlu1 %v5801_v19 }
 0x8d3   : > { %v12532_v16 = vpop.eup %12531  ;;  %v16600_v20 = vmul.f32 %v12530_v41, %v16542_v10  ;;  %5799 = vadd.xlane.f32.xlu0 %v5798_v17 }
 0x8d4   : > { %v16603_v0 = vmul.f32 %v12532_v16, %v16545_v7 }
 0x8d5   : > { %v5679_v58 = vsel %vm268_vm0, %v16600_v20, 0.0  ;;  %v5713_v29 = vmul.f32 %v16600_v20, %v16600_v20 }
 0x8d6   : > { %5680 = vadd.xlane.f32.xlu1 %v5679_v58  ;;  %v5676_v43 = vsel %vm268_vm0, %v16603_v0, 0.0  ;;  %v5712_v31 = vmul.f32 %v16603_v0, %v16603_v0 }
 0x8d7   : > { %5677 = vadd.xlane.f32.xlu0 %v5676_v43  ;;  %v5807_v10 = vsel %vm268_vm0, %v5713_v29, 0.0 }
 0x8d8   : > { %v5804_v7 = vsel %vm268_vm0, %v5712_v31, 0.0 }
 0x8da   : > { %5808 = vadd.xlane.f32.xlu1 %v5807_v10 }
 0x8db   : > { %5805 = vadd.xlane.f32.xlu0 %v5804_v7 }
 0x8eb   : > { %v5591_v45 = vpop.xlane.xlu1 %5590 }
 0x8ec   : > { %v5811_v37 = vmul.f32 0.025, %v5591_v45  ;;  %v5588_v28 = vpop.xlane.xlu0 %5587 }
 0x8ed   : > { %v5810_v52 = vmul.f32 0.025, %v5588_v28 }
 0x8ee   : > { %v5875_v5 = vmul.f32 %v5811_v37, %v5811_v37  ;;  %v6003_v45 = vsub.f32 %v16256_v11, %v5811_v37 }
 0x8ef   : > { %v5719_v9 = vpop.xlane.xlu1 %5718  ;;  %v5874_v26 = vmul.f32 %v5810_v52, %v5810_v52 }
 0x8f0   : > { %v5843_v61 = vmul.f32 0.025, %v5719_v9  ;;  %v5716_v39 = vpop.xlane.xlu0 %5715 }
 0x8f1   : > { %v5842_v30 = vmul.f32 0.025, %v5716_v39 }
 0x8f2   : > { %v5907_v55 = vsub.f32 %v5843_v61, %v5875_v5  ;;  %v6002_v5 = vsub.f32 %v16264_v36, %v5810_v52  ;;  %v16628_v61 = vld [vmem:[%s19019_s2 + $0x11] ss:$0 sm:$0xff] }
 0x8f3   : > { %v5906_v1 = vsub.f32 %v5842_v30, %v5874_v26  ;;  %v5597_v51 = vpop.xlane.xlu1 %5596 }
 0x8f4   : > { %v5939_v56 = vadd.f32 1e-05, %v5907_v55  ;;  %v16615_v12 = vmul.f32 0.025, %v5597_v51  ;;  %v5594_v33 = vpop.xlane.xlu0 %5593 }
 0x8f5   : > { %v5938_v40 = vadd.f32 1e-05, %v5906_v1  ;;  %v5812_v4 = vmul.f32 0.025, %v5594_v33 }
 0x8f6   : > { %12533 = vrsqrt.f32 %v5939_v56  ;;  %v5877_v60 = vmul.f32 %v16615_v12, %v16615_v12 }
 0x8f7   : > { %12535 = vrsqrt.f32 %v5938_v40  ;;  %v5725_v59 = vpop.xlane.xlu1 %5724  ;;  %v5876_v19 = vmul.f32 %v5812_v4, %v5812_v4  ;;  %v16638_v40 = vld [vmem:[%s19019_s2 + $0x15] ss:$0 sm:$0xff] }
 0x8f8   : > { %v5845_v21 = vmul.f32 0.025, %v5725_v59  ;;  %v5722_v49 = vpop.xlane.xlu0 %5721 }
 0x8f9   : > { %v5844_v41 = vmul.f32 0.025, %v5722_v49 }
 0x8fa   : > { %v5909_v17 = vsub.f32 %v5845_v21, %v5877_v60 }
 0x8fb   : > { %v5908_v16 = vsub.f32 %v5844_v41, %v5876_v19  ;;  %v5603_v58 = vpop.xlane.xlu1 %5602 }
 0x8fc   : > { %v5941_v29 = vadd.f32 1e-05, %v5909_v17  ;;  %v16619_v43 = vmul.f32 0.025, %v5603_v58  ;;  %v5600_v31 = vpop.xlane.xlu0 %5599 }
 0x8fd   : > { %v5940_v10 = vadd.f32 1e-05, %v5908_v16  ;;  %v16621_v7 = vmul.f32 0.025, %v5600_v31  ;;  %v6005_v16 = vsub.f32 %v16285_v8, %v16615_v12 }
 0x8fe   : > { %12537 = vrsqrt.f32 %v5941_v29  ;;  %v5879_v39 = vmul.f32 %v16619_v43, %v16619_v43 }
 0x8ff   : > { %12539 = vrsqrt.f32 %v5940_v10  ;;  %v5731_v28 = vpop.xlane.xlu1 %5730  ;;  %v5878_v11 = vmul.f32 %v16621_v7, %v16621_v7  ;;  %v6004_v10 = vsub.f32 %v16288_v44, %v5812_v4 }
 0x900   : > { %v12534_v9 = vpop.eup %12533  ;;  %v5847_v26 = vmul.f32 0.025, %v5731_v28  ;;  %v5728_v30 = vpop.xlane.xlu0 %5727 }
 0x901   : > { %v12536_v55 = vpop.eup %12535  ;;  %v6035_v1 = vmul.f32 %v12534_v9, %v6003_v45  ;;  %v5846_v37 = vmul.f32 0.025, %v5728_v30 }
 0x902   : > { %v5911_v51 = vsub.f32 %v5847_v26, %v5879_v39  ;;  %v6034_v56 = vmul.f32 %v12536_v55, %v6002_v5 }
 0x903   : > { %v6072_v36 = vmul.f32 %v16628_v61, %v6035_v1  ;;  %v5910_v52 = vsub.f32 %v5846_v37, %v5878_v11  ;;  %v5609_v33 = vpop.xlane.xlu1 %5608 }
 0x904   : > { %v5943_v59 = vadd.f32 1e-05, %v5911_v51  ;;  %v16640_v60 = vmul.f32 0.025, %v5609_v33  ;;  %v5606_v21 = vpop.xlane.xlu0 %5605  ;;  %v6071_v49 = vmul.f32 %v16628_v61, %v6034_v56  ;;  %v6007_v33 = vsub.f32 %v16309_v3, %v16619_v43 }
 0x905   : > { %v5942_v19 = vadd.f32 1e-05, %v5910_v52  ;;  %v16643_v41 = vmul.f32 0.025, %v5606_v21  ;;  %v6109_v29 = vadd.f32 %v16638_v40, %v6072_v36 }
 0x906   : > { %12541 = vrsqrt.f32 %v5943_v59  ;;  %v6108_v17 = vadd.f32 %v16638_v40, %v6071_v49  ;;  %v5881_v45 = vmul.f32 %v16640_v60, %v16640_v60 }
 0x907   : > { %12543 = vrsqrt.f32 %v5942_v19  ;;  %v5737_v58 = vpop.xlane.xlu1 %5736  ;;  %v5880_v39 = vmul.f32 %v16643_v41, %v16643_v41  ;;  %v6006_v19 = vsub.f32 %v16312_v62, %v16621_v7 }
 0x908   : > { %v12538_v31 = vpop.eup %12537  ;;  %v5849_v28 = vmul.f32 0.025, %v5737_v58  ;;  %11294 = vmatprep.mubr.msk.f32.mxu0 %vm268_vm0, %v6108_v17  ;;  %v5734_v9 = vpop.xlane.xlu0 %5733 }
 0x909   : > { %v12540_v5 = vpop.eup %12539  ;;  %v5848_v26 = vmul.f32 0.025, %v5734_v9  ;;  %11295 = vmatmul.mubr.msk.f32.vlgmr.msra.gmra.mrb[96].mxu0 %vm268_vm0, %v6109_v29  ;;  %v6037_v8 = vmul.f32 %v12538_v31, %v6005_v16 }
 0x90a   : > { %v5913_v12 = vsub.f32 %v5849_v28, %v5881_v45  ;;  %v6036_v30 = vmul.f32 %v12540_v5, %v6004_v10 }
 0x90b   : > { %v5912_v55 = vsub.f32 %v5848_v26, %v5880_v39  ;;  %v5615_v1 = vpop.xlane.xlu1 %5614  ;;  %v6074_v44 = vmul.f32 %v16628_v61, %v6037_v8 }
 0x90c   : > { %v5945_v4 = vadd.f32 1e-05, %v5913_v12  ;;  %v16657_v11 = vmul.f32 0.025, %v5615_v1  ;;  %v5612_v37 = vpop.xlane.xlu0 %5611  ;;  %v6073_v51 = vmul.f32 %v16628_v61, %v6036_v30 }
 0x90d   : > { %v5944_v56 = vadd.f32 1e-05, %v5912_v55  ;;  %v16660_v36 = vmul.f32 0.025, %v5612_v37  ;;  %v6111_v21 = vadd.f32 %v16638_v40, %v6074_v44  ;;  %v6009_v55 = vsub.f32 %v16333_v24, %v16640_v60 }
 0x90e   : > { %12545 = vrsqrt.f32 %v5945_v4  ;;  %v6110_v52 = vadd.f32 %v16638_v40, %v6073_v51  ;;  %v5883_v17 = vmul.f32 %v16657_v11, %v16657_v11  ;;  %v6008_v37 = vsub.f32 %v16336_v18, %v16643_v41 }
 0x90f   : > { %12547 = vrsqrt.f32 %v5944_v56  ;;  %v5743_v59 = vpop.xlane.xlu1 %5742  ;;  %v5882_v31 = vmul.f32 %v16660_v36, %v16660_v36 }
 0x910   : > { %v12542_v49 = vpop.eup %12541  ;;  %v5851_v16 = vmul.f32 0.025, %v5743_v59  ;;  %11297 = vmatprep.mubr.msk.f32.mxu0 %vm268_vm0, %v6110_v52  ;;  %v5740_v58 = vpop.xlane.xlu0 %5739 }
 0x911   : > { %v12544_v29 = vpop.eup %12543  ;;  %v5850_v3 = vmul.f32 0.025, %v5740_v58  ;;  %11298 = vmatmul.mubr.msk.f32.gmra.mrb[98].mxu0 %vm268_vm0, %v6111_v21  ;;  %v6039_v43 = vmul.f32 %v12542_v49, %v6007_v33 }
 0x912   : > { %v5915_v10 = vsub.f32 %v5851_v16, %v5883_v17  ;;  %v6038_v45 = vmul.f32 %v12544_v29, %v6006_v19 }
 0x913   : > { %v5914_v28 = vsub.f32 %v5850_v3, %v5882_v31  ;;  %v5621_v9 = vpop.xlane.xlu1 %5620  ;;  %v6076_v62 = vmul.f32 %v16628_v61, %v6039_v43 }
 0x914   : > { %v5947_v7 = vadd.f32 1e-05, %v5915_v10  ;;  %v16675_v5 = vmul.f32 0.025, %v5621_v9  ;;  %v5618_v39 = vpop.xlane.xlu0 %5617  ;;  %v6075_v26 = vmul.f32 %v16628_v61, %v6038_v45  ;;  %v6011_v10 = vsub.f32 %v16357_v50, %v16657_v11 }
 0x915   : > { %v5946_v8 = vadd.f32 1e-05, %v5914_v28  ;;  %v16678_v12 = vmul.f32 0.025, %v5618_v39  ;;  %v6113_v44 = vadd.f32 %v16638_v40, %v6076_v62  ;;  %v6010_v62 = vsub.f32 %v16360_v32, %v16660_v36 }
 0x916   : > { %12549 = vrsqrt.f32 %v5947_v7  ;;  %v6112_v30 = vadd.f32 %v16638_v40, %v6075_v26  ;;  %v5885_v51 = vmul.f32 %v16675_v5, %v16675_v5 }
 0x917   : > { %12551 = vrsqrt.f32 %v5946_v8  ;;  %v5749_v1 = vpop.xlane.xlu1 %5748  ;;  %v5884_v59 = vmul.f32 %v16678_v12, %v16678_v12 }
 0x918   : > { %v12546_v4 = vpop.eup %12545  ;;  %v5853_v56 = vmul.f32 0.025, %v5749_v1  ;;  %11300 = vmatprep.mubr.msk.f32.mxu0 %vm268_vm0, %v6112_v30  ;;  %v5746_v52 = vpop.xlane.xlu0 %5745 }
 0x919   : > { %v12548_v33 = vpop.eup %12547  ;;  %v5852_v24 = vmul.f32 0.025, %v5746_v52  ;;  %11301 = vmatmul.mubr.msk.f32.gmra.mrb[100].mxu0 %vm268_vm0, %v6113_v44  ;;  %v6041_v60 = vmul.f32 %v12546_v4, %v6009_v55 }
 0x91a   : > { %v5917_v21 = vsub.f32 %v5853_v56, %v5885_v51  ;;  %v6040_v49 = vmul.f32 %v12548_v33, %v6008_v37 }
 0x91b   : > { %v5916_v19 = vsub.f32 %v5852_v24, %v5884_v59  ;;  %v5627_v17 = vpop.xlane.xlu1 %5626  ;;  %v6078_v18 = vmul.f32 %v16628_v61, %v6041_v60  ;;  %v6013_v24 = vsub.f32 %v16381_v23, %v16675_v5 }
 0x91c   : > { %v5949_v41 = vadd.f32 1e-05, %v5917_v21  ;;  %v16693_v16 = vmul.f32 0.025, %v5627_v17  ;;  %v5624_v58 = vpop.xlane.xlu0 %5623  ;;  %v6077_v29 = vmul.f32 %v16628_v61, %v6040_v49 }
 0x91d   : > { %v5948_v31 = vadd.f32 1e-05, %v5916_v19  ;;  %v16696_v3 = vmul.f32 0.025, %v5624_v58  ;;  %v6115_v28 = vadd.f32 %v16638_v40, %v6078_v18  ;;  %v6012_v19 = vsub.f32 %v16387_v54, %v16678_v12 }
 0x91e   : > { %12553 = vrsqrt.f32 %v5949_v41  ;;  %v6114_v43 = vadd.f32 %v16638_v40, %v6077_v29  ;;  %v5887_v7 = vmul.f32 %v16693_v16, %v16693_v16 }
 0x91f   : > { %12555 = vrsqrt.f32 %v5948_v31  ;;  %v5755_v45 = vpop.xlane.xlu1 %5754  ;;  %v5886_v30 = vmul.f32 %v16696_v3, %v16696_v3 }
 0x920   : > { %v12550_v9 = vpop.eup %12549  ;;  %v5855_v39 = vmul.f32 0.025, %v5755_v45  ;;  %11303 = vmatprep.mubr.msk.f32.mxu0 %vm268_vm0, %v6114_v43  ;;  %v5752_v26 = vpop.xlane.xlu0 %5751 }
 0x921   : > { %v12552_v8 = vpop.eup %12551  ;;  %v5854_v50 = vmul.f32 0.025, %v5752_v26  ;;  %11304 = vmatmul.mubr.msk.f32.gmra.mrb[102].mxu0 %vm268_vm0, %v6115_v28  ;;  %v6043_v11 = vmul.f32 %v12550_v9, %v6011_v10 }
 0x922   : > { %v5919_v55 = vsub.f32 %v5855_v39, %v5887_v7  ;;  %v6042_v1 = vmul.f32 %v12552_v8, %v6010_v62  ;;  %v6015_v8 = vsub.f32 %v16408_v63, %v16693_v16 }
 0x923   : > { %v5918_v44 = vsub.f32 %v5854_v50, %v5886_v30  ;;  %v5633_v4 = vpop.xlane.xlu1 %5632  ;;  %v6080_v32 = vmul.f32 %v16628_v61, %v6043_v11 }
 0x924   : > { %v5951_v36 = vadd.f32 1e-05, %v5919_v55  ;;  %v16711_v37 = vmul.f32 0.025, %v5633_v4  ;;  %v5630_v51 = vpop.xlane.xlu0 %5629  ;;  %v6079_v56 = vmul.f32 %v16628_v61, %v6042_v1  ;;  %v6014_v55 = vsub.f32 %v16411_v57, %v16696_v3 }
 0x925   : > { %v5950_v52 = vadd.f32 1e-05, %v5918_v44  ;;  %v16714_v33 = vmul.f32 0.025, %v5630_v51  ;;  %v6117_v21 = vadd.f32 %v16638_v40, %v6080_v32 }
 0x926   : > { %12557 = vrsqrt.f32 %v5951_v36  ;;  %v6116_v59 = vadd.f32 %v16638_v40, %v6079_v56  ;;  %v5889_v17 = vmul.f32 %v16711_v37, %v16711_v37 }
 0x927   : > { %12559 = vrsqrt.f32 %v5950_v52  ;;  %v5761_v60 = vpop.xlane.xlu1 %5760  ;;  %v5888_v29 = vmul.f32 %v16714_v33, %v16714_v33 }
 0x928   : > { %v12554_v49 = vpop.eup %12553  ;;  %v5857_v18 = vmul.f32 0.025, %v5761_v60  ;;  %11306 = vmatprep.mubr.msk.f32.mxu0 %vm268_vm0, %v6116_v59  ;;  %v5758_v41 = vpop.xlane.xlu0 %5757 }
 0x929   : > { %v12556_v58 = vpop.eup %12555  ;;  %v5856_v23 = vmul.f32 0.025, %v5758_v41  ;;  %11307 = vmatmul.mubr.msk.f32.gmra.mrb[104].mxu0 %vm268_vm0, %v6117_v21  ;;  %v6045_v5 = vmul.f32 %v12554_v49, %v6013_v24 }
 0x92a   : > { %v5921_v31 = vsub.f32 %v5857_v18, %v5889_v17  ;;  %v6044_v43 = vmul.f32 %v12556_v58, %v6012_v19  ;;  %v6017_v18 = vsub.f32 %v16432_v15, %v16711_v37 }
 0x92b   : > { %v5920_v10 = vsub.f32 %v5856_v23, %v5888_v29  ;;  %v5639_v45 = vpop.xlane.xlu1 %5638  ;;  %v6082_v54 = vmul.f32 %v16628_v61, %v6045_v5  ;;  %v6016_v23 = vsub.f32 %v16435_v2, %v16714_v33 }
 0x92c   : > { %v5953_v12 = vadd.f32 1e-05, %v5921_v31  ;;  %v16729_v28 = vmul.f32 0.025, %v5639_v45  ;;  %v5636_v9 = vpop.xlane.xlu0 %5635  ;;  %v6081_v62 = vmul.f32 %v16628_v61, %v6044_v43 }
 0x92d   : > { %v5952_v7 = vadd.f32 1e-05, %v5920_v10  ;;  %v16732_v39 = vmul.f32 0.025, %v5636_v9  ;;  %v6119_v50 = vadd.f32 %v16638_v40, %v6082_v54 }
 0x92e   : > { %12561 = vrsqrt.f32 %v5953_v12  ;;  %v6118_v26 = vadd.f32 %v16638_v40, %v6081_v62  ;;  %v5891_v1 = vmul.f32 %v16729_v28, %v16729_v28 }
 0x92f   : > { %12563 = vrsqrt.f32 %v5952_v7  ;;  %v5767_v30 = vpop.xlane.xlu1 %5766  ;;  %v5890_v36 = vmul.f32 %v16732_v39, %v16732_v39 }
 0x930   : > { %v12558_v11 = vpop.eup %12557  ;;  %v5859_v44 = vmul.f32 0.025, %v5767_v30  ;;  %11309 = vmatprep.mubr.msk.f32.mxu0 %vm268_vm0, %v6118_v26  ;;  %v5764_v4 = vpop.xlane.xlu0 %5763 }
 0x931   : > { %v12560_v32 = vpop.eup %12559  ;;  %v5858_v63 = vmul.f32 0.025, %v5764_v4  ;;  %11310 = vmatmul.mubr.msk.f32.gmra.mrb[106].mxu0 %vm268_vm0, %v6119_v50  ;;  %v6047_v16 = vmul.f32 %v12558_v11, %v6015_v8 }
 0x932   : > { %v5923_v51 = vsub.f32 %v5859_v44, %v5891_v1  ;;  %v6046_v56 = vmul.f32 %v12560_v32, %v6014_v55  ;;  %v6019_v55 = vsub.f32 %v16456_v22, %v16729_v28  ;;  %v6018_v32 = vsub.f32 %v16459_v46, %v16732_v39 }
 0x933   : > { %v5922_v52 = vsub.f32 %v5858_v63, %v5890_v36  ;;  %v5645_v59 = vpop.xlane.xlu1 %5644  ;;  %v6084_v57 = vmul.f32 %v16628_v61, %v6047_v16 }
 0x934   : > { %v5955_v3 = vadd.f32 1e-05, %v5923_v51  ;;  %v16747_v24 = vmul.f32 0.025, %v5645_v59  ;;  %v5642_v60 = vpop.xlane.xlu0 %5641  ;;  %v6083_v21 = vmul.f32 %v16628_v61, %v6046_v56 }
 0x935   : > { %v5954_v49 = vadd.f32 1e-05, %v5922_v52  ;;  %v16750_v19 = vmul.f32 0.025, %v5642_v60  ;;  %v6121_v58 = vadd.f32 %v16638_v40, %v6084_v57 }
 0x936   : > { %12565 = vrsqrt.f32 %v5955_v3  ;;  %v6120_v17 = vadd.f32 %v16638_v40, %v6083_v21  ;;  %v5893_v5 = vmul.f32 %v16747_v24, %v16747_v24 }
 0x937   : > { %12567 = vrsqrt.f32 %v5954_v49  ;;  %v5773_v41 = vpop.xlane.xlu1 %5772  ;;  %v5892_v45 = vmul.f32 %v16750_v19, %v16750_v19 }
 0x938   : > { %v12562_v29 = vpop.eup %12561  ;;  %v5861_v31 = vmul.f32 0.025, %v5773_v41  ;;  %11312 = vmatprep.mubr.msk.f32.mxu0 %vm268_vm0, %v6120_v17  ;;  %v5770_v43 = vpop.xlane.xlu0 %5769 }
 0x939   : > { %v12564_v10 = vpop.eup %12563  ;;  %v5860_v15 = vmul.f32 0.025, %v5770_v43  ;;  %11313 = vmatmul.mubr.msk.f32.gmra.mrb[108].mxu0 %vm268_vm0, %v6121_v58  ;;  %v6049_v37 = vmul.f32 %v12562_v29, %v6017_v18  ;;  %v6021_v58 = vsub.f32 %v16480_v48, %v16747_v24 }
 0x93a   : > { %v5925_v54 = vsub.f32 %v5861_v31, %v5893_v5  ;;  %v6048_v12 = vmul.f32 %v12564_v10, %v6016_v23  ;;  %v6020_v31 = vsub.f32 %v16483_v27, %v16750_v19 }
 0x93b   : > { %v5924_v9 = vsub.f32 %v5860_v15, %v5892_v45  ;;  %v5651_v62 = vpop.xlane.xlu1 %5650  ;;  %v6086_v2 = vmul.f32 %v16628_v61, %v6049_v37 }
 0x93c   : > { %v5957_v33 = vadd.f32 1e-05, %v5925_v54  ;;  %v16765_v7 = vmul.f32 0.025, %v5651_v62  ;;  %v5648_v26 = vpop.xlane.xlu0 %5647  ;;  %v6085_v8 = vmul.f32 %v16628_v61, %v6048_v12 }
 0x93d   : > { %v5956_v30 = vadd.f32 1e-05, %v5924_v9  ;;  %v16768_v50 = vmul.f32 0.025, %v5648_v26  ;;  %v6123_v44 = vadd.f32 %v16638_v40, %v6086_v2 }
 0x93e   : > { %12569 = vrsqrt.f32 %v5957_v33  ;;  %v6122_v11 = vadd.f32 %v16638_v40, %v6085_v8  ;;  %v5895_v36 = vmul.f32 %v16765_v7, %v16765_v7 }
 0x93f   : > { %12571 = vrsqrt.f32 %v5956_v30  ;;  %v5779_v1 = vpop.xlane.xlu1 %5778  ;;  %v5894_v56 = vmul.f32 %v16768_v50, %v16768_v50 }
 0x940   : > { %v12566_v4 = vpop.eup %12565  ;;  %v5863_v63 = vmul.f32 0.025, %v5779_v1  ;;  %11315 = vmatprep.mubr.msk.f32.mxu0 %vm268_vm0, %v6122_v11  ;;  %v5776_v16 = vpop.xlane.xlu0 %5775 }
 0x941   : > { %v12568_v51 = vpop.eup %12567  ;;  %v5862_v22 = vmul.f32 0.025, %v5776_v16  ;;  %11316 = vmatmul.mubr.msk.f32.gmra.mrb[110].mxu0 %vm268_vm0, %v6123_v44  ;;  %v6051_v28 = vmul.f32 %v12566_v4, %v6019_v55  ;;  %v6023_v55 = vsub.f32 %v16504_v53, %v16765_v7 }
 0x942   : > { %v5927_v52 = vsub.f32 %v5863_v63, %v5895_v36  ;;  %v6050_v59 = vmul.f32 %v12568_v51, %v6018_v32  ;;  %v6022_v32 = vsub.f32 %v16507_v47, %v16768_v50 }
 0x943   : > { %v5926_v57 = vsub.f32 %v5862_v22, %v5894_v56  ;;  %v5657_v3 = vpop.xlane.xlu1 %5656  ;;  %v6088_v46 = vmul.f32 %v16628_v61, %v6051_v28 }
 0x944   : > { %v5959_v39 = vadd.f32 1e-05, %v5927_v52  ;;  %v16783_v60 = vmul.f32 0.025, %v5657_v3  ;;  %v5654_v21 = vpop.xlane.xlu0 %5653  ;;  %v6087_v49 = vmul.f32 %v16628_v61, %v6050_v59 }
 0x945   : > { %v5958_v17 = vadd.f32 1e-05, %v5926_v57  ;;  %v16786_v18 = vmul.f32 0.025, %v5654_v21  ;;  %v6125_v23 = vadd.f32 %v16638_v40, %v6088_v46 }
 0x946   : > { %12573 = vrsqrt.f32 %v5959_v39  ;;  %v6124_v41 = vadd.f32 %v16638_v40, %v6087_v49  ;;  %v5897_v43 = vmul.f32 %v16783_v60, %v16783_v60 }
 0x947   : > { %12575 = vrsqrt.f32 %v5958_v17  ;;  %v5785_v29 = vpop.xlane.xlu1 %5784  ;;  %v5896_v37 = vmul.f32 %v16786_v18, %v16786_v18  ;;  %v6025_v17 = vsub.f32 %v16528_v35, %v16783_v60 }
 0x948   : > { %v12570_v5 = vpop.eup %12569  ;;  %v5865_v10 = vmul.f32 0.025, %v5785_v29  ;;  %11318 = vmatprep.mubr.msk.f32.mxu0 %vm268_vm0, %v6124_v41  ;;  %v5782_v45 = vpop.xlane.xlu0 %5781 }
 0x949   : > { %v12572_v15 = vpop.eup %12571  ;;  %v5864_v48 = vmul.f32 0.025, %v5782_v45  ;;  %11319 = vmatmul.mubr.msk.f32.gmra.mrb[112].mxu0 %vm268_vm0, %v6125_v23  ;;  %v6053_v24 = vmul.f32 %v12570_v5, %v6021_v58  ;;  %v6024_v23 = vsub.f32 %v16531_v42, %v16786_v18 }
 0x94a   : > { %v5929_v54 = vsub.f32 %v5865_v10, %v5897_v43  ;;  %v6052_v12 = vmul.f32 %v12572_v15, %v6020_v31 }
 0x94b   : > { %v5928_v9 = vsub.f32 %v5864_v48, %v5896_v37  ;;  %v5663_v62 = vpop.xlane.xlu1 %5662  ;;  %v6090_v27 = vmul.f32 %v16628_v61, %v6053_v24 }
 0x94c   : > { %v5961_v19 = vadd.f32 1e-05, %v5929_v54  ;;  %v16801_v2 = vmul.f32 0.025, %v5663_v62  ;;  %v5660_v33 = vpop.xlane.xlu0 %5659  ;;  %v6089_v26 = vmul.f32 %v16628_v61, %v6052_v12 }
 0x94d   : > { %v5960_v8 = vadd.f32 1e-05, %v5928_v9  ;;  %v16804_v30 = vmul.f32 0.025, %v5660_v33  ;;  %v6127_v44 = vadd.f32 %v16638_v40, %v6090_v27 }
 0x94e   : > { %12577 = vrsqrt.f32 %v5961_v19  ;;  %v6126_v11 = vadd.f32 %v16638_v40, %v6089_v26  ;;  %v5899_v36 = vmul.f32 %v16801_v2, %v16801_v2  ;;  %v6027_v33 = vsub.f32 %v16552_v34, %v16801_v2 }
 0x94f   : > { %12579 = vrsqrt.f32 %v5960_v8  ;;  %v5791_v1 = vpop.xlane.xlu1 %5790  ;;  %v5898_v56 = vmul.f32 %v16804_v30, %v16804_v30 }
 0x950   : > { %v12574_v4 = vpop.eup %12573  ;;  %v5867_v63 = vmul.f32 0.025, %v5791_v1  ;;  %11321 = vmatprep.mubr.msk.f32.mxu0 %vm268_vm0, %v6126_v11  ;;  %v5788_v16 = vpop.xlane.xlu0 %5787 }
 0x951   : > { %v12576_v51 = vpop.eup %12575  ;;  %v5866_v53 = vmul.f32 0.025, %v5788_v16  ;;  %11322 = vmatmul.mubr.msk.f32.gmra.mrb[114].mxu0 %vm268_vm0, %v6127_v44  ;;  %v6055_v7 = vmul.f32 %v12574_v4, %v6023_v55  ;;  %v6026_v55 = vsub.f32 %v16555_v6, %v16804_v30 }
 0x952   : > { %v5931_v22 = vsub.f32 %v5867_v63, %v5899_v36  ;;  %v6054_v28 = vmul.f32 %v12576_v51, %v6022_v32 }
 0x953   : > { %v5930_v52 = vsub.f32 %v5866_v53, %v5898_v56  ;;  %v5669_v59 = vpop.xlane.xlu1 %5668  ;;  %v6092_v47 = vmul.f32 %v16628_v61, %v6055_v7 }
 0x954   : > { %v5963_v50 = vadd.f32 1e-05, %v5931_v22  ;;  %v16819_v57 = vmul.f32 0.025, %v5669_v59  ;;  %v5666_v3 = vpop.xlane.xlu0 %5665  ;;  %v6091_v46 = vmul.f32 %v16628_v61, %v6054_v28 }
 0x955   : > { %v5962_v39 = vadd.f32 1e-05, %v5930_v52  ;;  %v16822_v21 = vmul.f32 0.025, %v5666_v3  ;;  %v6129_v58 = vadd.f32 %v16638_v40, %v6092_v47 }
 0x956   : > { %12581 = vrsqrt.f32 %v5963_v50  ;;  %v6128_v49 = vadd.f32 %v16638_v40, %v6091_v46  ;;  %v5901_v5 = vmul.f32 %v16819_v57, %v16819_v57  ;;  %v6029_v47 = vsub.f32 %v16568_v14, %v16819_v57 }
 0x957   : > { %12583 = vrsqrt.f32 %v5962_v39  ;;  %v5797_v41 = vpop.xlane.xlu1 %5796  ;;  %v5900_v45 = vmul.f32 %v16822_v21, %v16822_v21  ;;  %v6028_v39 = vsub.f32 %v16571_v38, %v16822_v21 }
 0x958   : > { %v12578_v29 = vpop.eup %12577  ;;  %v5869_v31 = vmul.f32 0.025, %v5797_v41  ;;  %11324 = vmatprep.mubr.msk.f32.mxu0 %vm268_vm0, %v6128_v49  ;;  %v5794_v43 = vpop.xlane.xlu0 %5793 }
 0x959   : > { %v12580_v10 = vpop.eup %12579  ;;  %v5868_v35 = vmul.f32 0.025, %v5794_v43  ;;  %11325 = vmatmul.mubr.msk.f32.gmra.mrb[116].mxu0 %vm268_vm0, %v6129_v58  ;;  %v6057_v60 = vmul.f32 %v12578_v29, %v6025_v17 }
 0x95a   : > { %v5933_v15 = vsub.f32 %v5869_v31, %v5901_v5  ;;  %v6056_v37 = vmul.f32 %v12580_v10, %v6024_v23 }
 0x95b   : > { %v5932_v48 = vsub.f32 %v5868_v35, %v5900_v45  ;;  %v5675_v24 = vpop.xlane.xlu1 %5674  ;;  %v6094_v42 = vmul.f32 %v16628_v61, %v6057_v60 }
 0x95c   : > { %v5965_v18 = vadd.f32 1e-05, %v5933_v15  ;;  %v16837_v54 = vmul.f32 0.025, %v5675_v24  ;;  %v5672_v12 = vpop.xlane.xlu0 %5671  ;;  %v6093_v9 = vmul.f32 %v16628_v61, %v6056_v37 }
 0x95d   : > { %v5964_v62 = vadd.f32 1e-05, %v5932_v48  ;;  %v16840_v27 = vmul.f32 0.025, %v5672_v12  ;;  %v6131_v8 = vadd.f32 %v16638_v40, %v6094_v42 }
 0x95e   : > { %12585 = vrsqrt.f32 %v5965_v18  ;;  %v6130_v19 = vadd.f32 %v16638_v40, %v6093_v9  ;;  %v5903_v1 = vmul.f32 %v16837_v54, %v16837_v54  ;;  %v6031_v35 = vsub.f32 %v16584_v25, %v16837_v54 }
 0x95f   : > { %12587 = vrsqrt.f32 %v5964_v62  ;;  %v5803_v26 = vpop.xlane.xlu1 %5802  ;;  %v5902_v36 = vmul.f32 %v16840_v27, %v16840_v27  ;;  %v6030_v37 = vsub.f32 %v16587_v13, %v16840_v27 }
 0x960   : > { %v12582_v11 = vpop.eup %12581  ;;  %v5871_v44 = vmul.f32 0.025, %v5803_v26  ;;  %11327 = vmatprep.mubr.msk.f32.mxu0 %vm268_vm0, %v6130_v19  ;;  %v5800_v4 = vpop.xlane.xlu0 %5799 }
 0x961   : > { %v12584_v32 = vpop.eup %12583  ;;  %v5870_v34 = vmul.f32 0.025, %v5800_v4  ;;  %11328 = vmatmul.mubr.msk.f32.gmra.mrb[118].mxu0 %vm268_vm0, %v6131_v8  ;;  %v6059_v2 = vmul.f32 %v12582_v11, %v6027_v33 }
 0x962   : > { %v5935_v63 = vsub.f32 %v5871_v44, %v5903_v1  ;;  %v6058_v16 = vmul.f32 %v12584_v32, %v6026_v55 }
 0x963   : > { %v5934_v51 = vsub.f32 %v5870_v34, %v5902_v36  ;;  %v5681_v56 = vpop.xlane.xlu1 %5680  ;;  %v6096_v6 = vmul.f32 %v16628_v61, %v6059_v2 }
 0x964   : > { %v5967_v30 = vadd.f32 1e-05, %v5935_v63  ;;  %v5841_v53 = vmul.f32 0.025, %v5681_v56  ;;  %v5678_v7 = vpop.xlane.xlu0 %5677  ;;  %v6095_v22 = vmul.f32 %v16628_v61, %v6058_v16 }
 0x965   : > { %v5966_v28 = vadd.f32 1e-05, %v5934_v51  ;;  %v5840_v52 = vmul.f32 0.025, %v5678_v7  ;;  %v6133_v3 = vadd.f32 %v16638_v40, %v6096_v6 }
 0x966   : > { %12589 = vrsqrt.f32 %v5967_v30  ;;  %v6132_v59 = vadd.f32 %v16638_v40, %v6095_v22  ;;  %v5905_v49 = vmul.f32 %v5841_v53, %v5841_v53  ;;  %v6033_v54 = vsub.f32 %v16600_v20, %v5841_v53 }
 0x967   : > { %12591 = vrsqrt.f32 %v5966_v28  ;;  %v5809_v50 = vpop.xlane.xlu1 %5808  ;;  %v5904_v29 = vmul.f32 %v5840_v52, %v5840_v52  ;;  %v6032_v13 = vsub.f32 %v16603_v0, %v5840_v52  ;;  %v16891_v0 = vld [vmem:[%s19019_s2 + $0xe] ss:$0 sm:$0xff] }
 0x968   : > { %v12586_v46 = vpop.eup %12585  ;;  %v5873_v17 = vmul.f32 0.025, %v5809_v50  ;;  %11330 = vmatprep.mubr.msk.f32.mxu0 %vm268_vm0, %v6132_v59  ;;  %v5806_v41 = vpop.xlane.xlu0 %5805  ;;  %v10384_v50 = vld [vmem:[%s19018_s1 + $0x120] sm:$0xff] }
 0x969   : > { %v12588_v58 = vpop.eup %12587  ;;  %v5872_v23 = vmul.f32 0.025, %v5806_v41  ;;  %11331 = vmatmul.mubr.msk.f32.gmra.mrb[120].mxu0 %vm268_vm0, %v6133_v3  ;;  %v6061_v5 = vmul.f32 %v12586_v46, %v6029_v47  ;;  %v10383_v47 = vld [vmem:[%s19018_s1 + $0x118] sm:$0xff] }
 0x96a   : > { %v5937_v14 = vsub.f32 %v5873_v17, %v5905_v49  ;;  %v6060_v57 = vmul.f32 %v12588_v58, %v6028_v39  ;;  %v11572_v46 = vpack.c.bf16 %v10384_v50, %v10383_v47 }
 0x96b   : > { %v5936_v31 = vsub.f32 %v5872_v23, %v5904_v29  ;;  %v6098_v43 = vmul.f32 %v16628_v61, %v6061_v5 }
 0x96c   : > { %v5969_v10 = vadd.f32 1e-05, %v5937_v14  ;;  %v6097_v45 = vmul.f32 %v16628_v61, %v6060_v57  ;;  %11573 = vmatprep.subr.bf16.mxu1 %v11572_v46 }
 0x96d   : > { %v5968_v38 = vadd.f32 1e-05, %v5936_v31  ;;  %v6135_v60 = vadd.f32 %v16638_v40, %v6098_v43  ;;  %11575 = vmatpush3.bf16.msra.mxu1 %v11572_v46 }
 0x96e   : > { %12593 = vrsqrt.f32 %v5969_v10  ;;  %v6134_v21 = vadd.f32 %v16638_v40, %v6097_v45  ;;  %v10385_v10 = vld [vmem:[%s19018_s1 + $0x128] sm:$0xff]  ;;  %v10386_v45 = vld [vmem:[%s19018_s1 + $0x130] sm:$0xff] }
 0x96f   : > { %12595 = vrsqrt.f32 %v5968_v38 }
 0x970   : > { %v12590_v15 = vpop.eup %12589  ;;  %11333 = vmatprep.mubr.msk.f32.mxu0 %vm268_vm0, %v6134_v21  ;;  %v11576_v21 = vpack.c.bf16 %v10386_v45, %v10385_v10 }
 0x971   : > { %v12592_v48 = vpop.eup %12591  ;;  %11334 = vmatmul.mubr.msk.f32.gmra.mrb[122].mxu0 %vm268_vm0, %v6135_v60  ;;  %v6063_v24 = vmul.f32 %v12590_v15, %v6031_v35 }
 0x972   : > { %v6062_v42 = vmul.f32 %v12592_v48, %v6030_v37  ;;  %11577 = vmatprep.subr.bf16.mxu1 %v11576_v21 }
 0x973   : > { %v6100_v18 = vmul.f32 %v16628_v61, %v6063_v24  ;;  %11579 = vmatpush3.bf16.msra.mxu1 %v11576_v21 }
 0x974   : > { %v6099_v12 = vmul.f32 %v16628_v61, %v6062_v42 }
 0x975   : > { %v6137_v9 = vadd.f32 %v16638_v40, %v6100_v18 }
 0x976   : > { %v6136_v25 = vadd.f32 %v16638_v40, %v6099_v12 }
 0x978   : > { %v12594_v62 = vpop.eup %12593  ;;  %11336 = vmatprep.mubr.msk.f32.mxu0 %vm268_vm0, %v6136_v25 }
 0x979   : > { %v12596_v27 = vpop.eup %12595  ;;  %11337 = vmatmul.mubr.msk.f32.gmra.mrb[124].mxu0 %vm268_vm0, %v6137_v9  ;;  %v6065_v19 = vmul.f32 %v12594_v62, %v6033_v54 }
 0x97a   : > { %v6064_v33 = vmul.f32 %v12596_v27, %v6032_v13 }
 0x97b   : > { %v6102_v26 = vmul.f32 %v16628_v61, %v6065_v19 }
 0x97c   : > { %v6101_v8 = vmul.f32 %v16628_v61, %v6064_v33 }
 0x97d   : > { %v6139_v20 = vadd.f32 %v16638_v40, %v6102_v26 }
 0x97e   : > { %v6138_v11 = vadd.f32 %v16638_v40, %v6101_v8 }
 0x980   : > { %11339 = vmatprep.mubr.msk.f32.mxu0 %vm268_vm0, %v6138_v11 }
 0x981   : > { %11340 = vmatmul.mubr.msk.f32.gmra.mrb[126].mxu0 %vm268_vm0, %v6139_v20 }
 0x9dc   : > { %v11296_v55 = vpop.f32.mrb[96].mxu0 }
 0x9dd   : > { %v6319_v1 = vadd.f32 %v11296_v55, %v16891_v0  ;;  %v6313_v44 = vpop.f32.mrb[97].mxu0 }
 0x9de   : > { %v6314_v4 = vadd.f32 %v16891_v0, %v6313_v44 }
 0x9df   : > { %v10350_v61 = vmul.f32 -1.442695, %v6319_v1 }
 0x9e0   : > { %v10349_v32 = vmul.f32 -1.442695, %v6314_v4 }
 0x9e1   : > { %12597 = vpow2.f32 %v10350_v61 }
 0x9e2   : > { %12599 = vpow2.f32 %v10349_v32 }
 0x9e4   : > { %v11299_v40 = vpop.f32.mrb[98].mxu0 }
 0x9e5   : > { %v16896_v36 = vadd.f32 %v11299_v40, %v16891_v0  ;;  %v6323_v34 = vpop.f32.mrb[99].mxu0 }
 0x9e6   : > { %v16899_v2 = vadd.f32 %v16891_v0, %v6323_v34 }
 0x9e7   : > { %v10352_v63 = vmul.f32 -1.442695, %v16896_v36 }
 0x9e8   : > { %v10351_v16 = vmul.f32 -1.442695, %v16899_v2 }
 0x9e9   : > { %12601 = vpow2.f32 %v10352_v63 }
 0x9ea   : > { %12603 = vpow2.f32 %v10351_v16 }
 0x9eb   : > { %v12598_v51 = vpop.eup %12597 }
 0x9ec   : > { %v12600_v56 = vpop.eup %12599  ;;  %v6569_v6 = vadd.f32 1.0, %v12598_v51  ;;  %v11302_v30 = vpop.f32.mrb[100].mxu0 }
 0x9ed   : > { %v6568_v53 = vadd.f32 1.0, %v12600_v56  ;;  %v16904_v7 = vadd.f32 %v11302_v30, %v16891_v0  ;;  %v6333_v22 = vpop.f32.mrb[101].mxu0 }
 0x9ee   : > { %12605 = vrcp.f32 %v6569_v6  ;;  %v16907_v28 = vadd.f32 %v16891_v0, %v6333_v22 }
 0x9ef   : > { %12607 = vrcp.f32 %v6568_v53  ;;  %v10354_v52 = vmul.f32 -1.442695, %v16904_v7 }
 0x9f0   : > { %v10353_v59 = vmul.f32 -1.442695, %v16907_v28 }
 0x9f1   : > { %12609 = vpow2.f32 %v10354_v52 }
 0x9f2   : > { %12611 = vpow2.f32 %v10353_v59 }
 0x9f3   : > { %v12602_v3 = vpop.eup %12601 }
 0x9f4   : > { %v12604_v39 = vpop.eup %12603  ;;  %v6571_v49 = vadd.f32 1.0, %v12602_v3  ;;  %v11305_v17 = vpop.f32.mrb[102].mxu0 }
 0x9f5   : > { %v6570_v41 = vadd.f32 1.0, %v12604_v39  ;;  %v16918_v58 = vadd.f32 %v11305_v17, %v16891_v0  ;;  %v6343_v29 = vpop.f32.mrb[103].mxu0 }
 0x9f6   : > { %12613 = vrcp.f32 %v6571_v49  ;;  %v16921_v23 = vadd.f32 %v16891_v0, %v6343_v29 }
 0x9f7   : > { %12615 = vrcp.f32 %v6570_v41  ;;  %v10356_v5 = vmul.f32 -1.442695, %v16918_v58 }
 0x9f8   : > { %v12606_v14 = vpop.eup %12605  ;;  %v10355_v57 = vmul.f32 -1.442695, %v16921_v23 }
 0x9f9   : > { %v12608_v31 = vpop.eup %12607  ;;  %v16925_v43 = vmul.f32 %v12606_v14, %v6319_v1  ;;  %12617 = vpow2.f32 %v10356_v5 }
 0x9fa   : > { %v16933_v38 = vmul.f32 %v12608_v31, %v6314_v4  ;;  %12619 = vpow2.f32 %v10355_v57 }
 0x9fb   : > { %v12610_v35 = vpop.eup %12609  ;;  %v6699_v60 = vsel %vm268_vm0, %v16925_v43, 0.0  ;;  %v6793_v15 = vmul.f32 %v16925_v43, %v16925_v43 }
 0x9fc   : > { %v12612_v37 = vpop.eup %12611  ;;  %v6573_v48 = vadd.f32 1.0, %v12610_v35  ;;  %6700 = vadd.xlane.f32.xlu1 %v6699_v60  ;;  %v11308_v24 = vpop.f32.mrb[104].mxu0  ;;  %v6696_v42 = vsel %vm268_vm0, %v16933_v38, 0.0  ;;  %v6792_v18 = vmul.f32 %v16933_v38, %v16933_v38 }
 0x9fd   : > { %v6572_v12 = vadd.f32 1.0, %v12612_v37  ;;  %v16944_v25 = vadd.f32 %v11308_v24, %v16891_v0  ;;  %6697 = vadd.xlane.f32.xlu0 %v6696_v42  ;;  %v6353_v54 = vpop.f32.mrb[105].mxu0  ;;  %v6827_v13 = vsel %vm268_vm0, %v6793_v15, 0.0 }
 0x9fe   : > { %12621 = vrcp.f32 %v6573_v48  ;;  %v16947_v9 = vadd.f32 %v16891_v0, %v6353_v54  ;;  %v6824_v33 = vsel %vm268_vm0, %v6792_v18, 0.0 }
 0x9ff   : > { %12623 = vrcp.f32 %v6572_v12  ;;  %v10358_v62 = vmul.f32 -1.442695, %v16944_v25 }
 0xa00   : > { %v12614_v27 = vpop.eup %12613  ;;  %v10357_v19 = vmul.f32 -1.442695, %v16947_v9  ;;  %6828 = vadd.xlane.f32.xlu1 %v6827_v13 }
 0xa01   : > { %v12616_v26 = vpop.eup %12615  ;;  %v16954_v8 = vmul.f32 %v12614_v27, %v16896_v36  ;;  %12625 = vpow2.f32 %v10358_v62  ;;  %6825 = vadd.xlane.f32.xlu0 %v6824_v33 }
 0xa02   : > { %v16957_v11 = vmul.f32 %v12616_v26, %v16899_v2  ;;  %12627 = vpow2.f32 %v10357_v19 }
 0xa03   : > { %v12618_v20 = vpop.eup %12617  ;;  %v6705_v55 = vsel %vm268_vm0, %v16954_v8, 0.0  ;;  %v6795_v1 = vmul.f32 %v16954_v8, %v16954_v8 }
 0xa04   : > { %v12620_v44 = vpop.eup %12619  ;;  %v6575_v4 = vadd.f32 1.0, %v12618_v20  ;;  %6706 = vadd.xlane.f32.xlu1 %v6705_v55  ;;  %v11311_v61 = vpop.f32.mrb[106].mxu0  ;;  %v6702_v32 = vsel %vm268_vm0, %v16957_v11, 0.0  ;;  %v6794_v40 = vmul.f32 %v16957_v11, %v16957_v11 }
 0xa05   : > { %v6574_v36 = vadd.f32 1.0, %v12620_v44  ;;  %v16968_v34 = vadd.f32 %v11311_v61, %v16891_v0  ;;  %6703 = vadd.xlane.f32.xlu0 %v6702_v32  ;;  %v6363_v2 = vpop.f32.mrb[107].mxu0  ;;  %v6833_v51 = vsel %vm268_vm0, %v6795_v1, 0.0 }
 0xa06   : > { %12629 = vrcp.f32 %v6575_v4  ;;  %v16971_v63 = vadd.f32 %v16891_v0, %v6363_v2  ;;  %v6830_v30 = vsel %vm268_vm0, %v6794_v40, 0.0 }
 0xa07   : > { %12631 = vrcp.f32 %v6574_v36  ;;  %v10360_v16 = vmul.f32 -1.442695, %v16968_v34 }
 0xa08   : > { %v12622_v56 = vpop.eup %12621  ;;  %v10359_v6 = vmul.f32 -1.442695, %v16971_v63  ;;  %6834 = vadd.xlane.f32.xlu1 %v6833_v51 }
 0xa09   : > { %v12624_v53 = vpop.eup %12623  ;;  %v16978_v22 = vmul.f32 %v12622_v56, %v16904_v7  ;;  %12633 = vpow2.f32 %v10360_v16  ;;  %6831 = vadd.xlane.f32.xlu0 %v6830_v30 }
 0xa0a   : > { %v16981_v52 = vmul.f32 %v12624_v53, %v16907_v28  ;;  %12635 = vpow2.f32 %v10359_v6 }
 0xa0b   : > { %v12626_v59 = vpop.eup %12625  ;;  %v6711_v47 = vsel %vm268_vm0, %v16978_v22, 0.0  ;;  %v6797_v50 = vmul.f32 %v16978_v22, %v16978_v22 }
 0xa0c   : > { %v12628_v3 = vpop.eup %12627  ;;  %v6577_v46 = vadd.f32 1.0, %v12626_v59  ;;  %6712 = vadd.xlane.f32.xlu1 %v6711_v47  ;;  %v11314_v39 = vpop.f32.mrb[108].mxu0  ;;  %v6708_v7 = vsel %vm268_vm0, %v16981_v52, 0.0  ;;  %v6796_v49 = vmul.f32 %v16981_v52, %v16981_v52 }
 0xa0d   : > { %v6576_v28 = vadd.f32 1.0, %v12628_v3  ;;  %v16992_v17 = vadd.f32 %v11314_v39, %v16891_v0  ;;  %6709 = vadd.xlane.f32.xlu0 %v6708_v7  ;;  %v6373_v41 = vpop.f32.mrb[109].mxu0  ;;  %v6839_v14 = vsel %vm268_vm0, %v6797_v50, 0.0 }
 0xa0e   : > { %12637 = vrcp.f32 %v6577_v46  ;;  %v16995_v29 = vadd.f32 %v16891_v0, %v6373_v41  ;;  %v6836_v10 = vsel %vm268_vm0, %v6796_v49, 0.0  ;;  %v10387_v46 = vld [vmem:[%s19018_s1 + $0x138] sm:$0xff] }
 0xa0f   : > { %12639 = vrcp.f32 %v6576_v28  ;;  %v10362_v5 = vmul.f32 -1.442695, %v16992_v17  ;;  %11350 = vmatprep.subr.mxu1 %v10387_v46 }
 0xa10   : > { %v12630_v57 = vpop.eup %12629  ;;  %v10361_v31 = vmul.f32 -1.442695, %v16995_v29  ;;  %6840 = vadd.xlane.f32.xlu1 %v6839_v14  ;;  %11351 = vmatpush3.msra.mxu1 %v10387_v46 }
 0xa11   : > { %v12632_v45 = vpop.eup %12631  ;;  %v17002_v21 = vmul.f32 %v12630_v57, %v16918_v58  ;;  %12641 = vpow2.f32 %v10362_v5  ;;  %6837 = vadd.xlane.f32.xlu0 %v6836_v10 }
 0xa12   : > { %v17005_v35 = vmul.f32 %v12632_v45, %v16921_v23  ;;  %12643 = vpow2.f32 %v10361_v31 }
 0xa13   : > { %v12634_v60 = vpop.eup %12633  ;;  %v6717_v15 = vsel %vm268_vm0, %v17002_v21, 0.0  ;;  %v6799_v37 = vmul.f32 %v17002_v21, %v17002_v21 }
 0xa14   : > { %v12636_v48 = vpop.eup %12635  ;;  %v6579_v24 = vadd.f32 1.0, %v12634_v60  ;;  %6718 = vadd.xlane.f32.xlu1 %v6717_v15  ;;  %v11317_v42 = vpop.f32.mrb[110].mxu0  ;;  %v6714_v58 = vsel %vm268_vm0, %v17005_v35, 0.0  ;;  %v6798_v18 = vmul.f32 %v17005_v35, %v17005_v35 }
 0xa15   : > { %v6578_v23 = vadd.f32 1.0, %v12636_v48  ;;  %v17016_v12 = vadd.f32 %v11317_v42, %v16891_v0  ;;  %6715 = vadd.xlane.f32.xlu0 %v6714_v58  ;;  %v6383_v54 = vpop.f32.mrb[111].mxu0  ;;  %v6845_v27 = vsel %vm268_vm0, %v6799_v37, 0.0 }
 0xa16   : > { %12645 = vrcp.f32 %v6579_v24  ;;  %v17019_v62 = vadd.f32 %v16891_v0, %v6383_v54  ;;  %v6842_v26 = vsel %vm268_vm0, %v6798_v18, 0.0 }
 0xa17   : > { %12647 = vrcp.f32 %v6578_v23  ;;  %v10364_v13 = vmul.f32 -1.442695, %v17016_v12 }
 0xa18   : > { %v12638_v19 = vpop.eup %12637  ;;  %v10363_v33 = vmul.f32 -1.442695, %v17019_v62  ;;  %6846 = vadd.xlane.f32.xlu1 %v6845_v27 }
 0xa19   : > { %v12640_v20 = vpop.eup %12639  ;;  %v17026_v55 = vmul.f32 %v12638_v19, %v16944_v25  ;;  %12649 = vpow2.f32 %v10364_v13  ;;  %6843 = vadd.xlane.f32.xlu0 %v6842_v26 }
 0xa1a   : > { %v17029_v1 = vmul.f32 %v12640_v20, %v16947_v9  ;;  %12651 = vpow2.f32 %v10363_v33 }
 0xa1b   : > { %v12642_v44 = vpop.eup %12641  ;;  %v6723_v4 = vsel %vm268_vm0, %v17026_v55, 0.0  ;;  %v6801_v61 = vmul.f32 %v17026_v55, %v17026_v55 }
 0xa1c   : > { %v12644_v32 = vpop.eup %12643  ;;  %v6581_v40 = vadd.f32 1.0, %v12642_v44  ;;  %6724 = vadd.xlane.f32.xlu1 %v6723_v4  ;;  %v11320_v36 = vpop.f32.mrb[112].mxu0  ;;  %v6720_v25 = vsel %vm268_vm0, %v17029_v1, 0.0  ;;  %v6800_v2 = vmul.f32 %v17029_v1, %v17029_v1 }
 0xa1d   : > { %v6580_v9 = vadd.f32 1.0, %v12644_v32  ;;  %v17040_v16 = vadd.f32 %v11320_v36, %v16891_v0  ;;  %6721 = vadd.xlane.f32.xlu0 %v6720_v25  ;;  %v6393_v51 = vpop.f32.mrb[113].mxu0  ;;  %v6851_v30 = vsel %vm268_vm0, %v6801_v61, 0.0 }
 0xa1e   : > { %12653 = vrcp.f32 %v6581_v40  ;;  %v17043_v56 = vadd.f32 %v16891_v0, %v6393_v51  ;;  %v6848_v47 = vsel %vm268_vm0, %v6800_v2, 0.0 }
 0xa1f   : > { %12655 = vrcp.f32 %v6580_v9  ;;  %v10366_v6 = vmul.f32 -1.442695, %v17040_v16 }
 0xa20   : > { %v12646_v53 = vpop.eup %12645  ;;  %v10365_v59 = vmul.f32 -1.442695, %v17043_v56  ;;  %6852 = vadd.xlane.f32.xlu1 %v6851_v30 }
 0xa21   : > { %v12648_v50 = vpop.eup %12647  ;;  %v17050_v3 = vmul.f32 %v12646_v53, %v16968_v34  ;;  %12657 = vpow2.f32 %v10366_v6  ;;  %6849 = vadd.xlane.f32.xlu0 %v6848_v47 }
 0xa22   : > { %v17056_v39 = vmul.f32 %v12648_v50, %v16971_v63  ;;  %12659 = vpow2.f32 %v10365_v59 }
 0xa23   : > { %v12650_v7 = vpop.eup %12649  ;;  %v6729_v49 = vsel %vm268_vm0, %v17050_v3, 0.0  ;;  %v6803_v28 = vmul.f32 %v17050_v3, %v17050_v3 }
 0xa24   : > { %v12652_v34 = vpop.eup %12651  ;;  %v6583_v41 = vadd.f32 1.0, %v12650_v7  ;;  %6730 = vadd.xlane.f32.xlu1 %v6729_v49  ;;  %v11323_v5 = vpop.f32.mrb[114].mxu0  ;;  %v6726_v14 = vsel %vm268_vm0, %v17056_v39, 0.0  ;;  %v6802_v63 = vmul.f32 %v17056_v39, %v17056_v39 }
 0xa25   : > { %v6582_v57 = vadd.f32 1.0, %v12652_v34  ;;  %v17067_v31 = vadd.f32 %v11323_v5, %v16891_v0  ;;  %6727 = vadd.xlane.f32.xlu0 %v6726_v14  ;;  %v6403_v10 = vpop.f32.mrb[115].mxu0  ;;  %v6857_v15 = vsel %vm268_vm0, %v6803_v28, 0.0 }
 0xa26   : > { %12661 = vrcp.f32 %v6583_v41  ;;  %v17070_v45 = vadd.f32 %v16891_v0, %v6403_v10  ;;  %v6854_v24 = vsel %vm268_vm0, %v6802_v63, 0.0 }
 0xa27   : > { %12663 = vrcp.f32 %v6582_v57  ;;  %v10368_v60 = vmul.f32 -1.442695, %v17067_v31 }
 0xa28   : > { %v12654_v37 = vpop.eup %12653  ;;  %v10367_v48 = vmul.f32 -1.442695, %v17070_v45  ;;  %6858 = vadd.xlane.f32.xlu1 %v6857_v15 }
 0xa29   : > { %v12656_v42 = vpop.eup %12655  ;;  %v17077_v58 = vmul.f32 %v12654_v37, %v16992_v17  ;;  %12665 = vpow2.f32 %v10368_v60  ;;  %6855 = vadd.xlane.f32.xlu0 %v6854_v24 }
 0xa2a   : > { %v17080_v18 = vmul.f32 %v12656_v42, %v16995_v29  ;;  %12667 = vpow2.f32 %v10367_v48 }
 0xa2b   : > { %v12658_v23 = vpop.eup %12657  ;;  %v6735_v54 = vsel %vm268_vm0, %v17077_v58, 0.0  ;;  %v6805_v13 = vmul.f32 %v17077_v58, %v17077_v58 }
 0xa2c   : > { %v12660_v27 = vpop.eup %12659  ;;  %v6585_v19 = vadd.f32 1.0, %v12658_v23  ;;  %6736 = vadd.xlane.f32.xlu1 %v6735_v54  ;;  %v11326_v33 = vpop.f32.mrb[116].mxu0  ;;  %v6732_v17 = vsel %vm268_vm0, %v17080_v18, 0.0  ;;  %v6804_v26 = vmul.f32 %v17080_v18, %v17080_v18 }
 0xa2d   : > { %v6584_v29 = vadd.f32 1.0, %v12660_v27  ;;  %v17091_v20 = vadd.f32 %v11326_v33, %v16891_v0  ;;  %6733 = vadd.xlane.f32.xlu0 %v6732_v17  ;;  %v6413_v44 = vpop.f32.mrb[117].mxu0  ;;  %v6863_v32 = vsel %vm268_vm0, %v6805_v13, 0.0 }
 0xa2e   : > { %12669 = vrcp.f32 %v6585_v19  ;;  %v17094_v4 = vadd.f32 %v16891_v0, %v6413_v44  ;;  %v6860_v25 = vsel %vm268_vm0, %v6804_v26, 0.0 }
 0xa2f   : > { %12671 = vrcp.f32 %v6584_v29  ;;  %v10370_v61 = vmul.f32 -1.442695, %v17091_v20 }
 0xa30   : > { %v12662_v40 = vpop.eup %12661  ;;  %v10369_v36 = vmul.f32 -1.442695, %v17094_v4  ;;  %6864 = vadd.xlane.f32.xlu1 %v6863_v32 }
 0xa31   : > { %v12664_v2 = vpop.eup %12663  ;;  %v17101_v9 = vmul.f32 %v12662_v40, %v17016_v12  ;;  %12673 = vpow2.f32 %v10370_v61  ;;  %6861 = vadd.xlane.f32.xlu0 %v6860_v25 }
 0xa32   : > { %v17104_v51 = vmul.f32 %v12664_v2, %v17019_v62  ;;  %12675 = vpow2.f32 %v10369_v36 }
 0xa33   : > { %v12666_v6 = vpop.eup %12665  ;;  %v6741_v30 = vsel %vm268_vm0, %v17101_v9, 0.0  ;;  %v6807_v53 = vmul.f32 %v17101_v9, %v17101_v9 }
 0xa34   : > { %v12668_v59 = vpop.eup %12667  ;;  %v6587_v47 = vadd.f32 1.0, %v12666_v6  ;;  %6742 = vadd.xlane.f32.xlu1 %v6741_v30  ;;  %v11329_v50 = vpop.f32.mrb[118].mxu0  ;;  %v6738_v12 = vsel %vm268_vm0, %v17104_v51, 0.0  ;;  %v6806_v46 = vmul.f32 %v17104_v51, %v17104_v51 }
 0xa35   : > { %v6586_v62 = vadd.f32 1.0, %v12668_v59  ;;  %v17115_v7 = vadd.f32 %v11329_v50, %v16891_v0  ;;  %6739 = vadd.xlane.f32.xlu0 %v6738_v12  ;;  %v6423_v49 = vpop.f32.mrb[119].mxu0  ;;  %v6869_v41 = vsel %vm268_vm0, %v6807_v53, 0.0 }
 0xa36   : > { %12677 = vrcp.f32 %v6587_v47  ;;  %v17118_v28 = vadd.f32 %v16891_v0, %v6423_v49  ;;  %v6866_v63 = vsel %vm268_vm0, %v6806_v46, 0.0 }
 0xa37   : > { %12679 = vrcp.f32 %v6586_v62  ;;  %v10372_v34 = vmul.f32 -1.442695, %v17115_v7 }
 0xa38   : > { %v12670_v5 = vpop.eup %12669  ;;  %v10371_v14 = vmul.f32 -1.442695, %v17118_v28  ;;  %6870 = vadd.xlane.f32.xlu1 %v6869_v41 }
 0xa39   : > { %v12672_v57 = vpop.eup %12671  ;;  %v17125_v10 = vmul.f32 %v12670_v5, %v17040_v16  ;;  %12681 = vpow2.f32 %v10372_v34  ;;  %6867 = vadd.xlane.f32.xlu0 %v6866_v63 }
 0xa3a   : > { %v17128_v60 = vmul.f32 %v12672_v57, %v17043_v56  ;;  %12683 = vpow2.f32 %v10371_v14 }
 0xa3b   : > { %v12674_v15 = vpop.eup %12673  ;;  %v6747_v37 = vsel %vm268_vm0, %v17125_v10, 0.0  ;;  %v6809_v48 = vmul.f32 %v17125_v10, %v17125_v10 }
 0xa3c   : > { %v12676_v24 = vpop.eup %12675  ;;  %v6589_v42 = vadd.f32 1.0, %v12674_v15  ;;  %6748 = vadd.xlane.f32.xlu1 %v6747_v37  ;;  %v11332_v23 = vpop.f32.mrb[120].mxu0  ;;  %v6744_v16 = vsel %vm268_vm0, %v17128_v60, 0.0  ;;  %v6808_v54 = vmul.f32 %v17128_v60, %v17128_v60 }
 0xa3d   : > { %v6588_v56 = vadd.f32 1.0, %v12676_v24  ;;  %v17139_v13 = vadd.f32 %v11332_v23, %v16891_v0  ;;  %6745 = vadd.xlane.f32.xlu0 %v6744_v16  ;;  %v6433_v27 = vpop.f32.mrb[121].mxu0  ;;  %v6875_v17 = vsel %vm268_vm0, %v6809_v48, 0.0 }
 0xa3e   : > { %12685 = vrcp.f32 %v6589_v42  ;;  %v17142_v19 = vadd.f32 %v16891_v0, %v6433_v27  ;;  %v6872_v44 = vsel %vm268_vm0, %v6808_v54, 0.0 }
 0xa3f   : > { %12687 = vrcp.f32 %v6588_v56  ;;  %v10374_v33 = vmul.f32 -1.442695, %v17139_v13 }
 0xa40   : > { %v12678_v26 = vpop.eup %12677  ;;  %v10373_v29 = vmul.f32 -1.442695, %v17142_v19  ;;  %6876 = vadd.xlane.f32.xlu1 %v6875_v17 }
 0xa41   : > { %v12680_v61 = vpop.eup %12679  ;;  %v17149_v32 = vmul.f32 %v12678_v26, %v17067_v31  ;;  %12689 = vpow2.f32 %v10374_v33  ;;  %6873 = vadd.xlane.f32.xlu0 %v6872_v44 }
 0xa42   : > { %v17152_v40 = vmul.f32 %v12680_v61, %v17070_v45  ;;  %12691 = vpow2.f32 %v10373_v29 }
 0xa43   : > { %v12682_v36 = vpop.eup %12681  ;;  %v6753_v25 = vsel %vm268_vm0, %v17149_v32, 0.0  ;;  %v6811_v2 = vmul.f32 %v17149_v32, %v17149_v32 }
 0xa44   : > { %v12684_v6 = vpop.eup %12683  ;;  %v6591_v30 = vadd.f32 1.0, %v12682_v36  ;;  %6754 = vadd.xlane.f32.xlu1 %v6753_v25  ;;  %v11335_v53 = vpop.f32.mrb[122].mxu0  ;;  %v6750_v31 = vsel %vm268_vm0, %v17152_v40, 0.0  ;;  %v6810_v59 = vmul.f32 %v17152_v40, %v17152_v40 }
 0xa45   : > { %v6590_v45 = vadd.f32 1.0, %v12684_v6  ;;  %v17163_v47 = vadd.f32 %v11335_v53, %v16891_v0  ;;  %6751 = vadd.xlane.f32.xlu0 %v6750_v31  ;;  %v6443_v50 = vpop.f32.mrb[123].mxu0  ;;  %v6881_v62 = vsel %vm268_vm0, %v6811_v2, 0.0 }
 0xa46   : > { %12693 = vrcp.f32 %v6591_v30  ;;  %v17166_v12 = vadd.f32 %v16891_v0, %v6443_v50  ;;  %v6878_v41 = vsel %vm268_vm0, %v6810_v59, 0.0 }
 0xa47   : > { %12695 = vrcp.f32 %v6590_v45  ;;  %v10376_v46 = vmul.f32 -1.442695, %v17163_v47 }
 0xa48   : > { %v12686_v49 = vpop.eup %12685  ;;  %v10375_v34 = vmul.f32 -1.442695, %v17166_v12  ;;  %6882 = vadd.xlane.f32.xlu1 %v6881_v62 }
 0xa49   : > { %v12688_v5 = vpop.eup %12687  ;;  %v17173_v14 = vmul.f32 %v12686_v49, %v17091_v20  ;;  %12697 = vpow2.f32 %v10376_v46  ;;  %6879 = vadd.xlane.f32.xlu0 %v6878_v41 }
 0xa4a   : > { %v17176_v63 = vmul.f32 %v12688_v5, %v17094_v4  ;;  %12699 = vpow2.f32 %v10375_v34 }
 0xa4b   : > { %v12690_v57 = vpop.eup %12689  ;;  %v6759_v15 = vsel %vm268_vm0, %v17173_v14, 0.0  ;;  %v6813_v37 = vmul.f32 %v17173_v14, %v17173_v14 }
 0xa4c   : > { %v12692_v48 = vpop.eup %12691  ;;  %v6593_v24 = vadd.f32 1.0, %v12690_v57  ;;  %6760 = vadd.xlane.f32.xlu1 %v6759_v15  ;;  %v11338_v42 = vpop.f32.mrb[124].mxu0  ;;  %v6756_v20 = vsel %vm268_vm0, %v17176_v63, 0.0  ;;  %v6812_v23 = vmul.f32 %v17176_v63, %v17176_v63 }
 0xa4d   : > { %v6592_v4 = vadd.f32 1.0, %v12692_v48  ;;  %v17187_v16 = vadd.f32 %v11338_v42, %v16891_v0  ;;  %6757 = vadd.xlane.f32.xlu0 %v6756_v20  ;;  %v6453_v54 = vpop.f32.mrb[125].mxu0  ;;  %v6887_v33 = vsel %vm268_vm0, %v6813_v37, 0.0 }
 0xa4e   : > { %12701 = vrcp.f32 %v6593_v24  ;;  %v17190_v56 = vadd.f32 %v16891_v0, %v6453_v54  ;;  %v6884_v29 = vsel %vm268_vm0, %v6812_v23, 0.0 }
 0xa4f   : > { %12703 = vrcp.f32 %v6592_v4  ;;  %v10378_v27 = vmul.f32 -1.442695, %v17187_v16 }
 0xa50   : > { %v12694_v17 = vpop.eup %12693  ;;  %v10377_v26 = vmul.f32 -1.442695, %v17190_v56  ;;  %6888 = vadd.xlane.f32.xlu1 %v6887_v33 }
 0xa51   : > { %v12696_v44 = vpop.eup %12695  ;;  %v17197_v61 = vmul.f32 %v12694_v17, %v17115_v7  ;;  %12705 = vpow2.f32 %v10378_v27  ;;  %6885 = vadd.xlane.f32.xlu0 %v6884_v29 }
 0xa52   : > { %v17200_v36 = vmul.f32 %v12696_v44, %v17118_v28  ;;  %12707 = vpow2.f32 %v10377_v26 }
 0xa53   : > { %v12698_v25 = vpop.eup %12697  ;;  %v6765_v2 = vsel %vm268_vm0, %v17197_v61, 0.0  ;;  %v6815_v6 = vmul.f32 %v17197_v61, %v17197_v61 }
 0xa54   : > { %v12700_v30 = vpop.eup %12699  ;;  %v6595_v53 = vadd.f32 1.0, %v12698_v25  ;;  %6766 = vadd.xlane.f32.xlu1 %v6765_v2  ;;  %v11341_v31 = vpop.f32.mrb[126].mxu0  ;;  %v6762_v7 = vsel %vm268_vm0, %v17200_v36, 0.0  ;;  %v6814_v59 = vmul.f32 %v17200_v36, %v17200_v36 }
 0xa55   : > { %v6594_v28 = vadd.f32 1.0, %v12700_v30  ;;  %v17211_v45 = vadd.f32 %v11341_v31, %v16891_v0  ;;  %6763 = vadd.xlane.f32.xlu0 %v6762_v7  ;;  %v6463_v50 = vpop.f32.mrb[127].mxu0  ;;  %v6893_v49 = vsel %vm268_vm0, %v6815_v6, 0.0 }
 0xa56   : > { %12709 = vrcp.f32 %v6595_v53  ;;  %v17214_v46 = vadd.f32 %v16891_v0, %v6463_v50  ;;  %v6890_v5 = vsel %vm268_vm0, %v6814_v59, 0.0 }
 0xa57   : > { %12711 = vrcp.f32 %v6594_v28  ;;  %v10380_v62 = vmul.f32 -1.442695, %v17211_v45 }
 0xa58   : > { %v12702_v34 = vpop.eup %12701  ;;  %v10379_v41 = vmul.f32 -1.442695, %v17214_v46  ;;  %6894 = vadd.xlane.f32.xlu1 %v6893_v49 }
 0xa59   : > { %v12704_v57 = vpop.eup %12703  ;;  %v17221_v15 = vmul.f32 %v12702_v34, %v17139_v13  ;;  %12713 = vpow2.f32 %v10380_v62  ;;  %6891 = vadd.xlane.f32.xlu0 %v6890_v5 }
 0xa5a   : > { %v17224_v0 = vmul.f32 %v12704_v57, %v17142_v19  ;;  %12715 = vpow2.f32 %v10379_v41 }
 0xa5b   : > { %v12706_v37 = vpop.eup %12705  ;;  %v6771_v48 = vsel %vm268_vm0, %v17221_v15, 0.0  ;;  %v6817_v24 = vmul.f32 %v17221_v15, %v17221_v15 }
 0xa5c   : > { %v12708_v42 = vpop.eup %12707  ;;  %v6597_v20 = vadd.f32 1.0, %v12706_v37  ;;  %6772 = vadd.xlane.f32.xlu1 %v6771_v48  ;;  %v6768_v13 = vsel %vm268_vm0, %v17224_v0, 0.0  ;;  %v6816_v23 = vmul.f32 %v17224_v0, %v17224_v0 }
 0xa5d   : > { %v6596_v4 = vadd.f32 1.0, %v12708_v42  ;;  %6769 = vadd.xlane.f32.xlu0 %v6768_v13  ;;  %v6899_v19 = vsel %vm268_vm0, %v6817_v24, 0.0 }
 0xa5e   : > { %12717 = vrcp.f32 %v6597_v20  ;;  %v6896_v27 = vsel %vm268_vm0, %v6816_v23, 0.0 }
 0xa5f   : > { %12719 = vrcp.f32 %v6596_v4 }
 0xa60   : > { %v12710_v54 = vpop.eup %12709  ;;  %6900 = vadd.xlane.f32.xlu1 %v6899_v19 }
 0xa61   : > { %v12712_v33 = vpop.eup %12711  ;;  %v17237_v17 = vmul.f32 %v12710_v54, %v17163_v47  ;;  %6897 = vadd.xlane.f32.xlu0 %v6896_v27 }
 0xa62   : > { %v17240_v26 = vmul.f32 %v12712_v33, %v17166_v12 }
 0xa63   : > { %v12714_v29 = vpop.eup %12713  ;;  %v6777_v44 = vsel %vm268_vm0, %v17237_v17, 0.0  ;;  %v6819_v25 = vmul.f32 %v17237_v17, %v17237_v17 }
 0xa64   : > { %v12716_v2 = vpop.eup %12715  ;;  %v6599_v6 = vadd.f32 1.0, %v12714_v29  ;;  %6778 = vadd.xlane.f32.xlu1 %v6777_v44  ;;  %v6774_v30 = vsel %vm268_vm0, %v17240_v26, 0.0  ;;  %v6818_v47 = vmul.f32 %v17240_v26, %v17240_v26 }
 0xa65   : > { %v6598_v53 = vadd.f32 1.0, %v12716_v2  ;;  %6775 = vadd.xlane.f32.xlu0 %v6774_v30  ;;  %v6905_v12 = vsel %vm268_vm0, %v6819_v25, 0.0 }
 0xa66   : > { %12721 = vrcp.f32 %v6599_v6  ;;  %v6902_v7 = vsel %vm268_vm0, %v6818_v47, 0.0 }
 0xa67   : > { %12723 = vrcp.f32 %v6598_v53 }
 0xa68   : > { %v12718_v31 = vpop.eup %12717  ;;  %6906 = vadd.xlane.f32.xlu1 %v6905_v12 }
 0xa69   : > { %v12720_v59 = vpop.eup %12719  ;;  %v17253_v28 = vmul.f32 %v12718_v31, %v17187_v16  ;;  %6903 = vadd.xlane.f32.xlu0 %v6902_v7 }
 0xa6a   : > { %v17256_v50 = vmul.f32 %v12720_v59, %v17190_v56 }
 0xa6b   : > { %v6783_v62 = vsel %vm268_vm0, %v17253_v28, 0.0  ;;  %v6821_v49 = vmul.f32 %v17253_v28, %v17253_v28 }
 0xa6c   : > { %6784 = vadd.xlane.f32.xlu1 %v6783_v62  ;;  %v6780_v34 = vsel %vm268_vm0, %v17256_v50, 0.0  ;;  %v6820_v41 = vmul.f32 %v17256_v50, %v17256_v50 }
 0xa6d   : > { %6781 = vadd.xlane.f32.xlu0 %v6780_v34  ;;  %v6911_v16 = vsel %vm268_vm0, %v6821_v49, 0.0 }
 0xa6e   : > { %v6908_v56 = vsel %vm268_vm0, %v6820_v41, 0.0 }
 0xa70   : > { %v12722_v5 = vpop.eup %12721  ;;  %6912 = vadd.xlane.f32.xlu1 %v6911_v16 }
 0xa71   : > { %v12724_v57 = vpop.eup %12723  ;;  %v17269_v37 = vmul.f32 %v12722_v5, %v17211_v45  ;;  %6909 = vadd.xlane.f32.xlu0 %v6908_v56 }
 0xa72   : > { %v17272_v48 = vmul.f32 %v12724_v57, %v17214_v46 }
 0xa73   : > { %v6789_v24 = vsel %vm268_vm0, %v17269_v37, 0.0  ;;  %v6823_v42 = vmul.f32 %v17269_v37, %v17269_v37 }
 0xa74   : > { %6790 = vadd.xlane.f32.xlu1 %v6789_v24  ;;  %v6786_v20 = vsel %vm268_vm0, %v17272_v48, 0.0  ;;  %v6822_v13 = vmul.f32 %v17272_v48, %v17272_v48 }
 0xa75   : > { %6787 = vadd.xlane.f32.xlu0 %v6786_v20  ;;  %v6917_v45 = vsel %vm268_vm0, %v6823_v42, 0.0 }
 0xa76   : > { %v6914_v46 = vsel %vm268_vm0, %v6822_v13, 0.0 }
 0xa78   : > { %6918 = vadd.xlane.f32.xlu1 %v6917_v45 }
 0xa79   : > { %6915 = vadd.xlane.f32.xlu0 %v6914_v46 }
 0xa89   : > { %v6701_v23 = vpop.xlane.xlu1 %6700 }
 0xa8a   : > { %v6921_v4 = vmul.f32 0.025, %v6701_v23  ;;  %v6698_v19 = vpop.xlane.xlu0 %6697 }
 0xa8b   : > { %v6920_v54 = vmul.f32 0.025, %v6698_v19 }
 0xa8c   : > { %v6985_v33 = vmul.f32 %v6921_v4, %v6921_v4  ;;  %v7113_v23 = vsub.f32 %v16925_v43, %v6921_v4 }
 0xa8d   : > { %v6829_v27 = vpop.xlane.xlu1 %6828  ;;  %v6984_v25 = vmul.f32 %v6920_v54, %v6920_v54 }
 0xa8e   : > { %v6953_v29 = vmul.f32 0.025, %v6829_v27  ;;  %v6826_v44 = vpop.xlane.xlu0 %6825 }
 0xa8f   : > { %v6952_v2 = vmul.f32 0.025, %v6826_v44 }
 0xa90   : > { %v7017_v6 = vsub.f32 %v6953_v29, %v6985_v33  ;;  %v7112_v33 = vsub.f32 %v16933_v38, %v6920_v54  ;;  %v17297_v29 = vld [vmem:[%s19019_s2 + $0x12] ss:$0 sm:$0xff] }
 0xa91   : > { %v7016_v30 = vsub.f32 %v6952_v2, %v6984_v25  ;;  %v6707_v47 = vpop.xlane.xlu1 %6706 }
 0xa92   : > { %v7049_v53 = vadd.f32 1e-05, %v7017_v6  ;;  %v17284_v12 = vmul.f32 0.025, %v6707_v47  ;;  %v6704_v31 = vpop.xlane.xlu0 %6703 }
 0xa93   : > { %v7048_v7 = vadd.f32 1e-05, %v7016_v30  ;;  %v6922_v59 = vmul.f32 0.025, %v6704_v31 }
 0xa94   : > { %12725 = vrsqrt.f32 %v7049_v53  ;;  %v6987_v49 = vmul.f32 %v17284_v12, %v17284_v12 }
 0xa95   : > { %12727 = vrsqrt.f32 %v7048_v7  ;;  %v6835_v62 = vpop.xlane.xlu1 %6834  ;;  %v6986_v16 = vmul.f32 %v6922_v59, %v6922_v59  ;;  %v17307_v7 = vld [vmem:[%s19019_s2 + $0x16] ss:$0 sm:$0xff] }
 0xa96   : > { %v6955_v34 = vmul.f32 0.025, %v6835_v62  ;;  %v6832_v41 = vpop.xlane.xlu0 %6831 }
 0xa97   : > { %v6954_v5 = vmul.f32 0.025, %v6832_v41 }
 0xa98   : > { %v7019_v56 = vsub.f32 %v6955_v34, %v6987_v49 }
 0xa99   : > { %v7018_v57 = vsub.f32 %v6954_v5, %v6986_v16  ;;  %v6713_v24 = vpop.xlane.xlu1 %6712 }
 0xa9a   : > { %v7051_v42 = vadd.f32 1e-05, %v7019_v56  ;;  %v17288_v20 = vmul.f32 0.025, %v6713_v24  ;;  %v6710_v13 = vpop.xlane.xlu0 %6709 }
 0xa9b   : > { %v7050_v45 = vadd.f32 1e-05, %v7018_v57  ;;  %v17290_v46 = vmul.f32 0.025, %v6710_v13  ;;  %v7115_v57 = vsub.f32 %v16954_v8, %v17284_v12 }
 0xa9c   : > { %12729 = vrsqrt.f32 %v7051_v42  ;;  %v6989_v44 = vmul.f32 %v17288_v20, %v17288_v20 }
 0xa9d   : > { %12731 = vrsqrt.f32 %v7050_v45  ;;  %v6841_v19 = vpop.xlane.xlu1 %6840  ;;  %v6988_v43 = vmul.f32 %v17290_v46, %v17290_v46  ;;  %v7114_v45 = vsub.f32 %v16957_v11, %v6922_v59 }
 0xa9e   : > { %v12726_v27 = vpop.eup %12725  ;;  %v6957_v25 = vmul.f32 0.025, %v6841_v19  ;;  %v6838_v2 = vpop.xlane.xlu0 %6837 }
 0xa9f   : > { %v12728_v6 = vpop.eup %12727  ;;  %v7145_v30 = vmul.f32 %v12726_v27, %v7113_v23  ;;  %v6956_v4 = vmul.f32 0.025, %v6838_v2 }
 0xaa0   : > { %v7021_v47 = vsub.f32 %v6957_v25, %v6989_v44  ;;  %v7144_v53 = vmul.f32 %v12728_v6, %v7112_v33 }
 0xaa1   : > { %v7182_v38 = vmul.f32 %v17297_v29, %v7145_v30  ;;  %v7020_v54 = vsub.f32 %v6956_v4, %v6988_v43  ;;  %v6719_v31 = vpop.xlane.xlu1 %6718 }
 0xaa2   : > { %v7053_v62 = vadd.f32 1e-05, %v7021_v47  ;;  %v17309_v49 = vmul.f32 0.025, %v6719_v31  ;;  %v6716_v34 = vpop.xlane.xlu0 %6715  ;;  %v7181_v41 = vmul.f32 %v17297_v29, %v7144_v53  ;;  %v7117_v31 = vsub.f32 %v16978_v22, %v17288_v20 }
 0xaa3   : > { %v7052_v16 = vadd.f32 1e-05, %v7020_v54  ;;  %v17312_v5 = vmul.f32 0.025, %v6716_v34  ;;  %v7219_v42 = vadd.f32 %v17307_v7, %v7182_v38 }
 0xaa4   : > { %12733 = vrsqrt.f32 %v7053_v62  ;;  %v7218_v56 = vadd.f32 %v17307_v7, %v7181_v41  ;;  %v6991_v23 = vmul.f32 %v17309_v49, %v17309_v49 }
 0xaa5   : > { %12735 = vrsqrt.f32 %v7052_v16  ;;  %v6847_v24 = vpop.xlane.xlu1 %6846  ;;  %v6990_v44 = vmul.f32 %v17312_v5, %v17312_v5  ;;  %v7116_v16 = vsub.f32 %v16981_v52, %v17290_v46 }
 0xaa6   : > { %v12730_v13 = vpop.eup %12729  ;;  %v6959_v19 = vmul.f32 0.025, %v6847_v24  ;;  %11352 = vmatprep.mubr.msk.f32.mxu1 %vm268_vm0, %v7218_v56  ;;  %v6844_v27 = vpop.xlane.xlu0 %6843 }
 0xaa7   : > { %v12732_v33 = vpop.eup %12731  ;;  %v6958_v25 = vmul.f32 0.025, %v6844_v27  ;;  %11353 = vmatmul.mubr.msk.f32.vlgmr.msra.gmra.mrb[96].mxu1 %vm268_vm0, %v7219_v42  ;;  %v7147_v8 = vmul.f32 %v12730_v13, %v7115_v57 }
 0xaa8   : > { %v7023_v12 = vsub.f32 %v6959_v19, %v6991_v23  ;;  %v7146_v2 = vmul.f32 %v12732_v33, %v7114_v45 }
 0xaa9   : > { %v7022_v6 = vsub.f32 %v6958_v25, %v6990_v44  ;;  %v6725_v30 = vpop.xlane.xlu1 %6724  ;;  %v7184_v11 = vmul.f32 %v17297_v29, %v7147_v8 }
 0xaaa   : > { %v7055_v59 = vadd.f32 1e-05, %v7023_v12  ;;  %v17326_v43 = vmul.f32 0.025, %v6725_v30  ;;  %v6722_v4 = vpop.xlane.xlu0 %6721  ;;  %v7183_v47 = vmul.f32 %v17297_v29, %v7146_v2 }
 0xaab   : > { %v7054_v53 = vadd.f32 1e-05, %v7022_v6  ;;  %v17329_v38 = vmul.f32 0.025, %v6722_v4  ;;  %v7221_v34 = vadd.f32 %v17307_v7, %v7184_v11  ;;  %v7119_v6 = vsub.f32 %v17002_v21, %v17309_v49 }
 0xaac   : > { %12737 = vrsqrt.f32 %v7055_v59  ;;  %v7220_v54 = vadd.f32 %v17307_v7, %v7183_v47  ;;  %v6993_v56 = vmul.f32 %v17326_v43, %v17326_v43  ;;  %v7118_v4 = vsub.f32 %v17005_v35, %v17312_v5 }
 0xaad   : > { %12739 = vrsqrt.f32 %v7054_v53  ;;  %v6853_v62 = vpop.xlane.xlu1 %6852  ;;  %v6992_v13 = vmul.f32 %v17329_v38, %v17329_v38 }
 0xaae   : > { %v12734_v41 = vpop.eup %12733  ;;  %v6961_v57 = vmul.f32 0.025, %v6853_v62  ;;  %11355 = vmatprep.mubr.msk.f32.mxu1 %vm268_vm0, %v7220_v54  ;;  %v6850_v24 = vpop.xlane.xlu0 %6849 }
 0xaaf   : > { %v12736_v42 = vpop.eup %12735  ;;  %v6960_v22 = vmul.f32 0.025, %v6850_v24  ;;  %11356 = vmatmul.mubr.msk.f32.gmra.mrb[98].mxu1 %vm268_vm0, %v7221_v34  ;;  %v7149_v20 = vmul.f32 %v12734_v41, %v7117_v31 }
 0xab0   : > { %v7025_v45 = vsub.f32 %v6961_v57, %v6993_v56  ;;  %v7148_v23 = vmul.f32 %v12736_v42, %v7116_v16 }
 0xab1   : > { %v7024_v19 = vsub.f32 %v6960_v22, %v6992_v13  ;;  %v6731_v27 = vpop.xlane.xlu1 %6730  ;;  %v7186_v52 = vmul.f32 %v17297_v29, %v7149_v20 }
 0xab2   : > { %v7057_v46 = vadd.f32 1e-05, %v7025_v45  ;;  %v17344_v33 = vmul.f32 0.025, %v6731_v27  ;;  %v6728_v44 = vpop.xlane.xlu0 %6727  ;;  %v7185_v25 = vmul.f32 %v17297_v29, %v7148_v23  ;;  %v7121_v45 = vsub.f32 %v17026_v55, %v17326_v43 }
 0xab3   : > { %v7056_v8 = vadd.f32 1e-05, %v7024_v19  ;;  %v17347_v12 = vmul.f32 0.025, %v6728_v44  ;;  %v7223_v11 = vadd.f32 %v17307_v7, %v7186_v52  ;;  %v7120_v52 = vsub.f32 %v17029_v1, %v17329_v38 }
 0xab4   : > { %12741 = vrsqrt.f32 %v7057_v46  ;;  %v7222_v2 = vadd.f32 %v17307_v7, %v7185_v25  ;;  %v6995_v47 = vmul.f32 %v17344_v33, %v17344_v33 }
 0xab5   : > { %12743 = vrsqrt.f32 %v7056_v8  ;;  %v6859_v30 = vpop.xlane.xlu1 %6858  ;;  %v6994_v62 = vmul.f32 %v17347_v12, %v17347_v12 }
 0xab6   : > { %v12738_v59 = vpop.eup %12737  ;;  %v6963_v53 = vmul.f32 0.025, %v6859_v30  ;;  %11358 = vmatprep.mubr.msk.f32.mxu1 %vm268_vm0, %v7222_v2  ;;  %v6856_v54 = vpop.xlane.xlu0 %6855 }
 0xab7   : > { %v12740_v31 = vpop.eup %12739  ;;  %v6962_v21 = vmul.f32 0.025, %v6856_v54  ;;  %11359 = vmatmul.mubr.msk.f32.gmra.mrb[100].mxu1 %vm268_vm0, %v7223_v11  ;;  %v7151_v49 = vmul.f32 %v12738_v59, %v7119_v6 }
 0xab8   : > { %v7027_v34 = vsub.f32 %v6963_v53, %v6995_v47  ;;  %v7150_v41 = vmul.f32 %v12740_v31, %v7118_v4 }
 0xab9   : > { %v7026_v16 = vsub.f32 %v6962_v21, %v6994_v62  ;;  %v6737_v56 = vpop.xlane.xlu1 %6736  ;;  %v7188_v35 = vmul.f32 %v17297_v29, %v7151_v49  ;;  %v7123_v21 = vsub.f32 %v17050_v3, %v17344_v33 }
 0xaba   : > { %v7059_v5 = vadd.f32 1e-05, %v7027_v34  ;;  %v17362_v57 = vmul.f32 0.025, %v6737_v56  ;;  %v6734_v24 = vpop.xlane.xlu0 %6733  ;;  %v7187_v42 = vmul.f32 %v17297_v29, %v7150_v41 }
 0xabb   : > { %v7058_v13 = vadd.f32 1e-05, %v7026_v16  ;;  %v17365_v22 = vmul.f32 0.025, %v6734_v24  ;;  %v7225_v19 = vadd.f32 %v17307_v7, %v7188_v35  ;;  %v7122_v16 = vsub.f32 %v17056_v39, %v17347_v12 }
 0xabc   : > { %12745 = vrsqrt.f32 %v7059_v5  ;;  %v7224_v20 = vadd.f32 %v17307_v7, %v7187_v42  ;;  %v6997_v46 = vmul.f32 %v17362_v57, %v17362_v57 }
 0xabd   : > { %12747 = vrsqrt.f32 %v7058_v13  ;;  %v6865_v23 = vpop.xlane.xlu1 %6864  ;;  %v6996_v2 = vmul.f32 %v17365_v22, %v17365_v22 }
 0xabe   : > { %v12742_v27 = vpop.eup %12741  ;;  %v6965_v44 = vmul.f32 0.025, %v6865_v23  ;;  %11361 = vmatprep.mubr.msk.f32.mxu1 %vm268_vm0, %v7224_v20  ;;  %v6862_v25 = vpop.xlane.xlu0 %6861 }
 0xabf   : > { %v12744_v8 = vpop.eup %12743  ;;  %v6964_v55 = vmul.f32 0.025, %v6862_v25  ;;  %11362 = vmatmul.mubr.msk.f32.gmra.mrb[102].mxu1 %vm268_vm0, %v7225_v19  ;;  %v7153_v43 = vmul.f32 %v12742_v27, %v7121_v45 }
 0xac0   : > { %v7029_v6 = vsub.f32 %v6965_v44, %v6997_v46  ;;  %v7152_v30 = vmul.f32 %v12744_v8, %v7120_v52  ;;  %v7125_v8 = vsub.f32 %v17077_v58, %v17362_v57 }
 0xac1   : > { %v7028_v11 = vsub.f32 %v6964_v55, %v6996_v2  ;;  %v6743_v59 = vpop.xlane.xlu1 %6742  ;;  %v7190_v1 = vmul.f32 %v17297_v29, %v7153_v43 }
 0xac2   : > { %v7061_v38 = vadd.f32 1e-05, %v7029_v6  ;;  %v17380_v4 = vmul.f32 0.025, %v6743_v59  ;;  %v6740_v47 = vpop.xlane.xlu0 %6739  ;;  %v7189_v53 = vmul.f32 %v17297_v29, %v7152_v30  ;;  %v7124_v6 = vsub.f32 %v17080_v18, %v17365_v22 }
 0xac3   : > { %v7060_v54 = vadd.f32 1e-05, %v7028_v11  ;;  %v17383_v31 = vmul.f32 0.025, %v6740_v47  ;;  %v7227_v34 = vadd.f32 %v17307_v7, %v7190_v1 }
 0xac4   : > { %12749 = vrsqrt.f32 %v7061_v38  ;;  %v7226_v62 = vadd.f32 %v17307_v7, %v7189_v53  ;;  %v6999_v56 = vmul.f32 %v17380_v4, %v17380_v4 }
 0xac5   : > { %12751 = vrsqrt.f32 %v7060_v54  ;;  %v6871_v49 = vpop.xlane.xlu1 %6870  ;;  %v6998_v42 = vmul.f32 %v17383_v31, %v17383_v31 }
 0xac6   : > { %v12746_v41 = vpop.eup %12745  ;;  %v6967_v35 = vmul.f32 0.025, %v6871_v49  ;;  %11364 = vmatprep.mubr.msk.f32.mxu1 %vm268_vm0, %v7226_v62  ;;  %v6868_v5 = vpop.xlane.xlu0 %6867 }
 0xac7   : > { %v12748_v24 = vpop.eup %12747  ;;  %v6966_v3 = vmul.f32 0.025, %v6868_v5  ;;  %11365 = vmatmul.mubr.msk.f32.gmra.mrb[104].mxu1 %vm268_vm0, %v7227_v34  ;;  %v7155_v33 = vmul.f32 %v12746_v41, %v7123_v21 }
 0xac8   : > { %v7031_v13 = vsub.f32 %v6967_v35, %v6999_v56  ;;  %v7154_v20 = vmul.f32 %v12748_v24, %v7122_v16  ;;  %v7127_v35 = vsub.f32 %v17101_v9, %v17380_v4 }
 0xac9   : > { %v7030_v45 = vsub.f32 %v6966_v3, %v6998_v42  ;;  %v6749_v23 = vpop.xlane.xlu1 %6748  ;;  %v7192_v39 = vmul.f32 %v17297_v29, %v7155_v33  ;;  %v7126_v3 = vsub.f32 %v17104_v51, %v17383_v31 }
 0xaca   : > { %v7063_v12 = vadd.f32 1e-05, %v7031_v13  ;;  %v17398_v19 = vmul.f32 0.025, %v6749_v23  ;;  %v6746_v27 = vpop.xlane.xlu0 %6745  ;;  %v7191_v52 = vmul.f32 %v17297_v29, %v7154_v20 }
 0xacb   : > { %v7062_v46 = vadd.f32 1e-05, %v7030_v45  ;;  %v17401_v44 = vmul.f32 0.025, %v6746_v27  ;;  %v7229_v55 = vadd.f32 %v17307_v7, %v7192_v39 }
 0xacc   : > { %12753 = vrsqrt.f32 %v7063_v12  ;;  %v7228_v25 = vadd.f32 %v17307_v7, %v7191_v52  ;;  %v7001_v30 = vmul.f32 %v17398_v19, %v17398_v19 }
 0xacd   : > { %12755 = vrsqrt.f32 %v7062_v46  ;;  %v6877_v2 = vpop.xlane.xlu1 %6876  ;;  %v7000_v38 = vmul.f32 %v17401_v44, %v17401_v44 }
 0xace   : > { %v12750_v43 = vpop.eup %12749  ;;  %v6969_v11 = vmul.f32 0.025, %v6877_v2  ;;  %11367 = vmatprep.mubr.msk.f32.mxu1 %vm268_vm0, %v7228_v25  ;;  %v6874_v59 = vpop.xlane.xlu0 %6873 }
 0xacf   : > { %v12752_v1 = vpop.eup %12751  ;;  %v6968_v58 = vmul.f32 0.025, %v6874_v59  ;;  %11368 = vmatmul.mubr.msk.f32.gmra.mrb[106].mxu1 %vm268_vm0, %v7229_v55  ;;  %v7157_v57 = vmul.f32 %v12750_v43, %v7125_v8 }
 0xad0   : > { %v7033_v47 = vsub.f32 %v6969_v11, %v7001_v30  ;;  %v7156_v53 = vmul.f32 %v12752_v1, %v7124_v6  ;;  %v7129_v6 = vsub.f32 %v17125_v10, %v17398_v19  ;;  %v7128_v1 = vsub.f32 %v17128_v60, %v17401_v44 }
 0xad1   : > { %v7032_v54 = vsub.f32 %v6968_v58, %v7000_v38  ;;  %v6755_v62 = vpop.xlane.xlu1 %6754  ;;  %v7194_v18 = vmul.f32 %v17297_v29, %v7157_v57 }
 0xad2   : > { %v7065_v22 = vadd.f32 1e-05, %v7033_v47  ;;  %v17416_v21 = vmul.f32 0.025, %v6755_v62  ;;  %v6752_v49 = vpop.xlane.xlu0 %6751  ;;  %v7193_v34 = vmul.f32 %v17297_v29, %v7156_v53 }
 0xad3   : > { %v7064_v41 = vadd.f32 1e-05, %v7032_v54  ;;  %v17419_v16 = vmul.f32 0.025, %v6752_v49  ;;  %v7231_v24 = vadd.f32 %v17307_v7, %v7194_v18 }
 0xad4   : > { %12757 = vrsqrt.f32 %v7065_v22  ;;  %v7230_v56 = vadd.f32 %v17307_v7, %v7193_v34  ;;  %v7003_v33 = vmul.f32 %v17416_v21, %v17416_v21 }
 0xad5   : > { %12759 = vrsqrt.f32 %v7064_v41  ;;  %v6883_v5 = vpop.xlane.xlu1 %6882  ;;  %v7002_v23 = vmul.f32 %v17419_v16, %v17419_v16 }
 0xad6   : > { %v12754_v42 = vpop.eup %12753  ;;  %v6971_v13 = vmul.f32 0.025, %v6883_v5  ;;  %11370 = vmatprep.mubr.msk.f32.mxu1 %vm268_vm0, %v7230_v56  ;;  %v6880_v20 = vpop.xlane.xlu0 %6879 }
 0xad7   : > { %v12756_v45 = vpop.eup %12755  ;;  %v6970_v9 = vmul.f32 0.025, %v6880_v20  ;;  %11371 = vmatmul.mubr.msk.f32.gmra.mrb[108].mxu1 %vm268_vm0, %v7231_v24  ;;  %v7159_v4 = vmul.f32 %v12754_v42, %v7127_v35  ;;  %v7131_v24 = vsub.f32 %v17149_v32, %v17416_v21 }
 0xad8   : > { %v7035_v39 = vsub.f32 %v6971_v13, %v7003_v33  ;;  %v7158_v12 = vmul.f32 %v12756_v45, %v7126_v3  ;;  %v7130_v13 = vsub.f32 %v17152_v40, %v17419_v16 }
 0xad9   : > { %v7034_v27 = vsub.f32 %v6970_v9, %v7002_v23  ;;  %v6761_v52 = vpop.xlane.xlu1 %6760  ;;  %v7196_v51 = vmul.f32 %v17297_v29, %v7159_v4 }
 0xada   : > { %v7067_v31 = vadd.f32 1e-05, %v7035_v39  ;;  %v17434_v46 = vmul.f32 0.025, %v6761_v52  ;;  %v6758_v25 = vpop.xlane.xlu0 %6757  ;;  %v7195_v8 = vmul.f32 %v17297_v29, %v7158_v12 }
 0xadb   : > { %v7066_v2 = vadd.f32 1e-05, %v7034_v27  ;;  %v17437_v55 = vmul.f32 0.025, %v6758_v25  ;;  %v7233_v11 = vadd.f32 %v17307_v7, %v7196_v51 }
 0xadc   : > { %12761 = vrsqrt.f32 %v7067_v31  ;;  %v7232_v43 = vadd.f32 %v17307_v7, %v7195_v8  ;;  %v7005_v38 = vmul.f32 %v17434_v46, %v17434_v46 }
 0xadd   : > { %12763 = vrsqrt.f32 %v7066_v2  ;;  %v6889_v30 = vpop.xlane.xlu1 %6888  ;;  %v7004_v53 = vmul.f32 %v17437_v55, %v17437_v55 }
 0xade   : > { %v12758_v59 = vpop.eup %12757  ;;  %v6973_v58 = vmul.f32 0.025, %v6889_v30  ;;  %11373 = vmatprep.mubr.msk.f32.mxu1 %vm268_vm0, %v7232_v43  ;;  %v6886_v57 = vpop.xlane.xlu0 %6885 }
 0xadf   : > { %v12760_v47 = vpop.eup %12759  ;;  %v6972_v10 = vmul.f32 0.025, %v6886_v57  ;;  %11374 = vmatmul.mubr.msk.f32.gmra.mrb[110].mxu1 %vm268_vm0, %v7233_v11  ;;  %v7161_v19 = vmul.f32 %v12758_v59, %v7129_v6  ;;  %v7133_v6 = vsub.f32 %v17173_v14, %v17434_v46 }
 0xae0   : > { %v7037_v54 = vsub.f32 %v6973_v58, %v7005_v38  ;;  %v7160_v62 = vmul.f32 %v12760_v47, %v7128_v1  ;;  %v7132_v1 = vsub.f32 %v17176_v63, %v17437_v55 }
 0xae1   : > { %v7036_v18 = vsub.f32 %v6972_v10, %v7004_v53  ;;  %v6767_v22 = vpop.xlane.xlu1 %6766  ;;  %v7198_v60 = vmul.f32 %v17297_v29, %v7161_v19 }
 0xae2   : > { %v7069_v44 = vadd.f32 1e-05, %v7037_v54  ;;  %v17452_v49 = vmul.f32 0.025, %v6767_v22  ;;  %v6764_v34 = vpop.xlane.xlu0 %6763  ;;  %v7197_v41 = vmul.f32 %v17297_v29, %v7160_v62 }
 0xae3   : > { %v7068_v56 = vadd.f32 1e-05, %v7036_v18  ;;  %v17455_v35 = vmul.f32 0.025, %v6764_v34  ;;  %v7235_v3 = vadd.f32 %v17307_v7, %v7198_v60 }
 0xae4   : > { %12765 = vrsqrt.f32 %v7069_v44  ;;  %v7234_v5 = vadd.f32 %v17307_v7, %v7197_v41  ;;  %v7007_v20 = vmul.f32 %v17452_v49, %v17452_v49 }
 0xae5   : > { %12767 = vrsqrt.f32 %v7068_v56  ;;  %v6895_v42 = vpop.xlane.xlu1 %6894  ;;  %v7006_v4 = vmul.f32 %v17455_v35, %v17455_v35  ;;  %v7135_v56 = vsub.f32 %v17197_v61, %v17452_v49 }
 0xae6   : > { %v12762_v33 = vpop.eup %12761  ;;  %v6975_v45 = vmul.f32 0.025, %v6895_v42  ;;  %11376 = vmatprep.mubr.msk.f32.mxu1 %vm268_vm0, %v7234_v5  ;;  %v6892_v23 = vpop.xlane.xlu0 %6891 }
 0xae7   : > { %v12764_v9 = vpop.eup %12763  ;;  %v6974_v32 = vmul.f32 0.025, %v6892_v23  ;;  %11377 = vmatmul.mubr.msk.f32.gmra.mrb[112].mxu1 %vm268_vm0, %v7235_v3  ;;  %v7163_v21 = vmul.f32 %v12762_v33, %v7131_v24  ;;  %v7134_v3 = vsub.f32 %v17200_v36, %v17455_v35 }
 0xae8   : > { %v7039_v39 = vsub.f32 %v6975_v45, %v7007_v20  ;;  %v7162_v12 = vmul.f32 %v12764_v9, %v7130_v13 }
 0xae9   : > { %v7038_v27 = vsub.f32 %v6974_v32, %v7006_v4  ;;  %v6773_v52 = vpop.xlane.xlu1 %6772  ;;  %v7200_v40 = vmul.f32 %v17297_v29, %v7163_v21 }
 0xaea   : > { %v7071_v16 = vadd.f32 1e-05, %v7039_v39  ;;  %v17470_v51 = vmul.f32 0.025, %v6773_v52  ;;  %v6770_v31 = vpop.xlane.xlu0 %6769  ;;  %v7199_v25 = vmul.f32 %v17297_v29, %v7162_v12 }
 0xaeb   : > { %v7070_v8 = vadd.f32 1e-05, %v7038_v27  ;;  %v17473_v2 = vmul.f32 0.025, %v6770_v31  ;;  %v7237_v11 = vadd.f32 %v17307_v7, %v7200_v40 }
 0xaec   : > { %12769 = vrsqrt.f32 %v7071_v16  ;;  %v7236_v43 = vadd.f32 %v17307_v7, %v7199_v25  ;;  %v7009_v38 = vmul.f32 %v17470_v51, %v17470_v51  ;;  %v7137_v31 = vsub.f32 %v17221_v15, %v17470_v51 }
 0xaed   : > { %12771 = vrsqrt.f32 %v7070_v8  ;;  %v6901_v30 = vpop.xlane.xlu1 %6900  ;;  %v7008_v53 = vmul.f32 %v17473_v2, %v17473_v2 }
 0xaee   : > { %v12766_v59 = vpop.eup %12765  ;;  %v6977_v58 = vmul.f32 0.025, %v6901_v30  ;;  %11379 = vmatprep.mubr.msk.f32.mxu1 %vm268_vm0, %v7236_v43  ;;  %v6898_v57 = vpop.xlane.xlu0 %6897 }
 0xaef   : > { %v12768_v47 = vpop.eup %12767  ;;  %v6976_v14 = vmul.f32 0.025, %v6898_v57  ;;  %11380 = vmatmul.mubr.msk.f32.gmra.mrb[114].mxu1 %vm268_vm0, %v7237_v11  ;;  %v7165_v46 = vmul.f32 %v12766_v59, %v7133_v6  ;;  %v7136_v6 = vsub.f32 %v17224_v0, %v17473_v2 }
 0xaf0   : > { %v7041_v10 = vsub.f32 %v6977_v58, %v7009_v38  ;;  %v7164_v19 = vmul.f32 %v12768_v47, %v7132_v1 }
 0xaf1   : > { %v7040_v54 = vsub.f32 %v6976_v14, %v7008_v53  ;;  %v6779_v62 = vpop.xlane.xlu1 %6778  ;;  %v7202_v63 = vmul.f32 %v17297_v29, %v7165_v46 }
 0xaf2   : > { %v7073_v55 = vadd.f32 1e-05, %v7041_v10  ;;  %v17488_v18 = vmul.f32 0.025, %v6779_v62  ;;  %v6776_v22 = vpop.xlane.xlu0 %6775  ;;  %v7201_v60 = vmul.f32 %v17297_v29, %v7164_v19 }
 0xaf3   : > { %v7072_v44 = vadd.f32 1e-05, %v7040_v54  ;;  %v17491_v34 = vmul.f32 0.025, %v6776_v22  ;;  %v7239_v24 = vadd.f32 %v17307_v7, %v7202_v63 }
 0xaf4   : > { %12773 = vrsqrt.f32 %v7073_v55  ;;  %v7238_v41 = vadd.f32 %v17307_v7, %v7201_v60  ;;  %v7011_v33 = vmul.f32 %v17488_v18, %v17488_v18  ;;  %v7139_v63 = vsub.f32 %v17237_v17, %v17488_v18 }
 0xaf5   : > { %12775 = vrsqrt.f32 %v7072_v44  ;;  %v6907_v5 = vpop.xlane.xlu1 %6906  ;;  %v7010_v23 = vmul.f32 %v17491_v34, %v17491_v34  ;;  %v7138_v44 = vsub.f32 %v17240_v26, %v17491_v34 }
 0xaf6   : > { %v12770_v42 = vpop.eup %12769  ;;  %v6979_v13 = vmul.f32 0.025, %v6907_v5  ;;  %11382 = vmatprep.mubr.msk.f32.mxu1 %vm268_vm0, %v7238_v41  ;;  %v6904_v20 = vpop.xlane.xlu0 %6903 }
 0xaf7   : > { %v12772_v45 = vpop.eup %12771  ;;  %v6978_v61 = vmul.f32 0.025, %v6904_v20  ;;  %11383 = vmatmul.mubr.msk.f32.gmra.mrb[116].mxu1 %vm268_vm0, %v7239_v24  ;;  %v7167_v49 = vmul.f32 %v12770_v42, %v7135_v56 }
 0xaf8   : > { %v7043_v9 = vsub.f32 %v6979_v13, %v7011_v33  ;;  %v7166_v4 = vmul.f32 %v12772_v45, %v7134_v3 }
 0xaf9   : > { %v7042_v32 = vsub.f32 %v6978_v61, %v7010_v23  ;;  %v6785_v21 = vpop.xlane.xlu1 %6784  ;;  %v7204_v36 = vmul.f32 %v17297_v29, %v7167_v49 }
 0xafa   : > { %v7075_v35 = vadd.f32 1e-05, %v7043_v9  ;;  %v17506_v39 = vmul.f32 0.025, %v6785_v21  ;;  %v6782_v12 = vpop.xlane.xlu0 %6781  ;;  %v7203_v27 = vmul.f32 %v17297_v29, %v7166_v4 }
 0xafb   : > { %v7074_v52 = vadd.f32 1e-05, %v7042_v32  ;;  %v17509_v40 = vmul.f32 0.025, %v6782_v12  ;;  %v7241_v8 = vadd.f32 %v17307_v7, %v7204_v36 }
 0xafc   : > { %12777 = vrsqrt.f32 %v7075_v35  ;;  %v7240_v16 = vadd.f32 %v17307_v7, %v7203_v27  ;;  %v7013_v30 = vmul.f32 %v17506_v39, %v17506_v39  ;;  %v7141_v61 = vsub.f32 %v17253_v28, %v17506_v39 }
 0xafd   : > { %12779 = vrsqrt.f32 %v7074_v52  ;;  %v6913_v25 = vpop.xlane.xlu1 %6912  ;;  %v7012_v38 = vmul.f32 %v17509_v40, %v17509_v40  ;;  %v7140_v4 = vsub.f32 %v17256_v50, %v17509_v40 }
 0xafe   : > { %v12774_v43 = vpop.eup %12773  ;;  %v6981_v11 = vmul.f32 0.025, %v6913_v25  ;;  %11385 = vmatprep.mubr.msk.f32.mxu1 %vm268_vm0, %v7240_v16  ;;  %v6910_v59 = vpop.xlane.xlu0 %6909 }
 0xaff   : > { %v12776_v1 = vpop.eup %12775  ;;  %v6980_v15 = vmul.f32 0.025, %v6910_v59  ;;  %11386 = vmatmul.mubr.msk.f32.gmra.mrb[118].mxu1 %vm268_vm0, %v7241_v8  ;;  %v7169_v51 = vmul.f32 %v12774_v43, %v7137_v31 }
 0xb00   : > { %v7045_v58 = vsub.f32 %v6981_v11, %v7013_v30  ;;  %v7168_v57 = vmul.f32 %v12776_v1, %v7136_v6 }
 0xb01   : > { %v7044_v47 = vsub.f32 %v6980_v15, %v7012_v38  ;;  %v6791_v53 = vpop.xlane.xlu1 %6790  ;;  %v7206_v0 = vmul.f32 %v17297_v29, %v7169_v51 }
 0xb02   : > { %v7077_v2 = vadd.f32 1e-05, %v7045_v58  ;;  %v6951_v14 = vmul.f32 0.025, %v6791_v53  ;;  %v6788_v46 = vpop.xlane.xlu0 %6787  ;;  %v7205_v10 = vmul.f32 %v17297_v29, %v7168_v57 }
 0xb03   : > { %v7076_v19 = vadd.f32 1e-05, %v7044_v47  ;;  %v6950_v54 = vmul.f32 0.025, %v6788_v46  ;;  %v7243_v22 = vadd.f32 %v17307_v7, %v7206_v0 }
 0xb04   : > { %12781 = vrsqrt.f32 %v7077_v2  ;;  %v7242_v62 = vadd.f32 %v17307_v7, %v7205_v10  ;;  %v7015_v41 = vmul.f32 %v6951_v14, %v6951_v14  ;;  %v7143_v39 = vsub.f32 %v17269_v37, %v6951_v14 }
 0xb05   : > { %12783 = vrsqrt.f32 %v7076_v19  ;;  %v6919_v55 = vpop.xlane.xlu1 %6918  ;;  %v7014_v42 = vmul.f32 %v6950_v54, %v6950_v54  ;;  %v7142_v50 = vsub.f32 %v17272_v48, %v6950_v54  ;;  %v17560_v48 = vld [vmem:[%s19019_s2 + $0xf] ss:$0 sm:$0xff] }
 0xb06   : > { %v12778_v60 = vpop.eup %12777  ;;  %v6983_v56 = vmul.f32 0.025, %v6919_v55  ;;  %11388 = vmatprep.mubr.msk.f32.mxu1 %vm268_vm0, %v7242_v62  ;;  %v6916_v5 = vpop.xlane.xlu0 %6915  ;;  %v10456_v55 = vld [vmem:[%s19018_s1 + $0x148] sm:$0xff] }
 0xb07   : > { %v12780_v24 = vpop.eup %12779  ;;  %v6982_v3 = vmul.f32 0.025, %v6916_v5  ;;  %11389 = vmatmul.mubr.msk.f32.gmra.mrb[120].mxu1 %vm268_vm0, %v7243_v22  ;;  %v7171_v33 = vmul.f32 %v12778_v60, %v7139_v63  ;;  %v10455_v63 = vld [vmem:[%s19018_s1 + $0x140] sm:$0xff] }
 0xb08   : > { %v7047_v17 = vsub.f32 %v6983_v56, %v7015_v41  ;;  %v7170_v18 = vmul.f32 %v12780_v24, %v7138_v44  ;;  %v11580_v60 = vpack.c.bf16 %v10456_v55, %v10455_v63 }
 0xb09   : > { %v7046_v13 = vsub.f32 %v6982_v3, %v7014_v42  ;;  %v7208_v20 = vmul.f32 %v17297_v29, %v7171_v33 }
 0xb0a   : > { %v7079_v45 = vadd.f32 1e-05, %v7047_v17  ;;  %v7207_v23 = vmul.f32 %v17297_v29, %v7170_v18  ;;  %11581 = vmatprep.subr.bf16.mxu0 %v11580_v60 }
 0xb0b   : > { %v7078_v26 = vadd.f32 1e-05, %v7046_v13  ;;  %v7245_v49 = vadd.f32 %v17307_v7, %v7208_v20  ;;  %11583 = vmatpush3.bf16.msra.mxu0 %v11580_v60 }
 0xb0c   : > { %12785 = vrsqrt.f32 %v7079_v45  ;;  %v7244_v34 = vadd.f32 %v17307_v7, %v7207_v23  ;;  %v10457_v45 = vld [vmem:[%s19018_s1 + $0x150] sm:$0xff]  ;;  %v10458_v23 = vld [vmem:[%s19018_s1 + $0x158] sm:$0xff] }
 0xb0d   : > { %12787 = vrsqrt.f32 %v7078_v26 }
 0xb0e   : > { %v12782_v9 = vpop.eup %12781  ;;  %11391 = vmatprep.mubr.msk.f32.mxu1 %vm268_vm0, %v7244_v34  ;;  %v11584_v34 = vpack.c.bf16 %v10458_v23, %v10457_v45 }
 0xb0f   : > { %v12784_v32 = vpop.eup %12783  ;;  %11392 = vmatmul.mubr.msk.f32.gmra.mrb[122].mxu1 %vm268_vm0, %v7245_v49  ;;  %v7173_v21 = vmul.f32 %v12782_v9, %v7141_v61 }
 0xb10   : > { %v7172_v36 = vmul.f32 %v12784_v32, %v7140_v4  ;;  %11585 = vmatprep.subr.bf16.mxu0 %v11584_v34 }
 0xb11   : > { %v7210_v35 = vmul.f32 %v17297_v29, %v7173_v21  ;;  %11587 = vmatpush3.bf16.msra.mxu0 %v11584_v34 }
 0xb12   : > { %v7209_v12 = vmul.f32 %v17297_v29, %v7172_v36 }
 0xb13   : > { %v7247_v27 = vadd.f32 %v17307_v7, %v7210_v35 }
 0xb14   : > { %v7246_v28 = vadd.f32 %v17307_v7, %v7209_v12 }
 0xb16   : > { %v12786_v52 = vpop.eup %12785  ;;  %11394 = vmatprep.mubr.msk.f32.mxu1 %vm268_vm0, %v7246_v28 }
 0xb17   : > { %v12788_v40 = vpop.eup %12787  ;;  %11395 = vmatmul.mubr.msk.f32.gmra.mrb[124].mxu1 %vm268_vm0, %v7247_v27  ;;  %v7175_v16 = vmul.f32 %v12786_v52, %v7143_v39 }
 0xb18   : > { %v7174_v31 = vmul.f32 %v12788_v40, %v7142_v50 }
 0xb19   : > { %v7212_v25 = vmul.f32 %v17297_v29, %v7175_v16 }
 0xb1a   : > { %v7211_v8 = vmul.f32 %v17297_v29, %v7174_v31 }
 0xb1b   : > { %v7249_v37 = vadd.f32 %v17307_v7, %v7212_v25 }
 0xb1c   : > { %v7248_v43 = vadd.f32 %v17307_v7, %v7211_v8 }
 0xb1e   : > { %11397 = vmatprep.mubr.msk.f32.mxu1 %vm268_vm0, %v7248_v43 }
 0xb1f   : > { %11398 = vmatmul.mubr.msk.f32.gmra.mrb[126].mxu1 %vm268_vm0, %v7249_v37 }
 0xb7a   : > { %v11354_v6 = vpop.f32.mrb[96].mxu1 }
 0xb7b   : > { %v7429_v30 = vadd.f32 %v11354_v6, %v17560_v48  ;;  %v7423_v11 = vpop.f32.mrb[97].mxu1 }
 0xb7c   : > { %v7424_v59 = vadd.f32 %v17560_v48, %v7423_v11 }
 0xb7d   : > { %v10422_v29 = vmul.f32 -1.442695, %v7429_v30 }
 0xb7e   : > { %v10421_v1 = vmul.f32 -1.442695, %v7424_v59 }
 0xb7f   : > { %12789 = vpow2.f32 %v10422_v29 }
 0xb80   : > { %12791 = vpow2.f32 %v10421_v1 }
 0xb82   : > { %v11357_v7 = vpop.f32.mrb[98].mxu1 }
 0xb83   : > { %v17565_v38 = vadd.f32 %v11357_v7, %v17560_v48  ;;  %v7433_v15 = vpop.f32.mrb[99].mxu1 }
 0xb84   : > { %v17568_v51 = vadd.f32 %v17560_v48, %v7433_v15 }
 0xb85   : > { %v10424_v58 = vmul.f32 -1.442695, %v17565_v38 }
 0xb86   : > { %v10423_v57 = vmul.f32 -1.442695, %v17568_v51 }
 0xb87   : > { %12793 = vpow2.f32 %v10424_v58 }
 0xb88   : > { %12795 = vpow2.f32 %v10423_v57 }
 0xb89   : > { %v12790_v47 = vpop.eup %12789 }
 0xb8a   : > { %v12792_v53 = vpop.eup %12791  ;;  %v7679_v0 = vadd.f32 1.0, %v12790_v47  ;;  %v11360_v2 = vpop.f32.mrb[100].mxu1 }
 0xb8b   : > { %v7678_v14 = vadd.f32 1.0, %v12792_v53  ;;  %v17573_v46 = vadd.f32 %v11360_v2, %v17560_v48  ;;  %v7443_v10 = vpop.f32.mrb[101].mxu1 }
 0xb8c   : > { %12797 = vrcp.f32 %v7679_v0  ;;  %v17576_v19 = vadd.f32 %v17560_v48, %v7443_v10 }
 0xb8d   : > { %12799 = vrcp.f32 %v7678_v14  ;;  %v10426_v54 = vmul.f32 -1.442695, %v17573_v46 }
 0xb8e   : > { %v10425_v62 = vmul.f32 -1.442695, %v17576_v19 }
 0xb8f   : > { %12801 = vpow2.f32 %v10426_v54 }
 0xb90   : > { %12803 = vpow2.f32 %v10425_v62 }
 0xb91   : > { %v12794_v22 = vpop.eup %12793 }
 0xb92   : > { %v12796_v44 = vpop.eup %12795  ;;  %v7681_v41 = vadd.f32 1.0, %v12794_v22  ;;  %v11363_v56 = vpop.f32.mrb[102].mxu1 }
 0xb93   : > { %v7680_v5 = vadd.f32 1.0, %v12796_v44  ;;  %v17587_v24 = vadd.f32 %v11363_v56, %v17560_v48  ;;  %v7453_v42 = vpop.f32.mrb[103].mxu1 }
 0xb94   : > { %12805 = vrcp.f32 %v7681_v41  ;;  %v17590_v3 = vadd.f32 %v17560_v48, %v7453_v42 }
 0xb95   : > { %12807 = vrcp.f32 %v7680_v5  ;;  %v10428_v33 = vmul.f32 -1.442695, %v17587_v24 }
 0xb96   : > { %v12798_v17 = vpop.eup %12797  ;;  %v10427_v18 = vmul.f32 -1.442695, %v17590_v3 }
 0xb97   : > { %v12800_v13 = vpop.eup %12799  ;;  %v17594_v20 = vmul.f32 %v12798_v17, %v7429_v30  ;;  %12809 = vpow2.f32 %v10428_v33 }
 0xb98   : > { %v17602_v26 = vmul.f32 %v12800_v13, %v7424_v59  ;;  %12811 = vpow2.f32 %v10427_v18 }
 0xb99   : > { %v12802_v61 = vpop.eup %12801  ;;  %v7809_v49 = vsel %vm268_vm0, %v17594_v20, 0.0  ;;  %v7903_v9 = vmul.f32 %v17594_v20, %v17594_v20 }
 0xb9a   : > { %v12804_v4 = vpop.eup %12803  ;;  %v7683_v32 = vadd.f32 1.0, %v12802_v61  ;;  %7810 = vadd.xlane.f32.xlu1 %v7809_v49  ;;  %v11366_v21 = vpop.f32.mrb[104].mxu1  ;;  %v7806_v36 = vsel %vm268_vm0, %v17602_v26, 0.0  ;;  %v7902_v35 = vmul.f32 %v17602_v26, %v17602_v26 }
 0xb9b   : > { %v7682_v12 = vadd.f32 1.0, %v12804_v4  ;;  %v17613_v28 = vadd.f32 %v11366_v21, %v17560_v48  ;;  %7807 = vadd.xlane.f32.xlu0 %v7806_v36  ;;  %v7463_v39 = vpop.f32.mrb[105].mxu1  ;;  %v7937_v50 = vsel %vm268_vm0, %v7903_v9, 0.0 }
 0xb9c   : > { %12813 = vrcp.f32 %v7683_v32  ;;  %v17616_v27 = vadd.f32 %v17560_v48, %v7463_v39  ;;  %v7934_v31 = vsel %vm268_vm0, %v7902_v35, 0.0 }
 0xb9d   : > { %12815 = vrcp.f32 %v7682_v12  ;;  %v10430_v52 = vmul.f32 -1.442695, %v17613_v28 }
 0xb9e   : > { %v12806_v40 = vpop.eup %12805  ;;  %v10429_v16 = vmul.f32 -1.442695, %v17616_v27  ;;  %7938 = vadd.xlane.f32.xlu1 %v7937_v50 }
 0xb9f   : > { %v12808_v25 = vpop.eup %12807  ;;  %v17623_v8 = vmul.f32 %v12806_v40, %v17565_v38  ;;  %12817 = vpow2.f32 %v10430_v52  ;;  %7935 = vadd.xlane.f32.xlu0 %v7934_v31 }
 0xba0   : > { %v17626_v43 = vmul.f32 %v12808_v25, %v17568_v51  ;;  %12819 = vpow2.f32 %v10429_v16 }
 0xba1   : > { %v12810_v37 = vpop.eup %12809  ;;  %v7815_v6 = vsel %vm268_vm0, %v17623_v8, 0.0  ;;  %v7905_v30 = vmul.f32 %v17623_v8, %v17623_v8 }
 0xba2   : > { %v12812_v11 = vpop.eup %12811  ;;  %v7685_v59 = vadd.f32 1.0, %v12810_v37  ;;  %7816 = vadd.xlane.f32.xlu1 %v7815_v6  ;;  %v11369_v29 = vpop.f32.mrb[106].mxu1  ;;  %v7812_v1 = vsel %vm268_vm0, %v17626_v43, 0.0  ;;  %v7904_v7 = vmul.f32 %v17626_v43, %v17626_v43 }
 0xba3   : > { %v7684_v38 = vadd.f32 1.0, %v12812_v11  ;;  %v17637_v15 = vadd.f32 %v11369_v29, %v17560_v48  ;;  %7813 = vadd.xlane.f32.xlu0 %v7812_v1  ;;  %v7473_v51 = vpop.f32.mrb[107].mxu1  ;;  %v7943_v47 = vsel %vm268_vm0, %v7905_v30, 0.0 }
 0xba4   : > { %12821 = vrcp.f32 %v7685_v59  ;;  %v17640_v58 = vadd.f32 %v17560_v48, %v7473_v51  ;;  %v7940_v2 = vsel %vm268_vm0, %v7904_v7, 0.0 }
 0xba5   : > { %12823 = vrcp.f32 %v7684_v38  ;;  %v10432_v57 = vmul.f32 -1.442695, %v17637_v15 }
 0xba6   : > { %v12814_v53 = vpop.eup %12813  ;;  %v10431_v0 = vmul.f32 -1.442695, %v17640_v58  ;;  %7944 = vadd.xlane.f32.xlu1 %v7943_v47 }
 0xba7   : > { %v12816_v14 = vpop.eup %12815  ;;  %v17647_v10 = vmul.f32 %v12814_v53, %v17573_v46  ;;  %12825 = vpow2.f32 %v10432_v57  ;;  %7941 = vadd.xlane.f32.xlu0 %v7940_v2 }
 0xba8   : > { %v17650_v54 = vmul.f32 %v12816_v14, %v17576_v19  ;;  %12827 = vpow2.f32 %v10431_v0 }
 0xba9   : > { %v12818_v62 = vpop.eup %12817  ;;  %v7821_v63 = vsel %vm268_vm0, %v17647_v10, 0.0  ;;  %v7907_v55 = vmul.f32 %v17647_v10, %v17647_v10 }
 0xbaa   : > { %v12820_v22 = vpop.eup %12819  ;;  %v7687_v60 = vadd.f32 1.0, %v12818_v62  ;;  %7822 = vadd.xlane.f32.xlu1 %v7821_v63  ;;  %v11372_v44 = vpop.f32.mrb[108].mxu1  ;;  %v7818_v46 = vsel %vm268_vm0, %v17650_v54, 0.0  ;;  %v7906_v41 = vmul.f32 %v17650_v54, %v17650_v54 }
 0xbab   : > { %v7686_v19 = vadd.f32 1.0, %v12820_v22  ;;  %v17661_v56 = vadd.f32 %v11372_v44, %v17560_v48  ;;  %7819 = vadd.xlane.f32.xlu0 %v7818_v46  ;;  %v7483_v5 = vpop.f32.mrb[109].mxu1  ;;  %v7949_v17 = vsel %vm268_vm0, %v7907_v55, 0.0 }
 0xbac   : > { %12829 = vrcp.f32 %v7687_v60  ;;  %v17664_v42 = vadd.f32 %v17560_v48, %v7483_v5  ;;  %v7946_v45 = vsel %vm268_vm0, %v7906_v41, 0.0  ;;  %v10459_v60 = vld [vmem:[%s19018_s1 + $0x160] sm:$0xff] }
 0xbad   : > { %12831 = vrcp.f32 %v7686_v19  ;;  %v10434_v33 = vmul.f32 -1.442695, %v17661_v56  ;;  %11408 = vmatprep.subr.mxu0 %v10459_v60 }
 0xbae   : > { %v12822_v18 = vpop.eup %12821  ;;  %v10433_v13 = vmul.f32 -1.442695, %v17664_v42  ;;  %7950 = vadd.xlane.f32.xlu1 %v7949_v17  ;;  %11409 = vmatpush3.msra.mxu0 %v10459_v60 }
 0xbaf   : > { %v12824_v23 = vpop.eup %12823  ;;  %v17671_v34 = vmul.f32 %v12822_v18, %v17587_v24  ;;  %12833 = vpow2.f32 %v10434_v33  ;;  %7947 = vadd.xlane.f32.xlu0 %v7946_v45 }
 0xbb0   : > { %v17674_v61 = vmul.f32 %v12824_v23, %v17590_v3  ;;  %12835 = vpow2.f32 %v10433_v13 }
 0xbb1   : > { %v12826_v49 = vpop.eup %12825  ;;  %v7827_v9 = vsel %vm268_vm0, %v17671_v34, 0.0  ;;  %v7909_v4 = vmul.f32 %v17671_v34, %v17671_v34 }
 0xbb2   : > { %v12828_v32 = vpop.eup %12827  ;;  %v7689_v21 = vadd.f32 1.0, %v12826_v49  ;;  %7828 = vadd.xlane.f32.xlu1 %v7827_v9  ;;  %v11375_v36 = vpop.f32.mrb[110].mxu1  ;;  %v7824_v24 = vsel %vm268_vm0, %v17674_v61, 0.0  ;;  %v7908_v35 = vmul.f32 %v17674_v61, %v17674_v61 }
 0xbb3   : > { %v7688_v3 = vadd.f32 1.0, %v12828_v32  ;;  %v17685_v12 = vadd.f32 %v11375_v36, %v17560_v48  ;;  %7825 = vadd.xlane.f32.xlu0 %v7824_v24  ;;  %v7493_v39 = vpop.f32.mrb[111].mxu1  ;;  %v7955_v40 = vsel %vm268_vm0, %v7909_v4, 0.0 }
 0xbb4   : > { %12837 = vrcp.f32 %v7689_v21  ;;  %v17688_v52 = vadd.f32 %v17560_v48, %v7493_v39  ;;  %v7952_v25 = vsel %vm268_vm0, %v7908_v35, 0.0 }
 0xbb5   : > { %12839 = vrcp.f32 %v7688_v3  ;;  %v10436_v50 = vmul.f32 -1.442695, %v17685_v12 }
 0xbb6   : > { %v12830_v16 = vpop.eup %12829  ;;  %v10435_v31 = vmul.f32 -1.442695, %v17688_v52  ;;  %7956 = vadd.xlane.f32.xlu1 %v7955_v40 }
 0xbb7   : > { %v12832_v37 = vpop.eup %12831  ;;  %v17695_v6 = vmul.f32 %v12830_v16, %v17613_v28  ;;  %12841 = vpow2.f32 %v10436_v50  ;;  %7953 = vadd.xlane.f32.xlu0 %v7952_v25 }
 0xbb8   : > { %v17698_v30 = vmul.f32 %v12832_v37, %v17616_v27  ;;  %12843 = vpow2.f32 %v10435_v31 }
 0xbb9   : > { %v12834_v11 = vpop.eup %12833  ;;  %v7833_v59 = vsel %vm268_vm0, %v17695_v6, 0.0  ;;  %v7911_v29 = vmul.f32 %v17695_v6, %v17695_v6 }
 0xbba   : > { %v12836_v1 = vpop.eup %12835  ;;  %v7691_v7 = vadd.f32 1.0, %v12834_v11  ;;  %7834 = vadd.xlane.f32.xlu1 %v7833_v59  ;;  %v11378_v38 = vpop.f32.mrb[112].mxu1  ;;  %v7830_v28 = vsel %vm268_vm0, %v17698_v30, 0.0  ;;  %v7910_v51 = vmul.f32 %v17698_v30, %v17698_v30 }
 0xbbb   : > { %v7690_v27 = vadd.f32 1.0, %v12836_v1  ;;  %v17709_v57 = vadd.f32 %v11378_v38, %v17560_v48  ;;  %7831 = vadd.xlane.f32.xlu0 %v7830_v28  ;;  %v7503_v47 = vpop.f32.mrb[113].mxu1  ;;  %v7961_v2 = vsel %vm268_vm0, %v7911_v29, 0.0 }
 0xbbc   : > { %12845 = vrcp.f32 %v7691_v7  ;;  %v17712_v53 = vadd.f32 %v17560_v48, %v7503_v47  ;;  %v7958_v63 = vsel %vm268_vm0, %v7910_v51, 0.0 }
 0xbbd   : > { %12847 = vrcp.f32 %v7690_v27  ;;  %v10438_v0 = vmul.f32 -1.442695, %v17709_v57 }
 0xbbe   : > { %v12838_v14 = vpop.eup %12837  ;;  %v10437_v62 = vmul.f32 -1.442695, %v17712_v53  ;;  %7962 = vadd.xlane.f32.xlu1 %v7961_v2 }
 0xbbf   : > { %v12840_v55 = vpop.eup %12839  ;;  %v17719_v22 = vmul.f32 %v12838_v14, %v17637_v15  ;;  %12849 = vpow2.f32 %v10438_v0  ;;  %7959 = vadd.xlane.f32.xlu0 %v7958_v63 }
 0xbc0   : > { %v17725_v44 = vmul.f32 %v12840_v55, %v17640_v58  ;;  %12851 = vpow2.f32 %v10437_v62 }
 0xbc1   : > { %v12842_v46 = vpop.eup %12841  ;;  %v7839_v41 = vsel %vm268_vm0, %v17719_v22, 0.0  ;;  %v7913_v19 = vmul.f32 %v17719_v22, %v17719_v22 }
 0xbc2   : > { %v12844_v15 = vpop.eup %12843  ;;  %v7693_v5 = vadd.f32 1.0, %v12842_v46  ;;  %7840 = vadd.xlane.f32.xlu1 %v7839_v41  ;;  %v11381_v33 = vpop.f32.mrb[114].mxu1  ;;  %v7836_v17 = vsel %vm268_vm0, %v17725_v44, 0.0  ;;  %v7912_v58 = vmul.f32 %v17725_v44, %v17725_v44 }
 0xbc3   : > { %v7692_v18 = vadd.f32 1.0, %v12844_v15  ;;  %v17736_v13 = vadd.f32 %v11381_v33, %v17560_v48  ;;  %7837 = vadd.xlane.f32.xlu0 %v7836_v17  ;;  %v7513_v45 = vpop.f32.mrb[115].mxu1  ;;  %v7967_v9 = vsel %vm268_vm0, %v7913_v19, 0.0 }
 0xbc4   : > { %12853 = vrcp.f32 %v7693_v5  ;;  %v17739_v23 = vadd.f32 %v17560_v48, %v7513_v45  ;;  %v7964_v21 = vsel %vm268_vm0, %v7912_v58, 0.0 }
 0xbc5   : > { %12855 = vrcp.f32 %v7692_v18  ;;  %v10440_v49 = vmul.f32 -1.442695, %v17736_v13 }
 0xbc6   : > { %v12846_v4 = vpop.eup %12845  ;;  %v10439_v32 = vmul.f32 -1.442695, %v17739_v23  ;;  %7968 = vadd.xlane.f32.xlu1 %v7967_v9 }
 0xbc7   : > { %v12848_v36 = vpop.eup %12847  ;;  %v17746_v24 = vmul.f32 %v12846_v4, %v17661_v56  ;;  %12857 = vpow2.f32 %v10440_v49  ;;  %7965 = vadd.xlane.f32.xlu0 %v7964_v21 }
 0xbc8   : > { %v17749_v35 = vmul.f32 %v12848_v36, %v17664_v42  ;;  %12859 = vpow2.f32 %v10439_v32 }
 0xbc9   : > { %v12850_v3 = vpop.eup %12849  ;;  %v7845_v39 = vsel %vm268_vm0, %v17746_v24, 0.0  ;;  %v7915_v50 = vmul.f32 %v17746_v24, %v17746_v24 }
 0xbca   : > { %v12852_v40 = vpop.eup %12851  ;;  %v7695_v16 = vadd.f32 1.0, %v12850_v3  ;;  %7846 = vadd.xlane.f32.xlu1 %v7845_v39  ;;  %v11384_v31 = vpop.f32.mrb[116].mxu1  ;;  %v7842_v56 = vsel %vm268_vm0, %v17749_v35, 0.0  ;;  %v7914_v25 = vmul.f32 %v17749_v35, %v17749_v35 }
 0xbcb   : > { %v7694_v42 = vadd.f32 1.0, %v12852_v40  ;;  %v17760_v37 = vadd.f32 %v11384_v31, %v17560_v48  ;;  %7843 = vadd.xlane.f32.xlu0 %v7842_v56  ;;  %v7523_v11 = vpop.f32.mrb[117].mxu1  ;;  %v7973_v1 = vsel %vm268_vm0, %v7915_v50, 0.0 }
 0xbcc   : > { %12861 = vrcp.f32 %v7695_v16  ;;  %v17763_v59 = vadd.f32 %v17560_v48, %v7523_v11  ;;  %v7970_v28 = vsel %vm268_vm0, %v7914_v25, 0.0 }
 0xbcd   : > { %12863 = vrcp.f32 %v7694_v42  ;;  %v10442_v29 = vmul.f32 -1.442695, %v17760_v37 }
 0xbce   : > { %v12854_v7 = vpop.eup %12853  ;;  %v10441_v38 = vmul.f32 -1.442695, %v17763_v59  ;;  %7974 = vadd.xlane.f32.xlu1 %v7973_v1 }
 0xbcf   : > { %v12856_v51 = vpop.eup %12855  ;;  %v17770_v27 = vmul.f32 %v12854_v7, %v17685_v12  ;;  %12865 = vpow2.f32 %v10442_v29  ;;  %7971 = vadd.xlane.f32.xlu0 %v7970_v28 }
 0xbd0   : > { %v17773_v47 = vmul.f32 %v12856_v51, %v17688_v52  ;;  %12867 = vpow2.f32 %v10441_v38 }
 0xbd1   : > { %v12858_v0 = vpop.eup %12857  ;;  %v7851_v2 = vsel %vm268_vm0, %v17770_v27, 0.0  ;;  %v7917_v14 = vmul.f32 %v17770_v27, %v17770_v27 }
 0xbd2   : > { %v12860_v62 = vpop.eup %12859  ;;  %v7697_v63 = vadd.f32 1.0, %v12858_v0  ;;  %7852 = vadd.xlane.f32.xlu1 %v7851_v2  ;;  %v11387_v55 = vpop.f32.mrb[118].mxu1  ;;  %v7848_v12 = vsel %vm268_vm0, %v17773_v47, 0.0  ;;  %v7916_v60 = vmul.f32 %v17773_v47, %v17773_v47 }
 0xbd3   : > { %v7696_v52 = vadd.f32 1.0, %v12860_v62  ;;  %v17784_v46 = vadd.f32 %v11387_v55, %v17560_v48  ;;  %7849 = vadd.xlane.f32.xlu0 %v7848_v12  ;;  %v7533_v41 = vpop.f32.mrb[119].mxu1  ;;  %v7979_v5 = vsel %vm268_vm0, %v7917_v14, 0.0 }
 0xbd4   : > { %12869 = vrcp.f32 %v7697_v63  ;;  %v17787_v19 = vadd.f32 %v17560_v48, %v7533_v41  ;;  %v7976_v58 = vsel %vm268_vm0, %v7916_v60, 0.0 }
 0xbd5   : > { %12871 = vrcp.f32 %v7696_v52  ;;  %v10444_v15 = vmul.f32 -1.442695, %v17784_v46 }
 0xbd6   : > { %v12862_v33 = vpop.eup %12861  ;;  %v10443_v17 = vmul.f32 -1.442695, %v17787_v19  ;;  %7980 = vadd.xlane.f32.xlu1 %v7979_v5 }
 0xbd7   : > { %v12864_v18 = vpop.eup %12863  ;;  %v17794_v45 = vmul.f32 %v12862_v33, %v17709_v57  ;;  %12873 = vpow2.f32 %v10444_v15  ;;  %7977 = vadd.xlane.f32.xlu0 %v7976_v58 }
 0xbd8   : > { %v17797_v49 = vmul.f32 %v12864_v18, %v17712_v53  ;;  %12875 = vpow2.f32 %v10443_v17 }
 0xbd9   : > { %v12866_v9 = vpop.eup %12865  ;;  %v7857_v4 = vsel %vm268_vm0, %v17794_v45, 0.0  ;;  %v7919_v32 = vmul.f32 %v17794_v45, %v17794_v45 }
 0xbda   : > { %v12868_v21 = vpop.eup %12867  ;;  %v7699_v36 = vadd.f32 1.0, %v12866_v9  ;;  %7858 = vadd.xlane.f32.xlu1 %v7857_v4  ;;  %v11390_v3 = vpop.f32.mrb[120].mxu1  ;;  %v7854_v57 = vsel %vm268_vm0, %v17797_v49, 0.0  ;;  %v7918_v39 = vmul.f32 %v17797_v49, %v17797_v49 }
 0xbdb   : > { %v7698_v53 = vadd.f32 1.0, %v12868_v21  ;;  %v17808_v50 = vadd.f32 %v11390_v3, %v17560_v48  ;;  %7855 = vadd.xlane.f32.xlu0 %v7854_v57  ;;  %v7543_v40 = vpop.f32.mrb[121].mxu1  ;;  %v7985_v56 = vsel %vm268_vm0, %v7919_v32, 0.0 }
 0xbdc   : > { %12877 = vrcp.f32 %v7699_v36  ;;  %v17811_v16 = vadd.f32 %v17560_v48, %v7543_v40  ;;  %v7982_v11 = vsel %vm268_vm0, %v7918_v39, 0.0 }
 0xbdd   : > { %12879 = vrcp.f32 %v7698_v53  ;;  %v10446_v31 = vmul.f32 -1.442695, %v17808_v50 }
 0xbde   : > { %v12870_v25 = vpop.eup %12869  ;;  %v10445_v42 = vmul.f32 -1.442695, %v17811_v16  ;;  %7986 = vadd.xlane.f32.xlu1 %v7985_v56 }
 0xbdf   : > { %v12872_v29 = vpop.eup %12871  ;;  %v17818_v1 = vmul.f32 %v12870_v25, %v17736_v13  ;;  %12881 = vpow2.f32 %v10446_v31  ;;  %7983 = vadd.xlane.f32.xlu0 %v7982_v11 }
 0xbe0   : > { %v17821_v7 = vmul.f32 %v12872_v29, %v17739_v23  ;;  %12883 = vpow2.f32 %v10445_v42 }
 0xbe1   : > { %v12874_v38 = vpop.eup %12873  ;;  %v7863_v28 = vsel %vm268_vm0, %v17818_v1, 0.0  ;;  %v7921_v51 = vmul.f32 %v17818_v1, %v17818_v1 }
 0xbe2   : > { %v12876_v0 = vpop.eup %12875  ;;  %v7701_v2 = vadd.f32 1.0, %v12874_v38  ;;  %7864 = vadd.xlane.f32.xlu1 %v7863_v28  ;;  %v11393_v14 = vpop.f32.mrb[122].mxu1  ;;  %v7860_v13 = vsel %vm268_vm0, %v17821_v7, 0.0  ;;  %v7920_v62 = vmul.f32 %v17821_v7, %v17821_v7 }
 0xbe3   : > { %v7700_v23 = vadd.f32 1.0, %v12876_v0  ;;  %v17832_v63 = vadd.f32 %v11393_v14, %v17560_v48  ;;  %7861 = vadd.xlane.f32.xlu0 %v7860_v13  ;;  %v7553_v55 = vpop.f32.mrb[123].mxu1  ;;  %v7991_v52 = vsel %vm268_vm0, %v7921_v51, 0.0 }
 0xbe4   : > { %12885 = vrcp.f32 %v7701_v2  ;;  %v17835_v12 = vadd.f32 %v17560_v48, %v7553_v55  ;;  %v7988_v5 = vsel %vm268_vm0, %v7920_v62, 0.0 }
 0xbe5   : > { %12887 = vrcp.f32 %v7700_v23  ;;  %v10448_v60 = vmul.f32 -1.442695, %v17832_v63 }
 0xbe6   : > { %v12878_v41 = vpop.eup %12877  ;;  %v10447_v15 = vmul.f32 -1.442695, %v17835_v12  ;;  %7992 = vadd.xlane.f32.xlu1 %v7991_v52 }
 0xbe7   : > { %v12880_v33 = vpop.eup %12879  ;;  %v17842_v17 = vmul.f32 %v12878_v41, %v17760_v37  ;;  %12889 = vpow2.f32 %v10448_v60  ;;  %7989 = vadd.xlane.f32.xlu0 %v7988_v5 }
 0xbe8   : > { %v17845_v58 = vmul.f32 %v12880_v33, %v17763_v59  ;;  %12891 = vpow2.f32 %v10447_v15 }
 0xbe9   : > { %v12882_v18 = vpop.eup %12881  ;;  %v7869_v9 = vsel %vm268_vm0, %v17842_v17, 0.0  ;;  %v7923_v4 = vmul.f32 %v17842_v17, %v17842_v17 }
 0xbea   : > { %v12884_v32 = vpop.eup %12883  ;;  %v7703_v21 = vadd.f32 1.0, %v12882_v18  ;;  %7870 = vadd.xlane.f32.xlu1 %v7869_v9  ;;  %v11396_v36 = vpop.f32.mrb[124].mxu1  ;;  %v7866_v37 = vsel %vm268_vm0, %v17845_v58, 0.0  ;;  %v7922_v3 = vmul.f32 %v17845_v58, %v17845_v58 }
 0xbeb   : > { %v7702_v59 = vadd.f32 1.0, %v12884_v32  ;;  %v17856_v57 = vadd.f32 %v11396_v36, %v17560_v48  ;;  %7867 = vadd.xlane.f32.xlu0 %v7866_v37  ;;  %v7563_v39 = vpop.f32.mrb[125].mxu1  ;;  %v7997_v31 = vsel %vm268_vm0, %v7923_v4, 0.0 }
 0xbec   : > { %12893 = vrcp.f32 %v7703_v21  ;;  %v17859_v53 = vadd.f32 %v17560_v48, %v7563_v39  ;;  %v7994_v42 = vsel %vm268_vm0, %v7922_v3, 0.0 }
 0xbed   : > { %12895 = vrcp.f32 %v7702_v59  ;;  %v10450_v40 = vmul.f32 -1.442695, %v17856_v57 }
 0xbee   : > { %v12886_v56 = vpop.eup %12885  ;;  %v10449_v25 = vmul.f32 -1.442695, %v17859_v53  ;;  %7998 = vadd.xlane.f32.xlu1 %v7997_v31 }
 0xbef   : > { %v12888_v11 = vpop.eup %12887  ;;  %v17866_v29 = vmul.f32 %v12886_v56, %v17784_v46  ;;  %12897 = vpow2.f32 %v10450_v40  ;;  %7995 = vadd.xlane.f32.xlu0 %v7994_v42 }
 0xbf0   : > { %v17869_v38 = vmul.f32 %v12888_v11, %v17787_v19  ;;  %12899 = vpow2.f32 %v10449_v25 }
 0xbf1   : > { %v12890_v28 = vpop.eup %12889  ;;  %v7875_v51 = vsel %vm268_vm0, %v17866_v29, 0.0  ;;  %v7925_v0 = vmul.f32 %v17866_v29, %v17866_v29 }
 0xbf2   : > { %v12892_v2 = vpop.eup %12891  ;;  %v7705_v14 = vadd.f32 1.0, %v12890_v28  ;;  %7876 = vadd.xlane.f32.xlu1 %v7875_v51  ;;  %v11399_v13 = vpop.f32.mrb[126].mxu1  ;;  %v7872_v46 = vsel %vm268_vm0, %v17869_v38, 0.0  ;;  %v7924_v62 = vmul.f32 %v17869_v38, %v17869_v38 }
 0xbf3   : > { %v7704_v19 = vadd.f32 1.0, %v12892_v2  ;;  %v17880_v23 = vadd.f32 %v11399_v13, %v17560_v48  ;;  %7873 = vadd.xlane.f32.xlu0 %v7872_v46  ;;  %v7573_v55 = vpop.f32.mrb[127].mxu1  ;;  %v8003_v41 = vsel %vm268_vm0, %v7925_v0, 0.0 }
 0xbf4   : > { %12901 = vrcp.f32 %v7705_v14  ;;  %v17883_v60 = vadd.f32 %v17560_v48, %v7573_v55  ;;  %v8000_v33 = vsel %vm268_vm0, %v7924_v62, 0.0 }
 0xbf5   : > { %12903 = vrcp.f32 %v7704_v19  ;;  %v10452_v52 = vmul.f32 -1.442695, %v17880_v23 }
 0xbf6   : > { %v12894_v15 = vpop.eup %12893  ;;  %v10451_v5 = vmul.f32 -1.442695, %v17883_v60  ;;  %8004 = vadd.xlane.f32.xlu1 %v8003_v41 }
 0xbf7   : > { %v12896_v18 = vpop.eup %12895  ;;  %v17890_v9 = vmul.f32 %v12894_v15, %v17808_v50  ;;  %12905 = vpow2.f32 %v10452_v52  ;;  %8001 = vadd.xlane.f32.xlu0 %v8000_v33 }
 0xbf8   : > { %v17893_v48 = vmul.f32 %v12896_v18, %v17811_v16  ;;  %12907 = vpow2.f32 %v10451_v5 }
 0xbf9   : > { %v12898_v4 = vpop.eup %12897  ;;  %v7881_v32 = vsel %vm268_vm0, %v17890_v9, 0.0  ;;  %v7927_v21 = vmul.f32 %v17890_v9, %v17890_v9 }
 0xbfa   : > { %v12900_v36 = vpop.eup %12899  ;;  %v7707_v37 = vadd.f32 1.0, %v12898_v4  ;;  %7882 = vadd.xlane.f32.xlu1 %v7881_v32  ;;  %v7878_v50 = vsel %vm268_vm0, %v17893_v48, 0.0  ;;  %v7926_v3 = vmul.f32 %v17893_v48, %v17893_v48 }
 0xbfb   : > { %v7706_v59 = vadd.f32 1.0, %v12900_v36  ;;  %7879 = vadd.xlane.f32.xlu0 %v7878_v50  ;;  %v8009_v16 = vsel %vm268_vm0, %v7927_v21, 0.0 }
 0xbfc   : > { %12909 = vrcp.f32 %v7707_v37  ;;  %v8006_v40 = vsel %vm268_vm0, %v7926_v3, 0.0 }
 0xbfd   : > { %12911 = vrcp.f32 %v7706_v59 }
 0xbfe   : > { %v12902_v39 = vpop.eup %12901  ;;  %8010 = vadd.xlane.f32.xlu1 %v8009_v16 }
 0xbff   : > { %v12904_v31 = vpop.eup %12903  ;;  %v17906_v56 = vmul.f32 %v12902_v39, %v17832_v63  ;;  %8007 = vadd.xlane.f32.xlu0 %v8006_v40 }
 0xc00   : > { %v17909_v25 = vmul.f32 %v12904_v31, %v17835_v12 }
 0xc01   : > { %v12906_v42 = vpop.eup %12905  ;;  %v7887_v11 = vsel %vm268_vm0, %v17906_v56, 0.0  ;;  %v7929_v28 = vmul.f32 %v17906_v56, %v17906_v56 }
 0xc02   : > { %v12908_v51 = vpop.eup %12907  ;;  %v7709_v0 = vadd.f32 1.0, %v12906_v42  ;;  %7888 = vadd.xlane.f32.xlu1 %v7887_v11  ;;  %v7884_v2 = vsel %vm268_vm0, %v17909_v25, 0.0  ;;  %v7928_v63 = vmul.f32 %v17909_v25, %v17909_v25 }
 0xc03   : > { %v7708_v14 = vadd.f32 1.0, %v12908_v51  ;;  %7885 = vadd.xlane.f32.xlu0 %v7884_v2  ;;  %v8015_v12 = vsel %vm268_vm0, %v7929_v28, 0.0 }
 0xc04   : > { %12913 = vrcp.f32 %v7709_v0  ;;  %v8012_v46 = vsel %vm268_vm0, %v7928_v63, 0.0 }
 0xc05   : > { %12915 = vrcp.f32 %v7708_v14 }
 0xc06   : > { %v12910_v13 = vpop.eup %12909  ;;  %8016 = vadd.xlane.f32.xlu1 %v8015_v12 }
 0xc07   : > { %v12912_v62 = vpop.eup %12911  ;;  %v17922_v19 = vmul.f32 %v12910_v13, %v17856_v57  ;;  %8013 = vadd.xlane.f32.xlu0 %v8012_v46 }
 0xc08   : > { %v17925_v55 = vmul.f32 %v12912_v62, %v17859_v53 }
 0xc09   : > { %v7893_v52 = vsel %vm268_vm0, %v17922_v19, 0.0  ;;  %v7931_v41 = vmul.f32 %v17922_v19, %v17922_v19 }
 0xc0a   : > { %7894 = vadd.xlane.f32.xlu1 %v7893_v52  ;;  %v7890_v15 = vsel %vm268_vm0, %v17925_v55, 0.0  ;;  %v7930_v5 = vmul.f32 %v17925_v55, %v17925_v55 }
 0xc0b   : > { %7891 = vadd.xlane.f32.xlu0 %v7890_v15  ;;  %v8021_v57 = vsel %vm268_vm0, %v7931_v41, 0.0 }
 0xc0c   : > { %v8018_v53 = vsel %vm268_vm0, %v7930_v5, 0.0 }
 0xc0e   : > { %v12914_v33 = vpop.eup %12913  ;;  %8022 = vadd.xlane.f32.xlu1 %v8021_v57 }
 0xc0f   : > { %v12916_v18 = vpop.eup %12915  ;;  %v17938_v4 = vmul.f32 %v12914_v33, %v17880_v23  ;;  %8019 = vadd.xlane.f32.xlu0 %v8018_v53 }
 0xc10   : > { %v17941_v32 = vmul.f32 %v12916_v18, %v17883_v60 }
 0xc11   : > { %v7899_v21 = vsel %vm268_vm0, %v17938_v4, 0.0  ;;  %v7933_v36 = vmul.f32 %v17938_v4, %v17938_v4 }
 0xc12   : > { %7900 = vadd.xlane.f32.xlu1 %v7899_v21  ;;  %v7896_v37 = vsel %vm268_vm0, %v17941_v32, 0.0  ;;  %v7932_v50 = vmul.f32 %v17941_v32, %v17941_v32 }
 0xc13   : > { %7897 = vadd.xlane.f32.xlu0 %v7896_v37  ;;  %v8027_v23 = vsel %vm268_vm0, %v7933_v36, 0.0 }
 0xc14   : > { %v8024_v60 = vsel %vm268_vm0, %v7932_v50, 0.0 }
 0xc16   : > { %8028 = vadd.xlane.f32.xlu1 %v8027_v23 }
 0xc17   : > { %8025 = vadd.xlane.f32.xlu0 %v8024_v60 }
 0xc27   : > { %v7811_v3 = vpop.xlane.xlu1 %7810 }
 0xc28   : > { %v8031_v59 = vmul.f32 0.025, %v7811_v3  ;;  %v7808_v16 = vpop.xlane.xlu0 %7807 }
 0xc29   : > { %v8030_v39 = vmul.f32 0.025, %v7808_v16 }
 0xc2a   : > { %v8095_v31 = vmul.f32 %v8031_v59, %v8031_v59  ;;  %v8223_v3 = vsub.f32 %v17594_v20, %v8031_v59 }
 0xc2b   : > { %v7939_v40 = vpop.xlane.xlu1 %7938  ;;  %v8094_v28 = vmul.f32 %v8030_v39, %v8030_v39 }
 0xc2c   : > { %v8063_v42 = vmul.f32 0.025, %v7939_v40  ;;  %v7936_v11 = vpop.xlane.xlu0 %7935 }
 0xc2d   : > { %v8062_v51 = vmul.f32 0.025, %v7936_v11 }
 0xc2e   : > { %v8127_v0 = vsub.f32 %v8063_v42, %v8095_v31  ;;  %v8222_v31 = vsub.f32 %v17602_v26, %v8030_v39  ;;  %v17966_v42 = vld [vmem:[%s19019_s2 + $0x13] ss:$0 sm:$0xff] }
 0xc2f   : > { %v8126_v2 = vsub.f32 %v8062_v51, %v8094_v28  ;;  %v7817_v63 = vpop.xlane.xlu1 %7816 }
 0xc30   : > { %v8159_v14 = vadd.f32 1e-05, %v8127_v0  ;;  %v17953_v12 = vmul.f32 0.025, %v7817_v63  ;;  %v7814_v13 = vpop.xlane.xlu0 %7813 }
 0xc31   : > { %v8158_v46 = vadd.f32 1e-05, %v8126_v2  ;;  %v8032_v62 = vmul.f32 0.025, %v7814_v13 }
 0xc32   : > { %12917 = vrsqrt.f32 %v8159_v14  ;;  %v8097_v41 = vmul.f32 %v17953_v12, %v17953_v12 }
 0xc33   : > { %12919 = vrsqrt.f32 %v8158_v46  ;;  %v7945_v52 = vpop.xlane.xlu1 %7944  ;;  %v8096_v57 = vmul.f32 %v8032_v62, %v8032_v62  ;;  %v17976_v46 = vld [vmem:[%s19019_s2 + $0x17] ss:$0 sm:$0xff] }
 0xc34   : > { %v8065_v15 = vmul.f32 0.025, %v7945_v52  ;;  %v7942_v5 = vpop.xlane.xlu0 %7941 }
 0xc35   : > { %v8064_v33 = vmul.f32 0.025, %v7942_v5 }
 0xc36   : > { %v8129_v53 = vsub.f32 %v8065_v15, %v8097_v41 }
 0xc37   : > { %v8128_v18 = vsub.f32 %v8064_v33, %v8096_v57  ;;  %v7823_v21 = vpop.xlane.xlu1 %7822 }
 0xc38   : > { %v8161_v36 = vadd.f32 1e-05, %v8129_v53  ;;  %v17957_v37 = vmul.f32 0.025, %v7823_v21  ;;  %v7820_v50 = vpop.xlane.xlu0 %7819 }
 0xc39   : > { %v8160_v23 = vadd.f32 1e-05, %v8128_v18  ;;  %v17959_v60 = vmul.f32 0.025, %v7820_v50  ;;  %v8225_v18 = vsub.f32 %v17623_v8, %v17953_v12 }
 0xc3a   : > { %12921 = vrsqrt.f32 %v8161_v36  ;;  %v8099_v11 = vmul.f32 %v17957_v37, %v17957_v37 }
 0xc3b   : > { %12923 = vrsqrt.f32 %v8160_v23  ;;  %v7951_v16 = vpop.xlane.xlu1 %7950  ;;  %v8098_v20 = vmul.f32 %v17959_v60, %v17959_v60  ;;  %v8224_v23 = vsub.f32 %v17626_v43, %v8032_v62 }
 0xc3c   : > { %v12918_v40 = vpop.eup %12917  ;;  %v8067_v28 = vmul.f32 0.025, %v7951_v16  ;;  %v7948_v51 = vpop.xlane.xlu0 %7947 }
 0xc3d   : > { %v12920_v0 = vpop.eup %12919  ;;  %v8255_v2 = vmul.f32 %v12918_v40, %v8223_v3  ;;  %v8066_v59 = vmul.f32 0.025, %v7948_v51 }
 0xc3e   : > { %v8131_v63 = vsub.f32 %v8067_v28, %v8099_v11  ;;  %v8254_v14 = vmul.f32 %v12920_v0, %v8222_v31 }
 0xc3f   : > { %v8292_v26 = vmul.f32 %v17966_v42, %v8255_v2  ;;  %v8130_v39 = vsub.f32 %v8066_v59, %v8098_v20  ;;  %v7829_v13 = vpop.xlane.xlu1 %7828 }
 0xc40   : > { %v8163_v52 = vadd.f32 1e-05, %v8131_v63  ;;  %v17978_v41 = vmul.f32 0.025, %v7829_v13  ;;  %v7826_v15 = vpop.xlane.xlu0 %7825  ;;  %v8291_v5 = vmul.f32 %v17966_v42, %v8254_v14  ;;  %v8227_v13 = vsub.f32 %v17647_v10, %v17957_v37 }
 0xc41   : > { %v8162_v57 = vadd.f32 1e-05, %v8130_v39  ;;  %v17981_v33 = vmul.f32 0.025, %v7826_v15  ;;  %v8329_v36 = vadd.f32 %v17976_v46, %v8292_v26 }
 0xc42   : > { %12925 = vrsqrt.f32 %v8163_v52  ;;  %v8328_v53 = vadd.f32 %v17976_v46, %v8291_v5  ;;  %v8101_v3 = vmul.f32 %v17978_v41, %v17978_v41 }
 0xc43   : > { %12927 = vrsqrt.f32 %v8162_v57  ;;  %v7957_v21 = vpop.xlane.xlu1 %7956  ;;  %v8100_v11 = vmul.f32 %v17981_v33, %v17981_v33  ;;  %v8226_v57 = vsub.f32 %v17650_v54, %v17959_v60 }
 0xc44   : > { %v12922_v50 = vpop.eup %12921  ;;  %v8069_v16 = vmul.f32 0.025, %v7957_v21  ;;  %11410 = vmatprep.mubr.msk.f32.mxu0 %vm268_vm0, %v8328_v53  ;;  %v7954_v40 = vpop.xlane.xlu0 %7953 }
 0xc45   : > { %v12924_v31 = vpop.eup %12923  ;;  %v8068_v28 = vmul.f32 0.025, %v7954_v40  ;;  %11411 = vmatmul.mubr.msk.f32.vlgmr.msra.gmra.mrb[128].mxu0 %vm268_vm0, %v8329_v36  ;;  %v8257_v8 = vmul.f32 %v12922_v50, %v8225_v18 }
 0xc46   : > { %v8133_v12 = vsub.f32 %v8069_v16, %v8101_v3  ;;  %v8256_v51 = vmul.f32 %v12924_v31, %v8224_v23 }
 0xc47   : > { %v8132_v0 = vsub.f32 %v8068_v28, %v8100_v11  ;;  %v7835_v2 = vpop.xlane.xlu1 %7834  ;;  %v8294_v43 = vmul.f32 %v17966_v42, %v8257_v8 }
 0xc48   : > { %v8165_v62 = vadd.f32 1e-05, %v8133_v12  ;;  %v17995_v20 = vmul.f32 0.025, %v7835_v2  ;;  %v7832_v59 = vpop.xlane.xlu0 %7831  ;;  %v8293_v63 = vmul.f32 %v17966_v42, %v8256_v51 }
 0xc49   : > { %v8164_v14 = vadd.f32 1e-05, %v8132_v0  ;;  %v17998_v26 = vmul.f32 0.025, %v7832_v59  ;;  %v8331_v15 = vadd.f32 %v17976_v46, %v8294_v43  ;;  %v8229_v0 = vsub.f32 %v17671_v34, %v17978_v41 }
 0xc4a   : > { %12929 = vrsqrt.f32 %v8165_v62  ;;  %v8330_v39 = vadd.f32 %v17976_v46, %v8293_v63  ;;  %v8103_v53 = vmul.f32 %v17995_v20, %v17995_v20  ;;  %v8228_v59 = vsub.f32 %v17674_v61, %v17981_v33 }
 0xc4b   : > { %12931 = vrsqrt.f32 %v8164_v14  ;;  %v7963_v52 = vpop.xlane.xlu1 %7962  ;;  %v8102_v50 = vmul.f32 %v17998_v26, %v17998_v26 }
 0xc4c   : > { %v12926_v5 = vpop.eup %12925  ;;  %v8071_v18 = vmul.f32 0.025, %v7963_v52  ;;  %11413 = vmatprep.mubr.msk.f32.mxu0 %vm268_vm0, %v8330_v39  ;;  %v7960_v21 = vpop.xlane.xlu0 %7959 }
 0xc4d   : > { %v12928_v36 = vpop.eup %12927  ;;  %v8070_v10 = vmul.f32 0.025, %v7960_v21  ;;  %11414 = vmatmul.mubr.msk.f32.gmra.mrb[130].mxu0 %vm268_vm0, %v8331_v15  ;;  %v8259_v37 = vmul.f32 %v12926_v5, %v8227_v13 }
 0xc4e   : > { %v8135_v23 = vsub.f32 %v8071_v18, %v8103_v53  ;;  %v8258_v3 = vmul.f32 %v12928_v36, %v8226_v57 }
 0xc4f   : > { %v8134_v16 = vsub.f32 %v8070_v10, %v8102_v50  ;;  %v7841_v40 = vpop.xlane.xlu1 %7840  ;;  %v8296_v54 = vmul.f32 %v17966_v42, %v8259_v37 }
 0xc50   : > { %v8167_v60 = vadd.f32 1e-05, %v8135_v23  ;;  %v18013_v31 = vmul.f32 0.025, %v7841_v40  ;;  %v7838_v11 = vpop.xlane.xlu0 %7837  ;;  %v8295_v28 = vmul.f32 %v17966_v42, %v8258_v3  ;;  %v8231_v23 = vsub.f32 %v17695_v6, %v17995_v20 }
 0xc51   : > { %v8166_v8 = vadd.f32 1e-05, %v8134_v16  ;;  %v18016_v12 = vmul.f32 0.025, %v7838_v11  ;;  %v8333_v43 = vadd.f32 %v17976_v46, %v8296_v54  ;;  %v8230_v54 = vsub.f32 %v17698_v30, %v17998_v26 }
 0xc52   : > { %12933 = vrsqrt.f32 %v8167_v60  ;;  %v8332_v51 = vadd.f32 %v17976_v46, %v8295_v28  ;;  %v8105_v63 = vmul.f32 %v18013_v31, %v18013_v31 }
 0xc53   : > { %12935 = vrsqrt.f32 %v8166_v8  ;;  %v7969_v2 = vpop.xlane.xlu1 %7968  ;;  %v8104_v52 = vmul.f32 %v18016_v12, %v18016_v12 }
 0xc54   : > { %v12930_v62 = vpop.eup %12929  ;;  %v8073_v14 = vmul.f32 0.025, %v7969_v2  ;;  %11416 = vmatprep.mubr.msk.f32.mxu0 %vm268_vm0, %v8332_v51  ;;  %v7966_v39 = vpop.xlane.xlu0 %7965 }
 0xc55   : > { %v12932_v13 = vpop.eup %12931  ;;  %v8072_v34 = vmul.f32 0.025, %v7966_v39  ;;  %11417 = vmatmul.mubr.msk.f32.gmra.mrb[132].mxu0 %vm268_vm0, %v8333_v43  ;;  %v8261_v41 = vmul.f32 %v12930_v62, %v8229_v0 }
 0xc56   : > { %v8137_v15 = vsub.f32 %v8073_v14, %v8105_v63  ;;  %v8260_v5 = vmul.f32 %v12932_v13, %v8228_v59 }
 0xc57   : > { %v8136_v57 = vsub.f32 %v8072_v34, %v8104_v52  ;;  %v7847_v53 = vpop.xlane.xlu1 %7846  ;;  %v8298_v61 = vmul.f32 %v17966_v42, %v8261_v41  ;;  %v8233_v34 = vsub.f32 %v17719_v22, %v18013_v31 }
 0xc58   : > { %v8169_v33 = vadd.f32 1e-05, %v8137_v15  ;;  %v18031_v18 = vmul.f32 0.025, %v7847_v53  ;;  %v7844_v21 = vpop.xlane.xlu0 %7843  ;;  %v8297_v36 = vmul.f32 %v17966_v42, %v8260_v5 }
 0xc59   : > { %v8168_v50 = vadd.f32 1e-05, %v8136_v57  ;;  %v18034_v10 = vmul.f32 0.025, %v7844_v21  ;;  %v8335_v16 = vadd.f32 %v17976_v46, %v8298_v61  ;;  %v8232_v57 = vsub.f32 %v17725_v44, %v18016_v12 }
 0xc5a   : > { %12937 = vrsqrt.f32 %v8169_v33  ;;  %v8334_v37 = vadd.f32 %v17976_v46, %v8297_v36  ;;  %v8107_v60 = vmul.f32 %v18031_v18, %v18031_v18 }
 0xc5b   : > { %12939 = vrsqrt.f32 %v8168_v50  ;;  %v7975_v3 = vpop.xlane.xlu1 %7974  ;;  %v8106_v51 = vmul.f32 %v18034_v10, %v18034_v10 }
 0xc5c   : > { %v12934_v40 = vpop.eup %12933  ;;  %v8075_v11 = vmul.f32 0.025, %v7975_v3  ;;  %11419 = vmatprep.mubr.msk.f32.mxu0 %vm268_vm0, %v8334_v37  ;;  %v7972_v28 = vpop.xlane.xlu0 %7971 }
 0xc5d   : > { %v12936_v8 = vpop.eup %12935  ;;  %v8074_v6 = vmul.f32 0.025, %v7972_v28  ;;  %11420 = vmatmul.mubr.msk.f32.gmra.mrb[134].mxu0 %vm268_vm0, %v8335_v16  ;;  %v8263_v20 = vmul.f32 %v12934_v40, %v8231_v23 }
 0xc5e   : > { %v8139_v0 = vsub.f32 %v8075_v11, %v8107_v60  ;;  %v8262_v2 = vmul.f32 %v12936_v8, %v8230_v54  ;;  %v8235_v8 = vsub.f32 %v17746_v24, %v18031_v18 }
 0xc5f   : > { %v8138_v43 = vsub.f32 %v8074_v6, %v8106_v51  ;;  %v7853_v62 = vpop.xlane.xlu1 %7852  ;;  %v8300_v30 = vmul.f32 %v17966_v42, %v8263_v20 }
 0xc60   : > { %v8171_v26 = vadd.f32 1e-05, %v8139_v0  ;;  %v18049_v59 = vmul.f32 0.025, %v7853_v62  ;;  %v7850_v63 = vpop.xlane.xlu0 %7849  ;;  %v8299_v14 = vmul.f32 %v17966_v42, %v8262_v2  ;;  %v8234_v0 = vsub.f32 %v17749_v35, %v18034_v10 }
 0xc61   : > { %v8170_v39 = vadd.f32 1e-05, %v8138_v43  ;;  %v18052_v13 = vmul.f32 0.025, %v7850_v63  ;;  %v8337_v15 = vadd.f32 %v17976_v46, %v8300_v30 }
 0xc62   : > { %12941 = vrsqrt.f32 %v8171_v26  ;;  %v8336_v52 = vadd.f32 %v17976_v46, %v8299_v14  ;;  %v8109_v53 = vmul.f32 %v18049_v59, %v18049_v59 }
 0xc63   : > { %12943 = vrsqrt.f32 %v8170_v39  ;;  %v7981_v41 = vpop.xlane.xlu1 %7980  ;;  %v8108_v36 = vmul.f32 %v18052_v13, %v18052_v13 }
 0xc64   : > { %v12938_v5 = vpop.eup %12937  ;;  %v8077_v61 = vmul.f32 0.025, %v7981_v41  ;;  %11422 = vmatprep.mubr.msk.f32.mxu0 %vm268_vm0, %v8336_v52  ;;  %v7978_v33 = vpop.xlane.xlu0 %7977 }
 0xc65   : > { %v12940_v21 = vpop.eup %12939  ;;  %v8076_v22 = vmul.f32 0.025, %v7978_v33  ;;  %11423 = vmatmul.mubr.msk.f32.gmra.mrb[136].mxu0 %vm268_vm0, %v8337_v15  ;;  %v8265_v31 = vmul.f32 %v12938_v5, %v8233_v34 }
 0xc66   : > { %v8141_v50 = vsub.f32 %v8077_v61, %v8109_v53  ;;  %v8264_v37 = vmul.f32 %v12940_v21, %v8232_v57  ;;  %v8237_v61 = vsub.f32 %v17770_v27, %v18049_v59 }
 0xc67   : > { %v8140_v23 = vsub.f32 %v8076_v22, %v8108_v36  ;;  %v7859_v3 = vpop.xlane.xlu1 %7858  ;;  %v8302_v44 = vmul.f32 %v17966_v42, %v8265_v31  ;;  %v8236_v22 = vsub.f32 %v17773_v47, %v18052_v13 }
 0xc68   : > { %v8173_v12 = vadd.f32 1e-05, %v8141_v50  ;;  %v18067_v16 = vmul.f32 0.025, %v7859_v3  ;;  %v7856_v40 = vpop.xlane.xlu0 %7855  ;;  %v8301_v54 = vmul.f32 %v17966_v42, %v8264_v37 }
 0xc69   : > { %v8172_v60 = vadd.f32 1e-05, %v8140_v23  ;;  %v18070_v11 = vmul.f32 0.025, %v7856_v40  ;;  %v8339_v6 = vadd.f32 %v17976_v46, %v8302_v44 }
 0xc6a   : > { %12945 = vrsqrt.f32 %v8173_v12  ;;  %v8338_v28 = vadd.f32 %v17976_v46, %v8301_v54  ;;  %v8111_v2 = vmul.f32 %v18067_v16, %v18067_v16 }
 0xc6b   : > { %12947 = vrsqrt.f32 %v8172_v60  ;;  %v7987_v51 = vpop.xlane.xlu1 %7986  ;;  %v8110_v26 = vmul.f32 %v18070_v11, %v18070_v11 }
 0xc6c   : > { %v12942_v20 = vpop.eup %12941  ;;  %v8079_v43 = vmul.f32 0.025, %v7987_v51  ;;  %11425 = vmatprep.mubr.msk.f32.mxu0 %vm268_vm0, %v8338_v28  ;;  %v7984_v62 = vpop.xlane.xlu0 %7983 }
 0xc6d   : > { %v12944_v30 = vpop.eup %12943  ;;  %v8078_v24 = vmul.f32 0.025, %v7984_v62  ;;  %11426 = vmatmul.mubr.msk.f32.gmra.mrb[138].mxu0 %vm268_vm0, %v8339_v6  ;;  %v8267_v18 = vmul.f32 %v12942_v20, %v8235_v8 }
 0xc6e   : > { %v8143_v63 = vsub.f32 %v8079_v43, %v8111_v2  ;;  %v8266_v14 = vmul.f32 %v12944_v30, %v8234_v0  ;;  %v8239_v0 = vsub.f32 %v17794_v45, %v18067_v16  ;;  %v8238_v30 = vsub.f32 %v17797_v49, %v18070_v11 }
 0xc6f   : > { %v8142_v39 = vsub.f32 %v8078_v24, %v8110_v26  ;;  %v7865_v52 = vpop.xlane.xlu1 %7864  ;;  %v8304_v35 = vmul.f32 %v17966_v42, %v8267_v18 }
 0xc70   : > { %v8175_v10 = vadd.f32 1e-05, %v8143_v63  ;;  %v18085_v34 = vmul.f32 0.025, %v7865_v52  ;;  %v7862_v41 = vpop.xlane.xlu0 %7861  ;;  %v8303_v15 = vmul.f32 %v17966_v42, %v8266_v14 }
 0xc71   : > { %v8174_v5 = vadd.f32 1e-05, %v8142_v39  ;;  %v18088_v57 = vmul.f32 0.025, %v7862_v41  ;;  %v8341_v21 = vadd.f32 %v17976_v46, %v8304_v35 }
 0xc72   : > { %12949 = vrsqrt.f32 %v8175_v10  ;;  %v8340_v53 = vadd.f32 %v17976_v46, %v8303_v15  ;;  %v8113_v31 = vmul.f32 %v18085_v34, %v18085_v34 }
 0xc73   : > { %12951 = vrsqrt.f32 %v8174_v5  ;;  %v7993_v33 = vpop.xlane.xlu1 %7992  ;;  %v8112_v3 = vmul.f32 %v18088_v57, %v18088_v57 }
 0xc74   : > { %v12946_v36 = vpop.eup %12945  ;;  %v8081_v50 = vmul.f32 0.025, %v7993_v33  ;;  %11428 = vmatprep.mubr.msk.f32.mxu0 %vm268_vm0, %v8340_v53  ;;  %v7990_v37 = vpop.xlane.xlu0 %7989 }
 0xc75   : > { %v12948_v23 = vpop.eup %12947  ;;  %v8080_v27 = vmul.f32 0.025, %v7990_v37  ;;  %11429 = vmatmul.mubr.msk.f32.gmra.mrb[140].mxu0 %vm268_vm0, %v8341_v21  ;;  %v8269_v59 = vmul.f32 %v12946_v36, %v8237_v61  ;;  %v8241_v21 = vsub.f32 %v17818_v1, %v18085_v34 }
 0xc76   : > { %v8145_v44 = vsub.f32 %v8081_v50, %v8113_v31  ;;  %v8268_v12 = vmul.f32 %v12948_v23, %v8236_v22  ;;  %v8240_v50 = vsub.f32 %v17821_v7, %v18088_v57 }
 0xc77   : > { %v8144_v40 = vsub.f32 %v8080_v27, %v8112_v3  ;;  %v7871_v54 = vpop.xlane.xlu1 %7870  ;;  %v8306_v47 = vmul.f32 %v17966_v42, %v8269_v59 }
 0xc78   : > { %v8177_v13 = vadd.f32 1e-05, %v8145_v44  ;;  %v18103_v60 = vmul.f32 0.025, %v7871_v54  ;;  %v7868_v28 = vpop.xlane.xlu0 %7867  ;;  %v8305_v8 = vmul.f32 %v17966_v42, %v8268_v12 }
 0xc79   : > { %v8176_v51 = vadd.f32 1e-05, %v8144_v40  ;;  %v18106_v6 = vmul.f32 0.025, %v7868_v28  ;;  %v8343_v43 = vadd.f32 %v17976_v46, %v8306_v47 }
 0xc7a   : > { %12953 = vrsqrt.f32 %v8177_v13  ;;  %v8342_v20 = vadd.f32 %v17976_v46, %v8305_v8  ;;  %v8115_v26 = vmul.f32 %v18103_v60, %v18103_v60 }
 0xc7b   : > { %12955 = vrsqrt.f32 %v8176_v51  ;;  %v7999_v2 = vpop.xlane.xlu1 %7998  ;;  %v8114_v14 = vmul.f32 %v18106_v6, %v18106_v6 }
 0xc7c   : > { %v12950_v62 = vpop.eup %12949  ;;  %v8083_v24 = vmul.f32 0.025, %v7999_v2  ;;  %11431 = vmatprep.mubr.msk.f32.mxu0 %vm268_vm0, %v8342_v20  ;;  %v7996_v18 = vpop.xlane.xlu0 %7995 }
 0xc7d   : > { %v12952_v63 = vpop.eup %12951  ;;  %v8082_v45 = vmul.f32 0.025, %v7996_v18  ;;  %11432 = vmatmul.mubr.msk.f32.gmra.mrb[142].mxu0 %vm268_vm0, %v8343_v43  ;;  %v8271_v16 = vmul.f32 %v12950_v62, %v8239_v0  ;;  %v8243_v0 = vsub.f32 %v17842_v17, %v18103_v60 }
 0xc7e   : > { %v8147_v39 = vsub.f32 %v8083_v24, %v8115_v26  ;;  %v8270_v52 = vmul.f32 %v12952_v63, %v8238_v30  ;;  %v8242_v30 = vsub.f32 %v17845_v58, %v18106_v6 }
 0xc7f   : > { %v8146_v35 = vsub.f32 %v8082_v45, %v8114_v14  ;;  %v7877_v10 = vpop.xlane.xlu1 %7876  ;;  %v8308_v49 = vmul.f32 %v17966_v42, %v8271_v16 }
 0xc80   : > { %v8179_v11 = vadd.f32 1e-05, %v8147_v39  ;;  %v18121_v41 = vmul.f32 0.025, %v7877_v10  ;;  %v7874_v15 = vpop.xlane.xlu0 %7873  ;;  %v8307_v5 = vmul.f32 %v17966_v42, %v8270_v52 }
 0xc81   : > { %v8178_v53 = vadd.f32 1e-05, %v8146_v35  ;;  %v18124_v61 = vmul.f32 0.025, %v7874_v15  ;;  %v8345_v22 = vadd.f32 %v17976_v46, %v8308_v49 }
 0xc82   : > { %12957 = vrsqrt.f32 %v8179_v11  ;;  %v8344_v33 = vadd.f32 %v17976_v46, %v8307_v5  ;;  %v8117_v37 = vmul.f32 %v18121_v41, %v18121_v41 }
 0xc83   : > { %12959 = vrsqrt.f32 %v8178_v53  ;;  %v8005_v36 = vpop.xlane.xlu1 %8004  ;;  %v8116_v59 = vmul.f32 %v18124_v61, %v18124_v61  ;;  %v8245_v53 = vsub.f32 %v17866_v29, %v18121_v41 }
 0xc84   : > { %v12954_v31 = vpop.eup %12953  ;;  %v8085_v23 = vmul.f32 0.025, %v8005_v36  ;;  %11434 = vmatprep.mubr.msk.f32.mxu0 %vm268_vm0, %v8344_v33  ;;  %v8002_v3 = vpop.xlane.xlu0 %8001 }
 0xc85   : > { %v12956_v27 = vpop.eup %12955  ;;  %v8084_v1 = vmul.f32 0.025, %v8002_v3  ;;  %11435 = vmatmul.mubr.msk.f32.gmra.mrb[144].mxu0 %vm268_vm0, %v8345_v22  ;;  %v8273_v34 = vmul.f32 %v12954_v31, %v8241_v21  ;;  %v8244_v22 = vsub.f32 %v17869_v38, %v18124_v61 }
 0xc86   : > { %v8149_v44 = vsub.f32 %v8085_v23, %v8117_v37  ;;  %v8272_v12 = vmul.f32 %v12956_v27, %v8240_v50 }
 0xc87   : > { %v8148_v40 = vsub.f32 %v8084_v1, %v8116_v59  ;;  %v7883_v54 = vpop.xlane.xlu1 %7882  ;;  %v8310_v7 = vmul.f32 %v17966_v42, %v8273_v34 }
 0xc88   : > { %v8181_v57 = vadd.f32 1e-05, %v8149_v44  ;;  %v18139_v47 = vmul.f32 0.025, %v7883_v54  ;;  %v7880_v13 = vpop.xlane.xlu0 %7879  ;;  %v8309_v28 = vmul.f32 %v17966_v42, %v8272_v12 }
 0xc89   : > { %v8180_v8 = vadd.f32 1e-05, %v8148_v40  ;;  %v18142_v51 = vmul.f32 0.025, %v7880_v13  ;;  %v8347_v43 = vadd.f32 %v17976_v46, %v8310_v7 }
 0xc8a   : > { %12961 = vrsqrt.f32 %v8181_v57  ;;  %v8346_v20 = vadd.f32 %v17976_v46, %v8309_v28  ;;  %v8119_v26 = vmul.f32 %v18139_v47, %v18139_v47  ;;  %v8247_v13 = vsub.f32 %v17890_v9, %v18139_v47 }
 0xc8b   : > { %12963 = vrsqrt.f32 %v8180_v8  ;;  %v8011_v2 = vpop.xlane.xlu1 %8010  ;;  %v8118_v14 = vmul.f32 %v18142_v51, %v18142_v51 }
 0xc8c   : > { %v12958_v62 = vpop.eup %12957  ;;  %v8087_v24 = vmul.f32 0.025, %v8011_v2  ;;  %11437 = vmatprep.mubr.msk.f32.mxu0 %vm268_vm0, %v8346_v20  ;;  %v8008_v18 = vpop.xlane.xlu0 %8007 }
 0xc8d   : > { %v12960_v63 = vpop.eup %12959  ;;  %v8086_v17 = vmul.f32 0.025, %v8008_v18  ;;  %11438 = vmatmul.mubr.msk.f32.gmra.mrb[146].mxu0 %vm268_vm0, %v8347_v43  ;;  %v8275_v60 = vmul.f32 %v12958_v62, %v8243_v0  ;;  %v8246_v0 = vsub.f32 %v17893_v48, %v18142_v51 }
 0xc8e   : > { %v8151_v45 = vsub.f32 %v8087_v24, %v8119_v26  ;;  %v8274_v16 = vmul.f32 %v12960_v63, %v8242_v30 }
 0xc8f   : > { %v8150_v39 = vsub.f32 %v8086_v17, %v8118_v14  ;;  %v7889_v52 = vpop.xlane.xlu1 %7888  ;;  %v8312_v58 = vmul.f32 %v17966_v42, %v8275_v60 }
 0xc90   : > { %v8183_v6 = vadd.f32 1e-05, %v8151_v45  ;;  %v18157_v35 = vmul.f32 0.025, %v7889_v52  ;;  %v7886_v10 = vpop.xlane.xlu0 %7885  ;;  %v8311_v49 = vmul.f32 %v17966_v42, %v8274_v16 }
 0xc91   : > { %v8182_v11 = vadd.f32 1e-05, %v8150_v39  ;;  %v18160_v15 = vmul.f32 0.025, %v7886_v10  ;;  %v8349_v21 = vadd.f32 %v17976_v46, %v8312_v58 }
 0xc92   : > { %12965 = vrsqrt.f32 %v8183_v6  ;;  %v8348_v5 = vadd.f32 %v17976_v46, %v8311_v49  ;;  %v8121_v31 = vmul.f32 %v18157_v35, %v18157_v35  ;;  %v8249_v58 = vsub.f32 %v17906_v56, %v18157_v35 }
 0xc93   : > { %12967 = vrsqrt.f32 %v8182_v11  ;;  %v8017_v33 = vpop.xlane.xlu1 %8016  ;;  %v8120_v3 = vmul.f32 %v18160_v15, %v18160_v15  ;;  %v8248_v11 = vsub.f32 %v17909_v25, %v18160_v15 }
 0xc94   : > { %v12962_v36 = vpop.eup %12961  ;;  %v8089_v50 = vmul.f32 0.025, %v8017_v33  ;;  %11440 = vmatprep.mubr.msk.f32.mxu0 %vm268_vm0, %v8348_v5  ;;  %v8014_v37 = vpop.xlane.xlu0 %8013 }
 0xc95   : > { %v12964_v23 = vpop.eup %12963  ;;  %v8088_v29 = vmul.f32 0.025, %v8014_v37  ;;  %11441 = vmatmul.mubr.msk.f32.gmra.mrb[148].mxu0 %vm268_vm0, %v8349_v21  ;;  %v8277_v41 = vmul.f32 %v12962_v36, %v8245_v53 }
 0xc96   : > { %v8153_v27 = vsub.f32 %v8089_v50, %v8121_v31  ;;  %v8276_v59 = vmul.f32 %v12964_v23, %v8244_v22 }
 0xc97   : > { %v8152_v1 = vsub.f32 %v8088_v29, %v8120_v3  ;;  %v7895_v34 = vpop.xlane.xlu1 %7894  ;;  %v8314_v38 = vmul.f32 %v17966_v42, %v8277_v41 }
 0xc98   : > { %v8185_v61 = vadd.f32 1e-05, %v8153_v27  ;;  %v18175_v44 = vmul.f32 0.025, %v7895_v34  ;;  %v7892_v12 = vpop.xlane.xlu0 %7891  ;;  %v8313_v40 = vmul.f32 %v17966_v42, %v8276_v59 }
 0xc99   : > { %v8184_v54 = vadd.f32 1e-05, %v8152_v1  ;;  %v18178_v7 = vmul.f32 0.025, %v7892_v12  ;;  %v8351_v8 = vadd.f32 %v17976_v46, %v8314_v38 }
 0xc9a   : > { %12969 = vrsqrt.f32 %v8185_v61  ;;  %v8350_v57 = vadd.f32 %v17976_v46, %v8313_v40  ;;  %v8123_v2 = vmul.f32 %v18175_v44, %v18175_v44  ;;  %v8251_v29 = vsub.f32 %v17922_v19, %v18175_v44 }
 0xc9b   : > { %12971 = vrsqrt.f32 %v8184_v54  ;;  %v8023_v28 = vpop.xlane.xlu1 %8022  ;;  %v8122_v26 = vmul.f32 %v18178_v7, %v18178_v7  ;;  %v8250_v59 = vsub.f32 %v17925_v55, %v18178_v7 }
 0xc9c   : > { %v12966_v20 = vpop.eup %12965  ;;  %v8091_v43 = vmul.f32 0.025, %v8023_v28  ;;  %11443 = vmatprep.mubr.msk.f32.mxu0 %vm268_vm0, %v8350_v57  ;;  %v8020_v62 = vpop.xlane.xlu0 %8019 }
 0xc9d   : > { %v12968_v30 = vpop.eup %12967  ;;  %v8090_v9 = vmul.f32 0.025, %v8020_v62  ;;  %11444 = vmatmul.mubr.msk.f32.gmra.mrb[150].mxu0 %vm268_vm0, %v8351_v8  ;;  %v8279_v47 = vmul.f32 %v12966_v20, %v8247_v13 }
 0xc9e   : > { %v8155_v24 = vsub.f32 %v8091_v43, %v8123_v2  ;;  %v8278_v18 = vmul.f32 %v12968_v30, %v8246_v0 }
 0xc9f   : > { %v8154_v63 = vsub.f32 %v8090_v9, %v8122_v26  ;;  %v7901_v14 = vpop.xlane.xlu1 %7900  ;;  %v8316_v48 = vmul.f32 %v17966_v42, %v8279_v47 }
 0xca0   : > { %v8187_v51 = vadd.f32 1e-05, %v8155_v24  ;;  %v8061_v17 = vmul.f32 0.025, %v7901_v14  ;;  %v7898_v60 = vpop.xlane.xlu0 %7897  ;;  %v8315_v45 = vmul.f32 %v17966_v42, %v8278_v18 }
 0xca1   : > { %v8186_v16 = vadd.f32 1e-05, %v8154_v63  ;;  %v8060_v39 = vmul.f32 0.025, %v7898_v60  ;;  %v8353_v10 = vadd.f32 %v17976_v46, %v8316_v48 }
 0xca2   : > { %12973 = vrsqrt.f32 %v8187_v51  ;;  %v8352_v52 = vadd.f32 %v17976_v46, %v8315_v45  ;;  %v8125_v5 = vmul.f32 %v8061_v17, %v8061_v17  ;;  %v8253_v44 = vsub.f32 %v17938_v4, %v8061_v17 }
 0xca3   : > { %12975 = vrsqrt.f32 %v8186_v16  ;;  %v8029_v6 = vpop.xlane.xlu1 %8028  ;;  %v8124_v36 = vmul.f32 %v8060_v39, %v8060_v39  ;;  %v8252_v55 = vsub.f32 %v17941_v32, %v8060_v39  ;;  %v18229_v32 = vld [vmem:[%s19019_s2 + $0x10] ss:$0 sm:$0xff] }
 0xca4   : > { %v12970_v49 = vpop.eup %12969  ;;  %v8093_v53 = vmul.f32 0.025, %v8029_v6  ;;  %11446 = vmatprep.mubr.msk.f32.mxu0 %vm268_vm0, %v8352_v52  ;;  %v8026_v33 = vpop.xlane.xlu0 %8025 }
 0xca5   : > { %v12972_v21 = vpop.eup %12971  ;;  %v8092_v22 = vmul.f32 0.025, %v8026_v33  ;;  %11447 = vmatmul.mubr.msk.f32.gmra.mrb[152].mxu0 %vm268_vm0, %v8353_v10  ;;  %v8281_v31 = vmul.f32 %v12970_v49, %v8249_v58 }
 0xca6   : > { %v8157_v56 = vsub.f32 %v8093_v53, %v8125_v5  ;;  %v8280_v35 = vmul.f32 %v12972_v21, %v8248_v11 }
 0xca7   : > { %v8156_v50 = vsub.f32 %v8092_v22, %v8124_v36  ;;  %v8318_v37 = vmul.f32 %v17966_v42, %v8281_v31 }
 0xca8   : > { %v8189_v23 = vadd.f32 1e-05, %v8157_v56  ;;  %v8317_v3 = vmul.f32 %v17966_v42, %v8280_v35 }
 0xca9   : > { %v8188_v25 = vadd.f32 1e-05, %v8156_v50  ;;  %v8355_v41 = vadd.f32 %v17976_v46, %v8318_v37 }
 0xcaa   : > { %12977 = vrsqrt.f32 %v8189_v23  ;;  %v8354_v15 = vadd.f32 %v17976_v46, %v8317_v3 }
 0xcab   : > { %12979 = vrsqrt.f32 %v8188_v25 }
 0xcac   : > { %v12974_v27 = vpop.eup %12973  ;;  %11449 = vmatprep.mubr.msk.f32.mxu0 %vm268_vm0, %v8354_v15 }
 0xcad   : > { %v12976_v1 = vpop.eup %12975  ;;  %11450 = vmatmul.mubr.msk.f32.gmra.mrb[154].mxu0 %vm268_vm0, %v8355_v41  ;;  %v8283_v34 = vmul.f32 %v12974_v27, %v8251_v29 }
 0xcae   : > { %v8282_v38 = vmul.f32 %v12976_v1, %v8250_v59 }
 0xcaf   : > { %v8320_v61 = vmul.f32 %v17966_v42, %v8283_v34 }
 0xcb0   : > { %v8319_v12 = vmul.f32 %v17966_v42, %v8282_v38 }
 0xcb1   : > { %v8357_v40 = vadd.f32 %v17976_v46, %v8320_v61 }
 0xcb2   : > { %v8356_v19 = vadd.f32 %v17976_v46, %v8319_v12 }
 0xcb4   : > { %v12978_v54 = vpop.eup %12977  ;;  %11452 = vmatprep.mubr.msk.f32.mxu0 %vm268_vm0, %v8356_v19 }
 0xcb5   : > { %v12980_v7 = vpop.eup %12979  ;;  %11453 = vmatmul.mubr.msk.f32.gmra.mrb[156].mxu0 %vm268_vm0, %v8357_v40  ;;  %v8285_v57 = vmul.f32 %v12978_v54, %v8253_v44 }
 0xcb6   : > { %v8284_v13 = vmul.f32 %v12980_v7, %v8252_v55 }
 0xcb7   : > { %v8322_v28 = vmul.f32 %v17966_v42, %v8285_v57 }
 0xcb8   : > { %v8321_v8 = vmul.f32 %v17966_v42, %v8284_v13 }
 0xcb9   : > { %v8359_v4 = vadd.f32 %v17976_v46, %v8322_v28 }
 0xcba   : > { %v8358_v20 = vadd.f32 %v17976_v46, %v8321_v8 }
 0xcbc   : > { %11455 = vmatprep.mubr.msk.f32.mxu0 %vm268_vm0, %v8358_v20 }
 0xcbd   : > { %11456 = vmatmul.mubr.msk.f32.gmra.mrb[158].mxu0 %vm268_vm0, %v8359_v4 }
 0xd18   : > { %v11412_v0 = vpop.f32.mrb[128].mxu0 }
 0xd19   : > { %v8539_v2 = vadd.f32 %v11412_v0, %v18229_v32  ;;  %v8533_v43 = vpop.f32.mrb[129].mxu0 }
 0xd1a   : > { %v8534_v62 = vadd.f32 %v18229_v32, %v8533_v43 }
 0xd1b   : > { %v10494_v42 = vmul.f32 -1.442695, %v8539_v2 }
 0xd1c   : > { %v10493_v30 = vmul.f32 -1.442695, %v8534_v62 }
 0xd1d   : > { %12981 = vpow2.f32 %v10494_v42 }
 0xd1e   : > { %12983 = vpow2.f32 %v10493_v30 }
 0xd20   : > { %v11415_v46 = vpop.f32.mrb[130].mxu0 }
 0xd21   : > { %v8549_v26 = vadd.f32 %v11415_v46, %v18229_v32  ;;  %v8543_v9 = vpop.f32.mrb[131].mxu0 }
 0xd22   : > { %v18235_v47 = vadd.f32 %v18229_v32, %v8543_v9 }
 0xd23   : > { %v10496_v24 = vmul.f32 -1.442695, %v8549_v26 }
 0xd24   : > { %v10495_v18 = vmul.f32 -1.442695, %v18235_v47 }
 0xd25   : > { %12985 = vpow2.f32 %v10496_v24 }
 0xd26   : > { %12987 = vpow2.f32 %v10495_v18 }
 0xd27   : > { %v12982_v63 = vpop.eup %12981 }
 0xd28   : > { %v12984_v14 = vpop.eup %12983  ;;  %v8789_v48 = vadd.f32 1.0, %v12982_v63  ;;  %v11418_v51 = vpop.f32.mrb[132].mxu0 }
 0xd29   : > { %v8788_v17 = vadd.f32 1.0, %v12984_v14  ;;  %v18239_v60 = vadd.f32 %v11418_v51, %v18229_v32  ;;  %v8553_v45 = vpop.f32.mrb[133].mxu0 }
 0xd2a   : > { %12989 = vrcp.f32 %v8789_v48  ;;  %v18242_v16 = vadd.f32 %v18229_v32, %v8553_v45 }
 0xd2b   : > { %12991 = vrcp.f32 %v8788_v17  ;;  %v10498_v39 = vmul.f32 -1.442695, %v18239_v60 }
 0xd2c   : > { %v10497_v52 = vmul.f32 -1.442695, %v18242_v16 }
 0xd2d   : > { %12993 = vpow2.f32 %v10498_v39 }
 0xd2e   : > { %12995 = vpow2.f32 %v10497_v52 }
 0xd2f   : > { %v12986_v58 = vpop.eup %12985 }
 0xd30   : > { %v12988_v6 = vpop.eup %12987  ;;  %v8791_v10 = vadd.f32 1.0, %v12986_v58  ;;  %v11421_v49 = vpop.f32.mrb[134].mxu0 }
 0xd31   : > { %v8790_v11 = vadd.f32 1.0, %v12988_v6  ;;  %v18247_v5 = vadd.f32 %v11421_v49, %v18229_v32  ;;  %v8563_v53 = vpop.f32.mrb[135].mxu0 }
 0xd32   : > { %12997 = vrcp.f32 %v8791_v10  ;;  %v18250_v33 = vadd.f32 %v18229_v32, %v8563_v53 }
 0xd33   : > { %12999 = vrcp.f32 %v8790_v11  ;;  %v10500_v21 = vmul.f32 -1.442695, %v18247_v5 }
 0xd34   : > { %v12990_v36 = vpop.eup %12989  ;;  %v10499_v22 = vmul.f32 -1.442695, %v18250_v33 }
 0xd35   : > { %v12992_v31 = vpop.eup %12991  ;;  %v18254_v56 = vmul.f32 %v12990_v36, %v8539_v2  ;;  %13001 = vpow2.f32 %v10500_v21 }
 0xd36   : > { %v18256_v35 = vmul.f32 %v12992_v31, %v8534_v62  ;;  %13003 = vpow2.f32 %v10499_v22 }
 0xd37   : > { %v12994_v50 = vpop.eup %12993  ;;  %v8919_v37 = vsel %vm268_vm0, %v18254_v56, 0.0  ;;  %v9013_v23 = vmul.f32 %v18254_v56, %v18254_v56 }
 0xd38   : > { %v12996_v3 = vpop.eup %12995  ;;  %v8793_v25 = vadd.f32 1.0, %v12994_v50  ;;  %8920 = vadd.xlane.f32.xlu1 %v8919_v37  ;;  %v11424_v15 = vpop.f32.mrb[136].mxu0  ;;  %v8916_v29 = vsel %vm268_vm0, %v18256_v35, 0.0  ;;  %v9012_v41 = vmul.f32 %v18256_v35, %v18256_v35 }
 0xd39   : > { %v8792_v27 = vadd.f32 1.0, %v12996_v3  ;;  %v18267_v59 = vadd.f32 %v11424_v15, %v18229_v32  ;;  %8917 = vadd.xlane.f32.xlu0 %v8916_v29  ;;  %v8573_v1 = vpop.f32.mrb[137].mxu0  ;;  %v9047_v61 = vsel %vm268_vm0, %v9013_v23, 0.0 }
 0xd3a   : > { %13005 = vrcp.f32 %v8793_v25  ;;  %v18270_v34 = vadd.f32 %v18229_v32, %v8573_v1  ;;  %v9044_v44 = vsel %vm268_vm0, %v9012_v41, 0.0 }
 0xd3b   : > { %13007 = vrcp.f32 %v8792_v27  ;;  %v10502_v38 = vmul.f32 -1.442695, %v18267_v59 }
 0xd3c   : > { %v12998_v12 = vpop.eup %12997  ;;  %v10501_v19 = vmul.f32 -1.442695, %v18270_v34  ;;  %9048 = vadd.xlane.f32.xlu1 %v9047_v61 }
 0xd3d   : > { %v13000_v40 = vpop.eup %12999  ;;  %v18276_v54 = vmul.f32 %v12998_v12, %v8549_v26  ;;  %13009 = vpow2.f32 %v10502_v38  ;;  %9045 = vadd.xlane.f32.xlu0 %v9044_v44 }
 0xd3e   : > { %v18279_v55 = vmul.f32 %v13000_v40, %v18235_v47  ;;  %13011 = vpow2.f32 %v10501_v19 }
 0xd3f   : > { %v13002_v7 = vpop.eup %13001  ;;  %v8925_v57 = vsel %vm268_vm0, %v18276_v54, 0.0  ;;  %v9015_v13 = vmul.f32 %v18276_v54, %v18276_v54 }
 0xd40   : > { %v13004_v28 = vpop.eup %13003  ;;  %v8795_v8 = vadd.f32 1.0, %v13002_v7  ;;  %8926 = vadd.xlane.f32.xlu1 %v8925_v57  ;;  %v11427_v20 = vpop.f32.mrb[138].mxu0  ;;  %v8922_v4 = vsel %vm268_vm0, %v18279_v55, 0.0  ;;  %v9014_v0 = vmul.f32 %v18279_v55, %v18279_v55 }
 0xd41   : > { %v8794_v2 = vadd.f32 1.0, %v13004_v28  ;;  %v18290_v43 = vadd.f32 %v11427_v20, %v18229_v32  ;;  %8923 = vadd.xlane.f32.xlu0 %v8922_v4  ;;  %v8583_v62 = vpop.f32.mrb[139].mxu0  ;;  %v9053_v46 = vsel %vm268_vm0, %v9015_v13, 0.0 }
 0xd42   : > { %13013 = vrcp.f32 %v8795_v8  ;;  %v18293_v42 = vadd.f32 %v18229_v32, %v8583_v62  ;;  %v9050_v47 = vsel %vm268_vm0, %v9014_v0, 0.0 }
 0xd43   : > { %13015 = vrcp.f32 %v8794_v2  ;;  %v10504_v30 = vmul.f32 -1.442695, %v18290_v43 }
 0xd44   : > { %v13006_v26 = vpop.eup %13005  ;;  %v10503_v9 = vmul.f32 -1.442695, %v18293_v42  ;;  %9054 = vadd.xlane.f32.xlu1 %v9053_v46 }
 0xd45   : > { %v13008_v24 = vpop.eup %13007  ;;  %v18300_v18 = vmul.f32 %v13006_v26, %v18239_v60  ;;  %13017 = vpow2.f32 %v10504_v30  ;;  %9051 = vadd.xlane.f32.xlu0 %v9050_v47 }
 0xd46   : > { %v18303_v63 = vmul.f32 %v13008_v24, %v18242_v16  ;;  %13019 = vpow2.f32 %v10503_v9  ;;  %v9470_v24 = vld [vmem:[%s19020_s3] sm:$0xff] }
 0xd47   : > { %v13010_v14 = vpop.eup %13009  ;;  %v8931_v48 = vsel %vm268_vm0, %v18300_v18, 0.0  ;;  %v9017_v51 = vmul.f32 %v18300_v18, %v18300_v18 }
 0xd48   : > { %v13012_v17 = vpop.eup %13011  ;;  %v8797_v45 = vadd.f32 1.0, %v13010_v14  ;;  %8932 = vadd.xlane.f32.xlu1 %v8931_v48  ;;  %v11430_v39 = vpop.f32.mrb[140].mxu0  ;;  %v8928_v60 = vsel %vm268_vm0, %v18303_v63, 0.0  ;;  %v9016_v52 = vmul.f32 %v18303_v63, %v18303_v63  ;;  %v9471_v14 = vld [vmem:[%s19020_s3 + $0x8] sm:$0xff] }
 0xd49   : > { %v8796_v16 = vadd.f32 1.0, %v13012_v17  ;;  %v18314_v58 = vadd.f32 %v11430_v39, %v18229_v32  ;;  %8929 = vadd.xlane.f32.xlu0 %v8928_v60  ;;  %v8593_v6 = vpop.f32.mrb[141].mxu0  ;;  %v9059_v11 = vsel %vm268_vm0, %v9017_v51, 0.0 }
 0xd4a   : > { %13021 = vrcp.f32 %v8797_v45  ;;  %v18317_v10 = vadd.f32 %v18229_v32, %v8593_v6  ;;  %v9056_v36 = vsel %vm268_vm0, %v9016_v52, 0.0  ;;  %v11588_v45 = vpack.c.bf16 %v9471_v14, %v9470_v24 }
 0xd4b   : > { %13023 = vrcp.f32 %v8796_v16  ;;  %v10506_v49 = vmul.f32 -1.442695, %v18314_v58 }
 0xd4c   : > { %v13014_v53 = vpop.eup %13013  ;;  %v10505_v21 = vmul.f32 -1.442695, %v18317_v10  ;;  %9060 = vadd.xlane.f32.xlu1 %v9059_v11  ;;  %11589 = vmatprep.subr.bf16.mxu1 %v11588_v45  ;;  %v9473_v11 = vld [vmem:[%s19020_s3 + $0x18] sm:$0xff] }
 0xd4d   : > { %v13016_v22 = vpop.eup %13015  ;;  %v18324_v31 = vmul.f32 %v13014_v53, %v18247_v5  ;;  %13025 = vpow2.f32 %v10506_v49  ;;  %9057 = vadd.xlane.f32.xlu0 %v9056_v36  ;;  %11591 = vmatpush3.bf16.msra.mxu1 %v11588_v45 }
 0xd4e   : > { %v18327_v50 = vmul.f32 %v13016_v22, %v18250_v33  ;;  %13027 = vpow2.f32 %v10505_v21 }
 0xd4f   : > { %v13018_v37 = vpop.eup %13017  ;;  %v8937_v23 = vsel %vm268_vm0, %v18324_v31, 0.0  ;;  %v9019_v3 = vmul.f32 %v18324_v31, %v18324_v31 }
 0xd50   : > { %v13020_v25 = vpop.eup %13019  ;;  %v8799_v15 = vadd.f32 1.0, %v13018_v37  ;;  %8938 = vadd.xlane.f32.xlu1 %v8937_v23  ;;  %v11433_v29 = vpop.f32.mrb[142].mxu0  ;;  %v8934_v5 = vsel %vm268_vm0, %v18327_v50, 0.0  ;;  %v9018_v41 = vmul.f32 %v18327_v50, %v18327_v50 }
 0xd51   : > { %v8798_v33 = vadd.f32 1.0, %v13020_v25  ;;  %v18338_v27 = vadd.f32 %v11433_v29, %v18229_v32  ;;  %8935 = vadd.xlane.f32.xlu0 %v8934_v5  ;;  %v8603_v1 = vpop.f32.mrb[143].mxu0  ;;  %v9065_v12 = vsel %vm268_vm0, %v9019_v3, 0.0 }
 0xd52   : > { %13029 = vrcp.f32 %v8799_v15  ;;  %v18341_v38 = vadd.f32 %v18229_v32, %v8603_v1  ;;  %v9062_v40 = vsel %vm268_vm0, %v9018_v41, 0.0  ;;  %v9474_v15 = vld [vmem:[%s19020_s3 + $0x20] sm:$0xff] }
 0xd53   : > { %13031 = vrcp.f32 %v8798_v33  ;;  %v10508_v61 = vmul.f32 -1.442695, %v18338_v27 }
 0xd54   : > { %v13022_v19 = vpop.eup %13021  ;;  %v10507_v44 = vmul.f32 -1.442695, %v18341_v38  ;;  %9066 = vadd.xlane.f32.xlu1 %v9065_v12 }
 0xd55   : > { %v13024_v7 = vpop.eup %13023  ;;  %v18348_v57 = vmul.f32 %v13022_v19, %v18267_v59  ;;  %13033 = vpow2.f32 %v10508_v61  ;;  %9063 = vadd.xlane.f32.xlu0 %v9062_v40 }
 0xd56   : > { %v18351_v13 = vmul.f32 %v13024_v7, %v18270_v34  ;;  %13035 = vpow2.f32 %v10507_v44 }
 0xd57   : > { %v13026_v28 = vpop.eup %13025  ;;  %v8943_v8 = vsel %vm268_vm0, %v18348_v57, 0.0  ;;  %v9021_v20 = vmul.f32 %v18348_v57, %v18348_v57 }
 0xd58   : > { %v13028_v4 = vpop.eup %13027  ;;  %v8801_v0 = vadd.f32 1.0, %v13026_v28  ;;  %8944 = vadd.xlane.f32.xlu1 %v8943_v8  ;;  %v11436_v2 = vpop.f32.mrb[144].mxu0  ;;  %v8940_v59 = vsel %vm268_vm0, %v18351_v13, 0.0  ;;  %v9020_v62 = vmul.f32 %v18351_v13, %v18351_v13 }
 0xd59   : > { %v8800_v34 = vadd.f32 1.0, %v13028_v4  ;;  %v18362_v30 = vadd.f32 %v11436_v2, %v18229_v32  ;;  %8941 = vadd.xlane.f32.xlu0 %v8940_v59  ;;  %v8613_v46 = vpop.f32.mrb[145].mxu0  ;;  %v9071_v47 = vsel %vm268_vm0, %v9021_v20, 0.0 }
 0xd5a   : > { %13037 = vrcp.f32 %v8801_v0  ;;  %v18365_v26 = vadd.f32 %v18229_v32, %v8613_v46  ;;  %v9068_v17 = vsel %vm268_vm0, %v9020_v62, 0.0 }
 0xd5b   : > { %13039 = vrcp.f32 %v8800_v34  ;;  %v10510_v9 = vmul.f32 -1.442695, %v18362_v30 }
 0xd5c   : > { %v13030_v48 = vpop.eup %13029  ;;  %v10509_v51 = vmul.f32 -1.442695, %v18365_v26  ;;  %9072 = vadd.xlane.f32.xlu1 %v9071_v47 }
 0xd5d   : > { %v13032_v39 = vpop.eup %13031  ;;  %v18378_v60 = vmul.f32 %v13030_v48, %v18290_v43  ;;  %13041 = vpow2.f32 %v10510_v9  ;;  %9069 = vadd.xlane.f32.xlu0 %v9068_v17  ;;  %v9472_v43 = vld [vmem:[%s19020_s3 + $0x10] sm:$0xff] }
 0xd5e   : > { %v18381_v52 = vmul.f32 %v13032_v39, %v18293_v42  ;;  %13043 = vpow2.f32 %v10509_v51  ;;  %v11592_v37 = vpack.c.bf16 %v9473_v11, %v9472_v43 }
 0xd5f   : > { %v13034_v16 = vpop.eup %13033  ;;  %v8949_v6 = vsel %vm268_vm0, %v18378_v60, 0.0  ;;  %v9023_v49 = vmul.f32 %v18378_v60, %v18378_v60 }
 0xd60   : > { %v13036_v42 = vpop.eup %13035  ;;  %v8803_v53 = vadd.f32 1.0, %v13034_v16  ;;  %8950 = vadd.xlane.f32.xlu1 %v8949_v6  ;;  %v11439_v21 = vpop.f32.mrb[146].mxu0  ;;  %v8946_v36 = vsel %vm268_vm0, %v18381_v52, 0.0  ;;  %v9022_v22 = vmul.f32 %v18381_v52, %v18381_v52  ;;  %11593 = vmatprep.subr.bf16.mxu1 %v11592_v37 }
 0xd61   : > { %v8802_v23 = vadd.f32 1.0, %v13036_v42  ;;  %v18398_v3 = vadd.f32 %v11439_v21, %v18229_v32  ;;  %8947 = vadd.xlane.f32.xlu0 %v8946_v36  ;;  %v8623_v25 = vpop.f32.mrb[147].mxu0  ;;  %v9077_v41 = vsel %vm268_vm0, %v9023_v49, 0.0  ;;  %11595 = vmatpush3.bf16.msra.mxu1 %v11592_v37 }
 0xd62   : > { %13045 = vrcp.f32 %v8803_v53  ;;  %v18404_v29 = vadd.f32 %v18229_v32, %v8623_v25  ;;  %v9074_v61 = vsel %vm268_vm0, %v9022_v22, 0.0  ;;  %11466 = vmatprep.subr.mxu1 %v9474_v15 }
 0xd63   : > { %13047 = vrcp.f32 %v8802_v23  ;;  %v10512_v5 = vmul.f32 -1.442695, %v18398_v3 }
 0xd64   : > { %v13038_v33 = vpop.eup %13037  ;;  %v10511_v1 = vmul.f32 -1.442695, %v18404_v29  ;;  %9078 = vadd.xlane.f32.xlu1 %v9077_v41 }
 0xd65   : > { %v13040_v12 = vpop.eup %13039  ;;  %v18411_v19 = vmul.f32 %v13038_v33, %v18314_v58  ;;  %13049 = vpow2.f32 %v10512_v5  ;;  %9075 = vadd.xlane.f32.xlu0 %v9074_v61  ;;  %11467 = vmatpush3.msra.mxu1 %v9474_v15 }
 0xd66   : > { %v18414_v44 = vmul.f32 %v13040_v12, %v18317_v10  ;;  %13051 = vpow2.f32 %v10511_v1 }
 0xd67   : > { %v13042_v40 = vpop.eup %13041  ;;  %v8955_v7 = vsel %vm268_vm0, %v18411_v19, 0.0  ;;  %v9025_v28 = vmul.f32 %v18411_v19, %v18411_v19 }
 0xd68   : > { %v13044_v8 = vpop.eup %13043  ;;  %v8805_v20 = vadd.f32 1.0, %v13042_v40  ;;  %8956 = vadd.xlane.f32.xlu1 %v8955_v7  ;;  %v11442_v4 = vpop.f32.mrb[148].mxu0  ;;  %v8952_v58 = vsel %vm268_vm0, %v18414_v44, 0.0  ;;  %v9024_v10 = vmul.f32 %v18414_v44, %v18414_v44 }
 0xd69   : > { %v8804_v0 = vadd.f32 1.0, %v13044_v8  ;;  %v18425_v2 = vadd.f32 %v11442_v4, %v18229_v32  ;;  %8953 = vadd.xlane.f32.xlu0 %v8952_v58  ;;  %v8633_v59 = vpop.f32.mrb[149].mxu0  ;;  %v9083_v46 = vsel %vm268_vm0, %v9025_v28, 0.0 }
 0xd6a   : > { %13053 = vrcp.f32 %v8805_v20  ;;  %v18428_v62 = vadd.f32 %v18229_v32, %v8633_v59  ;;  %v9080_v24 = vsel %vm268_vm0, %v9024_v10, 0.0 }
 0xd6b   : > { %13055 = vrcp.f32 %v8804_v0  ;;  %v10514_v34 = vmul.f32 -1.442695, %v18425_v2 }
 0xd6c   : > { %v13046_v9 = vpop.eup %13045  ;;  %v10513_v47 = vmul.f32 -1.442695, %v18428_v62  ;;  %9084 = vadd.xlane.f32.xlu1 %v9083_v46 }
 0xd6d   : > { %v13048_v14 = vpop.eup %13047  ;;  %v18435_v48 = vmul.f32 %v13046_v9, %v18338_v27  ;;  %13057 = vpow2.f32 %v10514_v34  ;;  %9081 = vadd.xlane.f32.xlu0 %v9080_v24 }
 0xd6e   : > { %v18438_v51 = vmul.f32 %v13048_v14, %v18341_v38  ;;  %13059 = vpow2.f32 %v10513_v47 }
 0xd6f   : > { %v13050_v17 = vpop.eup %13049  ;;  %v8961_v45 = vsel %vm268_vm0, %v18435_v48, 0.0  ;;  %v9027_v39 = vmul.f32 %v18435_v48, %v18435_v48 }
 0xd70   : > { %v13052_v16 = vpop.eup %13051  ;;  %v8807_v6 = vadd.f32 1.0, %v13050_v17  ;;  %8962 = vadd.xlane.f32.xlu1 %v8961_v45  ;;  %v11445_v49 = vpop.f32.mrb[150].mxu0  ;;  %v8958_v27 = vsel %vm268_vm0, %v18438_v51, 0.0  ;;  %v9026_v43 = vmul.f32 %v18438_v51, %v18438_v51 }
 0xd71   : > { %v8806_v38 = vadd.f32 1.0, %v13052_v16  ;;  %v18449_v11 = vadd.f32 %v11445_v49, %v18229_v32  ;;  %8959 = vadd.xlane.f32.xlu0 %v8958_v27  ;;  %v8643_v42 = vpop.f32.mrb[151].mxu0  ;;  %v9089_v36 = vsel %vm268_vm0, %v9027_v39, 0.0 }
 0xd72   : > { %13061 = vrcp.f32 %v8807_v6  ;;  %v18452_v53 = vadd.f32 %v18229_v32, %v8643_v42  ;;  %v9086_v23 = vsel %vm268_vm0, %v9026_v43, 0.0 }
 0xd73   : > { %13063 = vrcp.f32 %v8806_v38  ;;  %v10516_v21 = vmul.f32 -1.442695, %v18449_v11 }
 0xd74   : > { %v13054_v22 = vpop.eup %13053  ;;  %v10515_v37 = vmul.f32 -1.442695, %v18452_v53  ;;  %9090 = vadd.xlane.f32.xlu1 %v9089_v36 }
 0xd75   : > { %v13056_v25 = vpop.eup %13055  ;;  %v18459_v15 = vmul.f32 %v13054_v22, %v18362_v30  ;;  %13065 = vpow2.f32 %v10516_v21  ;;  %9087 = vadd.xlane.f32.xlu0 %v9086_v23 }
 0xd76   : > { %v18462_v5 = vmul.f32 %v13056_v25, %v18365_v26  ;;  %13067 = vpow2.f32 %v10515_v37 }
 0xd77   : > { %v13058_v41 = vpop.eup %13057  ;;  %v8967_v33 = vsel %vm268_vm0, %v18459_v15, 0.0  ;;  %v9029_v1 = vmul.f32 %v18459_v15, %v18459_v15 }
 0xd78   : > { %v13060_v61 = vpop.eup %13059  ;;  %v8809_v12 = vadd.f32 1.0, %v13058_v41  ;;  %8968 = vadd.xlane.f32.xlu1 %v8967_v33  ;;  %v11448_v40 = vpop.f32.mrb[152].mxu0  ;;  %v8964_v30 = vsel %vm268_vm0, %v18462_v5, 0.0  ;;  %v9028_v7 = vmul.f32 %v18462_v5, %v18462_v5 }
 0xd79   : > { %v8808_v26 = vadd.f32 1.0, %v13060_v61  ;;  %v18473_v28 = vadd.f32 %v11448_v40, %v18229_v32  ;;  %8965 = vadd.xlane.f32.xlu0 %v8964_v30  ;;  %v8653_v8 = vpop.f32.mrb[153].mxu0  ;;  %v9095_v58 = vsel %vm268_vm0, %v9029_v1, 0.0 }
 0xd7a   : > { %13069 = vrcp.f32 %v8809_v12  ;;  %v18476_v20 = vadd.f32 %v18229_v32, %v8653_v8  ;;  %v9092_v59 = vsel %vm268_vm0, %v9028_v7, 0.0 }
 0xd7b   : > { %13071 = vrcp.f32 %v8808_v26  ;;  %v10518_v4 = vmul.f32 -1.442695, %v18473_v28 }
 0xd7c   : > { %v13062_v10 = vpop.eup %13061  ;;  %v10517_v0 = vmul.f32 -1.442695, %v18476_v20  ;;  %9096 = vadd.xlane.f32.xlu1 %v9095_v58 }
 0xd7d   : > { %v13064_v34 = vpop.eup %13063  ;;  %v18483_v46 = vmul.f32 %v13062_v10, %v18398_v3  ;;  %13073 = vpow2.f32 %v10518_v4  ;;  %9093 = vadd.xlane.f32.xlu0 %v9092_v59 }
 0xd7e   : > { %v18486_v9 = vmul.f32 %v13064_v34, %v18404_v29  ;;  %13075 = vpow2.f32 %v10517_v0 }
 0xd7f   : > { %v13066_v47 = vpop.eup %13065  ;;  %v8973_v24 = vsel %vm268_vm0, %v18483_v46, 0.0  ;;  %v9031_v14 = vmul.f32 %v18483_v46, %v18483_v46 }
 0xd80   : > { %v13068_v17 = vpop.eup %13067  ;;  %v8811_v45 = vadd.f32 1.0, %v13066_v47  ;;  %8974 = vadd.xlane.f32.xlu1 %v8973_v24  ;;  %v11451_v39 = vpop.f32.mrb[154].mxu0  ;;  %v8970_v3 = vsel %vm268_vm0, %v18486_v9, 0.0  ;;  %v9030_v16 = vmul.f32 %v18486_v9, %v18486_v9 }
 0xd81   : > { %v8810_v29 = vadd.f32 1.0, %v13068_v17  ;;  %v18497_v6 = vadd.f32 %v11451_v39, %v18229_v32  ;;  %8971 = vadd.xlane.f32.xlu0 %v8970_v3  ;;  %v8663_v49 = vpop.f32.mrb[155].mxu0  ;;  %v9101_v38 = vsel %vm268_vm0, %v9031_v14, 0.0 }
 0xd82   : > { %13077 = vrcp.f32 %v8811_v45  ;;  %v18500_v27 = vadd.f32 %v18229_v32, %v8663_v49  ;;  %v9098_v36 = vsel %vm268_vm0, %v9030_v16, 0.0 }
 0xd83   : > { %13079 = vrcp.f32 %v8810_v29  ;;  %v10520_v43 = vmul.f32 -1.442695, %v18497_v6 }
 0xd84   : > { %v13070_v42 = vpop.eup %13069  ;;  %v10519_v21 = vmul.f32 -1.442695, %v18500_v27  ;;  %9102 = vadd.xlane.f32.xlu1 %v9101_v38 }
 0xd85   : > { %v13072_v22 = vpop.eup %13071  ;;  %v18507_v37 = vmul.f32 %v13070_v42, %v18425_v2  ;;  %13081 = vpow2.f32 %v10520_v43  ;;  %9099 = vadd.xlane.f32.xlu0 %v9098_v36 }
 0xd86   : > { %v18510_v23 = vmul.f32 %v13072_v22, %v18428_v62  ;;  %13083 = vpow2.f32 %v10519_v21 }
 0xd87   : > { %v13074_v25 = vpop.eup %13073  ;;  %v8979_v41 = vsel %vm268_vm0, %v18507_v37, 0.0  ;;  %v9033_v33 = vmul.f32 %v18507_v37, %v18507_v37 }
 0xd88   : > { %v13076_v1 = vpop.eup %13075  ;;  %v8813_v61 = vadd.f32 1.0, %v13074_v25  ;;  %8980 = vadd.xlane.f32.xlu1 %v8979_v41  ;;  %v11454_v12 = vpop.f32.mrb[156].mxu0  ;;  %v8976_v2 = vsel %vm268_vm0, %v18510_v23, 0.0  ;;  %v9032_v40 = vmul.f32 %v18510_v23, %v18510_v23 }
 0xd89   : > { %v8812_v62 = vadd.f32 1.0, %v13076_v1  ;;  %v18521_v30 = vadd.f32 %v11454_v12, %v18229_v32  ;;  %8977 = vadd.xlane.f32.xlu0 %v8976_v2  ;;  %v8673_v7 = vpop.f32.mrb[157].mxu0  ;;  %v9107_v4 = vsel %vm268_vm0, %v9033_v33, 0.0 }
 0xd8a   : > { %13085 = vrcp.f32 %v8813_v61  ;;  %v18524_v26 = vadd.f32 %v18229_v32, %v8673_v7  ;;  %v9104_v0 = vsel %vm268_vm0, %v9032_v40, 0.0 }
 0xd8b   : > { %13087 = vrcp.f32 %v8812_v62  ;;  %v10522_v8 = vmul.f32 -1.442695, %v18521_v30 }
 0xd8c   : > { %v13078_v58 = vpop.eup %13077  ;;  %v10521_v10 = vmul.f32 -1.442695, %v18524_v26  ;;  %9108 = vadd.xlane.f32.xlu1 %v9107_v4 }
 0xd8d   : > { %v13080_v59 = vpop.eup %13079  ;;  %v18531_v34 = vmul.f32 %v13078_v58, %v18449_v11  ;;  %13089 = vpow2.f32 %v10522_v8  ;;  %9105 = vadd.xlane.f32.xlu0 %v9104_v0 }
 0xd8e   : > { %v18534_v47 = vmul.f32 %v13080_v59, %v18452_v53  ;;  %13091 = vpow2.f32 %v10521_v10 }
 0xd8f   : > { %v13082_v24 = vpop.eup %13081  ;;  %v8985_v14 = vsel %vm268_vm0, %v18531_v34, 0.0  ;;  %v9035_v17 = vmul.f32 %v18531_v34, %v18531_v34 }
 0xd90   : > { %v13084_v45 = vpop.eup %13083  ;;  %v8815_v39 = vadd.f32 1.0, %v13082_v24  ;;  %8986 = vadd.xlane.f32.xlu1 %v8985_v14  ;;  %v11457_v3 = vpop.f32.mrb[158].mxu0  ;;  %v8982_v11 = vsel %vm268_vm0, %v18534_v47, 0.0  ;;  %v9034_v16 = vmul.f32 %v18534_v47, %v18534_v47 }
 0xd91   : > { %v8814_v53 = vadd.f32 1.0, %v13084_v45  ;;  %v18545_v29 = vadd.f32 %v11457_v3, %v18229_v32  ;;  %8983 = vadd.xlane.f32.xlu0 %v8982_v11  ;;  %v8683_v49 = vpop.f32.mrb[159].mxu0  ;;  %v9113_v42 = vsel %vm268_vm0, %v9035_v17, 0.0 }
 0xd92   : > { %13093 = vrcp.f32 %v8815_v39  ;;  %v18548_v43 = vadd.f32 %v18229_v32, %v8683_v49  ;;  %v9110_v22 = vsel %vm268_vm0, %v9034_v16, 0.0 }
 0xd93   : > { %13095 = vrcp.f32 %v8814_v53  ;;  %v10524_v38 = vmul.f32 -1.442695, %v18545_v29 }
 0xd94   : > { %v13086_v21 = vpop.eup %13085  ;;  %v10523_v36 = vmul.f32 -1.442695, %v18548_v43  ;;  %9114 = vadd.xlane.f32.xlu1 %v9113_v42 }
 0xd95   : > { %v13088_v25 = vpop.eup %13087  ;;  %v18555_v41 = vmul.f32 %v13086_v21, %v18473_v28  ;;  %13097 = vpow2.f32 %v10524_v38  ;;  %9111 = vadd.xlane.f32.xlu0 %v9110_v22 }
 0xd96   : > { %v18558_v32 = vmul.f32 %v13088_v25, %v18476_v20  ;;  %13099 = vpow2.f32 %v10523_v36 }
 0xd97   : > { %v13090_v33 = vpop.eup %13089  ;;  %v8991_v1 = vsel %vm268_vm0, %v18555_v41, 0.0  ;;  %v9037_v61 = vmul.f32 %v18555_v41, %v18555_v41 }
 0xd98   : > { %v13092_v12 = vpop.eup %13091  ;;  %v8817_v2 = vadd.f32 1.0, %v13090_v33  ;;  %8992 = vadd.xlane.f32.xlu1 %v8991_v1  ;;  %v8988_v28 = vsel %vm268_vm0, %v18558_v32, 0.0  ;;  %v9036_v40 = vmul.f32 %v18558_v32, %v18558_v32 }
 0xd99   : > { %v8816_v62 = vadd.f32 1.0, %v13092_v12  ;;  %8989 = vadd.xlane.f32.xlu0 %v8988_v28  ;;  %v9119_v20 = vsel %vm268_vm0, %v9037_v61, 0.0 }
 0xd9a   : > { %13101 = vrcp.f32 %v8817_v2  ;;  %v9116_v8 = vsel %vm268_vm0, %v9036_v40, 0.0 }
 0xd9b   : > { %13103 = vrcp.f32 %v8816_v62 }
 0xd9c   : > { %v13094_v7 = vpop.eup %13093  ;;  %9120 = vadd.xlane.f32.xlu1 %v9119_v20 }
 0xd9d   : > { %v13096_v4 = vpop.eup %13095  ;;  %v18571_v58 = vmul.f32 %v13094_v7, %v18497_v6  ;;  %9117 = vadd.xlane.f32.xlu0 %v9116_v8 }
 0xd9e   : > { %v18574_v10 = vmul.f32 %v13096_v4, %v18500_v27 }
 0xd9f   : > { %v13098_v0 = vpop.eup %13097  ;;  %v8997_v59 = vsel %vm268_vm0, %v18571_v58, 0.0  ;;  %v9039_v24 = vmul.f32 %v18571_v58, %v18571_v58 }
 0xda0   : > { %v13100_v14 = vpop.eup %13099  ;;  %v8819_v17 = vadd.f32 1.0, %v13098_v0  ;;  %8998 = vadd.xlane.f32.xlu1 %v8997_v59  ;;  %v8994_v45 = vsel %vm268_vm0, %v18574_v10, 0.0  ;;  %v9038_v6 = vmul.f32 %v18574_v10, %v18574_v10 }
 0xda1   : > { %v8818_v39 = vadd.f32 1.0, %v13100_v14  ;;  %8995 = vadd.xlane.f32.xlu0 %v8994_v45  ;;  %v9125_v27 = vsel %vm268_vm0, %v9039_v24, 0.0 }
 0xda2   : > { %13105 = vrcp.f32 %v8819_v17  ;;  %v9122_v11 = vsel %vm268_vm0, %v9038_v6, 0.0 }
 0xda3   : > { %13107 = vrcp.f32 %v8818_v39 }
 0xda4   : > { %v13102_v3 = vpop.eup %13101  ;;  %9126 = vadd.xlane.f32.xlu1 %v9125_v27 }
 0xda5   : > { %v13104_v16 = vpop.eup %13103  ;;  %v18587_v53 = vmul.f32 %v13102_v3, %v18521_v30  ;;  %9123 = vadd.xlane.f32.xlu0 %v9122_v11 }
 0xda6   : > { %v18590_v49 = vmul.f32 %v13104_v16, %v18524_v26 }
 0xda7   : > { %v9003_v38 = vsel %vm268_vm0, %v18587_v53, 0.0  ;;  %v9041_v42 = vmul.f32 %v18587_v53, %v18587_v53 }
 0xda8   : > { %9004 = vadd.xlane.f32.xlu1 %v9003_v38  ;;  %v9000_v21 = vsel %vm268_vm0, %v18590_v49, 0.0  ;;  %v9040_v36 = vmul.f32 %v18590_v49, %v18590_v49 }
 0xda9   : > { %9001 = vadd.xlane.f32.xlu0 %v9000_v21  ;;  %v9131_v30 = vsel %vm268_vm0, %v9041_v42, 0.0 }
 0xdaa   : > { %v9128_v26 = vsel %vm268_vm0, %v9040_v36, 0.0 }
 0xdac   : > { %v13106_v22 = vpop.eup %13105  ;;  %9132 = vadd.xlane.f32.xlu1 %v9131_v30 }
 0xdad   : > { %v13108_v25 = vpop.eup %13107  ;;  %v18603_v33 = vmul.f32 %v13106_v22, %v18545_v29  ;;  %9129 = vadd.xlane.f32.xlu0 %v9128_v26 }
 0xdae   : > { %v18606_v1 = vmul.f32 %v13108_v25, %v18548_v43 }
 0xdaf   : > { %v9009_v61 = vsel %vm268_vm0, %v18603_v33, 0.0  ;;  %v9043_v12 = vmul.f32 %v18603_v33, %v18603_v33 }
 0xdb0   : > { %9010 = vadd.xlane.f32.xlu1 %v9009_v61  ;;  %v9006_v2 = vsel %vm268_vm0, %v18606_v1, 0.0  ;;  %v9042_v28 = vmul.f32 %v18606_v1, %v18606_v1 }
 0xdb1   : > { %9007 = vadd.xlane.f32.xlu0 %v9006_v2  ;;  %v9137_v29 = vsel %vm268_vm0, %v9043_v12, 0.0 }
 0xdb2   : > { %v9134_v43 = vsel %vm268_vm0, %v9042_v28, 0.0 }
 0xdb4   : > { %9138 = vadd.xlane.f32.xlu1 %v9137_v29 }
 0xdb5   : > { %9135 = vadd.xlane.f32.xlu0 %v9134_v43 }
 0xdc5   : > { %v8921_v40 = vpop.xlane.xlu1 %8920 }
 0xdc6   : > { %v9141_v62 = vmul.f32 0.025, %v8921_v40  ;;  %v8918_v20 = vpop.xlane.xlu0 %8917 }
 0xdc7   : > { %v9140_v7 = vmul.f32 0.025, %v8918_v20 }
 0xdc8   : > { %v9205_v4 = vmul.f32 %v9141_v62, %v9141_v62  ;;  %v9333_v40 = vsub.f32 %v18254_v56, %v9141_v62 }
 0xdc9   : > { %v9049_v8 = vpop.xlane.xlu1 %9048  ;;  %v9204_v24 = vmul.f32 %v9140_v7, %v9140_v7 }
 0xdca   : > { %v9173_v0 = vmul.f32 0.025, %v9049_v8  ;;  %v9046_v59 = vpop.xlane.xlu0 %9045 }
 0xdcb   : > { %v9172_v14 = vmul.f32 0.025, %v9046_v59 }
 0xdcc   : > { %v9237_v17 = vsub.f32 %v9173_v0, %v9205_v4  ;;  %v9332_v4 = vsub.f32 %v18256_v35, %v9140_v7  ;;  %v18631_v0 = vld [vmem:[%s19019_s2 + $0x14] ss:$0 sm:$0xff] }
 0xdcd   : > { %v9236_v45 = vsub.f32 %v9172_v14, %v9204_v24  ;;  %v8927_v6 = vpop.xlane.xlu1 %8926 }
 0xdce   : > { %v9269_v39 = vadd.f32 1e-05, %v9237_v17  ;;  %v18618_v27 = vmul.f32 0.025, %v8927_v6  ;;  %v8924_v3 = vpop.xlane.xlu0 %8923 }
 0xdcf   : > { %v9268_v11 = vadd.f32 1e-05, %v9236_v45  ;;  %v9142_v16 = vmul.f32 0.025, %v8924_v3 }
 0xdd0   : > { %13109 = vrsqrt.f32 %v9269_v39  ;;  %v9207_v42 = vmul.f32 %v18618_v27, %v18618_v27 }
 0xdd1   : > { %13111 = vrsqrt.f32 %v9268_v11  ;;  %v9055_v38 = vpop.xlane.xlu1 %9054  ;;  %v9206_v30 = vmul.f32 %v9142_v16, %v9142_v16  ;;  %v18641_v11 = vld [vmem:[%s19019_s2 + $0x18] ss:$0 sm:$0xff] }
 0xdd2   : > { %v9175_v21 = vmul.f32 0.025, %v9055_v38  ;;  %v9052_v36 = vpop.xlane.xlu0 %9051 }
 0xdd3   : > { %v9174_v22 = vmul.f32 0.025, %v9052_v36 }
 0xdd4   : > { %v9239_v26 = vsub.f32 %v9175_v21, %v9207_v42 }
 0xdd5   : > { %v9238_v25 = vsub.f32 %v9174_v22, %v9206_v30  ;;  %v8933_v61 = vpop.xlane.xlu1 %8932 }
 0xdd6   : > { %v9271_v12 = vadd.f32 1e-05, %v9239_v26  ;;  %v18622_v2 = vmul.f32 0.025, %v8933_v61  ;;  %v8930_v28 = vpop.xlane.xlu0 %8929 }
 0xdd7   : > { %v9270_v29 = vadd.f32 1e-05, %v9238_v25  ;;  %v18624_v43 = vmul.f32 0.025, %v8930_v28  ;;  %v9335_v25 = vsub.f32 %v18276_v54, %v18618_v27 }
 0xdd8   : > { %13113 = vrsqrt.f32 %v9271_v12  ;;  %v9209_v59 = vmul.f32 %v18622_v2, %v18622_v2 }
 0xdd9   : > { %13115 = vrsqrt.f32 %v9270_v29  ;;  %v9061_v20 = vpop.xlane.xlu1 %9060  ;;  %v9208_v56 = vmul.f32 %v18624_v43, %v18624_v43  ;;  %v9334_v29 = vsub.f32 %v18279_v55, %v9142_v16 }
 0xdda   : > { %v13110_v8 = vpop.eup %13109  ;;  %v9177_v24 = vmul.f32 0.025, %v9061_v20  ;;  %v9058_v14 = vpop.xlane.xlu0 %9057 }
 0xddb   : > { %v13112_v17 = vpop.eup %13111  ;;  %v9365_v45 = vmul.f32 %v13110_v8, %v9333_v40  ;;  %v9176_v62 = vmul.f32 0.025, %v9058_v14 }
 0xddc   : > { %v9241_v6 = vsub.f32 %v9177_v24, %v9209_v59  ;;  %v9364_v39 = vmul.f32 %v13112_v17, %v9332_v4 }
 0xddd   : > { %v9402_v35 = vmul.f32 %v18631_v0, %v9365_v45  ;;  %v9240_v7 = vsub.f32 %v9176_v62, %v9208_v56  ;;  %v8939_v3 = vpop.xlane.xlu1 %8938 }
 0xdde   : > { %v9273_v38 = vadd.f32 1e-05, %v9241_v6  ;;  %v18643_v42 = vmul.f32 0.025, %v8939_v3  ;;  %v8936_v21 = vpop.xlane.xlu0 %8935  ;;  %v9401_v36 = vmul.f32 %v18631_v0, %v9364_v39  ;;  %v9337_v3 = vsub.f32 %v18300_v18, %v18622_v2 }
 0xddf   : > { %v9272_v30 = vadd.f32 1e-05, %v9240_v7  ;;  %v18646_v22 = vmul.f32 0.025, %v8936_v21  ;;  %v9439_v12 = vadd.f32 %v18641_v11, %v9402_v35 }
 0xde0   : > { %13117 = vrsqrt.f32 %v9273_v38  ;;  %v9438_v26 = vadd.f32 %v18641_v11, %v9401_v36  ;;  %v9211_v40 = vmul.f32 %v18643_v42, %v18643_v42 }
 0xde1   : > { %13119 = vrsqrt.f32 %v9272_v30  ;;  %v9067_v61 = vpop.xlane.xlu1 %9066  ;;  %v9210_v59 = vmul.f32 %v18646_v22, %v18646_v22  ;;  %v9336_v30 = vsub.f32 %v18303_v63, %v18624_v43 }
 0xde2   : > { %v13114_v28 = vpop.eup %13113  ;;  %v9179_v20 = vmul.f32 0.025, %v9067_v61  ;;  %11468 = vmatprep.mubr.msk.f32.mxu1 %vm268_vm0, %v9438_v26  ;;  %v9064_v8 = vpop.xlane.xlu0 %9063 }
 0xde3   : > { %v13116_v4 = vpop.eup %13115  ;;  %v9178_v24 = vmul.f32 0.025, %v9064_v8  ;;  %11469 = vmatmul.mubr.msk.f32.vlgmr.msra.gmra.mrb[128].mxu1 %vm268_vm0, %v9439_v12  ;;  %v9367_v54 = vmul.f32 %v13114_v28, %v9335_v25 }
 0xde4   : > { %v9243_v27 = vsub.f32 %v9179_v20, %v9211_v40  ;;  %v9366_v14 = vmul.f32 %v13116_v4, %v9334_v29 }
 0xde5   : > { %v9242_v17 = vsub.f32 %v9178_v24, %v9210_v59  ;;  %v8945_v45 = vpop.xlane.xlu1 %8944  ;;  %v9404_v55 = vmul.f32 %v18631_v0, %v9367_v54 }
 0xde6   : > { %v9275_v16 = vadd.f32 1e-05, %v9243_v27  ;;  %v18660_v56 = vmul.f32 0.025, %v8945_v45  ;;  %v8942_v62 = vpop.xlane.xlu0 %8941  ;;  %v9403_v6 = vmul.f32 %v18631_v0, %v9366_v14 }
 0xde7   : > { %v9274_v39 = vadd.f32 1e-05, %v9242_v17  ;;  %v18663_v35 = vmul.f32 0.025, %v8942_v62  ;;  %v9441_v21 = vadd.f32 %v18641_v11, %v9404_v55  ;;  %v9339_v17 = vsub.f32 %v18324_v31, %v18643_v42 }
 0xde8   : > { %13121 = vrsqrt.f32 %v9275_v16  ;;  %v9440_v7 = vadd.f32 %v18641_v11, %v9403_v6  ;;  %v9213_v26 = vmul.f32 %v18660_v56, %v18660_v56  ;;  %v9338_v62 = vsub.f32 %v18327_v50, %v18646_v22 }
 0xde9   : > { %13123 = vrsqrt.f32 %v9274_v39  ;;  %v9073_v38 = vpop.xlane.xlu1 %9072  ;;  %v9212_v28 = vmul.f32 %v18663_v35, %v18663_v35 }
 0xdea   : > { %v13118_v36 = vpop.eup %13117  ;;  %v9181_v25 = vmul.f32 0.025, %v9073_v38  ;;  %11471 = vmatprep.mubr.msk.f32.mxu1 %vm268_vm0, %v9440_v7  ;;  %v9070_v61 = vpop.xlane.xlu0 %9069 }
 0xdeb   : > { %v13120_v12 = vpop.eup %13119  ;;  %v9180_v18 = vmul.f32 0.025, %v9070_v61  ;;  %11472 = vmatmul.mubr.msk.f32.gmra.mrb[130].mxu1 %vm268_vm0, %v9441_v21  ;;  %v9369_v2 = vmul.f32 %v13118_v36, %v9337_v3 }
 0xdec   : > { %v9245_v29 = vsub.f32 %v9181_v25, %v9213_v26  ;;  %v9368_v40 = vmul.f32 %v13120_v12, %v9336_v30 }
 0xded   : > { %v9244_v20 = vsub.f32 %v9180_v18, %v9212_v28  ;;  %v8951_v8 = vpop.xlane.xlu1 %8950  ;;  %v9406_v63 = vmul.f32 %v18631_v0, %v9369_v2 }
 0xdee   : > { %v9277_v43 = vadd.f32 1e-05, %v9245_v29  ;;  %v18678_v4 = vmul.f32 0.025, %v8951_v8  ;;  %v8948_v59 = vpop.xlane.xlu0 %8947  ;;  %v9405_v24 = vmul.f32 %v18631_v0, %v9368_v40  ;;  %v9341_v29 = vsub.f32 %v18348_v57, %v18660_v56 }
 0xdef   : > { %v9276_v54 = vadd.f32 1e-05, %v9244_v20  ;;  %v18681_v27 = vmul.f32 0.025, %v8948_v59  ;;  %v9443_v55 = vadd.f32 %v18641_v11, %v9406_v63  ;;  %v9340_v63 = vsub.f32 %v18351_v13, %v18663_v35 }
 0xdf0   : > { %13125 = vrsqrt.f32 %v9277_v43  ;;  %v9442_v14 = vadd.f32 %v18641_v11, %v9405_v24  ;;  %v9215_v6 = vmul.f32 %v18678_v4, %v18678_v4 }
 0xdf1   : > { %13127 = vrsqrt.f32 %v9276_v54  ;;  %v9079_v45 = vpop.xlane.xlu1 %9078  ;;  %v9214_v38 = vmul.f32 %v18681_v27, %v18681_v27 }
 0xdf2   : > { %v13122_v16 = vpop.eup %13121  ;;  %v9183_v39 = vmul.f32 0.025, %v9079_v45  ;;  %11474 = vmatprep.mubr.msk.f32.mxu1 %vm268_vm0, %v9442_v14  ;;  %v9076_v7 = vpop.xlane.xlu0 %9075 }
 0xdf3   : > { %v13124_v3 = vpop.eup %13123  ;;  %v9182_v31 = vmul.f32 0.025, %v9076_v7  ;;  %11475 = vmatmul.mubr.msk.f32.gmra.mrb[132].mxu1 %vm268_vm0, %v9443_v55  ;;  %v9371_v42 = vmul.f32 %v13122_v16, %v9339_v17 }
 0xdf4   : > { %v9247_v21 = vsub.f32 %v9183_v39, %v9215_v6  ;;  %v9370_v36 = vmul.f32 %v13124_v3, %v9338_v62 }
 0xdf5   : > { %v9246_v30 = vsub.f32 %v9182_v31, %v9214_v38  ;;  %v8957_v26 = vpop.xlane.xlu1 %8956  ;;  %v9408_v50 = vmul.f32 %v18631_v0, %v9371_v42  ;;  %v9343_v31 = vsub.f32 %v18378_v60, %v18678_v4 }
 0xdf6   : > { %v9279_v22 = vadd.f32 1e-05, %v9247_v21  ;;  %v18696_v25 = vmul.f32 0.025, %v8957_v26  ;;  %v8954_v61 = vpop.xlane.xlu0 %8953  ;;  %v9407_v12 = vmul.f32 %v18631_v0, %v9370_v36 }
 0xdf7   : > { %v9278_v28 = vadd.f32 1e-05, %v9246_v30  ;;  %v18699_v18 = vmul.f32 0.025, %v8954_v61  ;;  %v9445_v20 = vadd.f32 %v18641_v11, %v9408_v50  ;;  %v9342_v30 = vsub.f32 %v18381_v52, %v18681_v27 }
 0xdf8   : > { %13129 = vrsqrt.f32 %v9279_v22  ;;  %v9444_v2 = vadd.f32 %v18641_v11, %v9407_v12  ;;  %v9217_v43 = vmul.f32 %v18696_v25, %v18696_v25 }
 0xdf9   : > { %13131 = vrsqrt.f32 %v9278_v28  ;;  %v9085_v40 = vpop.xlane.xlu1 %9084  ;;  %v9216_v14 = vmul.f32 %v18699_v18, %v18699_v18 }
 0xdfa   : > { %v13126_v8 = vpop.eup %13125  ;;  %v9185_v59 = vmul.f32 0.025, %v9085_v40  ;;  %11477 = vmatprep.mubr.msk.f32.mxu1 %vm268_vm0, %v9444_v2  ;;  %v9082_v24 = vpop.xlane.xlu0 %9081 }
 0xdfb   : > { %v13128_v54 = vpop.eup %13127  ;;  %v9184_v57 = vmul.f32 0.025, %v9082_v24  ;;  %11478 = vmatmul.mubr.msk.f32.gmra.mrb[134].mxu1 %vm268_vm0, %v9445_v20  ;;  %v9373_v56 = vmul.f32 %v13126_v8, %v9341_v29 }
 0xdfc   : > { %v9249_v17 = vsub.f32 %v9185_v59, %v9217_v43  ;;  %v9372_v45 = vmul.f32 %v13128_v54, %v9340_v63  ;;  %v9345_v54 = vsub.f32 %v18411_v19, %v18696_v25 }
 0xdfd   : > { %v9248_v55 = vsub.f32 %v9184_v57, %v9216_v14  ;;  %v8963_v16 = vpop.xlane.xlu1 %8962  ;;  %v9410_v13 = vmul.f32 %v18631_v0, %v9373_v56 }
 0xdfe   : > { %v9281_v35 = vadd.f32 1e-05, %v9249_v17  ;;  %v18714_v62 = vmul.f32 0.025, %v8963_v16  ;;  %v8960_v6 = vpop.xlane.xlu0 %8959  ;;  %v9409_v39 = vmul.f32 %v18631_v0, %v9372_v45  ;;  %v9344_v17 = vsub.f32 %v18414_v44, %v18699_v18 }
 0xdff   : > { %v9280_v7 = vadd.f32 1e-05, %v9248_v55  ;;  %v18717_v3 = vmul.f32 0.025, %v8960_v6  ;;  %v9447_v21 = vadd.f32 %v18641_v11, %v9410_v13 }
 0xe00   : > { %13133 = vrsqrt.f32 %v9281_v35  ;;  %v9446_v38 = vadd.f32 %v18641_v11, %v9409_v39  ;;  %v9219_v26 = vmul.f32 %v18714_v62, %v18714_v62 }
 0xe01   : > { %13135 = vrsqrt.f32 %v9280_v7  ;;  %v9091_v42 = vpop.xlane.xlu1 %9090  ;;  %v9218_v12 = vmul.f32 %v18717_v3, %v18717_v3 }
 0xe02   : > { %v13130_v36 = vpop.eup %13129  ;;  %v9187_v50 = vmul.f32 0.025, %v9091_v42  ;;  %11480 = vmatprep.mubr.msk.f32.mxu1 %vm268_vm0, %v9446_v38  ;;  %v9088_v22 = vpop.xlane.xlu0 %9087 }
 0xe03   : > { %v13132_v61 = vpop.eup %13131  ;;  %v9186_v60 = vmul.f32 0.025, %v9088_v22  ;;  %11481 = vmatmul.mubr.msk.f32.gmra.mrb[136].mxu1 %vm268_vm0, %v9447_v21  ;;  %v9375_v4 = vmul.f32 %v13130_v36, %v9343_v31 }
 0xe04   : > { %v9251_v28 = vsub.f32 %v9187_v50, %v9219_v26  ;;  %v9374_v2 = vmul.f32 %v13132_v61, %v9342_v30  ;;  %v9347_v50 = vsub.f32 %v18435_v48, %v18714_v62 }
 0xe05   : > { %v9250_v29 = vsub.f32 %v9186_v60, %v9218_v12  ;;  %v8969_v40 = vpop.xlane.xlu1 %8968  ;;  %v9412_v52 = vmul.f32 %v18631_v0, %v9375_v4  ;;  %v9346_v60 = vsub.f32 %v18438_v51, %v18717_v3 }
 0xe06   : > { %v9283_v27 = vadd.f32 1e-05, %v9251_v28  ;;  %v18732_v20 = vmul.f32 0.025, %v8969_v40  ;;  %v8966_v8 = vpop.xlane.xlu0 %8965  ;;  %v9411_v63 = vmul.f32 %v18631_v0, %v9374_v2 }
 0xe07   : > { %v9282_v43 = vadd.f32 1e-05, %v9250_v29  ;;  %v18735_v59 = vmul.f32 0.025, %v8966_v8  ;;  %v9449_v57 = vadd.f32 %v18641_v11, %v9412_v52 }
 0xe08   : > { %13137 = vrsqrt.f32 %v9283_v27  ;;  %v9448_v24 = vadd.f32 %v18641_v11, %v9411_v63  ;;  %v9221_v45 = vmul.f32 %v18732_v20, %v18732_v20 }
 0xe09   : > { %13139 = vrsqrt.f32 %v9282_v43  ;;  %v9097_v14 = vpop.xlane.xlu1 %9096  ;;  %v9220_v35 = vmul.f32 %v18735_v59, %v18735_v59 }
 0xe0a   : > { %v13134_v56 = vpop.eup %13133  ;;  %v9189_v55 = vmul.f32 0.025, %v9097_v14  ;;  %11483 = vmatprep.mubr.msk.f32.mxu1 %vm268_vm0, %v9448_v24  ;;  %v9094_v16 = vpop.xlane.xlu0 %9093 }
 0xe0b   : > { %v13136_v13 = vpop.eup %13135  ;;  %v9188_v19 = vmul.f32 0.025, %v9094_v16  ;;  %11484 = vmatmul.mubr.msk.f32.gmra.mrb[138].mxu1 %vm268_vm0, %v9449_v57  ;;  %v9377_v25 = vmul.f32 %v13134_v56, %v9345_v54 }
 0xe0c   : > { %v9253_v6 = vsub.f32 %v9189_v55, %v9221_v45  ;;  %v9376_v39 = vmul.f32 %v13136_v13, %v9344_v17  ;;  %v9349_v17 = vsub.f32 %v18459_v15, %v18732_v20  ;;  %v9348_v13 = vsub.f32 %v18462_v5, %v18735_v59 }
 0xe0d   : > { %v9252_v7 = vsub.f32 %v9188_v19, %v9220_v35  ;;  %v8975_v38 = vpop.xlane.xlu1 %8974  ;;  %v9414_v44 = vmul.f32 %v18631_v0, %v9377_v25 }
 0xe0e   : > { %v9285_v18 = vadd.f32 1e-05, %v9253_v6  ;;  %v18750_v31 = vmul.f32 0.025, %v8975_v38  ;;  %v8972_v42 = vpop.xlane.xlu0 %8971  ;;  %v9413_v21 = vmul.f32 %v18631_v0, %v9376_v39 }
 0xe0f   : > { %v9284_v36 = vadd.f32 1e-05, %v9252_v7  ;;  %v18753_v30 = vmul.f32 0.025, %v8972_v42  ;;  %v9451_v61 = vadd.f32 %v18641_v11, %v9414_v44 }
 0xe10   : > { %13141 = vrsqrt.f32 %v9285_v18  ;;  %v9450_v26 = vadd.f32 %v18641_v11, %v9413_v21  ;;  %v9223_v4 = vmul.f32 %v18750_v31, %v18750_v31 }
 0xe11   : > { %13143 = vrsqrt.f32 %v9284_v36  ;;  %v9103_v22 = vpop.xlane.xlu1 %9102  ;;  %v9222_v40 = vmul.f32 %v18753_v30, %v18753_v30 }
 0xe12   : > { %v13138_v12 = vpop.eup %13137  ;;  %v9191_v28 = vmul.f32 0.025, %v9103_v22  ;;  %11486 = vmatprep.mubr.msk.f32.mxu1 %vm268_vm0, %v9450_v26  ;;  %v9100_v2 = vpop.xlane.xlu0 %9099 }
 0xe13   : > { %v13140_v29 = vpop.eup %13139  ;;  %v9190_v48 = vmul.f32 0.025, %v9100_v2  ;;  %11487 = vmatmul.mubr.msk.f32.gmra.mrb[140].mxu1 %vm268_vm0, %v9451_v61  ;;  %v9379_v62 = vmul.f32 %v13138_v12, %v9347_v50  ;;  %v9351_v61 = vsub.f32 %v18483_v46, %v18750_v31 }
 0xe14   : > { %v9255_v52 = vsub.f32 %v9191_v28, %v9223_v4  ;;  %v9378_v27 = vmul.f32 %v13140_v29, %v9346_v60  ;;  %v9350_v28 = vsub.f32 %v18486_v9, %v18753_v30 }
 0xe15   : > { %v9254_v8 = vsub.f32 %v9190_v48, %v9222_v40  ;;  %v8981_v63 = vpop.xlane.xlu1 %8980  ;;  %v9416_v51 = vmul.f32 %v18631_v0, %v9379_v62 }
 0xe16   : > { %v9287_v3 = vadd.f32 1e-05, %v9255_v52  ;;  %v18768_v43 = vmul.f32 0.025, %v8981_v63  ;;  %v8978_v24 = vpop.xlane.xlu0 %8977  ;;  %v9415_v54 = vmul.f32 %v18631_v0, %v9378_v27 }
 0xe17   : > { %v9286_v14 = vadd.f32 1e-05, %v9254_v8  ;;  %v18771_v57 = vmul.f32 0.025, %v8978_v24  ;;  %v9453_v55 = vadd.f32 %v18641_v11, %v9416_v51 }
 0xe18   : > { %13145 = vrsqrt.f32 %v9287_v3  ;;  %v9452_v56 = vadd.f32 %v18641_v11, %v9415_v54  ;;  %v9225_v35 = vmul.f32 %v18768_v43, %v18768_v43 }
 0xe19   : > { %13147 = vrsqrt.f32 %v9286_v14  ;;  %v9109_v45 = vpop.xlane.xlu1 %9108  ;;  %v9224_v39 = vmul.f32 %v18771_v57, %v18771_v57 }
 0xe1a   : > { %v13142_v16 = vpop.eup %13141  ;;  %v9193_v19 = vmul.f32 0.025, %v9109_v45  ;;  %11489 = vmatprep.mubr.msk.f32.mxu1 %vm268_vm0, %v9452_v56  ;;  %v9106_v25 = vpop.xlane.xlu0 %9105 }
 0xe1b   : > { %v13144_v6 = vpop.eup %13143  ;;  %v9192_v15 = vmul.f32 0.025, %v9106_v25  ;;  %11490 = vmatmul.mubr.msk.f32.gmra.mrb[142].mxu1 %vm268_vm0, %v9453_v55  ;;  %v9381_v20 = vmul.f32 %v13142_v16, %v9349_v17  ;;  %v9353_v17 = vsub.f32 %v18507_v37, %v18768_v43 }
 0xe1c   : > { %v9257_v7 = vsub.f32 %v9193_v19, %v9225_v35  ;;  %v9380_v38 = vmul.f32 %v13144_v6, %v9348_v13  ;;  %v9352_v13 = vsub.f32 %v18510_v23, %v18771_v57 }
 0xe1d   : > { %v9256_v44 = vsub.f32 %v9192_v15, %v9224_v39  ;;  %v8987_v18 = vpop.xlane.xlu1 %8986  ;;  %v9418_v5 = vmul.f32 %v18631_v0, %v9381_v20 }
 0xe1e   : > { %v9289_v59 = vadd.f32 1e-05, %v9257_v7  ;;  %v18786_v42 = vmul.f32 0.025, %v8987_v18  ;;  %v8984_v21 = vpop.xlane.xlu0 %8983  ;;  %v9417_v36 = vmul.f32 %v18631_v0, %v9380_v38 }
 0xe1f   : > { %v9288_v26 = vadd.f32 1e-05, %v9256_v44  ;;  %v18789_v50 = vmul.f32 0.025, %v8984_v21  ;;  %v9455_v60 = vadd.f32 %v18641_v11, %v9418_v5 }
 0xe20   : > { %13149 = vrsqrt.f32 %v9289_v59  ;;  %v9454_v22 = vadd.f32 %v18641_v11, %v9417_v36  ;;  %v9227_v2 = vmul.f32 %v18786_v42, %v18786_v42 }
 0xe21   : > { %13151 = vrsqrt.f32 %v9288_v26  ;;  %v9115_v12 = vpop.xlane.xlu1 %9114  ;;  %v9226_v62 = vmul.f32 %v18789_v50, %v18789_v50  ;;  %v9355_v26 = vsub.f32 %v18531_v34, %v18786_v42 }
 0xe22   : > { %v13146_v4 = vpop.eup %13145  ;;  %v9195_v29 = vmul.f32 0.025, %v9115_v12  ;;  %11492 = vmatprep.mubr.msk.f32.mxu1 %vm268_vm0, %v9454_v22  ;;  %v9112_v40 = vpop.xlane.xlu0 %9111 }
 0xe23   : > { %v13148_v48 = vpop.eup %13147  ;;  %v9194_v46 = vmul.f32 0.025, %v9112_v40  ;;  %11493 = vmatmul.mubr.msk.f32.gmra.mrb[144].mxu1 %vm268_vm0, %v9455_v60  ;;  %v9383_v31 = vmul.f32 %v13146_v4, %v9351_v61  ;;  %v9354_v60 = vsub.f32 %v18534_v47, %v18789_v50 }
 0xe24   : > { %v9259_v52 = vsub.f32 %v9195_v29, %v9227_v2  ;;  %v9382_v27 = vmul.f32 %v13148_v48, %v9350_v28 }
 0xe25   : > { %v9258_v8 = vsub.f32 %v9194_v46, %v9226_v62  ;;  %v8993_v63 = vpop.xlane.xlu1 %8992  ;;  %v9420_v9 = vmul.f32 %v18631_v0, %v9383_v31 }
 0xe26   : > { %v9291_v30 = vadd.f32 1e-05, %v9259_v52  ;;  %v18804_v51 = vmul.f32 0.025, %v8993_v63  ;;  %v8990_v3 = vpop.xlane.xlu0 %8989  ;;  %v9419_v24 = vmul.f32 %v18631_v0, %v9382_v27 }
 0xe27   : > { %v9290_v54 = vadd.f32 1e-05, %v9258_v8  ;;  %v18807_v14 = vmul.f32 0.025, %v8990_v3  ;;  %v9457_v55 = vadd.f32 %v18641_v11, %v9420_v9 }
 0xe28   : > { %13153 = vrsqrt.f32 %v9291_v30  ;;  %v9456_v56 = vadd.f32 %v18641_v11, %v9419_v24  ;;  %v9229_v35 = vmul.f32 %v18804_v51, %v18804_v51  ;;  %v9357_v3 = vsub.f32 %v18555_v41, %v18804_v51 }
 0xe29   : > { %13155 = vrsqrt.f32 %v9290_v54  ;;  %v9121_v45 = vpop.xlane.xlu1 %9120  ;;  %v9228_v39 = vmul.f32 %v18807_v14, %v18807_v14 }
 0xe2a   : > { %v13150_v16 = vpop.eup %13149  ;;  %v9197_v19 = vmul.f32 0.025, %v9121_v45  ;;  %11495 = vmatprep.mubr.msk.f32.mxu1 %vm268_vm0, %v9456_v56  ;;  %v9118_v25 = vpop.xlane.xlu0 %9117 }
 0xe2b   : > { %v13152_v6 = vpop.eup %13151  ;;  %v9196_v37 = vmul.f32 0.025, %v9118_v25  ;;  %11496 = vmatmul.mubr.msk.f32.gmra.mrb[146].mxu1 %vm268_vm0, %v9457_v55  ;;  %v9385_v43 = vmul.f32 %v13150_v16, %v9353_v17  ;;  %v9356_v17 = vsub.f32 %v18558_v32, %v18807_v14 }
 0xe2c   : > { %v9261_v15 = vsub.f32 %v9197_v19, %v9229_v35  ;;  %v9384_v20 = vmul.f32 %v13152_v6, %v9352_v13 }
 0xe2d   : > { %v9260_v7 = vsub.f32 %v9196_v37, %v9228_v39  ;;  %v8999_v38 = vpop.xlane.xlu1 %8998  ;;  %v9422_v23 = vmul.f32 %v18631_v0, %v9385_v43 }
 0xe2e   : > { %v9293_v57 = vadd.f32 1e-05, %v9261_v15  ;;  %v18822_v44 = vmul.f32 0.025, %v8999_v38  ;;  %v8996_v18 = vpop.xlane.xlu0 %8995  ;;  %v9421_v5 = vmul.f32 %v18631_v0, %v9384_v20 }
 0xe2f   : > { %v9292_v59 = vadd.f32 1e-05, %v9260_v7  ;;  %v18825_v21 = vmul.f32 0.025, %v8996_v18  ;;  %v9459_v61 = vadd.f32 %v18641_v11, %v9422_v23 }
 0xe30   : > { %13157 = vrsqrt.f32 %v9293_v57  ;;  %v9458_v36 = vadd.f32 %v18641_v11, %v9421_v5  ;;  %v9231_v4 = vmul.f32 %v18822_v44, %v18822_v44  ;;  %v9359_v23 = vsub.f32 %v18571_v58, %v18822_v44 }
 0xe31   : > { %13159 = vrsqrt.f32 %v9292_v59  ;;  %v9127_v22 = vpop.xlane.xlu1 %9126  ;;  %v9230_v40 = vmul.f32 %v18825_v21, %v18825_v21  ;;  %v9358_v59 = vsub.f32 %v18574_v10, %v18825_v21 }
 0xe32   : > { %v13154_v12 = vpop.eup %13153  ;;  %v9199_v28 = vmul.f32 0.025, %v9127_v22  ;;  %11498 = vmatprep.mubr.msk.f32.mxu1 %vm268_vm0, %v9458_v36  ;;  %v9124_v2 = vpop.xlane.xlu0 %9123 }
 0xe33   : > { %v13156_v29 = vpop.eup %13155  ;;  %v9198_v34 = vmul.f32 0.025, %v9124_v2  ;;  %11499 = vmatmul.mubr.msk.f32.gmra.mrb[148].mxu1 %vm268_vm0, %v9459_v61  ;;  %v9387_v42 = vmul.f32 %v13154_v12, %v9355_v26 }
 0xe34   : > { %v9263_v48 = vsub.f32 %v9199_v28, %v9231_v4  ;;  %v9386_v62 = vmul.f32 %v13156_v29, %v9354_v60 }
 0xe35   : > { %v9262_v46 = vsub.f32 %v9198_v34, %v9230_v40  ;;  %v9005_v31 = vpop.xlane.xlu1 %9004  ;;  %v9424_v47 = vmul.f32 %v18631_v0, %v9387_v42 }
 0xe36   : > { %v9295_v50 = vadd.f32 1e-05, %v9263_v48  ;;  %v18840_v52 = vmul.f32 0.025, %v9005_v31  ;;  %v9002_v27 = vpop.xlane.xlu0 %9001  ;;  %v9423_v8 = vmul.f32 %v18631_v0, %v9386_v62 }
 0xe37   : > { %v9294_v63 = vadd.f32 1e-05, %v9262_v46  ;;  %v18843_v9 = vmul.f32 0.025, %v9002_v27  ;;  %v9461_v54 = vadd.f32 %v18641_v11, %v9424_v47 }
 0xe38   : > { %13161 = vrsqrt.f32 %v9295_v50  ;;  %v9460_v30 = vadd.f32 %v18641_v11, %v9423_v8  ;;  %v9233_v45 = vmul.f32 %v18840_v52, %v18840_v52  ;;  %v9361_v34 = vsub.f32 %v18587_v53, %v18840_v52 }
 0xe39   : > { %13163 = vrsqrt.f32 %v9294_v63  ;;  %v9133_v24 = vpop.xlane.xlu1 %9132  ;;  %v9232_v35 = vmul.f32 %v18843_v9, %v18843_v9  ;;  %v9360_v62 = vsub.f32 %v18590_v49, %v18843_v9 }
 0xe3a   : > { %v13158_v56 = vpop.eup %13157  ;;  %v9201_v55 = vmul.f32 0.025, %v9133_v24  ;;  %11501 = vmatprep.mubr.msk.f32.mxu1 %vm268_vm0, %v9460_v30  ;;  %v9130_v16 = vpop.xlane.xlu0 %9129 }
 0xe3b   : > { %v13160_v13 = vpop.eup %13159  ;;  %v9200_v41 = vmul.f32 0.025, %v9130_v16  ;;  %11502 = vmatmul.mubr.msk.f32.gmra.mrb[150].mxu1 %vm268_vm0, %v9461_v54  ;;  %v9389_v51 = vmul.f32 %v13158_v56, %v9357_v3 }
 0xe3c   : > { %v9265_v19 = vsub.f32 %v9201_v55, %v9233_v45  ;;  %v9388_v25 = vmul.f32 %v13160_v13, %v9356_v17 }
 0xe3d   : > { %v9264_v6 = vsub.f32 %v9200_v41, %v9232_v35  ;;  %v9011_v39 = vpop.xlane.xlu1 %9010  ;;  %v9426_v32 = vmul.f32 %v18631_v0, %v9389_v51 }
 0xe3e   : > { %v9297_v14 = vadd.f32 1e-05, %v9265_v19  ;;  %v9171_v37 = vmul.f32 0.025, %v9011_v39  ;;  %v9008_v43 = vpop.xlane.xlu0 %9007  ;;  %v9425_v15 = vmul.f32 %v18631_v0, %v9388_v25 }
 0xe3f   : > { %v9296_v20 = vadd.f32 1e-05, %v9264_v6  ;;  %v9170_v7 = vmul.f32 0.025, %v9008_v43  ;;  %v9463_v18 = vadd.f32 %v18641_v11, %v9426_v32 }
 0xe40   : > { %13165 = vrsqrt.f32 %v9297_v14  ;;  %v9462_v38 = vadd.f32 %v18641_v11, %v9425_v15  ;;  %v9235_v36 = vmul.f32 %v9171_v37, %v9171_v37  ;;  %v9363_v52 = vsub.f32 %v18603_v33, %v9171_v37 }
 0xe41   : > { %13167 = vrsqrt.f32 %v9296_v20  ;;  %v9139_v57 = vpop.xlane.xlu1 %9138  ;;  %v9234_v12 = vmul.f32 %v9170_v7, %v9170_v7  ;;  %v9362_v63 = vsub.f32 %v18606_v1, %v9170_v7  ;;  %v18897_v1 = vld [vmem:[%s19021_s4] ss:$0 sm:$0xff] }
 0xe42   : > { %v13162_v5 = vpop.eup %13161  ;;  %v9203_v26 = vmul.f32 0.025, %v9139_v57  ;;  %11504 = vmatprep.mubr.msk.f32.mxu1 %vm268_vm0, %v9462_v38  ;;  %v9136_v22 = vpop.xlane.xlu0 %9135 }
 0xe43   : > { %v13164_v61 = vpop.eup %13163  ;;  %v9202_v60 = vmul.f32 0.025, %v9136_v22  ;;  %11505 = vmatmul.mubr.msk.f32.gmra.mrb[152].mxu1 %vm268_vm0, %v9463_v18  ;;  %v9391_v4 = vmul.f32 %v13162_v5, %v9359_v23 }
 0xe44   : > { %v9267_v58 = vsub.f32 %v9203_v26, %v9235_v36  ;;  %v9390_v44 = vmul.f32 %v13164_v61, %v9358_v59 }
 0xe45   : > { %v9266_v28 = vsub.f32 %v9202_v60, %v9234_v12  ;;  %v9428_v2 = vmul.f32 %v18631_v0, %v9391_v4 }
 0xe46   : > { %v9299_v29 = vadd.f32 1e-05, %v9267_v58  ;;  %v9427_v40 = vmul.f32 %v18631_v0, %v9390_v44 }
 0xe47   : > { %v9298_v10 = vadd.f32 1e-05, %v9266_v28  ;;  %v9465_v42 = vadd.f32 %v18641_v11, %v9428_v2 }
 0xe48   : > { %13169 = vrsqrt.f32 %v9299_v29  ;;  %v9464_v21 = vadd.f32 %v18641_v11, %v9427_v40 }
 0xe49   : > { %13171 = vrsqrt.f32 %v9298_v10 }
 0xe4a   : > { %v13166_v48 = vpop.eup %13165  ;;  %11507 = vmatprep.mubr.msk.f32.mxu1 %vm268_vm0, %v9464_v21 }
 0xe4b   : > { %v13168_v46 = vpop.eup %13167  ;;  %11508 = vmatmul.mubr.msk.f32.gmra.mrb[154].mxu1 %vm268_vm0, %v9465_v42  ;;  %v9393_v31 = vmul.f32 %v13166_v48, %v9361_v34 }
 0xe4c   : > { %v9392_v47 = vmul.f32 %v13168_v46, %v9360_v62 }
 0xe4d   : > { %v9430_v50 = vmul.f32 %v18631_v0, %v9393_v31 }
 0xe4e   : > { %v9429_v27 = vmul.f32 %v18631_v0, %v9392_v47 }
 0xe4f   : > { %v9467_v8 = vadd.f32 %v18641_v11, %v9430_v50 }
 0xe50   : > { %v9466_v53 = vadd.f32 %v18641_v11, %v9429_v27 }
 0xe52   : > { %v13170_v49 = vpop.eup %13169  ;;  %11510 = vmatprep.mubr.msk.f32.mxu1 %vm268_vm0, %v9466_v53 }
 0xe53   : > { %v13172_v9 = vpop.eup %13171  ;;  %11511 = vmatmul.mubr.msk.f32.gmra.mrb[156].mxu1 %vm268_vm0, %v9467_v8  ;;  %v9395_v30 = vmul.f32 %v13170_v49, %v9363_v52 }
 0xe54   : > { %v9394_v3 = vmul.f32 %v13172_v9, %v9362_v63 }
 0xe55   : > { %v9432_v24 = vmul.f32 %v18631_v0, %v9395_v30 }
 0xe56   : > { %v9431_v54 = vmul.f32 %v18631_v0, %v9394_v3 }
 0xe57   : > { %v9469_v33 = vadd.f32 %v18641_v11, %v9432_v24 }
 0xe58   : > { %v9468_v56 = vadd.f32 %v18641_v11, %v9431_v54 }
 0xe5a   : > { %11513 = vmatprep.mubr.msk.f32.mxu1 %vm268_vm0, %v9468_v56 }
 0xe5b   : > { %11514 = vmatmul.mubr.msk.f32.gmra.mrb[158].mxu1 %vm268_vm0, %v9469_v33 }
 0xeb6   : > { %v11470_v17 = vpop.f32.mrb[128].mxu1 }
 0xeb7   : > { %v9650_v45 = vadd.f32 %v11470_v17, %v18897_v1  ;;  %v9644_v0 = vpop.f32.mrb[129].mxu1 }
 0xeb8   : > { %v9645_v55 = vadd.f32 %v18897_v1, %v9644_v0 }
 0xeb9   : > { %9804 = vst [vmem:[%s18901_s26 + $0x8] sm:$0xff] %v9650_v45 }
 0xeba   : > { %9803 = vst [vmem:[%s18901_s26] sm:$0xff] %v9645_v55 }
 0xebe   : > { %v11473_v11 = vpop.f32.mrb[130].mxu1 }
 0xebf   : > { %v9660_v16 = vadd.f32 %v11473_v11, %v18897_v1  ;;  %v9654_v13 = vpop.f32.mrb[131].mxu1 }
 0xec0   : > { %v9655_v35 = vadd.f32 %v18897_v1, %v9654_v13 }
 0xec1   : > { %9806 = vst [vmem:[%s18901_s26 + $0x18] sm:$0xff] %v9660_v16 }
 0xec2   : > { %9805 = vst [vmem:[%s18901_s26 + $0x10] sm:$0xff] %v9655_v35 }
 0xec6   : > { %v11476_v41 = vpop.f32.mrb[132].mxu1 }
 0xec7   : > { %v9670_v51 = vadd.f32 %v11476_v41, %v18897_v1  ;;  %v9664_v19 = vpop.f32.mrb[133].mxu1 }
 0xec8   : > { %v9665_v25 = vadd.f32 %v18897_v1, %v9664_v19 }
 0xec9   : > { %9808 = vst [vmem:[%s18901_s26 + $0x28] sm:$0xff] %v9670_v51 }
 0xeca   : > { %9807 = vst [vmem:[%s18901_s26 + $0x20] sm:$0xff] %v9665_v25 }
 0xece   : > { %v11479_v6 = vpop.f32.mrb[134].mxu1 }
 0xecf   : > { %v9680_v39 = vadd.f32 %v11479_v6, %v18897_v1  ;;  %v9674_v32 = vpop.f32.mrb[135].mxu1 }
 0xed0   : > { %v9675_v14 = vadd.f32 %v18897_v1, %v9674_v32 }
 0xed1   : > { %9810 = vst [vmem:[%s18901_s26 + $0x38] sm:$0xff] %v9680_v39 }
 0xed2   : > { %9809 = vst [vmem:[%s18901_s26 + $0x30] sm:$0xff] %v9675_v14 }
 0xed6   : > { %v11482_v37 = vpop.f32.mrb[136].mxu1 }
 0xed7   : > { %v9690_v43 = vadd.f32 %v11482_v37, %v18897_v1  ;;  %v9684_v15 = vpop.f32.mrb[137].mxu1 }
 0xed8   : > { %v9685_v20 = vadd.f32 %v18897_v1, %v9684_v15 }
 0xed9   : > { %9812 = vst [vmem:[%s18901_s26 + $0x48] sm:$0xff] %v9690_v43 }
 0xeda   : > { %9811 = vst [vmem:[%s18901_s26 + $0x40] sm:$0xff] %v9685_v20 }
 0xede   : > { %v11485_v7 = vpop.f32.mrb[138].mxu1 }
 0xedf   : > { %v9700_v38 = vadd.f32 %v11485_v7, %v18897_v1  ;;  %v9694_v23 = vpop.f32.mrb[139].mxu1 }
 0xee0   : > { %v9695_v57 = vadd.f32 %v18897_v1, %v9694_v23 }
 0xee1   : > { %9814 = vst [vmem:[%s18901_s26 + $0x58] sm:$0xff] %v9700_v38 }
 0xee2   : > { %9813 = vst [vmem:[%s18901_s26 + $0x50] sm:$0xff] %v9695_v57 }
 0xee6   : > { %v11488_v18 = vpop.f32.mrb[140].mxu1 }
 0xee7   : > { %v9710_v5 = vadd.f32 %v11488_v18, %v18897_v1  ;;  %v9704_v59 = vpop.f32.mrb[141].mxu1 }
 0xee8   : > { %v9705_v36 = vadd.f32 %v18897_v1, %v9704_v59 }
 0xee9   : > { %9816 = vst [vmem:[%s18901_s26 + $0x68] sm:$0xff] %v9710_v5 }
 0xeea   : > { %9815 = vst [vmem:[%s18901_s26 + $0x60] sm:$0xff] %v9705_v36 }
 0xeee   : > { %v11491_v26 = vpop.f32.mrb[142].mxu1 }
 0xeef   : > { %v9720_v22 = vadd.f32 %v11491_v26, %v18897_v1  ;;  %v9714_v61 = vpop.f32.mrb[143].mxu1 }
 0xef0   : > { %v9715_v12 = vadd.f32 %v18897_v1, %v9714_v61 }
 0xef1   : > { %9818 = vst [vmem:[%s18901_s26 + $0x78] sm:$0xff] %v9720_v22 }
 0xef2   : > { %9817 = vst [vmem:[%s18901_s26 + $0x70] sm:$0xff] %v9715_v12 }
 0xef6   : > { %v11494_v60 = vpop.f32.mrb[144].mxu1 }
 0xef7   : > { %v9730_v4 = vadd.f32 %v11494_v60, %v18897_v1  ;;  %v9724_v58 = vpop.f32.mrb[145].mxu1 }
 0xef8   : > { %v9725_v44 = vadd.f32 %v18897_v1, %v9724_v58 }
 0xef9   : > { %9820 = vst [vmem:[%s18901_s26 + $0x88] sm:$0xff] %v9730_v4 }
 0xefa   : > { %9819 = vst [vmem:[%s18901_s26 + $0x80] sm:$0xff] %v9725_v44 }
 0xefe   : > { %v11497_v28 = vpop.f32.mrb[146].mxu1 }
 0xeff   : > { %v9740_v2 = vadd.f32 %v11497_v28, %v18897_v1  ;;  %v9734_v29 = vpop.f32.mrb[147].mxu1 }
 0xf00   : > { %v9735_v40 = vadd.f32 %v18897_v1, %v9734_v29 }
 0xf01   : > { %9822 = vst [vmem:[%s18901_s26 + $0x98] sm:$0xff] %v9740_v2 }
 0xf02   : > { %9821 = vst [vmem:[%s18901_s26 + $0x90] sm:$0xff] %v9735_v40 }
 0xf06   : > { %v11500_v10 = vpop.f32.mrb[148].mxu1 }
 0xf07   : > { %v9750_v21 = vadd.f32 %v11500_v10, %v18897_v1  ;;  %v9744_v34 = vpop.f32.mrb[149].mxu1 }
 0xf08   : > { %v9745_v42 = vadd.f32 %v18897_v1, %v9744_v34 }
 0xf09   : > { %9824 = vst [vmem:[%s18901_s26 + $0xa8] sm:$0xff] %v9750_v21 }
 0xf0a   : > { %9823 = vst [vmem:[%s18901_s26 + $0xa0] sm:$0xff] %v9745_v42 }
 0xf0e   : > { %v11503_v48 = vpop.f32.mrb[150].mxu1 }
 0xf0f   : > { %v9760_v62 = vadd.f32 %v11503_v48, %v18897_v1  ;;  %v9754_v46 = vpop.f32.mrb[151].mxu1 }
 0xf10   : > { %v9755_v31 = vadd.f32 %v18897_v1, %v9754_v46 }
 0xf11   : > { %9826 = vst [vmem:[%s18901_s26 + $0xb8] sm:$0xff] %v9760_v62 }
 0xf12   : > { %9825 = vst [vmem:[%s18901_s26 + $0xb0] sm:$0xff] %v9755_v31 }
 0xf16   : > { %v11506_v47 = vpop.f32.mrb[152].mxu1 }
 0xf17   : > { %v9770_v50 = vadd.f32 %v11506_v47, %v18897_v1  ;;  %v9764_v27 = vpop.f32.mrb[153].mxu1 }
 0xf18   : > { %v9765_v53 = vadd.f32 %v18897_v1, %v9764_v27 }
 0xf19   : > { %9828 = vst [vmem:[%s18901_s26 + $0xc8] sm:$0xff] %v9770_v50 }
 0xf1a   : > { %9827 = vst [vmem:[%s18901_s26 + $0xc0] sm:$0xff] %v9765_v53 }
 0xf1e   : > { %v11509_v52 = vpop.f32.mrb[154].mxu1 }
 0xf1f   : > { %v9780_v8 = vadd.f32 %v11509_v52, %v18897_v1  ;;  %v9774_v49 = vpop.f32.mrb[155].mxu1 }
 0xf20   : > { %v9775_v63 = vadd.f32 %v18897_v1, %v9774_v49 }
 0xf21   : > { %9830 = vst [vmem:[%s18901_s26 + $0xd8] sm:$0xff] %v9780_v8 }
 0xf22   : > { %9829 = vst [vmem:[%s18901_s26 + $0xd0] sm:$0xff] %v9775_v63 }
 0xf26   : > { %v11512_v9 = vpop.f32.mrb[156].mxu1 }
 0xf27   : > { %v9790_v30 = vadd.f32 %v11512_v9, %v18897_v1  ;;  %v9784_v3 = vpop.f32.mrb[157].mxu1 }
 0xf28   : > { %v9785_v24 = vadd.f32 %v18897_v1, %v9784_v3 }
 0xf29   : > { %9832 = vst [vmem:[%s18901_s26 + $0xe8] sm:$0xff] %v9790_v30 }
 0xf2a   : > { %9831 = vst [vmem:[%s18901_s26 + $0xe0] sm:$0xff] %v9785_v24 }
 0xf2e   : > { %v11515_v54 = vpop.f32.mrb[158].mxu1 }
 0xf2f   : > { %v9800_v56 = vadd.f32 %v11515_v54, %v18897_v1  ;;  %v9794_v33 = vpop.f32.mrb[159].mxu1 }
 0xf30   : > { %v9795_v17 = vadd.f32 %v18897_v1, %v9794_v33 }
 0xf31   : > { %9834 = vst [vmem:[%s18901_s26 + $0xf8] sm:$0xff] %v9800_v56 }
 0xf32   : > { %9833 = vst [vmem:[%s18901_s26 + $0xf0] sm:$0xff] %v9795_v17 }
 0xf33   : > { %13186 = shalt.err (!%p13183_p3)
}
 0xf34   : > { %s13187_s14 = scalar_lea.hbm %s18967_s9, 4096  ;;  %s13191_s17 = scalar_lea.hbm %s19022_s5, 16384 }
 0xf35   : > { %p13188_p4 = scmp.ne.s32.totalorder %s18967_s9, %s13187_s14  ;;  %p13192_p9 = scmp.lt.u32.totalorder %s18967_s9, %s19022_s5 }
 0xf36   : > { %p13193_p10 = scmp.lt.u32.totalorder %s13191_s17, %s13187_s14  ;;  %p13195_p12 = scmp.lt.u32.totalorder %s13187_s14, %s18967_s9 }
 0xf37   : > { %p13189_p7 = pnand %p13188_p4, %p13308_p5 }
 0xf38   : > { %p13194_p11 = por %p13193_p10, %p13192_p9 }
 0xf39   : > { %p13190_p8 = pneg %p13189_p7 }
 0xf3a   : > { %p13196_p13 = por %p13195_p12, %p13194_p11 }
 0xf3c   : > { %p13197_p0 = pnand %p13196_p13, %p13190_p8 }
 0xf3e   : > { %13200 = shalt.err (!%p13197_p0)
}
 0xf3f   : > { %s13238_s26 = smov 128   ;;  %s13239_s30 = smov 8  }
 0xf40   : > { %11596 = dma.vmem_to_hbm [thread:$0]  (%p13308_p5), %s18969_s6, 4096, %s18967_s9, %s18976_s22, %s13238_s26, %s13238_s26, %s13239_s30  }
 0xf41 PF: > { %p11602_p1 = scmp.ge.s32.totalorder %s13235_s21, 2  ;;  %s9864_s7 = sand.u32 1, %s13223_s18  }
 0xf42   : > { %s9865_s8 = scalar_lea.sflag [#allocation3], %s9864_s7 }
 0xf43   : > { %p11599_p2 = pnand %p11602_p1, %p13312_p6 }
 0xf45   : > { %13218 = dma.done.wait (!%p11599_p2), %s9865_s8, 4096  }
 0xf46   : > { %13220 = vsyncadd (!%p11599_p2), %s9865_s8, 4294963200  ;;  %p15_p3 = scmp.ge.s32.totalorder %s13295_s24, 6   ;;  %s19025_s18 = smov %s13227_s19 }
 0xf47   : > { %s19026_s19 = smov %s13231_s20  ;;  %s19027_s20 = smov %s13306_s27 }
 0xf48   : > { %s19028_s21 = smov %s13295_s24  ;;  %17 = sbr.rel (!%p15_p3) target bundleno = 3 (0x3), region = 83 }
 0xf4f   :  { %9870 = vsyncpa [#allocation3], 1 }
 0xf50   :  { %9872 = vsyncpa [#allocation3 + $0x1], 1 }

</bundles_post_ra>
